<compile_context>
chip_gen: v6e
topology: v6e:2x2x1
jax: 0.10.0
libtpu: 0.0.40
codegen_flags: <defaults>
</compile_context>

<pallas_src>
import jax
import jax.numpy as jnp
from jax import lax
from jax.experimental import pallas as pl
from jax.experimental.pallas import tpu as pltpu


def _round_up(x, m):
    return ((x + m - 1) // m) * m


# ---------------------------------------------------------------------------
# Pallas kernels
# ---------------------------------------------------------------------------
def _conv3d_stats_kernel(x0_ref, x1_ref, x2_ref, w_ref, y_ref, sum_ref, ssq_ref):
    """One (n, d) output plane of the 3x3x3 conv + per-plane BN partial stats.

    x{0,1,2}_ref : (1, 1, Hp, Wp, Cip) bf16  padded input depth slices d, d+1, d+2
    w_ref        : (27, Cip, Cop)      bf16  taps ordered (kd, kh, kw)
    y_ref        : (1, 1, H, W, Cop)   bf16  conv output plane
    sum_ref/ssq_ref : (1, 1, 8, Cop)   f32   per-plane partials (row-broadcast; row 0 used)
    """
    Hp, Wp, Ci = x0_ref.shape[2], x0_ref.shape[3], x0_ref.shape[4]
    H, W = Hp - 2, Wp - 2
    Co = w_ref.shape[2]

    acc = jnp.zeros((H * W, Co), jnp.float32)
    x_refs = (x0_ref, x1_ref, x2_ref)
    for kd in range(3):                       # fully unrolled 27-tap accumulation
        for kh in range(3):
            for kw in range(3):
                patch = x_refs[kd][:, :, kh:kh + H, kw:kw + W, :].reshape(H * W, Ci)
                tap = kd * 9 + kh * 3 + kw
                acc += jnp.dot(patch, w_ref[tap],
                               preferred_element_type=jnp.float32)

    y_ref[...] = acc.reshape(1, 1, H, W, Co).astype(y_ref.dtype)

    # BatchNorm partial reductions from the f32 accumulator (before the bf16 cast).
    s = jnp.sum(acc, axis=0, keepdims=True)              # (1, Co)
    sq = jnp.sum(acc * acc, axis=0, keepdims=True)       # (1, Co)
    sum_ref[...] = jnp.broadcast_to(s, (8, Co)).reshape(1, 1, 8, Co)
    ssq_ref[...] = jnp.broadcast_to(sq, (8, Co)).reshape(1, 1, 8, Co)


def _bn_relu_pad_kernel(y_ref, scale_ref, shift_ref, o_ref):
    """Fused scale/shift + ReLU; writes the zero-padded bf16 input of the next conv."""
    D, H, W = y_ref.shape[1], y_ref.shape[2], y_ref.shape[3]
    o_ref[...] = jnp.zeros_like(o_ref)                   # halo (pad) region = 0
    z = jnp.maximum(y_ref[...].astype(jnp.float32) * scale_ref[...] + shift_ref[...], 0.0)
    o_ref[:, 1:1 + D, 1:1 + H, 1:1 + W, :] = z.astype(o_ref.dtype)


def _bn_relu_kernel(y_ref, scale_ref, shift_ref, o_ref):
    """Fused scale/shift + ReLU (final layer, unpadded f32 output)."""
    z = jnp.maximum(y_ref[...].astype(jnp.float32) * scale_ref[...] + shift_ref[...], 0.0)
    o_ref[...] = z.astype(o_ref.dtype)


# ---------------------------------------------------------------------------
# pallas_call wrappers
# ---------------------------------------------------------------------------
def _conv3d_stats(xp, w27):
    N, Dp, Hp, Wp, Ci = xp.shape
    D, H, W = Dp - 2, Hp - 2, Wp - 2
    Co = w27.shape[-1]

    def x_spec(kd):
        # depth slice d + kd of the padded input (block size 1 along depth)
        return pl.BlockSpec((1, 1, Hp, Wp, Ci),
                            lambda n, d, kd=kd: (n, d + kd, 0, 0, 0))

    return pl.pallas_call(
        _conv3d_stats_kernel,
        out_shape=(
            jax.ShapeDtypeStruct((N, D, H, W, Co), jnp.bfloat16),
            jax.ShapeDtypeStruct((N, D, 8, Co), jnp.float32),
            jax.ShapeDtypeStruct((N, D, 8, Co), jnp.float32),
        ),
        grid_spec=pltpu.PrefetchScalarGridSpec(
            num_scalar_prefetch=0,
            grid=(N, D),
            in_specs=[
                x_spec(0), x_spec(1), x_spec(2),
                pl.BlockSpec((27, Ci, Co), lambda n, d: (0, 0, 0)),   # resident weights
            ],
            out_specs=[
                pl.BlockSpec((1, 1, H, W, Co), lambda n, d: (n, d, 0, 0, 0)),
                pl.BlockSpec((1, 1, 8, Co), lambda n, d: (n, d, 0, 0)),
                pl.BlockSpec((1, 1, 8, Co), lambda n, d: (n, d, 0, 0)),
            ],
        ),
        compiler_params=pltpu.CompilerParams(
            # per-tile partial stats -> no cross-step accumulator -> both axes parallel
            dimension_semantics=("parallel", "parallel"),
            vmem_limit_bytes=32 * 1024 * 1024,
        ),
    )(xp, xp, xp, w27)


def _bn_relu_pad(y, scale, shift):
    N, D, H, W, Co = y.shape
    Dp, Hp, Wp = D + 2, H + 2, W + 2
    return pl.pallas_call(
        _bn_relu_pad_kernel,
        out_shape=jax.ShapeDtypeStruct((N, Dp, Hp, Wp, Co), jnp.bfloat16),
        grid_spec=pltpu.PrefetchScalarGridSpec(
            num_scalar_prefetch=0,
            grid=(N,),
            in_specs=[
                pl.BlockSpec((1, D, H, W, Co), lambda n: (n, 0, 0, 0, 0)),
                pl.BlockSpec((1, Co), lambda n: (0, 0)),
                pl.BlockSpec((1, Co), lambda n: (0, 0)),
            ],
            out_specs=pl.BlockSpec((1, Dp, Hp, Wp, Co), lambda n: (n, 0, 0, 0, 0)),
        ),
        compiler_params=pltpu.CompilerParams(
            dimension_semantics=("parallel",),
            vmem_limit_bytes=32 * 1024 * 1024,
        ),
    )(y, scale, shift)


def _bn_relu(y, scale, shift):
    N, D, H, W, Co = y.shape
    return pl.pallas_call(
        _bn_relu_kernel,
        out_shape=jax.ShapeDtypeStruct((N, D, H, W, Co), jnp.float32),
        grid_spec=pltpu.PrefetchScalarGridSpec(
            num_scalar_prefetch=0,
            grid=(N,),
            in_specs=[
                pl.BlockSpec((1, D, H, W, Co), lambda n: (n, 0, 0, 0, 0)),
                pl.BlockSpec((1, Co), lambda n: (0, 0)),
                pl.BlockSpec((1, Co), lambda n: (0, 0)),
            ],
            out_specs=pl.BlockSpec((1, D, H, W, Co), lambda n: (n, 0, 0, 0, 0)),
        ),
        compiler_params=pltpu.CompilerParams(
            dimension_semantics=("parallel",),
            vmem_limit_bytes=32 * 1024 * 1024,
        ),
    )(y, scale, shift)


# ---------------------------------------------------------------------------
# One Conv3d -> BatchNorm3d (batch stats) -> ReLU layer
# ---------------------------------------------------------------------------
def _conv_bn_relu_layer(xp, w, gamma, beta, *, last, eps=1e-5):
    """xp: (N, D+2, H+2, W+2, Cip) bf16 zero-padded NDHWC activation (Cip mult of 128).

    Returns the padded bf16 input of the next layer (last=False) or the final
    unpadded f32 activation (last=True); channel dim padded to a multiple of 128.
    """
    N, Dp, Hp, Wp, Cip = xp.shape
    D, H, W = Dp - 2, Hp - 2, Wp - 2
    Cin, Cout = w.shape[3], w.shape[4]
    Cop = _round_up(Cout, 128)

    # Zero-pad weights to (27, Cip, Cop) and cast to bf16 (lane-dense MXU operands).
    wp = jnp.zeros((3, 3, 3, Cip, Cop), jnp.float32)
    wp = wp.at[:, :, :, :Cin, :Cout].set(w)
    w27 = wp.reshape(27, Cip, Cop).astype(jnp.bfloat16)

    y, psum, pssq = _conv3d_stats(xp, w27)               # Pallas conv + BN partials

    # Reduce per-plane partials (f32) and fold BN into a per-channel scale/shift.
    M = N * D * H * W
    s = jnp.sum(psum[:, :, 0, :], axis=(0, 1))           # (Cop,)
    ss = jnp.sum(pssq[:, :, 0, :], axis=(0, 1))
    mean = s / M
    var = jnp.maximum(ss / M - mean * mean, 0.0)         # biased var (PyTorch BN train)
    inv_std = lax.rsqrt(var + eps)
    gamma_p = jnp.concatenate([gamma, jnp.ones((Cop - Cout,), jnp.float32)])
    beta_p = jnp.concatenate([beta, jnp.zeros((Cop - Cout,), jnp.float32)])
    scale = (gamma_p * inv_std).reshape(1, Cop)
    shift = (beta_p - mean * gamma_p * inv_std).reshape(1, Cop)

    if last:
        return _bn_relu(y, scale, shift)                 # (N, D, H, W, Cop) f32
    return _bn_relu_pad(y, scale, shift)                 # (N, Dp, Hp, Wp, Cop) bf16


@jax.jit
def double_conv3d(x_ncdhw, w1, g1, b1, w2, g2, b2):
    """Forward pass of DoubleConv3D. Input/output layout: NCDHW (PyTorch)."""
    N, Cin, D, H, W = x_ncdhw.shape
    Cout = w2.shape[4]
    Cip = _round_up(Cin, 128)

    x = jnp.transpose(x_ncdhw, (0, 2, 3, 4, 1))          # NCDHW -> NDHWC
    # zero-pad spatial dims by 1 and channels to a multiple of 128, cast to bf16
    xp = jnp.pad(x, ((0, 0), (1, 1), (1, 1), (1, 1), (0, Cip - Cin))).astype(jnp.bfloat16)

    x2p = _conv_bn_relu_layer(xp, w1, g1, b1, last=False)
    z = _conv_bn_relu_layer(x2p, w2, g2, b2, last=True)  # (N, D, H, W, Cop) f32

    z = z[..., :Cout]
    return jnp.transpose(z, (0, 4, 1, 2, 3))             # NDHWC -> NCDHW


# ---------------------------------------------------------------------------
# Deterministic parameter init (shapes from the PyTorch module __init__)
# ---------------------------------------------------------------------------
def init_params(key, in_channels, out_channels):
    k1, k2 = jax.random.split(key)
    # Conv weights stored as (kd, kh, kw, Cin, Cout)  [= PyTorch weight.permute(2,3,4,1,0)]
    fan_in1 = in_channels * 27
    fan_in2 = out_channels * 27
    w1 = jax.random.uniform(k1, (3, 3, 3, in_channels, out_channels),
                            jnp.float32, -1.0 / jnp.sqrt(fan_in1), 1.0 / jnp.sqrt(fan_in1))
    w2 = jax.random.uniform(k2, (3, 3, 3, out_channels, out_channels),
                            jnp.float32, -1.0 / jnp.sqrt(fan_in2), 1.0 / jnp.sqrt(fan_in2))
    # BatchNorm3d defaults: weight=1, bias=0
    g1 = jnp.ones((out_channels,), jnp.float32)
    b1 = jnp.zeros((out_channels,), jnp.float32)
    g2 = jnp.ones((out_channels,), jnp.float32)
    b2 = jnp.zeros((out_channels,), jnp.float32)
    return w1, g1, b1, w2, g2, b2


if __name__ == "__main__":
    key = jax.random.PRNGKey(0)
    kx, kp = jax.random.split(key)

    N, Cin, Cout, D, H, W = 2, 4, 8, 8, 8, 8
    x = jax.random.normal(kx, (N, Cin, D, H, W), jnp.float32)   # PyTorch NCDHW input

    params = init_params(kp, Cin, Cout)

    out = double_conv3d(x, *params)
    out = jax.block_until_ready(out)
    assert out.shape == (N, Cout, D, H, W)
    print("KERNEL_OK")
</pallas_src>

<mosaic_0001>
module attributes {stable_mosaic.version = 11 : i64} {
  func.func @_conv3d_stats_kernel(%arg0: i32, %arg1: i32, %arg2: memref<1x1x10x10x128xbf16, #tpu.memory_space<vmem>>, %arg3: memref<1x1x10x10x128xbf16, #tpu.memory_space<vmem>>, %arg4: memref<1x1x10x10x128xbf16, #tpu.memory_space<vmem>>, %arg5: memref<27x128x128xbf16, #tpu.memory_space<vmem>>, %arg6: memref<1x1x8x8x128xbf16, #tpu.memory_space<vmem>>, %arg7: memref<1x1x8x128xf32, #tpu.memory_space<vmem>>, %arg8: memref<1x1x8x128xf32, #tpu.memory_space<vmem>>) attributes {dimension_semantics = [#tpu.dimension_semantics<parallel>, #tpu.dimension_semantics<parallel>], iteration_bounds = array<i64: 2, 8>, scalar_prefetch = 0 : i64, scratch_operands = 0 : i64, tpu.core_type = #tpu.core_type<tc>, window_params = [{transform_indices = @transform_0, window_bounds = array<i64: 1, 1, 10, 10, 128>}, {transform_indices = @transform_1, window_bounds = array<i64: 1, 1, 10, 10, 128>}, {transform_indices = @transform_2, window_bounds = array<i64: 1, 1, 10, 10, 128>}, {pipeline_mode = #tpu.pipeline_mode<synchronous>, transform_indices = @transform_3, window_bounds = array<i64: 27, 128, 128>}, {transform_indices = @transform_4, window_bounds = array<i64: 1, 1, 8, 8, 128>}, {transform_indices = @transform_5, window_bounds = array<i64: 1, 1, 8, 128>}, {transform_indices = @transform_6, window_bounds = array<i64: 1, 1, 8, 128>}]} {
    %cst = arith.constant 0.000000e+00 : f32
    %0 = vector.broadcast %cst : f32 to vector<64x128xf32>
    %c0 = arith.constant 0 : index
    %c0_0 = arith.constant 0 : index
    %c0_1 = arith.constant 0 : index
    %c0_2 = arith.constant 0 : index
    %c0_3 = arith.constant 0 : index
    %1 = vector.load %arg2[%c0, %c0_0, %c0_1, %c0_2, %c0_3] : memref<1x1x10x10x128xbf16, #tpu.memory_space<vmem>>, vector<1x1x8x8x128xbf16>
    %2 = vector.shape_cast %1 : vector<1x1x8x8x128xbf16> to vector<64x128xbf16>
    %c0_4 = arith.constant 0 : index
    %c0_5 = arith.constant 0 : index
    %c0_6 = arith.constant 0 : index
    %3 = vector.load %arg5[%c0_4, %c0_5, %c0_6] : memref<27x128x128xbf16, #tpu.memory_space<vmem>>, vector<1x128x128xbf16>
    %4 = vector.shape_cast %3 : vector<1x128x128xbf16> to vector<128x128xbf16>
    %cst_7 = arith.constant dense<0.000000e+00> : vector<64x128xf32>
    %5 = tpu.matmul %2, %4, %cst_7 {dimension_numbers = #tpu.dot_dimension_numbers<[1], [0], [0], [1], [0, 0, 1, 1], [], []>} : vector<64x128xbf16>, vector<128x128xbf16>, vector<64x128xf32> -> vector<64x128xf32>
    %6 = arith.addf %0, %5 : vector<64x128xf32>
    %c0_8 = arith.constant 0 : index
    %c0_9 = arith.constant 0 : index
    %c0_10 = arith.constant 0 : index
    %c1 = arith.constant 1 : index
    %c0_11 = arith.constant 0 : index
    %7 = vector.load %arg2[%c0_8, %c0_9, %c0_10, %c1, %c0_11] : memref<1x1x10x10x128xbf16, #tpu.memory_space<vmem>>, vector<1x1x8x8x128xbf16>
    %8 = vector.shape_cast %7 : vector<1x1x8x8x128xbf16> to vector<64x128xbf16>
    %c1_12 = arith.constant 1 : index
    %c0_13 = arith.constant 0 : index
    %c0_14 = arith.constant 0 : index
    %9 = vector.load %arg5[%c1_12, %c0_13, %c0_14] : memref<27x128x128xbf16, #tpu.memory_space<vmem>>, vector<1x128x128xbf16>
    %10 = vector.shape_cast %9 : vector<1x128x128xbf16> to vector<128x128xbf16>
    %cst_15 = arith.constant dense<0.000000e+00> : vector<64x128xf32>
    %11 = tpu.matmul %8, %10, %cst_15 {dimension_numbers = #tpu.dot_dimension_numbers<[1], [0], [0], [1], [0, 0, 1, 1], [], []>} : vector<64x128xbf16>, vector<128x128xbf16>, vector<64x128xf32> -> vector<64x128xf32>
    %12 = arith.addf %6, %11 : vector<64x128xf32>
    %c0_16 = arith.constant 0 : index
    %c0_17 = arith.constant 0 : index
    %c0_18 = arith.constant 0 : index
    %c2 = arith.constant 2 : index
    %c0_19 = arith.constant 0 : index
    %13 = vector.load %arg2[%c0_16, %c0_17, %c0_18, %c2, %c0_19] : memref<1x1x10x10x128xbf16, #tpu.memory_space<vmem>>, vector<1x1x8x8x128xbf16>
    %14 = vector.shape_cast %13 : vector<1x1x8x8x128xbf16> to vector<64x128xbf16>
    %c2_20 = arith.constant 2 : index
    %c0_21 = arith.constant 0 : index
    %c0_22 = arith.constant 0 : index
    %15 = vector.load %arg5[%c2_20, %c0_21, %c0_22] : memref<27x128x128xbf16, #tpu.memory_space<vmem>>, vector<1x128x128xbf16>
    %16 = vector.shape_cast %15 : vector<1x128x128xbf16> to vector<128x128xbf16>
    %cst_23 = arith.constant dense<0.000000e+00> : vector<64x128xf32>
    %17 = tpu.matmul %14, %16, %cst_23 {dimension_numbers = #tpu.dot_dimension_numbers<[1], [0], [0], [1], [0, 0, 1, 1], [], []>} : vector<64x128xbf16>, vector<128x128xbf16>, vector<64x128xf32> -> vector<64x128xf32>
    %18 = arith.addf %12, %17 : vector<64x128xf32>
    %c0_24 = arith.constant 0 : index
    %c0_25 = arith.constant 0 : index
    %c1_26 = arith.constant 1 : index
    %c0_27 = arith.constant 0 : index
    %c0_28 = arith.constant 0 : index
    %19 = vector.load %arg2[%c0_24, %c0_25, %c1_26, %c0_27, %c0_28] : memref<1x1x10x10x128xbf16, #tpu.memory_space<vmem>>, vector<1x1x8x8x128xbf16>
    %20 = vector.shape_cast %19 : vector<1x1x8x8x128xbf16> to vector<64x128xbf16>
    %c3 = arith.constant 3 : index
    %c0_29 = arith.constant 0 : index
    %c0_30 = arith.constant 0 : index
    %21 = vector.load %arg5[%c3, %c0_29, %c0_30] : memref<27x128x128xbf16, #tpu.memory_space<vmem>>, vector<1x128x128xbf16>
    %22 = vector.shape_cast %21 : vector<1x128x128xbf16> to vector<128x128xbf16>
    %cst_31 = arith.constant dense<0.000000e+00> : vector<64x128xf32>
    %23 = tpu.matmul %20, %22, %cst_31 {dimension_numbers = #tpu.dot_dimension_numbers<[1], [0], [0], [1], [0, 0, 1, 1], [], []>} : vector<64x128xbf16>, vector<128x128xbf16>, vector<64x128xf32> -> vector<64x128xf32>
    %24 = arith.addf %18, %23 : vector<64x128xf32>
    %c0_32 = arith.constant 0 : index
    %c0_33 = arith.constant 0 : index
    %c1_34 = arith.constant 1 : index
    %c1_35 = arith.constant 1 : index
    %c0_36 = arith.constant 0 : index
    %25 = vector.load %arg2[%c0_32, %c0_33, %c1_34, %c1_35, %c0_36] : memref<1x1x10x10x128xbf16, #tpu.memory_space<vmem>>, vector<1x1x8x8x128xbf16>
    %26 = vector.shape_cast %25 : vector<1x1x8x8x128xbf16> to vector<64x128xbf16>
    %c4 = arith.constant 4 : index
    %c0_37 = arith.constant 0 : index
    %c0_38 = arith.constant 0 : index
    %27 = vector.load %arg5[%c4, %c0_37, %c0_38] : memref<27x128x128xbf16, #tpu.memory_space<vmem>>, vector<1x128x128xbf16>
    %28 = vector.shape_cast %27 : vector<1x128x128xbf16> to vector<128x128xbf16>
    %cst_39 = arith.constant dense<0.000000e+00> : vector<64x128xf32>
    %29 = tpu.matmul %26, %28, %cst_39 {dimension_numbers = #tpu.dot_dimension_numbers<[1], [0], [0], [1], [0, 0, 1, 1], [], []>} : vector<64x128xbf16>, vector<128x128xbf16>, vector<64x128xf32> -> vector<64x128xf32>
    %30 = arith.addf %24, %29 : vector<64x128xf32>
    %c0_40 = arith.constant 0 : index
    %c0_41 = arith.constant 0 : index
    %c1_42 = arith.constant 1 : index
    %c2_43 = arith.constant 2 : index
    %c0_44 = arith.constant 0 : index
    %31 = vector.load %arg2[%c0_40, %c0_41, %c1_42, %c2_43, %c0_44] : memref<1x1x10x10x128xbf16, #tpu.memory_space<vmem>>, vector<1x1x8x8x128xbf16>
    %32 = vector.shape_cast %31 : vector<1x1x8x8x128xbf16> to vector<64x128xbf16>
    %c5 = arith.constant 5 : index
    %c0_45 = arith.constant 0 : index
    %c0_46 = arith.constant 0 : index
    %33 = vector.load %arg5[%c5, %c0_45, %c0_46] : memref<27x128x128xbf16, #tpu.memory_space<vmem>>, vector<1x128x128xbf16>
    %34 = vector.shape_cast %33 : vector<1x128x128xbf16> to vector<128x128xbf16>
    %cst_47 = arith.constant dense<0.000000e+00> : vector<64x128xf32>
    %35 = tpu.matmul %32, %34, %cst_47 {dimension_numbers = #tpu.dot_dimension_numbers<[1], [0], [0], [1], [0, 0, 1, 1], [], []>} : vector<64x128xbf16>, vector<128x128xbf16>, vector<64x128xf32> -> vector<64x128xf32>
    %36 = arith.addf %30, %35 : vector<64x128xf32>
    %c0_48 = arith.constant 0 : index
    %c0_49 = arith.constant 0 : index
    %c2_50 = arith.constant 2 : index
    %c0_51 = arith.constant 0 : index
    %c0_52 = arith.constant 0 : index
    %37 = vector.load %arg2[%c0_48, %c0_49, %c2_50, %c0_51, %c0_52] : memref<1x1x10x10x128xbf16, #tpu.memory_space<vmem>>, vector<1x1x8x8x128xbf16>
    %38 = vector.shape_cast %37 : vector<1x1x8x8x128xbf16> to vector<64x128xbf16>
    %c6 = arith.constant 6 : index
    %c0_53 = arith.constant 0 : index
    %c0_54 = arith.constant 0 : index
    %39 = vector.load %arg5[%c6, %c0_53, %c0_54] : memref<27x128x128xbf16, #tpu.memory_space<vmem>>, vector<1x128x128xbf16>
    %40 = vector.shape_cast %39 : vector<1x128x128xbf16> to vector<128x128xbf16>
    %cst_55 = arith.constant dense<0.000000e+00> : vector<64x128xf32>
    %41 = tpu.matmul %38, %40, %cst_55 {dimension_numbers = #tpu.dot_dimension_numbers<[1], [0], [0], [1], [0, 0, 1, 1], [], []>} : vector<64x128xbf16>, vector<128x128xbf16>, vector<64x128xf32> -> vector<64x128xf32>
    %42 = arith.addf %36, %41 : vector<64x128xf32>
    %c0_56 = arith.constant 0 : index
    %c0_57 = arith.constant 0 : index
    %c2_58 = arith.constant 2 : index
    %c1_59 = arith.constant 1 : index
    %c0_60 = arith.constant 0 : index
    %43 = vector.load %arg2[%c0_56, %c0_57, %c2_58, %c1_59, %c0_60] : memref<1x1x10x10x128xbf16, #tpu.memory_space<vmem>>, vector<1x1x8x8x128xbf16>
    %44 = vector.shape_cast %43 : vector<1x1x8x8x128xbf16> to vector<64x128xbf16>
    %c7 = arith.constant 7 : index
    %c0_61 = arith.constant 0 : index
    %c0_62 = arith.constant 0 : index
    %45 = vector.load %arg5[%c7, %c0_61, %c0_62] : memref<27x128x128xbf16, #tpu.memory_space<vmem>>, vector<1x128x128xbf16>
    %46 = vector.shape_cast %45 : vector<1x128x128xbf16> to vector<128x128xbf16>
    %cst_63 = arith.constant dense<0.000000e+00> : vector<64x128xf32>
    %47 = tpu.matmul %44, %46, %cst_63 {dimension_numbers = #tpu.dot_dimension_numbers<[1], [0], [0], [1], [0, 0, 1, 1], [], []>} : vector<64x128xbf16>, vector<128x128xbf16>, vector<64x128xf32> -> vector<64x128xf32>
    %48 = arith.addf %42, %47 : vector<64x128xf32>
    %c0_64 = arith.constant 0 : index
    %c0_65 = arith.constant 0 : index
    %c2_66 = arith.constant 2 : index
    %c2_67 = arith.constant 2 : index
    %c0_68 = arith.constant 0 : index
    %49 = vector.load %arg2[%c0_64, %c0_65, %c2_66, %c2_67, %c0_68] : memref<1x1x10x10x128xbf16, #tpu.memory_space<vmem>>, vector<1x1x8x8x128xbf16>
    %50 = vector.shape_cast %49 : vector<1x1x8x8x128xbf16> to vector<64x128xbf16>
    %c8 = arith.constant 8 : index
    %c0_69 = arith.constant 0 : index
    %c0_70 = arith.constant 0 : index
    %51 = vector.load %arg5[%c8, %c0_69, %c0_70] : memref<27x128x128xbf16, #tpu.memory_space<vmem>>, vector<1x128x128xbf16>
    %52 = vector.shape_cast %51 : vector<1x128x128xbf16> to vector<128x128xbf16>
    %cst_71 = arith.constant dense<0.000000e+00> : vector<64x128xf32>
    %53 = tpu.matmul %50, %52, %cst_71 {dimension_numbers = #tpu.dot_dimension_numbers<[1], [0], [0], [1], [0, 0, 1, 1], [], []>} : vector<64x128xbf16>, vector<128x128xbf16>, vector<64x128xf32> -> vector<64x128xf32>
    %54 = arith.addf %48, %53 : vector<64x128xf32>
    %c0_72 = arith.constant 0 : index
    %c0_73 = arith.constant 0 : index
    %c0_74 = arith.constant 0 : index
    %c0_75 = arith.constant 0 : index
    %c0_76 = arith.constant 0 : index
    %55 = vector.load %arg3[%c0_72, %c0_73, %c0_74, %c0_75, %c0_76] : memref<1x1x10x10x128xbf16, #tpu.memory_space<vmem>>, vector<1x1x8x8x128xbf16>
    %56 = vector.shape_cast %55 : vector<1x1x8x8x128xbf16> to vector<64x128xbf16>
    %c9 = arith.constant 9 : index
    %c0_77 = arith.constant 0 : index
    %c0_78 = arith.constant 0 : index
    %57 = vector.load %arg5[%c9, %c0_77, %c0_78] : memref<27x128x128xbf16, #tpu.memory_space<vmem>>, vector<1x128x128xbf16>
    %58 = vector.shape_cast %57 : vector<1x128x128xbf16> to vector<128x128xbf16>
    %cst_79 = arith.constant dense<0.000000e+00> : vector<64x128xf32>
    %59 = tpu.matmul %56, %58, %cst_79 {dimension_numbers = #tpu.dot_dimension_numbers<[1], [0], [0], [1], [0, 0, 1, 1], [], []>} : vector<64x128xbf16>, vector<128x128xbf16>, vector<64x128xf32> -> vector<64x128xf32>
    %60 = arith.addf %54, %59 : vector<64x128xf32>
    %c0_80 = arith.constant 0 : index
    %c0_81 = arith.constant 0 : index
    %c0_82 = arith.constant 0 : index
    %c1_83 = arith.constant 1 : index
    %c0_84 = arith.constant 0 : index
    %61 = vector.load %arg3[%c0_80, %c0_81, %c0_82, %c1_83, %c0_84] : memref<1x1x10x10x128xbf16, #tpu.memory_space<vmem>>, vector<1x1x8x8x128xbf16>
    %62 = vector.shape_cast %61 : vector<1x1x8x8x128xbf16> to vector<64x128xbf16>
    %c10 = arith.constant 10 : index
    %c0_85 = arith.constant 0 : index
    %c0_86 = arith.constant 0 : index
    %63 = vector.load %arg5[%c10, %c0_85, %c0_86] : memref<27x128x128xbf16, #tpu.memory_space<vmem>>, vector<1x128x128xbf16>
    %64 = vector.shape_cast %63 : vector<1x128x128xbf16> to vector<128x128xbf16>
    %cst_87 = arith.constant dense<0.000000e+00> : vector<64x128xf32>
    %65 = tpu.matmul %62, %64, %cst_87 {dimension_numbers = #tpu.dot_dimension_numbers<[1], [0], [0], [1], [0, 0, 1, 1], [], []>} : vector<64x128xbf16>, vector<128x128xbf16>, vector<64x128xf32> -> vector<64x128xf32>
    %66 = arith.addf %60, %65 : vector<64x128xf32>
    %c0_88 = arith.constant 0 : index
    %c0_89 = arith.constant 0 : index
    %c0_90 = arith.constant 0 : index
    %c2_91 = arith.constant 2 : index
    %c0_92 = arith.constant 0 : index
    %67 = vector.load %arg3[%c0_88, %c0_89, %c0_90, %c2_91, %c0_92] : memref<1x1x10x10x128xbf16, #tpu.memory_space<vmem>>, vector<1x1x8x8x128xbf16>
    %68 = vector.shape_cast %67 : vector<1x1x8x8x128xbf16> to vector<64x128xbf16>
    %c11 = arith.constant 11 : index
    %c0_93 = arith.constant 0 : index
    %c0_94 = arith.constant 0 : index
    %69 = vector.load %arg5[%c11, %c0_93, %c0_94] : memref<27x128x128xbf16, #tpu.memory_space<vmem>>, vector<1x128x128xbf16>
    %70 = vector.shape_cast %69 : vector<1x128x128xbf16> to vector<128x128xbf16>
    %cst_95 = arith.constant dense<0.000000e+00> : vector<64x128xf32>
    %71 = tpu.matmul %68, %70, %cst_95 {dimension_numbers = #tpu.dot_dimension_numbers<[1], [0], [0], [1], [0, 0, 1, 1], [], []>} : vector<64x128xbf16>, vector<128x128xbf16>, vector<64x128xf32> -> vector<64x128xf32>
    %72 = arith.addf %66, %71 : vector<64x128xf32>
    %c0_96 = arith.constant 0 : index
    %c0_97 = arith.constant 0 : index
    %c1_98 = arith.constant 1 : index
    %c0_99 = arith.constant 0 : index
    %c0_100 = arith.constant 0 : index
    %73 = vector.load %arg3[%c0_96, %c0_97, %c1_98, %c0_99, %c0_100] : memref<1x1x10x10x128xbf16, #tpu.memory_space<vmem>>, vector<1x1x8x8x128xbf16>
    %74 = vector.shape_cast %73 : vector<1x1x8x8x128xbf16> to vector<64x128xbf16>
    %c12 = arith.constant 12 : index
    %c0_101 = arith.constant 0 : index
    %c0_102 = arith.constant 0 : index
    %75 = vector.load %arg5[%c12, %c0_101, %c0_102] : memref<27x128x128xbf16, #tpu.memory_space<vmem>>, vector<1x128x128xbf16>
    %76 = vector.shape_cast %75 : vector<1x128x128xbf16> to vector<128x128xbf16>
    %cst_103 = arith.constant dense<0.000000e+00> : vector<64x128xf32>
    %77 = tpu.matmul %74, %76, %cst_103 {dimension_numbers = #tpu.dot_dimension_numbers<[1], [0], [0], [1], [0, 0, 1, 1], [], []>} : vector<64x128xbf16>, vector<128x128xbf16>, vector<64x128xf32> -> vector<64x128xf32>
    %78 = arith.addf %72, %77 : vector<64x128xf32>
    %c0_104 = arith.constant 0 : index
    %c0_105 = arith.constant 0 : index
    %c1_106 = arith.constant 1 : index
    %c1_107 = arith.constant 1 : index
    %c0_108 = arith.constant 0 : index
    %79 = vector.load %arg3[%c0_104, %c0_105, %c1_106, %c1_107, %c0_108] : memref<1x1x10x10x128xbf16, #tpu.memory_space<vmem>>, vector<1x1x8x8x128xbf16>
    %80 = vector.shape_cast %79 : vector<1x1x8x8x128xbf16> to vector<64x128xbf16>
    %c13 = arith.constant 13 : index
    %c0_109 = arith.constant 0 : index
    %c0_110 = arith.constant 0 : index
    %81 = vector.load %arg5[%c13, %c0_109, %c0_110] : memref<27x128x128xbf16, #tpu.memory_space<vmem>>, vector<1x128x128xbf16>
    %82 = vector.shape_cast %81 : vector<1x128x128xbf16> to vector<128x128xbf16>
    %cst_111 = arith.constant dense<0.000000e+00> : vector<64x128xf32>
    %83 = tpu.matmul %80, %82, %cst_111 {dimension_numbers = #tpu.dot_dimension_numbers<[1], [0], [0], [1], [0, 0, 1, 1], [], []>} : vector<64x128xbf16>, vector<128x128xbf16>, vector<64x128xf32> -> vector<64x128xf32>
    %84 = arith.addf %78, %83 : vector<64x128xf32>
    %c0_112 = arith.constant 0 : index
    %c0_113 = arith.constant 0 : index
    %c1_114 = arith.constant 1 : index
    %c2_115 = arith.constant 2 : index
    %c0_116 = arith.constant 0 : index
    %85 = vector.load %arg3[%c0_112, %c0_113, %c1_114, %c2_115, %c0_116] : memref<1x1x10x10x128xbf16, #tpu.memory_space<vmem>>, vector<1x1x8x8x128xbf16>
    %86 = vector.shape_cast %85 : vector<1x1x8x8x128xbf16> to vector<64x128xbf16>
    %c14 = arith.constant 14 : index
    %c0_117 = arith.constant 0 : index
    %c0_118 = arith.constant 0 : index
    %87 = vector.load %arg5[%c14, %c0_117, %c0_118] : memref<27x128x128xbf16, #tpu.memory_space<vmem>>, vector<1x128x128xbf16>
    %88 = vector.shape_cast %87 : vector<1x128x128xbf16> to vector<128x128xbf16>
    %cst_119 = arith.constant dense<0.000000e+00> : vector<64x128xf32>
    %89 = tpu.matmul %86, %88, %cst_119 {dimension_numbers = #tpu.dot_dimension_numbers<[1], [0], [0], [1], [0, 0, 1, 1], [], []>} : vector<64x128xbf16>, vector<128x128xbf16>, vector<64x128xf32> -> vector<64x128xf32>
    %90 = arith.addf %84, %89 : vector<64x128xf32>
    %c0_120 = arith.constant 0 : index
    %c0_121 = arith.constant 0 : index
    %c2_122 = arith.constant 2 : index
    %c0_123 = arith.constant 0 : index
    %c0_124 = arith.constant 0 : index
    %91 = vector.load %arg3[%c0_120, %c0_121, %c2_122, %c0_123, %c0_124] : memref<1x1x10x10x128xbf16, #tpu.memory_space<vmem>>, vector<1x1x8x8x128xbf16>
    %92 = vector.shape_cast %91 : vector<1x1x8x8x128xbf16> to vector<64x128xbf16>
    %c15 = arith.constant 15 : index
    %c0_125 = arith.constant 0 : index
    %c0_126 = arith.constant 0 : index
    %93 = vector.load %arg5[%c15, %c0_125, %c0_126] : memref<27x128x128xbf16, #tpu.memory_space<vmem>>, vector<1x128x128xbf16>
    %94 = vector.shape_cast %93 : vector<1x128x128xbf16> to vector<128x128xbf16>
    %cst_127 = arith.constant dense<0.000000e+00> : vector<64x128xf32>
    %95 = tpu.matmul %92, %94, %cst_127 {dimension_numbers = #tpu.dot_dimension_numbers<[1], [0], [0], [1], [0, 0, 1, 1], [], []>} : vector<64x128xbf16>, vector<128x128xbf16>, vector<64x128xf32> -> vector<64x128xf32>
    %96 = arith.addf %90, %95 : vector<64x128xf32>
    %c0_128 = arith.constant 0 : index
    %c0_129 = arith.constant 0 : index
    %c2_130 = arith.constant 2 : index
    %c1_131 = arith.constant 1 : index
    %c0_132 = arith.constant 0 : index
    %97 = vector.load %arg3[%c0_128, %c0_129, %c2_130, %c1_131, %c0_132] : memref<1x1x10x10x128xbf16, #tpu.memory_space<vmem>>, vector<1x1x8x8x128xbf16>
    %98 = vector.shape_cast %97 : vector<1x1x8x8x128xbf16> to vector<64x128xbf16>
    %c16 = arith.constant 16 : index
    %c0_133 = arith.constant 0 : index
    %c0_134 = arith.constant 0 : index
    %99 = vector.load %arg5[%c16, %c0_133, %c0_134] : memref<27x128x128xbf16, #tpu.memory_space<vmem>>, vector<1x128x128xbf16>
    %100 = vector.shape_cast %99 : vector<1x128x128xbf16> to vector<128x128xbf16>
    %cst_135 = arith.constant dense<0.000000e+00> : vector<64x128xf32>
    %101 = tpu.matmul %98, %100, %cst_135 {dimension_numbers = #tpu.dot_dimension_numbers<[1], [0], [0], [1], [0, 0, 1, 1], [], []>} : vector<64x128xbf16>, vector<128x128xbf16>, vector<64x128xf32> -> vector<64x128xf32>
    %102 = arith.addf %96, %101 : vector<64x128xf32>
    %c0_136 = arith.constant 0 : index
    %c0_137 = arith.constant 0 : index
    %c2_138 = arith.constant 2 : index
    %c2_139 = arith.constant 2 : index
    %c0_140 = arith.constant 0 : index
    %103 = vector.load %arg3[%c0_136, %c0_137, %c2_138, %c2_139, %c0_140] : memref<1x1x10x10x128xbf16, #tpu.memory_space<vmem>>, vector<1x1x8x8x128xbf16>
    %104 = vector.shape_cast %103 : vector<1x1x8x8x128xbf16> to vector<64x128xbf16>
    %c17 = arith.constant 17 : index
    %c0_141 = arith.constant 0 : index
    %c0_142 = arith.constant 0 : index
    %105 = vector.load %arg5[%c17, %c0_141, %c0_142] : memref<27x128x128xbf16, #tpu.memory_space<vmem>>, vector<1x128x128xbf16>
    %106 = vector.shape_cast %105 : vector<1x128x128xbf16> to vector<128x128xbf16>
    %cst_143 = arith.constant dense<0.000000e+00> : vector<64x128xf32>
    %107 = tpu.matmul %104, %106, %cst_143 {dimension_numbers = #tpu.dot_dimension_numbers<[1], [0], [0], [1], [0, 0, 1, 1], [], []>} : vector<64x128xbf16>, vector<128x128xbf16>, vector<64x128xf32> -> vector<64x128xf32>
    %108 = arith.addf %102, %107 : vector<64x128xf32>
    %c0_144 = arith.constant 0 : index
    %c0_145 = arith.constant 0 : index
    %c0_146 = arith.constant 0 : index
    %c0_147 = arith.constant 0 : index
    %c0_148 = arith.constant 0 : index
    %109 = vector.load %arg4[%c0_144, %c0_145, %c0_146, %c0_147, %c0_148] : memref<1x1x10x10x128xbf16, #tpu.memory_space<vmem>>, vector<1x1x8x8x128xbf16>
    %110 = vector.shape_cast %109 : vector<1x1x8x8x128xbf16> to vector<64x128xbf16>
    %c18 = arith.constant 18 : index
    %c0_149 = arith.constant 0 : index
    %c0_150 = arith.constant 0 : index
    %111 = vector.load %arg5[%c18, %c0_149, %c0_150] : memref<27x128x128xbf16, #tpu.memory_space<vmem>>, vector<1x128x128xbf16>
    %112 = vector.shape_cast %111 : vector<1x128x128xbf16> to vector<128x128xbf16>
    %cst_151 = arith.constant dense<0.000000e+00> : vector<64x128xf32>
    %113 = tpu.matmul %110, %112, %cst_151 {dimension_numbers = #tpu.dot_dimension_numbers<[1], [0], [0], [1], [0, 0, 1, 1], [], []>} : vector<64x128xbf16>, vector<128x128xbf16>, vector<64x128xf32> -> vector<64x128xf32>
    %114 = arith.addf %108, %113 : vector<64x128xf32>
    %c0_152 = arith.constant 0 : index
    %c0_153 = arith.constant 0 : index
    %c0_154 = arith.constant 0 : index
    %c1_155 = arith.constant 1 : index
    %c0_156 = arith.constant 0 : index
    %115 = vector.load %arg4[%c0_152, %c0_153, %c0_154, %c1_155, %c0_156] : memref<1x1x10x10x128xbf16, #tpu.memory_space<vmem>>, vector<1x1x8x8x128xbf16>
    %116 = vector.shape_cast %115 : vector<1x1x8x8x128xbf16> to vector<64x128xbf16>
    %c19 = arith.constant 19 : index
    %c0_157 = arith.constant 0 : index
    %c0_158 = arith.constant 0 : index
    %117 = vector.load %arg5[%c19, %c0_157, %c0_158] : memref<27x128x128xbf16, #tpu.memory_space<vmem>>, vector<1x128x128xbf16>
    %118 = vector.shape_cast %117 : vector<1x128x128xbf16> to vector<128x128xbf16>
    %cst_159 = arith.constant dense<0.000000e+00> : vector<64x128xf32>
    %119 = tpu.matmul %116, %118, %cst_159 {dimension_numbers = #tpu.dot_dimension_numbers<[1], [0], [0], [1], [0, 0, 1, 1], [], []>} : vector<64x128xbf16>, vector<128x128xbf16>, vector<64x128xf32> -> vector<64x128xf32>
    %120 = arith.addf %114, %119 : vector<64x128xf32>
    %c0_160 = arith.constant 0 : index
    %c0_161 = arith.constant 0 : index
    %c0_162 = arith.constant 0 : index
    %c2_163 = arith.constant 2 : index
    %c0_164 = arith.constant 0 : index
    %121 = vector.load %arg4[%c0_160, %c0_161, %c0_162, %c2_163, %c0_164] : memref<1x1x10x10x128xbf16, #tpu.memory_space<vmem>>, vector<1x1x8x8x128xbf16>
    %122 = vector.shape_cast %121 : vector<1x1x8x8x128xbf16> to vector<64x128xbf16>
    %c20 = arith.constant 20 : index
    %c0_165 = arith.constant 0 : index
    %c0_166 = arith.constant 0 : index
    %123 = vector.load %arg5[%c20, %c0_165, %c0_166] : memref<27x128x128xbf16, #tpu.memory_space<vmem>>, vector<1x128x128xbf16>
    %124 = vector.shape_cast %123 : vector<1x128x128xbf16> to vector<128x128xbf16>
    %cst_167 = arith.constant dense<0.000000e+00> : vector<64x128xf32>
    %125 = tpu.matmul %122, %124, %cst_167 {dimension_numbers = #tpu.dot_dimension_numbers<[1], [0], [0], [1], [0, 0, 1, 1], [], []>} : vector<64x128xbf16>, vector<128x128xbf16>, vector<64x128xf32> -> vector<64x128xf32>
    %126 = arith.addf %120, %125 : vector<64x128xf32>
    %c0_168 = arith.constant 0 : index
    %c0_169 = arith.constant 0 : index
    %c1_170 = arith.constant 1 : index
    %c0_171 = arith.constant 0 : index
    %c0_172 = arith.constant 0 : index
    %127 = vector.load %arg4[%c0_168, %c0_169, %c1_170, %c0_171, %c0_172] : memref<1x1x10x10x128xbf16, #tpu.memory_space<vmem>>, vector<1x1x8x8x128xbf16>
    %128 = vector.shape_cast %127 : vector<1x1x8x8x128xbf16> to vector<64x128xbf16>
    %c21 = arith.constant 21 : index
    %c0_173 = arith.constant 0 : index
    %c0_174 = arith.constant 0 : index
    %129 = vector.load %arg5[%c21, %c0_173, %c0_174] : memref<27x128x128xbf16, #tpu.memory_space<vmem>>, vector<1x128x128xbf16>
    %130 = vector.shape_cast %129 : vector<1x128x128xbf16> to vector<128x128xbf16>
    %cst_175 = arith.constant dense<0.000000e+00> : vector<64x128xf32>
    %131 = tpu.matmul %128, %130, %cst_175 {dimension_numbers = #tpu.dot_dimension_numbers<[1], [0], [0], [1], [0, 0, 1, 1], [], []>} : vector<64x128xbf16>, vector<128x128xbf16>, vector<64x128xf32> -> vector<64x128xf32>
    %132 = arith.addf %126, %131 : vector<64x128xf32>
    %c0_176 = arith.constant 0 : index
    %c0_177 = arith.constant 0 : index
    %c1_178 = arith.constant 1 : index
    %c1_179 = arith.constant 1 : index
    %c0_180 = arith.constant 0 : index
    %133 = vector.load %arg4[%c0_176, %c0_177, %c1_178, %c1_179, %c0_180] : memref<1x1x10x10x128xbf16, #tpu.memory_space<vmem>>, vector<1x1x8x8x128xbf16>
    %134 = vector.shape_cast %133 : vector<1x1x8x8x128xbf16> to vector<64x128xbf16>
    %c22 = arith.constant 22 : index
    %c0_181 = arith.constant 0 : index
    %c0_182 = arith.constant 0 : index
    %135 = vector.load %arg5[%c22, %c0_181, %c0_182] : memref<27x128x128xbf16, #tpu.memory_space<vmem>>, vector<1x128x128xbf16>
    %136 = vector.shape_cast %135 : vector<1x128x128xbf16> to vector<128x128xbf16>
    %cst_183 = arith.constant dense<0.000000e+00> : vector<64x128xf32>
    %137 = tpu.matmul %134, %136, %cst_183 {dimension_numbers = #tpu.dot_dimension_numbers<[1], [0], [0], [1], [0, 0, 1, 1], [], []>} : vector<64x128xbf16>, vector<128x128xbf16>, vector<64x128xf32> -> vector<64x128xf32>
    %138 = arith.addf %132, %137 : vector<64x128xf32>
    %c0_184 = arith.constant 0 : index
    %c0_185 = arith.constant 0 : index
    %c1_186 = arith.constant 1 : index
    %c2_187 = arith.constant 2 : index
    %c0_188 = arith.constant 0 : index
    %139 = vector.load %arg4[%c0_184, %c0_185, %c1_186, %c2_187, %c0_188] : memref<1x1x10x10x128xbf16, #tpu.memory_space<vmem>>, vector<1x1x8x8x128xbf16>
    %140 = vector.shape_cast %139 : vector<1x1x8x8x128xbf16> to vector<64x128xbf16>
    %c23 = arith.constant 23 : index
    %c0_189 = arith.constant 0 : index
    %c0_190 = arith.constant 0 : index
    %141 = vector.load %arg5[%c23, %c0_189, %c0_190] : memref<27x128x128xbf16, #tpu.memory_space<vmem>>, vector<1x128x128xbf16>
    %142 = vector.shape_cast %141 : vector<1x128x128xbf16> to vector<128x128xbf16>
    %cst_191 = arith.constant dense<0.000000e+00> : vector<64x128xf32>
    %143 = tpu.matmul %140, %142, %cst_191 {dimension_numbers = #tpu.dot_dimension_numbers<[1], [0], [0], [1], [0, 0, 1, 1], [], []>} : vector<64x128xbf16>, vector<128x128xbf16>, vector<64x128xf32> -> vector<64x128xf32>
    %144 = arith.addf %138, %143 : vector<64x128xf32>
    %c0_192 = arith.constant 0 : index
    %c0_193 = arith.constant 0 : index
    %c2_194 = arith.constant 2 : index
    %c0_195 = arith.constant 0 : index
    %c0_196 = arith.constant 0 : index
    %145 = vector.load %arg4[%c0_192, %c0_193, %c2_194, %c0_195, %c0_196] : memref<1x1x10x10x128xbf16, #tpu.memory_space<vmem>>, vector<1x1x8x8x128xbf16>
    %146 = vector.shape_cast %145 : vector<1x1x8x8x128xbf16> to vector<64x128xbf16>
    %c24 = arith.constant 24 : index
    %c0_197 = arith.constant 0 : index
    %c0_198 = arith.constant 0 : index
    %147 = vector.load %arg5[%c24, %c0_197, %c0_198] : memref<27x128x128xbf16, #tpu.memory_space<vmem>>, vector<1x128x128xbf16>
    %148 = vector.shape_cast %147 : vector<1x128x128xbf16> to vector<128x128xbf16>
    %cst_199 = arith.constant dense<0.000000e+00> : vector<64x128xf32>
    %149 = tpu.matmul %146, %148, %cst_199 {dimension_numbers = #tpu.dot_dimension_numbers<[1], [0], [0], [1], [0, 0, 1, 1], [], []>} : vector<64x128xbf16>, vector<128x128xbf16>, vector<64x128xf32> -> vector<64x128xf32>
    %150 = arith.addf %144, %149 : vector<64x128xf32>
    %c0_200 = arith.constant 0 : index
    %c0_201 = arith.constant 0 : index
    %c2_202 = arith.constant 2 : index
    %c1_203 = arith.constant 1 : index
    %c0_204 = arith.constant 0 : index
    %151 = vector.load %arg4[%c0_200, %c0_201, %c2_202, %c1_203, %c0_204] : memref<1x1x10x10x128xbf16, #tpu.memory_space<vmem>>, vector<1x1x8x8x128xbf16>
    %152 = vector.shape_cast %151 : vector<1x1x8x8x128xbf16> to vector<64x128xbf16>
    %c25 = arith.constant 25 : index
    %c0_205 = arith.constant 0 : index
    %c0_206 = arith.constant 0 : index
    %153 = vector.load %arg5[%c25, %c0_205, %c0_206] : memref<27x128x128xbf16, #tpu.memory_space<vmem>>, vector<1x128x128xbf16>
    %154 = vector.shape_cast %153 : vector<1x128x128xbf16> to vector<128x128xbf16>
    %cst_207 = arith.constant dense<0.000000e+00> : vector<64x128xf32>
    %155 = tpu.matmul %152, %154, %cst_207 {dimension_numbers = #tpu.dot_dimension_numbers<[1], [0], [0], [1], [0, 0, 1, 1], [], []>} : vector<64x128xbf16>, vector<128x128xbf16>, vector<64x128xf32> -> vector<64x128xf32>
    %156 = arith.addf %150, %155 : vector<64x128xf32>
    %c0_208 = arith.constant 0 : index
    %c0_209 = arith.constant 0 : index
    %c2_210 = arith.constant 2 : index
    %c2_211 = arith.constant 2 : index
    %c0_212 = arith.constant 0 : index
    %157 = vector.load %arg4[%c0_208, %c0_209, %c2_210, %c2_211, %c0_212] : memref<1x1x10x10x128xbf16, #tpu.memory_space<vmem>>, vector<1x1x8x8x128xbf16>
    %158 = vector.shape_cast %157 : vector<1x1x8x8x128xbf16> to vector<64x128xbf16>
    %c26 = arith.constant 26 : index
    %c0_213 = arith.constant 0 : index
    %c0_214 = arith.constant 0 : index
    %159 = vector.load %arg5[%c26, %c0_213, %c0_214] : memref<27x128x128xbf16, #tpu.memory_space<vmem>>, vector<1x128x128xbf16>
    %160 = vector.shape_cast %159 : vector<1x128x128xbf16> to vector<128x128xbf16>
    %cst_215 = arith.constant dense<0.000000e+00> : vector<64x128xf32>
    %161 = tpu.matmul %158, %160, %cst_215 {dimension_numbers = #tpu.dot_dimension_numbers<[1], [0], [0], [1], [0, 0, 1, 1], [], []>} : vector<64x128xbf16>, vector<128x128xbf16>, vector<64x128xf32> -> vector<64x128xf32>
    %162 = arith.addf %156, %161 : vector<64x128xf32>
    %163 = vector.shape_cast %162 : vector<64x128xf32> to vector<1x1x8x8x128xf32>
    %164 = arith.truncf %163 : vector<1x1x8x8x128xf32> to vector<1x1x8x8x128xbf16>
    %c0_216 = arith.constant 0 : index
    %c0_217 = arith.constant 0 : index
    %c0_218 = arith.constant 0 : index
    %c0_219 = arith.constant 0 : index
    %c0_220 = arith.constant 0 : index
    %165 = vector.load %arg6[%c0_216, %c0_217, %c0_218, %c0_219, %c0_220] : memref<1x1x8x8x128xbf16, #tpu.memory_space<vmem>>, vector<1x1x8x8x128xbf16>
    tpu.vector_store %arg6[%c0_216, %c0_217, %c0_218, %c0_219, %c0_220], %164 {strides = array<i32>} : memref<1x1x8x8x128xbf16, #tpu.memory_space<vmem>>, vector<1x1x8x8x128xbf16>,
    %cst_221 = arith.constant dense<0.000000e+00> : vector<128xf32>
    %166 = vector.multi_reduction <add>, %162, %cst_221 [0] : vector<64x128xf32> to vector<128xf32>
    %167 = vector.shape_cast %166 : vector<128xf32> to vector<1x128xf32>
    %168 = arith.mulf %162, %162 : vector<64x128xf32>
    %cst_222 = arith.constant dense<0.000000e+00> : vector<128xf32>
    %169 = vector.multi_reduction <add>, %168, %cst_222 [0] : vector<64x128xf32> to vector<128xf32>
    %170 = vector.shape_cast %169 : vector<128xf32> to vector<1x128xf32>
    %171 = vector.shape_cast %167 : vector<1x128xf32> to vector<1x128xf32>
    %172 = vector.broadcast %171 : vector<1x128xf32> to vector<8x128xf32>
    %173 = vector.shape_cast %172 : vector<8x128xf32> to vector<1x1x8x128xf32>
    %c0_223 = arith.constant 0 : index
    %c0_224 = arith.constant 0 : index
    %c0_225 = arith.constant 0 : index
    %c0_226 = arith.constant 0 : index
    %174 = vector.load %arg7[%c0_223, %c0_224, %c0_225, %c0_226] : memref<1x1x8x128xf32, #tpu.memory_space<vmem>>, vector<1x1x8x128xf32>
    tpu.vector_store %arg7[%c0_223, %c0_224, %c0_225, %c0_226], %173 {strides = array<i32>} : memref<1x1x8x128xf32, #tpu.memory_space<vmem>>, vector<1x1x8x128xf32>,
    %175 = vector.shape_cast %170 : vector<1x128xf32> to vector<1x128xf32>
    %176 = vector.broadcast %175 : vector<1x128xf32> to vector<8x128xf32>
    %177 = vector.shape_cast %176 : vector<8x128xf32> to vector<1x1x8x128xf32>
    %c0_227 = arith.constant 0 : index
    %c0_228 = arith.constant 0 : index
    %c0_229 = arith.constant 0 : index
    %c0_230 = arith.constant 0 : index
    %178 = vector.load %arg8[%c0_227, %c0_228, %c0_229, %c0_230] : memref<1x1x8x128xf32, #tpu.memory_space<vmem>>, vector<1x1x8x128xf32>
    tpu.vector_store %arg8[%c0_227, %c0_228, %c0_229, %c0_230], %177 {strides = array<i32>} : memref<1x1x8x128xf32, #tpu.memory_space<vmem>>, vector<1x1x8x128xf32>,
    return
  }
  func.func @transform_0(%arg0: i32, %arg1: i32) -> (i32, i32, i32, i32, i32) {
    %c0_i32 = arith.constant 0 : i32
    %0 = arith.addi %arg1, %c0_i32 : i32
    %c0_i32_0 = arith.constant 0 : i32
    %c0_i32_1 = arith.constant 0 : i32
    %c0_i32_2 = arith.constant 0 : i32
    %c0_i32_3 = arith.constant 0 : i32
    return %arg0, %0, %c0_i32_0, %c0_i32_1, %c0_i32_2 : i32, i32, i32, i32, i32
  }
  func.func @transform_1(%arg0: i32, %arg1: i32) -> (i32, i32, i32, i32, i32) {
    %c1_i32 = arith.constant 1 : i32
    %0 = arith.addi %arg1, %c1_i32 : i32
    %c0_i32 = arith.constant 0 : i32
    %c0_i32_0 = arith.constant 0 : i32
    %c0_i32_1 = arith.constant 0 : i32
    %c0_i32_2 = arith.constant 0 : i32
    return %arg0, %0, %c0_i32, %c0_i32_0, %c0_i32_1 : i32, i32, i32, i32, i32
  }
  func.func @transform_2(%arg0: i32, %arg1: i32) -> (i32, i32, i32, i32, i32) {
    %c2_i32 = arith.constant 2 : i32
    %0 = arith.addi %arg1, %c2_i32 : i32
    %c0_i32 = arith.constant 0 : i32
    %c0_i32_0 = arith.constant 0 : i32
    %c0_i32_1 = arith.constant 0 : i32
    %c0_i32_2 = arith.constant 0 : i32
    return %arg0, %0, %c0_i32, %c0_i32_0, %c0_i32_1 : i32, i32, i32, i32, i32
  }
  func.func @transform_3(%arg0: i32, %arg1: i32) -> (i32, i32, i32) {
    %c0_i32 = arith.constant 0 : i32
    %c0_i32_0 = arith.constant 0 : i32
    %c0_i32_1 = arith.constant 0 : i32
    %c0_i32_2 = arith.constant 0 : i32
    return %c0_i32, %c0_i32_0, %c0_i32_1 : i32, i32, i32
  }
  func.func @transform_4(%arg0: i32, %arg1: i32) -> (i32, i32, i32, i32, i32) {
    %c0_i32 = arith.constant 0 : i32
    %c0_i32_0 = arith.constant 0 : i32
    %c0_i32_1 = arith.constant 0 : i32
    %c0_i32_2 = arith.constant 0 : i32
    return %arg0, %arg1, %c0_i32, %c0_i32_0, %c0_i32_1 : i32, i32, i32, i32, i32
  }
  func.func @transform_5(%arg0: i32, %arg1: i32) -> (i32, i32, i32, i32) {
    %c0_i32 = arith.constant 0 : i32
    %c0_i32_0 = arith.constant 0 : i32
    %c0_i32_1 = arith.constant 0 : i32
    return %arg0, %arg1, %c0_i32, %c0_i32_0 : i32, i32, i32, i32
  }
  func.func @transform_6(%arg0: i32, %arg1: i32) -> (i32, i32, i32, i32) {
    %c0_i32 = arith.constant 0 : i32
    %c0_i32_0 = arith.constant 0 : i32
    %c0_i32_1 = arith.constant 0 : i32
    return %arg0, %arg1, %c0_i32, %c0_i32_0 : i32, i32, i32, i32
  }
}

module attributes {stable_mosaic.version = 11 : i64} {
  func.func @_bn_relu_pad_kernel(%arg0: i32, %arg1: memref<1x8x8x8x128xbf16, #tpu.memory_space<vmem>>, %arg2: memref<1x128xf32, #tpu.memory_space<vmem>>, %arg3: memref<1x128xf32, #tpu.memory_space<vmem>>, %arg4: memref<1x10x10x10x128xbf16, #tpu.memory_space<vmem>>) attributes {dimension_semantics = [#tpu.dimension_semantics<parallel>], iteration_bounds = array<i64: 2>, scalar_prefetch = 0 : i64, scratch_operands = 0 : i64, tpu.core_type = #tpu.core_type<tc>, window_params = [{transform_indices = @transform_0, window_bounds = array<i64: 1, 8, 8, 8, 128>}, {pipeline_mode = #tpu.pipeline_mode<synchronous>, transform_indices = @transform_1, window_bounds = array<i64: 1, 128>}, {pipeline_mode = #tpu.pipeline_mode<synchronous>, transform_indices = @transform_2, window_bounds = array<i64: 1, 128>}, {transform_indices = @transform_3, window_bounds = array<i64: 1, 10, 10, 10, 128>}]} {
    %cst = arith.constant 0.000000e+00 : bf16
    %0 = vector.broadcast %cst : bf16 to vector<1x10x10x10x128xbf16>
    %c0 = arith.constant 0 : index
    %c0_0 = arith.constant 0 : index
    %c0_1 = arith.constant 0 : index
    %c0_2 = arith.constant 0 : index
    %c0_3 = arith.constant 0 : index
    %1 = vector.load %arg4[%c0, %c0_0, %c0_1, %c0_2, %c0_3] : memref<1x10x10x10x128xbf16, #tpu.memory_space<vmem>>, vector<1x10x10x10x128xbf16>
    tpu.vector_store %arg4[%c0, %c0_0, %c0_1, %c0_2, %c0_3], %0 {strides = array<i32>} : memref<1x10x10x10x128xbf16, #tpu.memory_space<vmem>>, vector<1x10x10x10x128xbf16>,
    %c0_4 = arith.constant 0 : index
    %c0_5 = arith.constant 0 : index
    %c0_6 = arith.constant 0 : index
    %c0_7 = arith.constant 0 : index
    %c0_8 = arith.constant 0 : index
    %2 = vector.load %arg1[%c0_4, %c0_5, %c0_6, %c0_7, %c0_8] : memref<1x8x8x8x128xbf16, #tpu.memory_space<vmem>>, vector<1x8x8x8x128xbf16>
    %3 = arith.extf %2 : vector<1x8x8x8x128xbf16> to vector<1x8x8x8x128xf32>
    %c0_9 = arith.constant 0 : index
    %c0_10 = arith.constant 0 : index
    %4 = vector.load %arg2[%c0_9, %c0_10] : memref<1x128xf32, #tpu.memory_space<vmem>>, vector<1x128xf32>
    %5 = vector.shape_cast %4 : vector<1x128xf32> to vector<1x1x1x1x128xf32>
    %6 = vector.broadcast %5 : vector<1x1x1x1x128xf32> to vector<1x8x8x8x128xf32>
    %7 = arith.mulf %3, %6 : vector<1x8x8x8x128xf32>
    %c0_11 = arith.constant 0 : index
    %c0_12 = arith.constant 0 : index
    %8 = vector.load %arg3[%c0_11, %c0_12] : memref<1x128xf32, #tpu.memory_space<vmem>>, vector<1x128xf32>
    %9 = vector.shape_cast %8 : vector<1x128xf32> to vector<1x1x1x1x128xf32>
    %10 = vector.broadcast %9 : vector<1x1x1x1x128xf32> to vector<1x8x8x8x128xf32>
    %11 = arith.addf %7, %10 : vector<1x8x8x8x128xf32>
    %cst_13 = arith.constant 0.000000e+00 : f32
    %12 = vector.broadcast %cst_13 : f32 to vector<1x8x8x8x128xf32>
    %13 = arith.maximumf %11, %12 : vector<1x8x8x8x128xf32>
    %14 = arith.truncf %13 : vector<1x8x8x8x128xf32> to vector<1x8x8x8x128xbf16>
    %c0_14 = arith.constant 0 : index
    %c1 = arith.constant 1 : index
    %c1_15 = arith.constant 1 : index
    %c1_16 = arith.constant 1 : index
    %c0_17 = arith.constant 0 : index
    %15 = vector.load %arg4[%c0_14, %c1, %c1_15, %c1_16, %c0_17] : memref<1x10x10x10x128xbf16, #tpu.memory_space<vmem>>, vector<1x8x8x8x128xbf16>
    tpu.vector_store %arg4[%c0_14, %c1, %c1_15, %c1_16, %c0_17], %14 {strides = array<i32>} : memref<1x10x10x10x128xbf16, #tpu.memory_space<vmem>>, vector<1x8x8x8x128xbf16>,
    return
  }
  func.func @transform_0(%arg0: i32) -> (i32, i32, i32, i32, i32) {
    %c0_i32 = arith.constant 0 : i32
    %c0_i32_0 = arith.constant 0 : i32
    %c0_i32_1 = arith.constant 0 : i32
    %c0_i32_2 = arith.constant 0 : i32
    %c0_i32_3 = arith.constant 0 : i32
    return %arg0, %c0_i32, %c0_i32_0, %c0_i32_1, %c0_i32_2 : i32, i32, i32, i32, i32
  }
  func.func @transform_1(%arg0: i32) -> (i32, i32) {
    %c0_i32 = arith.constant 0 : i32
    %c0_i32_0 = arith.constant 0 : i32
    %c0_i32_1 = arith.constant 0 : i32
    return %c0_i32, %c0_i32_0 : i32, i32
  }
  func.func @transform_2(%arg0: i32) -> (i32, i32) {
    %c0_i32 = arith.constant 0 : i32
    %c0_i32_0 = arith.constant 0 : i32
    %c0_i32_1 = arith.constant 0 : i32
    return %c0_i32, %c0_i32_0 : i32, i32
  }
  func.func @transform_3(%arg0: i32) -> (i32, i32, i32, i32, i32) {
    %c0_i32 = arith.constant 0 : i32
    %c0_i32_0 = arith.constant 0 : i32
    %c0_i32_1 = arith.constant 0 : i32
    %c0_i32_2 = arith.constant 0 : i32
    %c0_i32_3 = arith.constant 0 : i32
    return %arg0, %c0_i32, %c0_i32_0, %c0_i32_1, %c0_i32_2 : i32, i32, i32, i32, i32
  }
}

module attributes {stable_mosaic.version = 11 : i64} {
  func.func @_bn_relu_kernel(%arg0: i32, %arg1: memref<1x8x8x8x128xbf16, #tpu.memory_space<vmem>>, %arg2: memref<1x128xf32, #tpu.memory_space<vmem>>, %arg3: memref<1x128xf32, #tpu.memory_space<vmem>>, %arg4: memref<1x8x8x8x128xf32, #tpu.memory_space<vmem>>) attributes {dimension_semantics = [#tpu.dimension_semantics<parallel>], iteration_bounds = array<i64: 2>, scalar_prefetch = 0 : i64, scratch_operands = 0 : i64, tpu.core_type = #tpu.core_type<tc>, window_params = [{transform_indices = @transform_0, window_bounds = array<i64: 1, 8, 8, 8, 128>}, {pipeline_mode = #tpu.pipeline_mode<synchronous>, transform_indices = @transform_1, window_bounds = array<i64: 1, 128>}, {pipeline_mode = #tpu.pipeline_mode<synchronous>, transform_indices = @transform_2, window_bounds = array<i64: 1, 128>}, {transform_indices = @transform_3, window_bounds = array<i64: 1, 8, 8, 8, 128>}]} {
    %c0 = arith.constant 0 : index
    %c0_0 = arith.constant 0 : index
    %c0_1 = arith.constant 0 : index
    %c0_2 = arith.constant 0 : index
    %c0_3 = arith.constant 0 : index
    %0 = vector.load %arg1[%c0, %c0_0, %c0_1, %c0_2, %c0_3] : memref<1x8x8x8x128xbf16, #tpu.memory_space<vmem>>, vector<1x8x8x8x128xbf16>
    %1 = arith.extf %0 : vector<1x8x8x8x128xbf16> to vector<1x8x8x8x128xf32>
    %c0_4 = arith.constant 0 : index
    %c0_5 = arith.constant 0 : index
    %2 = vector.load %arg2[%c0_4, %c0_5] : memref<1x128xf32, #tpu.memory_space<vmem>>, vector<1x128xf32>
    %3 = vector.shape_cast %2 : vector<1x128xf32> to vector<1x1x1x1x128xf32>
    %4 = vector.broadcast %3 : vector<1x1x1x1x128xf32> to vector<1x8x8x8x128xf32>
    %5 = arith.mulf %1, %4 : vector<1x8x8x8x128xf32>
    %c0_6 = arith.constant 0 : index
    %c0_7 = arith.constant 0 : index
    %6 = vector.load %arg3[%c0_6, %c0_7] : memref<1x128xf32, #tpu.memory_space<vmem>>, vector<1x128xf32>
    %7 = vector.shape_cast %6 : vector<1x128xf32> to vector<1x1x1x1x128xf32>
    %8 = vector.broadcast %7 : vector<1x1x1x1x128xf32> to vector<1x8x8x8x128xf32>
    %9 = arith.addf %5, %8 : vector<1x8x8x8x128xf32>
    %cst = arith.constant 0.000000e+00 : f32
    %10 = vector.broadcast %cst : f32 to vector<1x8x8x8x128xf32>
    %11 = arith.maximumf %9, %10 : vector<1x8x8x8x128xf32>
    %c0_8 = arith.constant 0 : index
    %c0_9 = arith.constant 0 : index
    %c0_10 = arith.constant 0 : index
    %c0_11 = arith.constant 0 : index
    %c0_12 = arith.constant 0 : index
    %12 = vector.load %arg4[%c0_8, %c0_9, %c0_10, %c0_11, %c0_12] : memref<1x8x8x8x128xf32, #tpu.memory_space<vmem>>, vector<1x8x8x8x128xf32>
    tpu.vector_store %arg4[%c0_8, %c0_9, %c0_10, %c0_11, %c0_12], %11 {strides = array<i32>} : memref<1x8x8x8x128xf32, #tpu.memory_space<vmem>>, vector<1x8x8x8x128xf32>,
    return
  }
  func.func @transform_0(%arg0: i32) -> (i32, i32, i32, i32, i32) {
    %c0_i32 = arith.constant 0 : i32
    %c0_i32_0 = arith.constant 0 : i32
    %c0_i32_1 = arith.constant 0 : i32
    %c0_i32_2 = arith.constant 0 : i32
    %c0_i32_3 = arith.constant 0 : i32
    return %arg0, %c0_i32, %c0_i32_0, %c0_i32_1, %c0_i32_2 : i32, i32, i32, i32, i32
  }
  func.func @transform_1(%arg0: i32) -> (i32, i32) {
    %c0_i32 = arith.constant 0 : i32
    %c0_i32_0 = arith.constant 0 : i32
    %c0_i32_1 = arith.constant 0 : i32
    return %c0_i32, %c0_i32_0 : i32, i32
  }
  func.func @transform_2(%arg0: i32) -> (i32, i32) {
    %c0_i32 = arith.constant 0 : i32
    %c0_i32_0 = arith.constant 0 : i32
    %c0_i32_1 = arith.constant 0 : i32
    return %c0_i32, %c0_i32_0 : i32, i32
  }
  func.func @transform_3(%arg0: i32) -> (i32, i32, i32, i32, i32) {
    %c0_i32 = arith.constant 0 : i32
    %c0_i32_0 = arith.constant 0 : i32
    %c0_i32_1 = arith.constant 0 : i32
    %c0_i32_2 = arith.constant 0 : i32
    %c0_i32_3 = arith.constant 0 : i32
    return %arg0, %c0_i32, %c0_i32_0, %c0_i32_1, %c0_i32_2 : i32, i32, i32, i32, i32
  }
}

</mosaic_0001>

<bundles_post_ra>
// kernel: double_conv3d.7
= control target key start
LH: loop header
LB: loop body
LE: loop exit
PB: predicated region body
PF: predicated region fallthrough
CT: control target
= control target key end

     0   :  { %s834_s12 = smov 0   ;;  %s1093_s0 = inlined_call_operand.vmem [shape: bf16[2,8,8,8,128], index: 0, kind: input, shape index: {}]   ;;  %s1094_s1 = inlined_call_operand.vmem [shape: f32[1,128], index: 1, kind: input, shape index: {}]   ;;  %s1095_s2 = inlined_call_operand.vmem [shape: f32[1,128], index: 2, kind: input, shape index: {}]   ;;  %s1096_s3 = inlined_call_operand.vmem [shape: f32[2,8,8,8,128], index: 3, kind: output, shape index: {}]  }
   0x1 LB: > { %s624_s13 = sadd.s32 4294967295, %s812_s12   ;;  %p628_p0 = scmp.ge.s32.totalorder %s812_s12, 1  ;;  %s812_s12 = sphi %s834_s12, %s13_s12  }
   0x2   : > { %p137_p1 = scmp.lt.s32.totalorder %s812_s12, 3 }
   0x4   : > { %p138_p2 = pnand %p628_p0, %p137_p1 }
   0x5   : > { %p161_p3 = scmp.lt.s32.totalorder (!%p138_p2), %s624_s13, 1 }
   0x6   : > { %141 = sbr.rel (%p138_p2) target bundleno = 83 (0x53), region = 32 }
   0xb   : > { %s1098_s13 = smov (!%p161_p3, %s624_s13), 1  ;;  %v853_v0 = vld [vmem:[%s1094_s1] ss:$0 sm:$0xff] }
   0xc   : > { %s637_s14 = sshll.u32 %s1098_s13, 8  ;;  %v862_v9 = vld [vmem:[%s1095_s2] ss:$0 sm:$0xff]  ;;  %s638_s22 = sshll.u32 %s1098_s13, 9 }
   0xd   : > { %s848_s17 = scalar_lea.vmem %s1093_s0, %s637_s14  ;;  %s880_s25 = scalar_lea.vmem %s1096_s3, %s638_s22 }
   0xe   : > { %v640_v1 = vld [vmem:[%s848_s17] sm:$0xff]   ;;  %v767_v2 = vld [vmem:[%s848_s17 + $0x8] sm:$0xff]   ;;  %v768_v3 = vld [vmem:[%s848_s17 + $0x10] sm:$0xff]  }
   0xf   : > { %v641_v4 = vunpack.c.l.bf16 %v640_v1  ;;  %v642_v5 = vunpack.c.h.bf16 %v640_v1  ;;  %v645_v6 = vunpack.c.l.bf16 %v767_v2  ;;  %v646_v7 = vunpack.c.h.bf16 %v767_v2  ;;  %v769_v8 = vld [vmem:[%s848_s17 + $0x18] sm:$0xff]   ;;  %v770_v30 = vld [vmem:[%s848_s17 + $0x20] sm:$0xff]   ;;  %v771_v31 = vld [vmem:[%s848_s17 + $0x28] sm:$0xff]  }
  0x10   : > { %v649_v10 = vunpack.c.l.bf16 %v768_v3  ;;  %v650_v11 = vunpack.c.h.bf16 %v768_v3  ;;  %v653_v12 = vunpack.c.l.bf16 %v769_v8  ;;  %v654_v13 = vunpack.c.h.bf16 %v769_v8  ;;  %v772_v36 = vld [vmem:[%s848_s17 + $0x30] sm:$0xff]   ;;  %v773_v37 = vld [vmem:[%s848_s17 + $0x38] sm:$0xff]   ;;  %v774_v3 = vld [vmem:[%s848_s17 + $0x40] sm:$0xff]  }
  0x11   : > { %v306_v14 = vmul.f32 %v641_v4, %v853_v0  ;;  %v307_v15 = vmul.f32 %v642_v5, %v853_v0  ;;  %v308_v16 = vmul.f32 %v645_v6, %v853_v0  ;;  %v309_v17 = vmul.f32 %v646_v7, %v853_v0  ;;  %v775_v4 = vld [vmem:[%s848_s17 + $0x48] sm:$0xff]  }
  0x12   : > { %v310_v18 = vmul.f32 %v649_v10, %v853_v0  ;;  %v311_v19 = vmul.f32 %v650_v11, %v853_v0  ;;  %v312_v20 = vmul.f32 %v653_v12, %v853_v0  ;;  %v313_v21 = vmul.f32 %v654_v13, %v853_v0  ;;  %v776_v10 = vld [vmem:[%s848_s17 + $0x50] sm:$0xff]   ;;  %v777_v11 = vld [vmem:[%s848_s17 + $0x58] sm:$0xff]  }
  0x13   : > { %v377_v22 = vadd.f32 %v862_v9, %v306_v14  ;;  %v378_v23 = vadd.f32 %v862_v9, %v307_v15  ;;  %v379_v24 = vadd.f32 %v862_v9, %v308_v16  ;;  %v380_v25 = vadd.f32 %v862_v9, %v309_v17 }
  0x14   : > { %v381_v26 = vadd.f32 %v862_v9, %v310_v18  ;;  %v382_v27 = vadd.f32 %v862_v9, %v311_v19  ;;  %v383_v28 = vadd.f32 %v862_v9, %v312_v20  ;;  %v384_v29 = vadd.f32 %v862_v9, %v313_v21 }
  0x15   : > { %v441_v32 = vmax.f32 %v377_v22, 0.0  ;;  %v442_v33 = vmax.f32 %v378_v23, 0.0  ;;  %v443_v34 = vmax.f32 %v379_v24, 0.0  ;;  %v444_v35 = vmax.f32 %v380_v25, 0.0 }
  0x16   : > { %v445_v38 = vmax.f32 %v381_v26, 0.0  ;;  %v446_v39 = vmax.f32 %v382_v27, 0.0  ;;  %v447_v40 = vmax.f32 %v383_v28, 0.0  ;;  %v448_v41 = vmax.f32 %v384_v29, 0.0 }
  0x17   : > { %505 = vst [vmem:[%s880_s25] sm:$0xff] %v441_v32  ;;  %506 = vst [vmem:[%s880_s25 + $0x8] sm:$0xff] %v442_v33  ;;  %v657_v42 = vunpack.c.l.bf16 %v770_v30  ;;  %v658_v43 = vunpack.c.h.bf16 %v770_v30  ;;  %v661_v44 = vunpack.c.l.bf16 %v771_v31  ;;  %v662_v45 = vunpack.c.h.bf16 %v771_v31 }
  0x18   : > { %507 = vst [vmem:[%s880_s25 + $0x10] sm:$0xff] %v443_v34  ;;  %508 = vst [vmem:[%s880_s25 + $0x18] sm:$0xff] %v444_v35  ;;  %v665_v46 = vunpack.c.l.bf16 %v772_v36  ;;  %v666_v47 = vunpack.c.h.bf16 %v772_v36  ;;  %v669_v48 = vunpack.c.l.bf16 %v773_v37  ;;  %v670_v49 = vunpack.c.h.bf16 %v773_v37 }
  0x19   : > { %509 = vst [vmem:[%s880_s25 + $0x20] sm:$0xff] %v445_v38  ;;  %510 = vst [vmem:[%s880_s25 + $0x28] sm:$0xff] %v446_v39  ;;  %v314_v50 = vmul.f32 %v657_v42, %v853_v0  ;;  %v315_v51 = vmul.f32 %v658_v43, %v853_v0  ;;  %v316_v52 = vmul.f32 %v661_v44, %v853_v0  ;;  %v673_v16 = vunpack.c.l.bf16 %v774_v3 }
  0x1a   : > { %511 = vst [vmem:[%s880_s25 + $0x30] sm:$0xff] %v447_v40  ;;  %512 = vst [vmem:[%s880_s25 + $0x38] sm:$0xff] %v448_v41  ;;  %v317_v53 = vmul.f32 %v662_v45, %v853_v0  ;;  %v318_v54 = vmul.f32 %v665_v46, %v853_v0  ;;  %v319_v55 = vmul.f32 %v666_v47, %v853_v0  ;;  %v674_v17 = vunpack.c.h.bf16 %v774_v3  ;;  %v778_v40 = vld [vmem:[%s848_s17 + $0x60] sm:$0xff]   ;;  %v779_v41 = vld [vmem:[%s848_s17 + $0x68] sm:$0xff]  }
  0x1b   : > { %v320_v56 = vmul.f32 %v669_v48, %v853_v0  ;;  %v321_v57 = vmul.f32 %v670_v49, %v853_v0  ;;  %v385_v58 = vadd.f32 %v862_v9, %v314_v50  ;;  %v386_v59 = vadd.f32 %v862_v9, %v315_v51  ;;  %v780_v46 = vld [vmem:[%s848_s17 + $0x70] sm:$0xff]   ;;  %v781_v47 = vld [vmem:[%s848_s17 + $0x78] sm:$0xff]  }
  0x1c   : > { %v387_v60 = vadd.f32 %v862_v9, %v316_v52  ;;  %v388_v61 = vadd.f32 %v862_v9, %v317_v53  ;;  %v389_v62 = vadd.f32 %v862_v9, %v318_v54  ;;  %v390_v63 = vadd.f32 %v862_v9, %v319_v55 }
  0x1d   : > { %v391_v1 = vadd.f32 %v862_v9, %v320_v56  ;;  %v392_v2 = vadd.f32 %v862_v9, %v321_v57  ;;  %v449_v5 = vmax.f32 %v385_v58, 0.0  ;;  %v450_v6 = vmax.f32 %v386_v59, 0.0 }
  0x1e   : > { %v451_v7 = vmax.f32 %v387_v60, 0.0  ;;  %v452_v8 = vmax.f32 %v388_v61, 0.0  ;;  %v453_v12 = vmax.f32 %v389_v62, 0.0  ;;  %v454_v13 = vmax.f32 %v390_v63, 0.0 }
  0x1f   : > { %v455_v14 = vmax.f32 %v391_v1, 0.0  ;;  %v456_v15 = vmax.f32 %v392_v2, 0.0  ;;  %513 = vst [vmem:[%s880_s25 + $0x40] sm:$0xff] %v449_v5  ;;  %514 = vst [vmem:[%s880_s25 + $0x48] sm:$0xff] %v450_v6  ;;  %v677_v18 = vunpack.c.l.bf16 %v775_v4  ;;  %v678_v19 = vunpack.c.h.bf16 %v775_v4 }
  0x20   : > { %515 = vst [vmem:[%s880_s25 + $0x50] sm:$0xff] %v451_v7  ;;  %516 = vst [vmem:[%s880_s25 + $0x58] sm:$0xff] %v452_v8  ;;  %v681_v20 = vunpack.c.l.bf16 %v776_v10  ;;  %v682_v21 = vunpack.c.h.bf16 %v776_v10  ;;  %v685_v22 = vunpack.c.l.bf16 %v777_v11  ;;  %v686_v23 = vunpack.c.h.bf16 %v777_v11 }
  0x21   : > { %517 = vst [vmem:[%s880_s25 + $0x60] sm:$0xff] %v453_v12  ;;  %518 = vst [vmem:[%s880_s25 + $0x68] sm:$0xff] %v454_v13  ;;  %v322_v24 = vmul.f32 %v673_v16, %v853_v0  ;;  %v323_v25 = vmul.f32 %v674_v17, %v853_v0  ;;  %v324_v26 = vmul.f32 %v677_v18, %v853_v0  ;;  %v689_v52 = vunpack.c.l.bf16 %v778_v40 }
  0x22   : > { %519 = vst [vmem:[%s880_s25 + $0x70] sm:$0xff] %v455_v14  ;;  %520 = vst [vmem:[%s880_s25 + $0x78] sm:$0xff] %v456_v15  ;;  %v325_v27 = vmul.f32 %v678_v19, %v853_v0  ;;  %v326_v28 = vmul.f32 %v681_v20, %v853_v0  ;;  %v327_v29 = vmul.f32 %v682_v21, %v853_v0  ;;  %v690_v53 = vunpack.c.h.bf16 %v778_v40  ;;  %v782_v14 = vld [vmem:[%s848_s17 + $0x80] sm:$0xff]   ;;  %v783_v15 = vld [vmem:[%s848_s17 + $0x88] sm:$0xff]  }
  0x23   : > { %v328_v30 = vmul.f32 %v685_v22, %v853_v0  ;;  %v329_v31 = vmul.f32 %v686_v23, %v853_v0  ;;  %v393_v32 = vadd.f32 %v862_v9, %v322_v24  ;;  %v394_v33 = vadd.f32 %v862_v9, %v323_v25  ;;  %v784_v20 = vld [vmem:[%s848_s17 + $0x90] sm:$0xff]   ;;  %v785_v21 = vld [vmem:[%s848_s17 + $0x98] sm:$0xff]  }
  0x24   : > { %v395_v34 = vadd.f32 %v862_v9, %v324_v26  ;;  %v396_v35 = vadd.f32 %v862_v9, %v325_v27  ;;  %v397_v36 = vadd.f32 %v862_v9, %v326_v28  ;;  %v398_v37 = vadd.f32 %v862_v9, %v327_v29 }
  0x25   : > { %v399_v38 = vadd.f32 %v862_v9, %v328_v30  ;;  %v400_v39 = vadd.f32 %v862_v9, %v329_v31  ;;  %v457_v42 = vmax.f32 %v393_v32, 0.0  ;;  %v458_v43 = vmax.f32 %v394_v33, 0.0 }
  0x26   : > { %v459_v44 = vmax.f32 %v395_v34, 0.0  ;;  %v460_v45 = vmax.f32 %v396_v35, 0.0  ;;  %v461_v48 = vmax.f32 %v397_v36, 0.0  ;;  %v462_v49 = vmax.f32 %v398_v37, 0.0 }
  0x27   : > { %v463_v50 = vmax.f32 %v399_v38, 0.0  ;;  %v464_v51 = vmax.f32 %v400_v39, 0.0  ;;  %521 = vst [vmem:[%s880_s25 + $0x80] sm:$0xff] %v457_v42  ;;  %522 = vst [vmem:[%s880_s25 + $0x88] sm:$0xff] %v458_v43  ;;  %v693_v54 = vunpack.c.l.bf16 %v779_v41  ;;  %v694_v55 = vunpack.c.h.bf16 %v779_v41 }
  0x28   : > { %523 = vst [vmem:[%s880_s25 + $0x90] sm:$0xff] %v459_v44  ;;  %524 = vst [vmem:[%s880_s25 + $0x98] sm:$0xff] %v460_v45  ;;  %v697_v56 = vunpack.c.l.bf16 %v780_v46  ;;  %v698_v57 = vunpack.c.h.bf16 %v780_v46  ;;  %v701_v58 = vunpack.c.l.bf16 %v781_v47  ;;  %v702_v59 = vunpack.c.h.bf16 %v781_v47 }
  0x29   : > { %525 = vst [vmem:[%s880_s25 + $0xa0] sm:$0xff] %v461_v48  ;;  %526 = vst [vmem:[%s880_s25 + $0xa8] sm:$0xff] %v462_v49  ;;  %v330_v60 = vmul.f32 %v689_v52, %v853_v0  ;;  %v331_v61 = vmul.f32 %v690_v53, %v853_v0  ;;  %v332_v62 = vmul.f32 %v693_v54, %v853_v0  ;;  %v705_v26 = vunpack.c.l.bf16 %v782_v14 }
  0x2a   : > { %527 = vst [vmem:[%s880_s25 + $0xb0] sm:$0xff] %v463_v50  ;;  %528 = vst [vmem:[%s880_s25 + $0xb8] sm:$0xff] %v464_v51  ;;  %v333_v63 = vmul.f32 %v694_v55, %v853_v0  ;;  %v334_v1 = vmul.f32 %v697_v56, %v853_v0  ;;  %v335_v2 = vmul.f32 %v698_v57, %v853_v0  ;;  %v706_v27 = vunpack.c.h.bf16 %v782_v14  ;;  %v786_v50 = vld [vmem:[%s848_s17 + $0xa0] sm:$0xff]   ;;  %v787_v51 = vld [vmem:[%s848_s17 + $0xa8] sm:$0xff]  }
  0x2b   : > { %v336_v3 = vmul.f32 %v701_v58, %v853_v0  ;;  %v337_v4 = vmul.f32 %v702_v59, %v853_v0  ;;  %v401_v5 = vadd.f32 %v862_v9, %v330_v60  ;;  %v402_v6 = vadd.f32 %v862_v9, %v331_v61  ;;  %v788_v56 = vld [vmem:[%s848_s17 + $0xb0] sm:$0xff]   ;;  %v789_v57 = vld [vmem:[%s848_s17 + $0xb8] sm:$0xff]  }
  0x2c   : > { %v403_v7 = vadd.f32 %v862_v9, %v332_v62  ;;  %v404_v8 = vadd.f32 %v862_v9, %v333_v63  ;;  %v405_v10 = vadd.f32 %v862_v9, %v334_v1  ;;  %v406_v11 = vadd.f32 %v862_v9, %v335_v2 }
  0x2d   : > { %v407_v12 = vadd.f32 %v862_v9, %v336_v3  ;;  %v408_v13 = vadd.f32 %v862_v9, %v337_v4  ;;  %v465_v16 = vmax.f32 %v401_v5, 0.0  ;;  %v466_v17 = vmax.f32 %v402_v6, 0.0 }
  0x2e   : > { %v467_v18 = vmax.f32 %v403_v7, 0.0  ;;  %v468_v19 = vmax.f32 %v404_v8, 0.0  ;;  %v469_v22 = vmax.f32 %v405_v10, 0.0  ;;  %v470_v23 = vmax.f32 %v406_v11, 0.0 }
  0x2f   : > { %v471_v24 = vmax.f32 %v407_v12, 0.0  ;;  %v472_v25 = vmax.f32 %v408_v13, 0.0  ;;  %529 = vst [vmem:[%s880_s25 + $0xc0] sm:$0xff] %v465_v16  ;;  %530 = vst [vmem:[%s880_s25 + $0xc8] sm:$0xff] %v466_v17  ;;  %v709_v28 = vunpack.c.l.bf16 %v783_v15  ;;  %v710_v29 = vunpack.c.h.bf16 %v783_v15 }
  0x30   : > { %531 = vst [vmem:[%s880_s25 + $0xd0] sm:$0xff] %v467_v18  ;;  %532 = vst [vmem:[%s880_s25 + $0xd8] sm:$0xff] %v468_v19  ;;  %v713_v30 = vunpack.c.l.bf16 %v784_v20  ;;  %v714_v31 = vunpack.c.h.bf16 %v784_v20  ;;  %v717_v32 = vunpack.c.l.bf16 %v785_v21  ;;  %v718_v33 = vunpack.c.h.bf16 %v785_v21 }
  0x31   : > { %533 = vst [vmem:[%s880_s25 + $0xe0] sm:$0xff] %v469_v22  ;;  %534 = vst [vmem:[%s880_s25 + $0xe8] sm:$0xff] %v470_v23  ;;  %v338_v34 = vmul.f32 %v705_v26, %v853_v0  ;;  %v339_v35 = vmul.f32 %v706_v27, %v853_v0  ;;  %v340_v36 = vmul.f32 %v709_v28, %v853_v0  ;;  %v721_v62 = vunpack.c.l.bf16 %v786_v50 }
  0x32   : > { %535 = vst [vmem:[%s880_s25 + $0xf0] sm:$0xff] %v471_v24  ;;  %536 = vst [vmem:[%s880_s25 + $0xf8] sm:$0xff] %v472_v25  ;;  %v341_v37 = vmul.f32 %v710_v29, %v853_v0  ;;  %v342_v38 = vmul.f32 %v713_v30, %v853_v0  ;;  %v343_v39 = vmul.f32 %v714_v31, %v853_v0  ;;  %v722_v63 = vunpack.c.h.bf16 %v786_v50  ;;  %v790_v24 = vld [vmem:[%s848_s17 + $0xc0] sm:$0xff]   ;;  %v791_v25 = vld [vmem:[%s848_s17 + $0xc8] sm:$0xff]  }
  0x33   : > { %v344_v40 = vmul.f32 %v717_v32, %v853_v0  ;;  %v345_v41 = vmul.f32 %v718_v33, %v853_v0  ;;  %v409_v42 = vadd.f32 %v862_v9, %v338_v34  ;;  %v410_v43 = vadd.f32 %v862_v9, %v339_v35  ;;  %v792_v30 = vld [vmem:[%s848_s17 + $0xd0] sm:$0xff]   ;;  %v793_v31 = vld [vmem:[%s848_s17 + $0xd8] sm:$0xff]  }
  0x34   : > { %v411_v44 = vadd.f32 %v862_v9, %v340_v36  ;;  %v412_v45 = vadd.f32 %v862_v9, %v341_v37  ;;  %v413_v46 = vadd.f32 %v862_v9, %v342_v38  ;;  %v414_v47 = vadd.f32 %v862_v9, %v343_v39 }
  0x35   : > { %v415_v48 = vadd.f32 %v862_v9, %v344_v40  ;;  %v416_v49 = vadd.f32 %v862_v9, %v345_v41  ;;  %v473_v52 = vmax.f32 %v409_v42, 0.0  ;;  %v474_v53 = vmax.f32 %v410_v43, 0.0 }
  0x36   : > { %v475_v54 = vmax.f32 %v411_v44, 0.0  ;;  %v476_v55 = vmax.f32 %v412_v45, 0.0  ;;  %v477_v58 = vmax.f32 %v413_v46, 0.0  ;;  %v478_v59 = vmax.f32 %v414_v47, 0.0 }
  0x37   : > { %v479_v60 = vmax.f32 %v415_v48, 0.0  ;;  %v480_v61 = vmax.f32 %v416_v49, 0.0  ;;  %537 = vst [vmem:[%s880_s25 + $0x100] sm:$0xff] %v473_v52  ;;  %538 = vst [vmem:[%s880_s25 + $0x108] sm:$0xff] %v474_v53  ;;  %v725_v1 = vunpack.c.l.bf16 %v787_v51  ;;  %v726_v2 = vunpack.c.h.bf16 %v787_v51 }
  0x38   : > { %539 = vst [vmem:[%s880_s25 + $0x110] sm:$0xff] %v475_v54  ;;  %540 = vst [vmem:[%s880_s25 + $0x118] sm:$0xff] %v476_v55  ;;  %v729_v3 = vunpack.c.l.bf16 %v788_v56  ;;  %v730_v4 = vunpack.c.h.bf16 %v788_v56  ;;  %v733_v5 = vunpack.c.l.bf16 %v789_v57  ;;  %v734_v6 = vunpack.c.h.bf16 %v789_v57 }
  0x39   : > { %541 = vst [vmem:[%s880_s25 + $0x120] sm:$0xff] %v477_v58  ;;  %542 = vst [vmem:[%s880_s25 + $0x128] sm:$0xff] %v478_v59  ;;  %v346_v7 = vmul.f32 %v721_v62, %v853_v0  ;;  %v347_v8 = vmul.f32 %v722_v63, %v853_v0  ;;  %v348_v10 = vmul.f32 %v725_v1, %v853_v0  ;;  %v737_v36 = vunpack.c.l.bf16 %v790_v24 }
  0x3a   : > { %543 = vst [vmem:[%s880_s25 + $0x130] sm:$0xff] %v479_v60  ;;  %544 = vst [vmem:[%s880_s25 + $0x138] sm:$0xff] %v480_v61  ;;  %v349_v11 = vmul.f32 %v726_v2, %v853_v0  ;;  %v350_v12 = vmul.f32 %v729_v3, %v853_v0  ;;  %v351_v13 = vmul.f32 %v730_v4, %v853_v0  ;;  %v738_v37 = vunpack.c.h.bf16 %v790_v24  ;;  %v794_v60 = vld [vmem:[%s848_s17 + $0xe0] sm:$0xff]   ;;  %v795_v61 = vld [vmem:[%s848_s17 + $0xe8] sm:$0xff]  }
  0x3b   : > { %v352_v14 = vmul.f32 %v733_v5, %v853_v0  ;;  %v353_v15 = vmul.f32 %v734_v6, %v853_v0  ;;  %v417_v16 = vadd.f32 %v862_v9, %v346_v7  ;;  %v418_v17 = vadd.f32 %v862_v9, %v347_v8  ;;  %v796_v3 = vld [vmem:[%s848_s17 + $0xf0] sm:$0xff]   ;;  %v797_v4 = vld [vmem:[%s848_s17 + $0xf8] sm:$0xff]  }
  0x3c   : > { %v419_v18 = vadd.f32 %v862_v9, %v348_v10  ;;  %v420_v19 = vadd.f32 %v862_v9, %v349_v11  ;;  %v421_v20 = vadd.f32 %v862_v9, %v350_v12  ;;  %v422_v21 = vadd.f32 %v862_v9, %v351_v13 }
  0x3d   : > { %v423_v22 = vadd.f32 %v862_v9, %v352_v14  ;;  %v424_v23 = vadd.f32 %v862_v9, %v353_v15  ;;  %v481_v26 = vmax.f32 %v417_v16, 0.0  ;;  %v482_v27 = vmax.f32 %v418_v17, 0.0 }
  0x3e   : > { %v483_v28 = vmax.f32 %v419_v18, 0.0  ;;  %v484_v29 = vmax.f32 %v420_v19, 0.0  ;;  %v485_v32 = vmax.f32 %v421_v20, 0.0  ;;  %v486_v33 = vmax.f32 %v422_v21, 0.0 }
  0x3f   : > { %v487_v34 = vmax.f32 %v423_v22, 0.0  ;;  %v488_v35 = vmax.f32 %v424_v23, 0.0  ;;  %545 = vst [vmem:[%s880_s25 + $0x140] sm:$0xff] %v481_v26  ;;  %546 = vst [vmem:[%s880_s25 + $0x148] sm:$0xff] %v482_v27  ;;  %v741_v38 = vunpack.c.l.bf16 %v791_v25  ;;  %v742_v39 = vunpack.c.h.bf16 %v791_v25 }
  0x40   : > { %547 = vst [vmem:[%s880_s25 + $0x150] sm:$0xff] %v483_v28  ;;  %548 = vst [vmem:[%s880_s25 + $0x158] sm:$0xff] %v484_v29  ;;  %v745_v40 = vunpack.c.l.bf16 %v792_v30  ;;  %v746_v41 = vunpack.c.h.bf16 %v792_v30  ;;  %v749_v42 = vunpack.c.l.bf16 %v793_v31  ;;  %v750_v43 = vunpack.c.h.bf16 %v793_v31 }
  0x41   : > { %549 = vst [vmem:[%s880_s25 + $0x160] sm:$0xff] %v485_v32  ;;  %550 = vst [vmem:[%s880_s25 + $0x168] sm:$0xff] %v486_v33  ;;  %v354_v44 = vmul.f32 %v737_v36, %v853_v0  ;;  %v355_v45 = vmul.f32 %v738_v37, %v853_v0  ;;  %v356_v46 = vmul.f32 %v741_v38, %v853_v0  ;;  %v753_v10 = vunpack.c.l.bf16 %v794_v60 }
  0x42   : > { %551 = vst [vmem:[%s880_s25 + $0x170] sm:$0xff] %v487_v34  ;;  %552 = vst [vmem:[%s880_s25 + $0x178] sm:$0xff] %v488_v35  ;;  %v357_v47 = vmul.f32 %v742_v39, %v853_v0  ;;  %v358_v48 = vmul.f32 %v745_v40, %v853_v0  ;;  %v359_v49 = vmul.f32 %v746_v41, %v853_v0  ;;  %v754_v11 = vunpack.c.h.bf16 %v794_v60 }
  0x43   : > { %v360_v50 = vmul.f32 %v749_v42, %v853_v0  ;;  %v361_v51 = vmul.f32 %v750_v43, %v853_v0  ;;  %v425_v52 = vadd.f32 %v862_v9, %v354_v44  ;;  %v426_v53 = vadd.f32 %v862_v9, %v355_v45 }
  0x44   : > { %v427_v54 = vadd.f32 %v862_v9, %v356_v46  ;;  %v428_v55 = vadd.f32 %v862_v9, %v357_v47  ;;  %v429_v56 = vadd.f32 %v862_v9, %v358_v48  ;;  %v430_v57 = vadd.f32 %v862_v9, %v359_v49 }
  0x45   : > { %v431_v58 = vadd.f32 %v862_v9, %v360_v50  ;;  %v432_v59 = vadd.f32 %v862_v9, %v361_v51  ;;  %v489_v62 = vmax.f32 %v425_v52, 0.0  ;;  %v490_v63 = vmax.f32 %v426_v53, 0.0 }
  0x46   : > { %v491_v1 = vmax.f32 %v427_v54, 0.0  ;;  %v492_v2 = vmax.f32 %v428_v55, 0.0  ;;  %v493_v5 = vmax.f32 %v429_v56, 0.0  ;;  %v494_v6 = vmax.f32 %v430_v57, 0.0 }
  0x47   : > { %v495_v7 = vmax.f32 %v431_v58, 0.0  ;;  %v496_v8 = vmax.f32 %v432_v59, 0.0  ;;  %553 = vst [vmem:[%s880_s25 + $0x180] sm:$0xff] %v489_v62  ;;  %554 = vst [vmem:[%s880_s25 + $0x188] sm:$0xff] %v490_v63  ;;  %v757_v12 = vunpack.c.l.bf16 %v795_v61  ;;  %v758_v13 = vunpack.c.h.bf16 %v795_v61 }
  0x48   : > { %555 = vst [vmem:[%s880_s25 + $0x190] sm:$0xff] %v491_v1  ;;  %556 = vst [vmem:[%s880_s25 + $0x198] sm:$0xff] %v492_v2  ;;  %v761_v14 = vunpack.c.l.bf16 %v796_v3  ;;  %v762_v15 = vunpack.c.h.bf16 %v796_v3  ;;  %v765_v16 = vunpack.c.l.bf16 %v797_v4  ;;  %v766_v17 = vunpack.c.h.bf16 %v797_v4 }
  0x49   : > { %557 = vst [vmem:[%s880_s25 + $0x1a0] sm:$0xff] %v493_v5  ;;  %558 = vst [vmem:[%s880_s25 + $0x1a8] sm:$0xff] %v494_v6  ;;  %v362_v18 = vmul.f32 %v753_v10, %v853_v0  ;;  %v363_v19 = vmul.f32 %v754_v11, %v853_v0  ;;  %v364_v20 = vmul.f32 %v757_v12, %v853_v0 }
  0x4a   : > { %559 = vst [vmem:[%s880_s25 + $0x1b0] sm:$0xff] %v495_v7  ;;  %560 = vst [vmem:[%s880_s25 + $0x1b8] sm:$0xff] %v496_v8  ;;  %v365_v21 = vmul.f32 %v758_v13, %v853_v0  ;;  %v366_v22 = vmul.f32 %v761_v14, %v853_v0  ;;  %v367_v23 = vmul.f32 %v762_v15, %v853_v0 }
  0x4b   : > { %v368_v24 = vmul.f32 %v765_v16, %v853_v0  ;;  %v369_v25 = vmul.f32 %v766_v17, %v853_v0  ;;  %v433_v26 = vadd.f32 %v862_v9, %v362_v18  ;;  %v434_v27 = vadd.f32 %v862_v9, %v363_v19 }
  0x4c   : > { %v435_v28 = vadd.f32 %v862_v9, %v364_v20  ;;  %v436_v29 = vadd.f32 %v862_v9, %v365_v21  ;;  %v437_v30 = vadd.f32 %v862_v9, %v366_v22  ;;  %v438_v31 = vadd.f32 %v862_v9, %v367_v23 }
  0x4d   : > { %v439_v0 = vadd.f32 %v862_v9, %v368_v24  ;;  %v440_v32 = vadd.f32 %v862_v9, %v369_v25  ;;  %v497_v33 = vmax.f32 %v433_v26, 0.0  ;;  %v498_v34 = vmax.f32 %v434_v27, 0.0 }
  0x4e   : > { %v499_v35 = vmax.f32 %v435_v28, 0.0  ;;  %v500_v36 = vmax.f32 %v436_v29, 0.0  ;;  %v501_v37 = vmax.f32 %v437_v30, 0.0  ;;  %v502_v38 = vmax.f32 %v438_v31, 0.0 }
  0x4f   : > { %v503_v39 = vmax.f32 %v439_v0, 0.0  ;;  %v504_v40 = vmax.f32 %v440_v32, 0.0  ;;  %561 = vst [vmem:[%s880_s25 + $0x1c0] sm:$0xff] %v497_v33  ;;  %562 = vst [vmem:[%s880_s25 + $0x1c8] sm:$0xff] %v498_v34 }
  0x50   : > { %563 = vst [vmem:[%s880_s25 + $0x1d0] sm:$0xff] %v499_v35  ;;  %564 = vst [vmem:[%s880_s25 + $0x1d8] sm:$0xff] %v500_v36 }
  0x51   : > { %565 = vst [vmem:[%s880_s25 + $0x1e0] sm:$0xff] %v501_v37  ;;  %566 = vst [vmem:[%s880_s25 + $0x1e8] sm:$0xff] %v502_v38 }
  0x52   : > { %567 = vst [vmem:[%s880_s25 + $0x1f0] sm:$0xff] %v503_v39  ;;  %568 = vst [vmem:[%s880_s25 + $0x1f8] sm:$0xff] %v504_v40 }
  0x53 PF: > { %s13_s12 = sadd.s32 1, %s812_s12  }
  0x54   : > { %p10_p4 = scmp.ge.s32.totalorder %s13_s12, 4  }
  0x56   :  { %12 = sbr.rel (!%p10_p4) target bundleno = 1 (0x1), region = 62 }

// kernel: double_conv3d.5
= control target key start
LH: loop header
LB: loop body
LE: loop exit
PB: predicated region body
PF: predicated region fallthrough
CT: control target
= control target key end

     0   :  { %s2646_s12 = smov 0   ;;  %s3802_s0 = inlined_call_operand.vmem [shape: bf16[2,8,8,8,128], index: 0, kind: input, shape index: {}]   ;;  %s3803_s1 = inlined_call_operand.vmem [shape: f32[1,128], index: 1, kind: input, shape index: {}]   ;;  %s3804_s2 = inlined_call_operand.vmem [shape: f32[1,128], index: 2, kind: input, shape index: {}]   ;;  %s3805_s3 = inlined_call_operand.vmem [shape: bf16[2,10,10,10,128], index: 3, kind: output, shape index: {}]  }
   0x1 LB: > { %s2048_s13 = sadd.s32 4294967295, %s2623_s12   ;;  %p2052_p0 = scmp.ge.s32.totalorder %s2623_s12, 1  ;;  %s2623_s12 = sphi %s2646_s12, %s13_s12  }
   0x2   : > { %p137_p1 = scmp.lt.s32.totalorder %s2623_s12, 3 }
   0x4   : > { %p138_p2 = pnand %p2052_p0, %p137_p1 }
   0x5   : > { %p161_p3 = scmp.lt.s32.totalorder (!%p138_p2), %s2048_s13, 1 }
   0x6   : > { %141 = sbr.rel (%p138_p2) target bundleno = 287 (0x11f), region = 32 }
   0xb   : > { %s3811_s13 = smov (!%p161_p3, %s2048_s13), 1  ;;  %v2662_v0 = vld [vmem:[%s3803_s1] ss:$0 sm:$0xff]  ;;  %v2625_v4 = vmov 0   ;;  %vm1603_vm0 = vcmask 1043456   ;;  %vm1609_vm2 = vcmask 1040384  }
   0xc   : > { %s2604_s14 = smul.u32 800, %s3811_s13  ;;  %s2380_s15 = sshll.u32 %s3811_s13, 8  ;;  %v3086_v10 = vld [vmem:[%s3804_s2] ss:$0 sm:$0xff]  ;;  %vm1604_vm1 = vsmask.f32 7938 }
   0xd   : > { %s2657_s18 = scalar_lea.vmem %s3802_s0, %s2380_s15  ;;  %vm1610_vm3 = vsmask.f32 256  ;;  %vm3123_vm4 = vmand %vm1603_vm0, %vm1604_vm1 }
   0xe   : > { %s2667_s23 = scalar_lea.vmem %s3805_s3, %s2604_s14  ;;  %v2670_v1 = vld [vmem:[%s2657_s18] sm:$0xff]   ;;  %v2673_v2 = vld [vmem:[%s2657_s18 + $0x8] sm:$0xff]   ;;  %v2676_v3 = vld [vmem:[%s2657_s18 + $0x10] sm:$0xff]  }
   0xf   : > { %194 = vst [vmem:[%s2667_s23 + $0x58] sm:$0xf] %v2625_v4  ;;  %172 = vst [vmem:[%s2667_s23] sm:$0xf] %v2625_v4  ;;  %v2447_v5 = vunpack.c.l.bf16 %v2670_v1  ;;  %v2448_v6 = vunpack.c.h.bf16 %v2670_v1  ;;  %v2451_v7 = vunpack.c.l.bf16 %v2673_v2  ;;  %v2452_v8 = vunpack.c.h.bf16 %v2673_v2  ;;  %v2575_v9 = vld [vmem:[%s2657_s18 + $0x18] sm:$0xff]   ;;  %v2576_v27 = vld [vmem:[%s2657_s18 + $0x20] sm:$0xff]  }
  0x10   : > { %173 = vst [vmem:[%s2667_s23 + $0x4] sm:$0x1] %v2625_v4  ;;  %174 = vst [vmem:[%s2667_s23 + $0x8] sm:$0xf] %v2625_v4  ;;  %v2455_v11 = vunpack.c.l.bf16 %v2676_v3  ;;  %v2456_v12 = vunpack.c.h.bf16 %v2676_v3  ;;  %v2459_v13 = vunpack.c.l.bf16 %v2575_v9  ;;  %v2460_v14 = vunpack.c.h.bf16 %v2575_v9  ;;  %v3104_v28 = vld [vmem:[%s2657_s18 + $0x28] sm:$0xff]  }
  0x11   : > { %175 = vst [vmem:[%s2667_s23 + $0xc] sm:$0x1] %v2625_v4  ;;  %176 = vst [vmem:[%s2667_s23 + $0x10] sm:$0xf] %v2625_v4  ;;  %v507_v15 = vmul.f32 %v2447_v5, %v2662_v0  ;;  %v508_v16 = vmul.f32 %v2448_v6, %v2662_v0  ;;  %v509_v17 = vmul.f32 %v2451_v7, %v2662_v0  ;;  %v2463_v37 = vunpack.c.l.bf16 %v2576_v27 }
  0x12   : > { %177 = vst [vmem:[%s2667_s23 + $0x14] sm:$0x1] %v2625_v4  ;;  %178 = vst [vmem:[%s2667_s23 + $0x18] sm:$0xf] %v2625_v4  ;;  %v510_v18 = vmul.f32 %v2452_v8, %v2662_v0  ;;  %v511_v19 = vmul.f32 %v2455_v11, %v2662_v0  ;;  %v512_v20 = vmul.f32 %v2456_v12, %v2662_v0  ;;  %v2464_v38 = vunpack.c.h.bf16 %v2576_v27 }
  0x13   : > { %179 = vst [vmem:[%s2667_s23 + $0x1c] sm:$0x1] %v2625_v4  ;;  %180 = vst [vmem:[%s2667_s23 + $0x20] sm:$0xf] %v2625_v4  ;;  %v513_v21 = vmul.f32 %v2459_v13, %v2662_v0  ;;  %v514_v22 = vmul.f32 %v2460_v14, %v2662_v0  ;;  %v578_v23 = vadd.f32 %v3086_v10, %v507_v15  ;;  %v2467_v39 = vunpack.c.l.bf16 %v3104_v28 }
  0x14   : > { %181 = vst [vmem:[%s2667_s23 + $0x24] sm:$0x1] %v2625_v4  ;;  %182 = vst [vmem:[%s2667_s23 + $0x28] sm:$0xf] %v2625_v4  ;;  %v579_v24 = vadd.f32 %v3086_v10, %v508_v16  ;;  %v580_v25 = vadd.f32 %v3086_v10, %v509_v17  ;;  %v581_v26 = vadd.f32 %v3086_v10, %v510_v18  ;;  %v2468_v40 = vunpack.c.h.bf16 %v3104_v28 }
  0x15   : > { %183 = vst [vmem:[%s2667_s23 + $0x2c] sm:$0x1] %v2625_v4  ;;  %184 = vst [vmem:[%s2667_s23 + $0x30] sm:$0xf] %v2625_v4  ;;  %v582_v29 = vadd.f32 %v3086_v10, %v511_v19  ;;  %v583_v30 = vadd.f32 %v3086_v10, %v512_v20  ;;  %v3109_v31 = vadd.f32 %v3086_v10, %v513_v21  ;;  %v642_v33 = vmax.f32 %v578_v23, 0.0 }
  0x16   : > { %185 = vst [vmem:[%s2667_s23 + $0x34] sm:$0x1] %v2625_v4  ;;  %186 = vst [vmem:[%s2667_s23 + $0x38] sm:$0xf] %v2625_v4  ;;  %v3112_v32 = vadd.f32 %v3086_v10, %v514_v22  ;;  %v643_v34 = vmax.f32 %v579_v24, 0.0  ;;  %v644_v35 = vmax.f32 %v580_v25, 0.0  ;;  %v515_v47 = vmul.f32 %v2463_v37, %v2662_v0 }
  0x17   : > { %187 = vst [vmem:[%s2667_s23 + $0x3c] sm:$0x1] %v2625_v4  ;;  %188 = vst [vmem:[%s2667_s23 + $0x40] sm:$0xf] %v2625_v4  ;;  %v645_v36 = vmax.f32 %v581_v26, 0.0  ;;  %v2381_v41 = vpack.c.bf16 %v642_v33, %v642_v33  ;;  %v646_v45 = vmax.f32 %v582_v29, 0.0  ;;  %v516_v48 = vmul.f32 %v2464_v38, %v2662_v0 }
  0x18   : > { %189 = vst [vmem:[%s2667_s23 + $0x44] sm:$0x1] %v2625_v4  ;;  %190 = vst [vmem:[%s2667_s23 + $0x48] sm:$0xf] %v2625_v4  ;;  %v2382_v42 = vpack.c.bf16 %v643_v34, %v643_v34  ;;  %v2383_v43 = vpack.c.bf16 %v644_v35, %v644_v35  ;;  %v647_v46 = vmax.f32 %v583_v30, 0.0  ;;  %v648_v8 = vmax.f32 %v3109_v31, 0.0 }
  0x19   : > { %191 = vst [vmem:[%s2667_s23 + $0x4c] sm:$0x1] %v2625_v4  ;;  %192 = vst [vmem:[%s2667_s23 + $0x50] sm:$0xf] %v2625_v4  ;;  %v2384_v44 = vpack.c.bf16 %v645_v36, %v645_v36  ;;  %v963_v49 = vshrl.u32 %v2381_v41, 16  ;;  %v966_v50 = vshll.u32 %v2381_v41, 16  ;;  %v2385_v2 = vpack.c.bf16 %v646_v45, %v646_v45 }
  0x1a   : > { %193 = vst [vmem:[%s2667_s23 + $0x54] sm:$0x1] %v2625_v4  ;;  %195 = vst [vmem:[%s2667_s23 + $0x5c] sm:$0x1] %v2625_v4  ;;  %v971_v51 = vshrl.u32 %v2382_v42, 16  ;;  %v974_v52 = vshll.u32 %v2382_v42, 16  ;;  %v2386_v3 = vpack.c.bf16 %v647_v46, %v647_v46  ;;  %v2387_v35 = vpack.c.bf16 %v648_v8, %v648_v8 }
  0x1b   : > { %196 = vst [vmem:[%s2667_s23 + $0x60] sm:$0xf] %v2625_v4  ;;  %197 = vst [vmem:[%s2667_s23 + $0x64] sm:$0x1] %v2625_v4  ;;  %v2122_v53 = vld [vmem:[%s2667_s23 + $0x58] sm:$0xf]  ;;  %v586_v37 = vadd.f32 %v3086_v10, %v515_v47  ;;  %v587_v38 = vadd.f32 %v3086_v10, %v516_v48  ;;  %v517_v45 = vmul.f32 %v2467_v39, %v2662_v0 }
  0x1c   : > { %198 = vst [vmem:[%s2667_s23 + $0x68] sm:$0xf] %v2625_v4  ;;  %199 = vst [vmem:[%s2667_s23 + $0x6c] sm:$0x1] %v2625_v4  ;;  %v979_v56 = vshrl.u32 %v2383_v43, 16  ;;  %v982_v57 = vshll.u32 %v2383_v43, 16  ;;  %v518_v46 = vmul.f32 %v2468_v40, %v2662_v0 }
  0x1d   : > { %200 = vst [vmem:[%s2667_s23 + $0x70] sm:$0xf] %v2625_v4  ;;  %201 = vst [vmem:[%s2667_s23 + $0x74] sm:$0x1] %v2625_v4  ;;  %v987_v58 = vshrl.u32 %v2384_v44, 16  ;;  %v990_v59 = vshll.u32 %v2384_v44, 16 }
  0x1e   : > { %202 = vst [vmem:[%s2667_s23 + $0x78] sm:$0xf] %v2625_v4  ;;  %203 = vst [vmem:[%s2667_s23 + $0x7c] sm:$0x1] %v2625_v4  ;;  %v965_v60 = vrot.slane %v963_v49, 7  ;;  %v973_v62 = vrot.slane %v971_v51, 7 }
  0x1f   : > { %204 = vst [vmem:[%s2667_s23 + $0x80] sm:$0xf] %v2625_v4  ;;  %205 = vst [vmem:[%s2667_s23 + $0x84] sm:$0x1] %v2625_v4  ;;  %v981_v5 = vrot.slane %v979_v56, 7  ;;  %v989_v7 = vrot.slane %v987_v58, 7 }
  0x20   : > { %206 = vst [vmem:[%s2667_s23 + $0x88] sm:$0xf] %v2625_v4  ;;  %207 = vst [vmem:[%s2667_s23 + $0x8c] sm:$0x1] %v2625_v4  ;;  %v649_v9 = vmax.f32 %v3112_v32, 0.0  ;;  %v968_v11 = vor.u32 %v966_v50, %v965_v60  ;;  %v969_v12 = vrot.slane %v965_v60, 4  ;;  %v976_v13 = vor.u32 %v974_v52, %v973_v62 }
  0x21   : > { %208 = vst [vmem:[%s2667_s23 + $0x90] sm:$0xf] %v2625_v4  ;;  %209 = vst [vmem:[%s2667_s23 + $0x94] sm:$0x1] %v2625_v4  ;;  %v2124_v54 = vld [vmem:[%s2667_s23 + $0x5c] sm:$0x1]  ;;  %v984_v17 = vor.u32 %v982_v57, %v981_v5  ;;  %v992_v19 = vor.u32 %v990_v59, %v989_v7 }
  0x22   : > { %210 = vst [vmem:[%s2667_s23 + $0x98] sm:$0xf] %v2625_v4  ;;  %211 = vst [vmem:[%s2667_s23 + $0x9c] sm:$0x1] %v2625_v4  ;;  %v2126_v55 = vld [vmem:[%s2667_s23 + $0x60] sm:$0xf]  ;;  %v1607_v21 = vsel %vm3123_vm4, %v968_v11, %v2122_v53  ;;  %v2388_v36 = vpack.c.bf16 %v649_v9, %v649_v9  ;;  %v588_v11 = vadd.f32 %v3086_v10, %v517_v45 }
  0x23   : > { %212 = vst [vmem:[%s2667_s23 + $0xa0] sm:$0xf] %v2625_v4  ;;  %213 = vst [vmem:[%s2667_s23 + $0xa4] sm:$0x1] %v2625_v4  ;;  %v2128_v63 = vld [vmem:[%s2667_s23 + $0x64] sm:$0x1]  ;;  %v1616_v23 = vsel %vm3123_vm4, %v976_v13, %v2126_v55 }
  0x24   : > { %214 = vst [vmem:[%s2667_s23 + $0xa8] sm:$0xf] %v2625_v4  ;;  %215 = vst [vmem:[%s2667_s23 + $0xac] sm:$0x1] %v2625_v4  ;;  %v2130_v1 = vld [vmem:[%s2667_s23 + $0x68] sm:$0xf] }
  0x25   : > { %216 = vst [vmem:[%s2667_s23 + $0xb0] sm:$0xf] %v2625_v4  ;;  %217 = vst [vmem:[%s2667_s23 + $0xb4] sm:$0x1] %v2625_v4  ;;  %v2132_v6 = vld [vmem:[%s2667_s23 + $0x6c] sm:$0x1]  ;;  %v1622_v25 = vsel %vm3123_vm4, %v984_v17, %v2130_v1 }
  0x26   : > { %218 = vst [vmem:[%s2667_s23 + $0xb8] sm:$0xf] %v2625_v4  ;;  %219 = vst [vmem:[%s2667_s23 + $0xbc] sm:$0x1] %v2625_v4  ;;  %v977_v14 = vrot.slane %v973_v62, 4  ;;  %v985_v18 = vrot.slane %v981_v5, 4 }
  0x27   : > { %220 = vst [vmem:[%s2667_s23 + $0xc0] sm:$0xf] %v2625_v4  ;;  %221 = vst [vmem:[%s2667_s23 + $0xc4] sm:$0x1] %v2625_v4  ;;  %v2134_v15 = vld [vmem:[%s2667_s23 + $0x70] sm:$0xf] }
  0x28   : > { %222 = vst [vmem:[%s2667_s23 + $0xc8] sm:$0xf] %v2625_v4  ;;  %223 = vst [vmem:[%s2667_s23 + $0xcc] sm:$0x1] %v2625_v4  ;;  %v2136_v16 = vld [vmem:[%s2667_s23 + $0x74] sm:$0x1]  ;;  %v1628_v27 = vsel %vm3123_vm4, %v992_v19, %v2134_v15 }
  0x29   : > { %224 = vst [vmem:[%s2667_s23 + $0xd0] sm:$0xf] %v2625_v4  ;;  %225 = vst [vmem:[%s2667_s23 + $0xd4] sm:$0x1] %v2625_v4  ;;  %v993_v20 = vrot.slane %v989_v7, 4  ;;  %v995_v30 = vshrl.u32 %v2385_v2, 16 }
  0x2a   : > { %226 = vst [vmem:[%s2667_s23 + $0xd8] sm:$0xf] %v2625_v4  ;;  %227 = vst [vmem:[%s2667_s23 + $0xdc] sm:$0x1] %v2625_v4  ;;  %v998_v31 = vshll.u32 %v2385_v2, 16  ;;  %v1003_v32 = vshrl.u32 %v2386_v3, 16 }
  0x2b   : > { %228 = vst [vmem:[%s2667_s23 + $0xe0] sm:$0xf] %v2625_v4  ;;  %229 = vst [vmem:[%s2667_s23 + $0xe4] sm:$0x1] %v2625_v4  ;;  %v1006_v33 = vshll.u32 %v2386_v3, 16  ;;  %v997_v41 = vrot.slane %v995_v30, 7 }
  0x2c   : > { %230 = vst [vmem:[%s2667_s23 + $0xe8] sm:$0xf] %v2625_v4  ;;  %231 = vst [vmem:[%s2667_s23 + $0xec] sm:$0x1] %v2625_v4  ;;  %v2138_v34 = vld [vmem:[%s2667_s23 + $0x78] sm:$0xf] }
  0x2d   : > { %232 = vst [vmem:[%s2667_s23 + $0xf0] sm:$0xf] %v2625_v4  ;;  %233 = vst [vmem:[%s2667_s23 + $0xf4] sm:$0x1] %v2625_v4  ;;  %v2140_v42 = vld [vmem:[%s2667_s23 + $0x7c] sm:$0x1]  ;;  %v1000_v52 = vor.u32 %v998_v31, %v997_v41 }
  0x2e   : > { %234 = vst [vmem:[%s2667_s23 + $0xf8] sm:$0xf] %v2625_v4  ;;  %235 = vst [vmem:[%s2667_s23 + $0xfc] sm:$0x1] %v2625_v4  ;;  %v1005_v43 = vrot.slane %v1003_v32, 7  ;;  %v1011_v50 = vshrl.u32 %v2387_v35, 16 }
  0x2f   : > { %236 = vst [vmem:[%s2667_s23 + $0x100] sm:$0xf] %v2625_v4  ;;  %237 = vst [vmem:[%s2667_s23 + $0x104] sm:$0x1] %v2625_v4  ;;  %v2142_v44 = vld [vmem:[%s2667_s23 + $0x80] sm:$0xf]  ;;  %v1634_v58 = vsel %vm3123_vm4, %v1000_v52, %v2138_v34 }
  0x30   : > { %238 = vst [vmem:[%s2667_s23 + $0x108] sm:$0xf] %v2625_v4  ;;  %239 = vst [vmem:[%s2667_s23 + $0x10c] sm:$0x1] %v2625_v4  ;;  %v2144_v49 = vld [vmem:[%s2667_s23 + $0x84] sm:$0x1] }
  0x31   : > { %240 = vst [vmem:[%s2667_s23 + $0x110] sm:$0xf] %v2625_v4  ;;  %241 = vst [vmem:[%s2667_s23 + $0x114] sm:$0x1] %v2625_v4  ;;  %v1014_v51 = vshll.u32 %v2387_v35, 16  ;;  %v1019_v47 = vshrl.u32 %v2388_v36, 16 }
  0x32   : > { %242 = vst [vmem:[%s2667_s23 + $0x118] sm:$0xf] %v2625_v4  ;;  %243 = vst [vmem:[%s2667_s23 + $0x11c] sm:$0x1] %v2625_v4  ;;  %v1022_v48 = vshll.u32 %v2388_v36, 16  ;;  %v1001_v53 = vrot.slane %v997_v41, 4 }
  0x33   : > { %244 = vst [vmem:[%s2667_s23 + $0x120] sm:$0xf] %v2625_v4  ;;  %245 = vst [vmem:[%s2667_s23 + $0x124] sm:$0x1] %v2625_v4  ;;  %v1009_v55 = vrot.slane %v1005_v43, 4  ;;  %v1013_v39 = vrot.slane %v1011_v50, 7 }
  0x34   : > { %246 = vst [vmem:[%s2667_s23 + $0x128] sm:$0xf] %v2625_v4  ;;  %247 = vst [vmem:[%s2667_s23 + $0x12c] sm:$0x1] %v2625_v4  ;;  %v2146_v56 = vld [vmem:[%s2667_s23 + $0x88] sm:$0xf] }
  0x35   : > { %248 = vst [vmem:[%s2667_s23 + $0x130] sm:$0xf] %v2625_v4  ;;  %249 = vst [vmem:[%s2667_s23 + $0x134] sm:$0x1] %v2625_v4  ;;  %v1021_v28 = vrot.slane %v1019_v47, 7  ;;  %v650_v40 = vmax.f32 %v586_v37, 0.0  ;;  %v1016_v3 = vor.u32 %v1014_v51, %v1013_v39 }
  0x36   : > { %250 = vst [vmem:[%s2667_s23 + $0x138] sm:$0xf] %v2625_v4  ;;  %251 = vst [vmem:[%s2667_s23 + $0x13c] sm:$0x1] %v2625_v4  ;;  %v651_v57 = vmax.f32 %v587_v38, 0.0  ;;  %v1017_v5 = vrot.slane %v1013_v39, 4 }
  0x37   : > { %252 = vst [vmem:[%s2667_s23 + $0x140] sm:$0xf] %v2625_v4  ;;  %253 = vst [vmem:[%s2667_s23 + $0x144] sm:$0x1] %v2625_v4  ;;  %v2150_v1 = vld [vmem:[%s2667_s23 + $0x90] sm:$0xf]  ;;  %v2389_v8 = vpack.c.bf16 %v650_v40, %v650_v40 }
  0x38   : > { %254 = vst [vmem:[%s2667_s23 + $0x148] sm:$0xf] %v2625_v4  ;;  %255 = vst [vmem:[%s2667_s23 + $0x14c] sm:$0x1] %v2625_v4  ;;  %v2152_v2 = vld [vmem:[%s2667_s23 + $0x94] sm:$0x1]  ;;  %v2390_v9 = vpack.c.bf16 %v651_v57, %v651_v57 }
  0x39   : > { %256 = vst [vmem:[%s2667_s23 + $0x150] sm:$0xf] %v2625_v4  ;;  %257 = vst [vmem:[%s2667_s23 + $0x154] sm:$0x1] %v2625_v4  ;;  %v1025_v7 = vrot.slane %v1021_v28, 4  ;;  %v2578_v13 = vld [vmem:[%s2657_s18 + $0x30] sm:$0xff]  }
  0x3a   : > { %258 = vst [vmem:[%s2667_s23 + $0x158] sm:$0xf] %v2625_v4  ;;  %259 = vst [vmem:[%s2667_s23 + $0x15c] sm:$0x1] %v2625_v4  ;;  %v1027_v19 = vshrl.u32 %v2389_v8, 16  ;;  %v2580_v47 = vld [vmem:[%s2657_s18 + $0x40] sm:$0xff]  }
  0x3b   : > { %260 = vst [vmem:[%s2667_s23 + $0x160] sm:$0xf] %v2625_v4  ;;  %261 = vst [vmem:[%s2667_s23 + $0x164] sm:$0x1] %v2625_v4  ;;  %v2158_v34 = vld [vmem:[%s2667_s23 + $0xb0] sm:$0xf] }
  0x3c   : > { %262 = vst [vmem:[%s2667_s23 + $0x168] sm:$0xf] %v2625_v4  ;;  %263 = vst [vmem:[%s2667_s23 + $0x16c] sm:$0x1] %v2625_v4  ;;  %v2160_v35 = vld [vmem:[%s2667_s23 + $0xb4] sm:$0x1] }
  0x3d   : > { %264 = vst [vmem:[%s2667_s23 + $0x170] sm:$0xf] %v2625_v4  ;;  %265 = vst [vmem:[%s2667_s23 + $0x174] sm:$0x1] %v2625_v4  ;;  %v2162_v39 = vld [vmem:[%s2667_s23 + $0xb8] sm:$0xf] }
  0x3e   : > { %266 = vst [vmem:[%s2667_s23 + $0x178] sm:$0xf] %v2625_v4  ;;  %267 = vst [vmem:[%s2667_s23 + $0x17c] sm:$0x1] %v2625_v4  ;;  %v2164_v57 = vld [vmem:[%s2667_s23 + $0xbc] sm:$0x1] }
  0x3f   : > { %268 = vst [vmem:[%s2667_s23 + $0x180] sm:$0xf] %v2625_v4  ;;  %269 = vst [vmem:[%s2667_s23 + $0x184] sm:$0x1] %v2625_v4 }
  0x40   : > { %270 = vst [vmem:[%s2667_s23 + $0x188] sm:$0xf] %v2625_v4  ;;  %271 = vst [vmem:[%s2667_s23 + $0x18c] sm:$0x1] %v2625_v4 }
  0x41   : > { %272 = vst [vmem:[%s2667_s23 + $0x190] sm:$0xf] %v2625_v4  ;;  %273 = vst [vmem:[%s2667_s23 + $0x194] sm:$0x1] %v2625_v4 }
  0x42   : > { %274 = vst [vmem:[%s2667_s23 + $0x198] sm:$0xf] %v2625_v4  ;;  %275 = vst [vmem:[%s2667_s23 + $0x19c] sm:$0x1] %v2625_v4 }
  0x43   : > { %276 = vst [vmem:[%s2667_s23 + $0x1a0] sm:$0xf] %v2625_v4  ;;  %277 = vst [vmem:[%s2667_s23 + $0x1a4] sm:$0x1] %v2625_v4 }
  0x44   : > { %278 = vst [vmem:[%s2667_s23 + $0x1a8] sm:$0xf] %v2625_v4  ;;  %279 = vst [vmem:[%s2667_s23 + $0x1ac] sm:$0x1] %v2625_v4 }
  0x45   : > { %280 = vst [vmem:[%s2667_s23 + $0x1b0] sm:$0xf] %v2625_v4  ;;  %281 = vst [vmem:[%s2667_s23 + $0x1b4] sm:$0x1] %v2625_v4 }
  0x46   : > { %282 = vst [vmem:[%s2667_s23 + $0x1b8] sm:$0xf] %v2625_v4  ;;  %283 = vst [vmem:[%s2667_s23 + $0x1bc] sm:$0x1] %v2625_v4 }
  0x47   : > { %284 = vst [vmem:[%s2667_s23 + $0x1c0] sm:$0xf] %v2625_v4  ;;  %285 = vst [vmem:[%s2667_s23 + $0x1c4] sm:$0x1] %v2625_v4 }
  0x48   : > { %286 = vst [vmem:[%s2667_s23 + $0x1c8] sm:$0xf] %v2625_v4  ;;  %287 = vst [vmem:[%s2667_s23 + $0x1cc] sm:$0x1] %v2625_v4 }
  0x49   : > { %288 = vst [vmem:[%s2667_s23 + $0x1d0] sm:$0xf] %v2625_v4  ;;  %289 = vst [vmem:[%s2667_s23 + $0x1d4] sm:$0x1] %v2625_v4 }
  0x4a   : > { %290 = vst [vmem:[%s2667_s23 + $0x1d8] sm:$0xf] %v2625_v4  ;;  %291 = vst [vmem:[%s2667_s23 + $0x1dc] sm:$0x1] %v2625_v4 }
  0x4b   : > { %292 = vst [vmem:[%s2667_s23 + $0x1e0] sm:$0xf] %v2625_v4  ;;  %293 = vst [vmem:[%s2667_s23 + $0x1e4] sm:$0x1] %v2625_v4 }
  0x4c   : > { %294 = vst [vmem:[%s2667_s23 + $0x1e8] sm:$0xf] %v2625_v4  ;;  %295 = vst [vmem:[%s2667_s23 + $0x1ec] sm:$0x1] %v2625_v4 }
  0x4d   : > { %296 = vst [vmem:[%s2667_s23 + $0x1f0] sm:$0xf] %v2625_v4  ;;  %297 = vst [vmem:[%s2667_s23 + $0x1f4] sm:$0x1] %v2625_v4 }
  0x4e   : > { %298 = vst [vmem:[%s2667_s23 + $0x1f8] sm:$0xf] %v2625_v4  ;;  %299 = vst [vmem:[%s2667_s23 + $0x1fc] sm:$0x1] %v2625_v4 }
  0x4f   : > { %300 = vst [vmem:[%s2667_s23 + $0x200] sm:$0xf] %v2625_v4  ;;  %301 = vst [vmem:[%s2667_s23 + $0x204] sm:$0x1] %v2625_v4 }
  0x50   : > { %302 = vst [vmem:[%s2667_s23 + $0x208] sm:$0xf] %v2625_v4  ;;  %303 = vst [vmem:[%s2667_s23 + $0x20c] sm:$0x1] %v2625_v4 }
  0x51   : > { %304 = vst [vmem:[%s2667_s23 + $0x210] sm:$0xf] %v2625_v4  ;;  %305 = vst [vmem:[%s2667_s23 + $0x214] sm:$0x1] %v2625_v4 }
  0x52   : > { %306 = vst [vmem:[%s2667_s23 + $0x218] sm:$0xf] %v2625_v4  ;;  %307 = vst [vmem:[%s2667_s23 + $0x21c] sm:$0x1] %v2625_v4 }
  0x53   : > { %308 = vst [vmem:[%s2667_s23 + $0x220] sm:$0xf] %v2625_v4  ;;  %309 = vst [vmem:[%s2667_s23 + $0x224] sm:$0x1] %v2625_v4 }
  0x54   : > { %310 = vst [vmem:[%s2667_s23 + $0x228] sm:$0xf] %v2625_v4  ;;  %311 = vst [vmem:[%s2667_s23 + $0x22c] sm:$0x1] %v2625_v4 }
  0x55   : > { %312 = vst [vmem:[%s2667_s23 + $0x230] sm:$0xf] %v2625_v4  ;;  %313 = vst [vmem:[%s2667_s23 + $0x234] sm:$0x1] %v2625_v4 }
  0x56   : > { %314 = vst [vmem:[%s2667_s23 + $0x238] sm:$0xf] %v2625_v4  ;;  %315 = vst [vmem:[%s2667_s23 + $0x23c] sm:$0x1] %v2625_v4 }
  0x57   : > { %316 = vst [vmem:[%s2667_s23 + $0x240] sm:$0xf] %v2625_v4  ;;  %317 = vst [vmem:[%s2667_s23 + $0x244] sm:$0x1] %v2625_v4 }
  0x58   : > { %318 = vst [vmem:[%s2667_s23 + $0x248] sm:$0xf] %v2625_v4  ;;  %319 = vst [vmem:[%s2667_s23 + $0x24c] sm:$0x1] %v2625_v4 }
  0x59   : > { %320 = vst [vmem:[%s2667_s23 + $0x250] sm:$0xf] %v2625_v4  ;;  %321 = vst [vmem:[%s2667_s23 + $0x254] sm:$0x1] %v2625_v4 }
  0x5a   : > { %322 = vst [vmem:[%s2667_s23 + $0x258] sm:$0xf] %v2625_v4  ;;  %323 = vst [vmem:[%s2667_s23 + $0x25c] sm:$0x1] %v2625_v4 }
  0x5b   : > { %324 = vst [vmem:[%s2667_s23 + $0x260] sm:$0xf] %v2625_v4  ;;  %325 = vst [vmem:[%s2667_s23 + $0x264] sm:$0x1] %v2625_v4 }
  0x5c   : > { %326 = vst [vmem:[%s2667_s23 + $0x268] sm:$0xf] %v2625_v4  ;;  %327 = vst [vmem:[%s2667_s23 + $0x26c] sm:$0x1] %v2625_v4 }
  0x5d   : > { %328 = vst [vmem:[%s2667_s23 + $0x270] sm:$0xf] %v2625_v4  ;;  %329 = vst [vmem:[%s2667_s23 + $0x274] sm:$0x1] %v2625_v4 }
  0x5e   : > { %330 = vst [vmem:[%s2667_s23 + $0x278] sm:$0xf] %v2625_v4  ;;  %331 = vst [vmem:[%s2667_s23 + $0x27c] sm:$0x1] %v2625_v4 }
  0x5f   : > { %332 = vst [vmem:[%s2667_s23 + $0x280] sm:$0xf] %v2625_v4  ;;  %333 = vst [vmem:[%s2667_s23 + $0x284] sm:$0x1] %v2625_v4 }
  0x60   : > { %334 = vst [vmem:[%s2667_s23 + $0x288] sm:$0xf] %v2625_v4  ;;  %335 = vst [vmem:[%s2667_s23 + $0x28c] sm:$0x1] %v2625_v4 }
  0x61   : > { %336 = vst [vmem:[%s2667_s23 + $0x290] sm:$0xf] %v2625_v4  ;;  %337 = vst [vmem:[%s2667_s23 + $0x294] sm:$0x1] %v2625_v4 }
  0x62   : > { %338 = vst [vmem:[%s2667_s23 + $0x298] sm:$0xf] %v2625_v4  ;;  %339 = vst [vmem:[%s2667_s23 + $0x29c] sm:$0x1] %v2625_v4 }
  0x63   : > { %340 = vst [vmem:[%s2667_s23 + $0x2a0] sm:$0xf] %v2625_v4  ;;  %341 = vst [vmem:[%s2667_s23 + $0x2a4] sm:$0x1] %v2625_v4 }
  0x64   : > { %342 = vst [vmem:[%s2667_s23 + $0x2a8] sm:$0xf] %v2625_v4  ;;  %343 = vst [vmem:[%s2667_s23 + $0x2ac] sm:$0x1] %v2625_v4 }
  0x65   : > { %344 = vst [vmem:[%s2667_s23 + $0x2b0] sm:$0xf] %v2625_v4  ;;  %345 = vst [vmem:[%s2667_s23 + $0x2b4] sm:$0x1] %v2625_v4 }
  0x66   : > { %346 = vst [vmem:[%s2667_s23 + $0x2b8] sm:$0xf] %v2625_v4  ;;  %347 = vst [vmem:[%s2667_s23 + $0x2bc] sm:$0x1] %v2625_v4 }
  0x67   : > { %348 = vst [vmem:[%s2667_s23 + $0x2c0] sm:$0xf] %v2625_v4  ;;  %349 = vst [vmem:[%s2667_s23 + $0x2c4] sm:$0x1] %v2625_v4 }
  0x68   : > { %350 = vst [vmem:[%s2667_s23 + $0x2c8] sm:$0xf] %v2625_v4  ;;  %351 = vst [vmem:[%s2667_s23 + $0x2cc] sm:$0x1] %v2625_v4 }
  0x69   : > { %352 = vst [vmem:[%s2667_s23 + $0x2d0] sm:$0xf] %v2625_v4  ;;  %353 = vst [vmem:[%s2667_s23 + $0x2d4] sm:$0x1] %v2625_v4 }
  0x6a   : > { %354 = vst [vmem:[%s2667_s23 + $0x2d8] sm:$0xf] %v2625_v4  ;;  %355 = vst [vmem:[%s2667_s23 + $0x2dc] sm:$0x1] %v2625_v4 }
  0x6b   : > { %356 = vst [vmem:[%s2667_s23 + $0x2e0] sm:$0xf] %v2625_v4  ;;  %357 = vst [vmem:[%s2667_s23 + $0x2e4] sm:$0x1] %v2625_v4 }
  0x6c   : > { %358 = vst [vmem:[%s2667_s23 + $0x2e8] sm:$0xf] %v2625_v4  ;;  %359 = vst [vmem:[%s2667_s23 + $0x2ec] sm:$0x1] %v2625_v4 }
  0x6d   : > { %360 = vst [vmem:[%s2667_s23 + $0x2f0] sm:$0xf] %v2625_v4  ;;  %361 = vst [vmem:[%s2667_s23 + $0x2f4] sm:$0x1] %v2625_v4 }
  0x6e   : > { %362 = vst [vmem:[%s2667_s23 + $0x2f8] sm:$0xf] %v2625_v4  ;;  %363 = vst [vmem:[%s2667_s23 + $0x2fc] sm:$0x1] %v2625_v4 }
  0x6f   : > { %364 = vst [vmem:[%s2667_s23 + $0x300] sm:$0xf] %v2625_v4  ;;  %365 = vst [vmem:[%s2667_s23 + $0x304] sm:$0x1] %v2625_v4 }
  0x70   : > { %366 = vst [vmem:[%s2667_s23 + $0x308] sm:$0xf] %v2625_v4  ;;  %367 = vst [vmem:[%s2667_s23 + $0x30c] sm:$0x1] %v2625_v4 }
  0x71   : > { %368 = vst [vmem:[%s2667_s23 + $0x310] sm:$0xf] %v2625_v4  ;;  %369 = vst [vmem:[%s2667_s23 + $0x314] sm:$0x1] %v2625_v4 }
  0x72   : > { %370 = vst [vmem:[%s2667_s23 + $0x318] sm:$0xf] %v2625_v4  ;;  %371 = vst [vmem:[%s2667_s23 + $0x31c] sm:$0x1] %v2625_v4 }
  0x73   : > { %vm3131_vm5 = vmand %vm1609_vm2, %vm1610_vm3  ;;  %2123 = vst [vmem:[%s2667_s23 + $0x58] sm:$0xf] %v1607_v21  ;;  %v1035_v21 = vshrl.u32 %v2390_v9, 16 }
  0x74   : > { %v1613_v22 = vsel %vm3131_vm5, %v969_v12, %v2124_v54  ;;  %v1619_v24 = vsel %vm3131_vm5, %v977_v14, %v2128_v63  ;;  %2127 = vst [vmem:[%s2667_s23 + $0x60] sm:$0xf] %v1616_v23  ;;  %v1625_v26 = vsel %vm3131_vm5, %v985_v18, %v2132_v6  ;;  %v1631_v29 = vsel %vm3131_vm5, %v993_v20, %v2136_v16  ;;  %v2148_v63 = vld [vmem:[%s2667_s23 + $0x8c] sm:$0x1]  ;;  %v2579_v18 = vld [vmem:[%s2657_s18 + $0x38] sm:$0xff]  }
  0x75   : > { %2125 = vst [vmem:[%s2667_s23 + $0x5c] sm:$0x1] %v1613_v22  ;;  %2129 = vst [vmem:[%s2667_s23 + $0x64] sm:$0x1] %v1619_v24  ;;  %v1008_v54 = vor.u32 %v1006_v33, %v1005_v43  ;;  %v1637_v59 = vsel %vm3131_vm5, %v1001_v53, %v2140_v42  ;;  %v1643_v62 = vsel %vm3131_vm5, %v1009_v55, %v2144_v49  ;;  %v1030_v20 = vshll.u32 %v2389_v8, 16 }
  0x76   : > { %2131 = vst [vmem:[%s2667_s23 + $0x68] sm:$0xf] %v1622_v25  ;;  %2133 = vst [vmem:[%s2667_s23 + $0x6c] sm:$0x1] %v1625_v26  ;;  %v1024_v6 = vor.u32 %v1022_v48, %v1021_v28  ;;  %v589_v12 = vadd.f32 %v3086_v10, %v518_v46  ;;  %v1646_v14 = vsel %vm3123_vm4, %v1016_v3, %v2146_v56  ;;  %v1038_v22 = vshll.u32 %v2390_v9, 16 }
  0x77   : > { %2135 = vst [vmem:[%s2667_s23 + $0x70] sm:$0xf] %v1628_v27  ;;  %2137 = vst [vmem:[%s2667_s23 + $0x74] sm:$0x1] %v1631_v29  ;;  %v1640_v60 = vsel %vm3123_vm4, %v1008_v54, %v2142_v44  ;;  %v1649_v15 = vsel %vm3131_vm5, %v1017_v5, %v2148_v63  ;;  %v1655_v17 = vsel %vm3131_vm5, %v1025_v7, %v2152_v2  ;;  %v652_v23 = vmax.f32 %v588_v11, 0.0 }
  0x78   : > { %2139 = vst [vmem:[%s2667_s23 + $0x78] sm:$0xf] %v1634_v58  ;;  %2141 = vst [vmem:[%s2667_s23 + $0x7c] sm:$0x1] %v1637_v59  ;;  %v1652_v16 = vsel %vm3123_vm4, %v1024_v6, %v2150_v1  ;;  %v653_v24 = vmax.f32 %v589_v12, 0.0  ;;  %v2471_v25 = vunpack.c.l.bf16 %v2578_v13  ;;  %v2472_v26 = vunpack.c.h.bf16 %v2578_v13  ;;  %v2581_v12 = vld [vmem:[%s2657_s18 + $0x48] sm:$0xff]  }
  0x79   : > { %2143 = vst [vmem:[%s2667_s23 + $0x80] sm:$0xf] %v1640_v60  ;;  %2145 = vst [vmem:[%s2667_s23 + $0x84] sm:$0x1] %v1643_v62  ;;  %v1029_v27 = vrot.slane %v1027_v19, 7  ;;  %v1037_v30 = vrot.slane %v1035_v21, 7  ;;  %v2475_v31 = vunpack.c.l.bf16 %v2579_v18  ;;  %v2476_v32 = vunpack.c.h.bf16 %v2579_v18 }
  0x7a   : > { %2147 = vst [vmem:[%s2667_s23 + $0x88] sm:$0xf] %v1646_v14  ;;  %2149 = vst [vmem:[%s2667_s23 + $0x8c] sm:$0x1] %v1649_v15  ;;  %v2154_v29 = vld [vmem:[%s2667_s23 + $0xa8] sm:$0xf]  ;;  %v2391_v36 = vpack.c.bf16 %v652_v23, %v652_v23  ;;  %v2392_v37 = vpack.c.bf16 %v653_v24, %v653_v24  ;;  %v519_v38 = vmul.f32 %v2471_v25, %v2662_v0  ;;  %v2479_v63 = vunpack.c.l.bf16 %v2580_v47 }
  0x7b   : > { %2151 = vst [vmem:[%s2667_s23 + $0x90] sm:$0xf] %v1652_v16  ;;  %2153 = vst [vmem:[%s2667_s23 + $0x94] sm:$0x1] %v1655_v17  ;;  %v2156_v33 = vld [vmem:[%s2667_s23 + $0xac] sm:$0x1]  ;;  %v520_v41 = vmul.f32 %v2472_v26, %v2662_v0  ;;  %v1032_v42 = vor.u32 %v1030_v20, %v1029_v27  ;;  %v1040_v44 = vor.u32 %v1038_v22, %v1037_v30  ;;  %v2480_v1 = vunpack.c.h.bf16 %v2580_v47 }
  0x7c   : > { %v1033_v43 = vrot.slane %v1029_v27, 4  ;;  %v1041_v45 = vrot.slane %v1037_v30, 4  ;;  %v1043_v46 = vshrl.u32 %v2391_v36, 16  ;;  %v1046_v49 = vshll.u32 %v2391_v36, 16  ;;  %v2166_v58 = vld [vmem:[%s2667_s23 + $0xc0] sm:$0xf] }
  0x7d   : > { %v1051_v50 = vshrl.u32 %v2392_v37, 16  ;;  %v1054_v51 = vshll.u32 %v2392_v37, 16  ;;  %v1658_v48 = vsel %vm3123_vm4, %v1032_v42, %v2154_v29  ;;  %v1664_v53 = vsel %vm3123_vm4, %v1040_v44, %v2158_v34  ;;  %v2168_v59 = vld [vmem:[%s2667_s23 + $0xc4] sm:$0x1]  ;;  %v2170_v30 = vld [vmem:[%s2667_s23 + $0xc8] sm:$0xf] }
  0x7e   : > { %v1661_v52 = vsel %vm3131_vm5, %v1033_v43, %v2156_v33  ;;  %v1667_v54 = vsel %vm3131_vm5, %v1041_v45, %v2160_v35  ;;  %2155 = vst [vmem:[%s2667_s23 + $0xa8] sm:$0xf] %v1658_v48  ;;  %2159 = vst [vmem:[%s2667_s23 + $0xb0] sm:$0xf] %v1664_v53  ;;  %v1045_v55 = vrot.slane %v1043_v46, 7  ;;  %v590_v28 = vadd.f32 %v3086_v10, %v519_v38 }
  0x7f   : > { %2157 = vst [vmem:[%s2667_s23 + $0xac] sm:$0x1] %v1661_v52  ;;  %2161 = vst [vmem:[%s2667_s23 + $0xb4] sm:$0x1] %v1667_v54  ;;  %v1053_v56 = vrot.slane %v1051_v50, 7  ;;  %v591_v40 = vadd.f32 %v3086_v10, %v520_v41  ;;  %v521_v60 = vmul.f32 %v2475_v31, %v2662_v0  ;;  %v522_v62 = vmul.f32 %v2476_v32, %v2662_v0 }
  0x80   : > { %v1048_v2 = vor.u32 %v1046_v49, %v1045_v55  ;;  %v1049_v3 = vrot.slane %v1045_v55, 4  ;;  %v654_v7 = vmax.f32 %v590_v28, 0.0  ;;  %v523_v21 = vmul.f32 %v2479_v63, %v2662_v0  ;;  %v2172_v36 = vld [vmem:[%s2667_s23 + $0xcc] sm:$0x1]  ;;  %v2174_v38 = vld [vmem:[%s2667_s23 + $0xd0] sm:$0xf] }
  0x81   : > { %v1056_v5 = vor.u32 %v1054_v51, %v1053_v56  ;;  %v1057_v6 = vrot.slane %v1053_v56, 4  ;;  %v655_v8 = vmax.f32 %v591_v40, 0.0  ;;  %v592_v9 = vadd.f32 %v3086_v10, %v521_v60  ;;  %v2176_v43 = vld [vmem:[%s2667_s23 + $0xd4] sm:$0x1]  ;;  %v2178_v53 = vld [vmem:[%s2667_s23 + $0xd8] sm:$0xf] }
  0x82   : > { %v593_v11 = vadd.f32 %v3086_v10, %v522_v62  ;;  %v1670_v13 = vsel %vm3123_vm4, %v1048_v2, %v2162_v39  ;;  %v1673_v14 = vsel %vm3131_vm5, %v1049_v3, %v2164_v57  ;;  %v2393_v17 = vpack.c.bf16 %v654_v7, %v654_v7  ;;  %v2184_v60 = vld [vmem:[%s2667_s23 + $0xe4] sm:$0x1] }
  0x83   : > { %v1676_v15 = vsel %vm3123_vm4, %v1056_v5, %v2166_v58  ;;  %v1679_v16 = vsel %vm3131_vm5, %v1057_v6, %v2168_v59  ;;  %2163 = vst [vmem:[%s2667_s23 + $0xb8] sm:$0xf] %v1670_v13  ;;  %2165 = vst [vmem:[%s2667_s23 + $0xbc] sm:$0x1] %v1673_v14  ;;  %v2394_v18 = vpack.c.bf16 %v655_v8, %v655_v8  ;;  %v656_v19 = vmax.f32 %v592_v9, 0.0  ;;  %v2582_v8 = vld [vmem:[%s2657_s18 + $0x50] sm:$0xff]  }
  0x84   : > { %2167 = vst [vmem:[%s2667_s23 + $0xc0] sm:$0xf] %v1676_v15  ;;  %2169 = vst [vmem:[%s2667_s23 + $0xc4] sm:$0x1] %v1679_v16  ;;  %v657_v20 = vmax.f32 %v593_v11, 0.0  ;;  %v524_v22 = vmul.f32 %v2480_v1, %v2662_v0  ;;  %v2483_v23 = vunpack.c.l.bf16 %v2581_v12  ;;  %v2484_v24 = vunpack.c.h.bf16 %v2581_v12  ;;  %v2583_v14 = vld [vmem:[%s2657_s18 + $0x58] sm:$0xff]  }
  0x85   : > { %v1059_v25 = vshrl.u32 %v2393_v17, 16  ;;  %v1062_v26 = vshll.u32 %v2393_v17, 16  ;;  %v1067_v27 = vshrl.u32 %v2394_v18, 16  ;;  %v1070_v29 = vshll.u32 %v2394_v18, 16  ;;  %v2180_v58 = vld [vmem:[%s2667_s23 + $0xdc] sm:$0x1] }
  0x86   : > { %v2395_v31 = vpack.c.bf16 %v656_v19, %v656_v19  ;;  %v2396_v32 = vpack.c.bf16 %v657_v20, %v657_v20  ;;  %v594_v33 = vadd.f32 %v3086_v10, %v523_v21  ;;  %v595_v34 = vadd.f32 %v3086_v10, %v524_v22  ;;  %v2182_v59 = vld [vmem:[%s2667_s23 + $0xe0] sm:$0xf] }
  0x87   : > { %v1061_v35 = vrot.slane %v1059_v25, 7  ;;  %v1069_v37 = vrot.slane %v1067_v27, 7  ;;  %v525_v41 = vmul.f32 %v2483_v23, %v2662_v0  ;;  %v526_v42 = vmul.f32 %v2484_v24, %v2662_v0  ;;  %v2186_v24 = vld [vmem:[%s2667_s23 + $0xf8] sm:$0xf] }
  0x88   : > { %v1075_v44 = vshrl.u32 %v2395_v31, 16  ;;  %v1078_v45 = vshll.u32 %v2395_v31, 16  ;;  %v1083_v46 = vshrl.u32 %v2396_v32, 16  ;;  %v1086_v49 = vshll.u32 %v2396_v32, 16  ;;  %v2192_v31 = vld [vmem:[%s2667_s23 + $0x104] sm:$0x1] }
  0x89   : > { %v1064_v50 = vor.u32 %v1062_v26, %v1061_v35  ;;  %v1065_v51 = vrot.slane %v1061_v35, 4  ;;  %v1072_v47 = vor.u32 %v1070_v29, %v1069_v37  ;;  %v1073_v48 = vrot.slane %v1069_v37, 4  ;;  %v2188_v29 = vld [vmem:[%s2667_s23 + $0xfc] sm:$0x1]  ;;  %v3300_v35 = vld [vmem:[%s3803_s1] ss:$0 sm:$0xff] }
  0x8a   : > { %v1077_v52 = vrot.slane %v1075_v44, 7  ;;  %v1085_v54 = vrot.slane %v1083_v46, 7  ;;  %v658_v55 = vmax.f32 %v594_v33, 0.0  ;;  %v659_v39 = vmax.f32 %v595_v34, 0.0  ;;  %v2584_v46 = vld [vmem:[%s2657_s18 + $0x60] sm:$0xff]  }
  0x8b   : > { %v1682_v56 = vsel %vm3123_vm4, %v1064_v50, %v2170_v30  ;;  %v1685_v28 = vsel %vm3131_vm5, %v1065_v51, %v2172_v36  ;;  %v1688_v40 = vsel %vm3123_vm4, %v1072_v47, %v2174_v38  ;;  %v1691_v57 = vsel %vm3131_vm5, %v1073_v48, %v2176_v43  ;;  %v2190_v30 = vld [vmem:[%s2667_s23 + $0x100] sm:$0xf] }
  0x8c   : > { %2171 = vst [vmem:[%s2667_s23 + $0xc8] sm:$0xf] %v1682_v56  ;;  %2173 = vst [vmem:[%s2667_s23 + $0xcc] sm:$0x1] %v1685_v28  ;;  %v1080_v62 = vor.u32 %v1078_v45, %v1077_v52  ;;  %v1081_v63 = vrot.slane %v1077_v52, 4  ;;  %v1088_v1 = vor.u32 %v1086_v49, %v1085_v54  ;;  %v1089_v2 = vrot.slane %v1085_v54, 4 }
  0x8d   : > { %2175 = vst [vmem:[%s2667_s23 + $0xd0] sm:$0xf] %v1688_v40  ;;  %2177 = vst [vmem:[%s2667_s23 + $0xd4] sm:$0x1] %v1691_v57  ;;  %v2397_v3 = vpack.c.bf16 %v658_v55, %v658_v55  ;;  %v2398_v5 = vpack.c.bf16 %v659_v39, %v659_v39  ;;  %v596_v6 = vadd.f32 %v3086_v10, %v525_v41  ;;  %v2487_v21 = vunpack.c.l.bf16 %v2582_v8  ;;  %v2194_v52 = vld [vmem:[%s2667_s23 + $0x108] sm:$0xf] }
  0x8e   : > { %v597_v7 = vadd.f32 %v3086_v10, %v526_v42  ;;  %v1694_v9 = vsel %vm3123_vm4, %v1080_v62, %v2178_v53  ;;  %v1697_v11 = vsel %vm3131_vm5, %v1081_v63, %v2180_v58  ;;  %v1700_v12 = vsel %vm3123_vm4, %v1088_v1, %v2182_v59  ;;  %v2196_v39 = vld [vmem:[%s2667_s23 + $0x10c] sm:$0x1]  ;;  %v2198_v56 = vld [vmem:[%s2667_s23 + $0x110] sm:$0xf]  ;;  %v2200_v28 = vld [vmem:[%s2667_s23 + $0x114] sm:$0x1] }
  0x8f   : > { %v1703_v13 = vsel %vm3131_vm5, %v1089_v2, %v2184_v60  ;;  %2179 = vst [vmem:[%s2667_s23 + $0xd8] sm:$0xf] %v1694_v9  ;;  %2181 = vst [vmem:[%s2667_s23 + $0xdc] sm:$0x1] %v1697_v11  ;;  %v1091_v15 = vshrl.u32 %v2397_v3, 16  ;;  %v1094_v16 = vshll.u32 %v2397_v3, 16  ;;  %v2488_v22 = vunpack.c.h.bf16 %v2582_v8 }
  0x90   : > { %2183 = vst [vmem:[%s2667_s23 + $0xe0] sm:$0xf] %v1700_v12  ;;  %2185 = vst [vmem:[%s2667_s23 + $0xe4] sm:$0x1] %v1703_v13  ;;  %v1099_v17 = vshrl.u32 %v2398_v5, 16  ;;  %v1102_v18 = vshll.u32 %v2398_v5, 16  ;;  %v2491_v26 = vunpack.c.l.bf16 %v2583_v14  ;;  %v2492_v27 = vunpack.c.h.bf16 %v2583_v14 }
  0x91   : > { %v660_v19 = vmax.f32 %v596_v6, 0.0  ;;  %v661_v20 = vmax.f32 %v597_v7, 0.0  ;;  %v1093_v23 = vrot.slane %v1091_v15, 7  ;;  %v527_v34 = vmul.f32 %v2487_v21, %v2662_v0  ;;  %v2585_v7 = vld [vmem:[%s2657_s18 + $0x68] sm:$0xff]  }
  0x92   : > { %v1101_v25 = vrot.slane %v1099_v17, 7  ;;  %v528_v36 = vmul.f32 %v3300_v35, %v2488_v22  ;;  %v529_v40 = vmul.f32 %v3300_v35, %v2491_v26  ;;  %v530_v57 = vmul.f32 %v3300_v35, %v2492_v27 }
  0x93   : > { %v2399_v32 = vpack.c.bf16 %v660_v19, %v660_v19  ;;  %v2400_v33 = vpack.c.bf16 %v661_v20, %v661_v20  ;;  %v1096_v37 = vor.u32 %v1094_v16, %v1093_v23  ;;  %v1097_v38 = vrot.slane %v1093_v23, 4 }
  0x94   : > { %v1104_v41 = vor.u32 %v1102_v18, %v1101_v25  ;;  %v1105_v42 = vrot.slane %v1101_v25, 4  ;;  %v598_v54 = vadd.f32 %v3086_v10, %v527_v34  ;;  %v599_v55 = vadd.f32 %v3086_v10, %v528_v36  ;;  %v2202_v25 = vld [vmem:[%s2667_s23 + $0x118] sm:$0xf]  ;;  %v2206_v34 = vld [vmem:[%s2667_s23 + $0x120] sm:$0xf] }
  0x95   : > { %v1107_v43 = vshrl.u32 %v2399_v32, 16  ;;  %v1110_v44 = vshll.u32 %v2399_v32, 16  ;;  %v1115_v45 = vshrl.u32 %v2400_v33, 16  ;;  %v1118_v0 = vshll.u32 %v2400_v33, 16  ;;  %v2204_v32 = vld [vmem:[%s2667_s23 + $0x11c] sm:$0x1] }
  0x96   : > { %v1706_v49 = vsel %vm3123_vm4, %v1096_v37, %v2186_v24  ;;  %v1709_v50 = vsel %vm3131_vm5, %v1097_v38, %v2188_v29  ;;  %v1712_v51 = vsel %vm3123_vm4, %v1104_v41, %v2190_v30  ;;  %v1715_v47 = vsel %vm3131_vm5, %v1105_v42, %v2192_v31  ;;  %v2208_v38 = vld [vmem:[%s2667_s23 + $0x124] sm:$0x1] }
  0x97   : > { %2187 = vst [vmem:[%s2667_s23 + $0xf8] sm:$0xf] %v1706_v49  ;;  %2189 = vst [vmem:[%s2667_s23 + $0xfc] sm:$0x1] %v1709_v50  ;;  %v1109_v48 = vrot.slane %v1107_v43, 7  ;;  %v1117_v53 = vrot.slane %v1115_v45, 7  ;;  %v2495_v58 = vunpack.c.l.bf16 %v2584_v46  ;;  %v2496_v59 = vunpack.c.h.bf16 %v2584_v46 }
  0x98   : > { %2191 = vst [vmem:[%s2667_s23 + $0x100] sm:$0xf] %v1712_v51  ;;  %2193 = vst [vmem:[%s2667_s23 + $0x104] sm:$0x1] %v1715_v47  ;;  %v662_v2 = vmax.f32 %v598_v54, 0.0  ;;  %v663_v3 = vmax.f32 %v599_v55, 0.0  ;;  %v600_v5 = vadd.f32 %v3086_v10, %v529_v40  ;;  %v601_v6 = vadd.f32 %v3086_v10, %v530_v57 }
  0x99   : > { %v1112_v60 = vor.u32 %v1110_v44, %v1109_v48  ;;  %v1113_v62 = vrot.slane %v1109_v48, 4  ;;  %v1120_v63 = vor.u32 %v1118_v0, %v1117_v53  ;;  %v1121_v1 = vrot.slane %v1117_v53, 4  ;;  %v2210_v51 = vld [vmem:[%s2667_s23 + $0x128] sm:$0xf]  ;;  %v2216_v40 = vld [vmem:[%s2667_s23 + $0x134] sm:$0x1] }
  0x9a   : > { %v2401_v13 = vpack.c.bf16 %v662_v2, %v662_v2  ;;  %v2402_v14 = vpack.c.bf16 %v663_v3, %v663_v3  ;;  %v664_v15 = vmax.f32 %v600_v5, 0.0  ;;  %v665_v16 = vmax.f32 %v601_v6, 0.0  ;;  %v2586_v3 = vld [vmem:[%s2657_s18 + $0x70] sm:$0xff]  }
  0x9b   : > { %v1718_v8 = vsel %vm3123_vm4, %v1112_v60, %v2194_v52  ;;  %v1721_v9 = vsel %vm3131_vm5, %v1113_v62, %v2196_v39  ;;  %v1724_v11 = vsel %vm3123_vm4, %v1120_v63, %v2198_v56  ;;  %v1727_v12 = vsel %vm3131_vm5, %v1121_v1, %v2200_v28  ;;  %v2212_v56 = vld [vmem:[%s2667_s23 + $0x12c] sm:$0x1]  ;;  %v2214_v28 = vld [vmem:[%s2667_s23 + $0x130] sm:$0xf] }
  0x9c   : > { %2195 = vst [vmem:[%s2667_s23 + $0x108] sm:$0xf] %v1718_v8  ;;  %2197 = vst [vmem:[%s2667_s23 + $0x10c] sm:$0x1] %v1721_v9  ;;  %v531_v17 = vmul.f32 %v3300_v35, %v2495_v58  ;;  %v532_v18 = vmul.f32 %v3300_v35, %v2496_v59  ;;  %v2499_v19 = vunpack.c.l.bf16 %v2585_v7  ;;  %v2500_v20 = vunpack.c.h.bf16 %v2585_v7  ;;  %v2587_v9 = vld [vmem:[%s2657_s18 + $0x78] sm:$0xff]  }
  0x9d   : > { %2199 = vst [vmem:[%s2667_s23 + $0x110] sm:$0xf] %v1724_v11  ;;  %2201 = vst [vmem:[%s2667_s23 + $0x114] sm:$0x1] %v1727_v12  ;;  %v1123_v21 = vshrl.u32 %v2401_v13, 16  ;;  %v1126_v22 = vshll.u32 %v2401_v13, 16  ;;  %v2403_v26 = vpack.c.bf16 %v664_v15, %v664_v15  ;;  %v2404_v27 = vpack.c.bf16 %v665_v16, %v665_v16 }
  0x9e   : > { %v1131_v23 = vshrl.u32 %v2402_v14, 16  ;;  %v1134_v24 = vshll.u32 %v2402_v14, 16  ;;  %v602_v29 = vadd.f32 %v3086_v10, %v531_v17  ;;  %v603_v30 = vadd.f32 %v3086_v10, %v532_v18 }
  0x9f   : > { %v1125_v31 = vrot.slane %v1123_v21, 7  ;;  %v533_v36 = vmul.f32 %v3300_v35, %v2499_v19  ;;  %v534_v37 = vmul.f32 %v3300_v35, %v2500_v20  ;;  %v1139_v41 = vshrl.u32 %v2403_v26, 16  ;;  %v2218_v20 = vld [vmem:[%s2667_s23 + $0x148] sm:$0xf] }
  0xa0   : > { %v1133_v33 = vrot.slane %v1131_v23, 7  ;;  %v1142_v42 = vshll.u32 %v2403_v26, 16  ;;  %v1147_v43 = vshrl.u32 %v2404_v27, 16  ;;  %v1150_v44 = vshll.u32 %v2404_v27, 16  ;;  %v2224_v26 = vld [vmem:[%s2667_s23 + $0x154] sm:$0x1] }
  0xa1   : > { %v1128_v45 = vor.u32 %v1126_v22, %v1125_v31  ;;  %v1129_v0 = vrot.slane %v1125_v31, 4  ;;  %v1141_v50 = vrot.slane %v1139_v41, 7  ;;  %v666_v48 = vmax.f32 %v602_v29, 0.0 }
  0xa2   : > { %v1136_v46 = vor.u32 %v1134_v24, %v1133_v33  ;;  %v1137_v49 = vrot.slane %v1133_v33, 4  ;;  %v1149_v47 = vrot.slane %v1147_v43, 7  ;;  %v667_v52 = vmax.f32 %v603_v30, 0.0  ;;  %v2220_v24 = vld [vmem:[%s2667_s23 + $0x14c] sm:$0x1]  ;;  %v2588_v43 = vld [vmem:[%s2657_s18 + $0x80] sm:$0xff]  }
  0xa3   : > { %v1730_v53 = vsel %vm3123_vm4, %v1128_v45, %v2202_v25  ;;  %v1733_v54 = vsel %vm3131_vm5, %v1129_v0, %v2204_v32  ;;  %v1144_v57 = vor.u32 %v1142_v42, %v1141_v50  ;;  %v1145_v58 = vrot.slane %v1141_v50, 4  ;;  %v2222_v25 = vld [vmem:[%s2667_s23 + $0x150] sm:$0xf]  ;;  %v2226_v50 = vld [vmem:[%s2667_s23 + $0x158] sm:$0xf] }
  0xa4   : > { %v1736_v55 = vsel %vm3123_vm4, %v1136_v46, %v2206_v34  ;;  %v1739_v39 = vsel %vm3131_vm5, %v1137_v49, %v2208_v38  ;;  %2203 = vst [vmem:[%s2667_s23 + $0x118] sm:$0xf] %v1730_v53  ;;  %2205 = vst [vmem:[%s2667_s23 + $0x11c] sm:$0x1] %v1733_v54  ;;  %v1152_v59 = vor.u32 %v1150_v44, %v1149_v47  ;;  %v1153_v60 = vrot.slane %v1149_v47, 4 }
  0xa5   : > { %2207 = vst [vmem:[%s2667_s23 + $0x120] sm:$0xf] %v1736_v55  ;;  %2209 = vst [vmem:[%s2667_s23 + $0x124] sm:$0x1] %v1739_v39  ;;  %v2405_v62 = vpack.c.bf16 %v666_v48, %v666_v48  ;;  %v2406_v63 = vpack.c.bf16 %v667_v52, %v667_v52  ;;  %v604_v1 = vadd.f32 %v3086_v10, %v533_v36  ;;  %v2503_v17 = vunpack.c.l.bf16 %v2586_v3  ;;  %v2228_v52 = vld [vmem:[%s2667_s23 + $0x15c] sm:$0x1] }
  0xa6   : > { %v605_v2 = vadd.f32 %v3086_v10, %v534_v37  ;;  %v1742_v5 = vsel %vm3123_vm4, %v1144_v57, %v2210_v51  ;;  %v1745_v6 = vsel %vm3131_vm5, %v1145_v58, %v2212_v56  ;;  %v1748_v7 = vsel %vm3123_vm4, %v1152_v59, %v2214_v28  ;;  %v2230_v53 = vld [vmem:[%s2667_s23 + $0x160] sm:$0xf]  ;;  %v2232_v54 = vld [vmem:[%s2667_s23 + $0x164] sm:$0x1] }
  0xa7   : > { %v1751_v8 = vsel %vm3131_vm5, %v1153_v60, %v2216_v40  ;;  %2211 = vst [vmem:[%s2667_s23 + $0x128] sm:$0xf] %v1742_v5  ;;  %2213 = vst [vmem:[%s2667_s23 + $0x12c] sm:$0x1] %v1745_v6  ;;  %v1155_v11 = vshrl.u32 %v2405_v62, 16  ;;  %v1158_v12 = vshll.u32 %v2405_v62, 16  ;;  %v2504_v18 = vunpack.c.h.bf16 %v2586_v3 }
  0xa8   : > { %2215 = vst [vmem:[%s2667_s23 + $0x130] sm:$0xf] %v1748_v7  ;;  %2217 = vst [vmem:[%s2667_s23 + $0x134] sm:$0x1] %v1751_v8  ;;  %v1163_v13 = vshrl.u32 %v2406_v63, 16  ;;  %v1166_v14 = vshll.u32 %v2406_v63, 16  ;;  %v2507_v22 = vunpack.c.l.bf16 %v2587_v9  ;;  %v2508_v23 = vunpack.c.h.bf16 %v2587_v9 }
  0xa9   : > { %v668_v15 = vmax.f32 %v604_v1, 0.0  ;;  %v669_v16 = vmax.f32 %v605_v2, 0.0  ;;  %v1157_v19 = vrot.slane %v1155_v11, 7  ;;  %v535_v30 = vmul.f32 %v3300_v35, %v2503_v17  ;;  %v2589_v2 = vld [vmem:[%s2657_s18 + $0x88] sm:$0xff]  }
  0xaa   : > { %v1165_v21 = vrot.slane %v1163_v13, 7  ;;  %v536_v31 = vmul.f32 %v3300_v35, %v2504_v18  ;;  %v537_v55 = vmul.f32 %v3300_v35, %v2507_v22  ;;  %v538_v39 = vmul.f32 %v3300_v35, %v2508_v23 }
  0xab   : > { %v2407_v27 = vpack.c.bf16 %v668_v15, %v668_v15  ;;  %v2408_v29 = vpack.c.bf16 %v669_v16, %v669_v16  ;;  %v1160_v32 = vor.u32 %v1158_v12, %v1157_v19  ;;  %v1161_v33 = vrot.slane %v1157_v19, 4 }
  0xac   : > { %v1168_v34 = vor.u32 %v1166_v14, %v1165_v21  ;;  %v1169_v36 = vrot.slane %v1165_v21, 4  ;;  %v606_v47 = vadd.f32 %v3086_v10, %v535_v30  ;;  %v607_v48 = vadd.f32 %v3086_v10, %v536_v31  ;;  %v2234_v21 = vld [vmem:[%s2667_s23 + $0x168] sm:$0xf]  ;;  %v2238_v30 = vld [vmem:[%s2667_s23 + $0x170] sm:$0xf] }
  0xad   : > { %v1171_v37 = vshrl.u32 %v2407_v27, 16  ;;  %v1174_v38 = vshll.u32 %v2407_v27, 16  ;;  %v1179_v41 = vshrl.u32 %v2408_v29, 16  ;;  %v1182_v42 = vshll.u32 %v2408_v29, 16  ;;  %v2236_v27 = vld [vmem:[%s2667_s23 + $0x16c] sm:$0x1] }
  0xae   : > { %v1754_v44 = vsel %vm3123_vm4, %v1160_v32, %v2218_v20  ;;  %v1757_v45 = vsel %vm3131_vm5, %v1161_v33, %v2220_v24  ;;  %v1760_v0 = vsel %vm3123_vm4, %v1168_v34, %v2222_v25  ;;  %v1763_v46 = vsel %vm3131_vm5, %v1169_v36, %v2224_v26  ;;  %v2240_v33 = vld [vmem:[%s2667_s23 + $0x174] sm:$0x1] }
  0xaf   : > { %2219 = vst [vmem:[%s2667_s23 + $0x148] sm:$0xf] %v1754_v44  ;;  %2221 = vst [vmem:[%s2667_s23 + $0x14c] sm:$0x1] %v1757_v45  ;;  %v1173_v49 = vrot.slane %v1171_v37, 7  ;;  %v1181_v51 = vrot.slane %v1179_v41, 7  ;;  %v2511_v56 = vunpack.c.l.bf16 %v2588_v43  ;;  %v2512_v28 = vunpack.c.h.bf16 %v2588_v43 }
  0xb0   : > { %2223 = vst [vmem:[%s2667_s23 + $0x150] sm:$0xf] %v1760_v0  ;;  %2225 = vst [vmem:[%s2667_s23 + $0x154] sm:$0x1] %v1763_v46  ;;  %v670_v60 = vmax.f32 %v606_v47, 0.0  ;;  %v671_v62 = vmax.f32 %v607_v48, 0.0  ;;  %v608_v63 = vadd.f32 %v3086_v10, %v537_v55  ;;  %v609_v1 = vadd.f32 %v3086_v10, %v538_v39 }
  0xb1   : > { %v1176_v40 = vor.u32 %v1174_v38, %v1173_v49  ;;  %v1177_v57 = vrot.slane %v1173_v49, 4  ;;  %v1184_v58 = vor.u32 %v1182_v42, %v1181_v51  ;;  %v1185_v59 = vrot.slane %v1181_v51, 4  ;;  %v2242_v45 = vld [vmem:[%s2667_s23 + $0x178] sm:$0xf] }
  0xb2   : > { %v2409_v8 = vpack.c.bf16 %v670_v60, %v670_v60  ;;  %v2410_v9 = vpack.c.bf16 %v671_v62, %v671_v62  ;;  %v672_v11 = vmax.f32 %v608_v63, 0.0  ;;  %v673_v12 = vmax.f32 %v609_v1, 0.0  ;;  %v2590_v62 = vld [vmem:[%s2657_s18 + $0x90] sm:$0xff]  }
  0xb3   : > { %v1766_v3 = vsel %vm3123_vm4, %v1176_v40, %v2226_v50  ;;  %v1769_v5 = vsel %vm3131_vm5, %v1177_v57, %v2228_v52  ;;  %v1772_v6 = vsel %vm3123_vm4, %v1184_v58, %v2230_v53  ;;  %v1775_v7 = vsel %vm3131_vm5, %v1185_v59, %v2232_v54  ;;  %v2244_v52 = vld [vmem:[%s2667_s23 + $0x17c] sm:$0x1]  ;;  %v2246_v53 = vld [vmem:[%s2667_s23 + $0x180] sm:$0xf]  ;;  %v2248_v54 = vld [vmem:[%s2667_s23 + $0x184] sm:$0x1] }
  0xb4   : > { %2227 = vst [vmem:[%s2667_s23 + $0x158] sm:$0xf] %v1766_v3  ;;  %2229 = vst [vmem:[%s2667_s23 + $0x15c] sm:$0x1] %v1769_v5  ;;  %v539_v13 = vmul.f32 %v3300_v35, %v2511_v56  ;;  %v540_v14 = vmul.f32 %v3300_v35, %v2512_v28  ;;  %v2515_v15 = vunpack.c.l.bf16 %v2589_v2  ;;  %v2516_v16 = vunpack.c.h.bf16 %v2589_v2  ;;  %v3452_v58 = vld [vmem:[%s3804_s2] ss:$0 sm:$0xff] }
  0xb5   : > { %2231 = vst [vmem:[%s2667_s23 + $0x160] sm:$0xf] %v1772_v6  ;;  %2233 = vst [vmem:[%s2667_s23 + $0x164] sm:$0x1] %v1775_v7  ;;  %v1187_v17 = vshrl.u32 %v2409_v8, 16  ;;  %v1190_v18 = vshll.u32 %v2409_v8, 16  ;;  %v2411_v22 = vpack.c.bf16 %v672_v11, %v672_v11  ;;  %v2412_v23 = vpack.c.bf16 %v673_v12, %v673_v12 }
  0xb6   : > { %v1195_v19 = vshrl.u32 %v2410_v9, 16  ;;  %v1198_v20 = vshll.u32 %v2410_v9, 16  ;;  %v610_v24 = vadd.f32 %v3086_v10, %v539_v13  ;;  %v611_v25 = vadd.f32 %v3086_v10, %v540_v14  ;;  %v2591_v5 = vld [vmem:[%s2657_s18 + $0x98] sm:$0xff]  }
  0xb7   : > { %v1189_v26 = vrot.slane %v1187_v17, 7  ;;  %v541_v31 = vmul.f32 %v3300_v35, %v2515_v15  ;;  %v542_v32 = vmul.f32 %v3300_v35, %v2516_v16  ;;  %v1203_v34 = vshrl.u32 %v2411_v22, 16  ;;  %v2250_v16 = vld [vmem:[%s2667_s23 + $0x198] sm:$0xf] }
  0xb8   : > { %v1197_v29 = vrot.slane %v1195_v19, 7  ;;  %v1206_v36 = vshll.u32 %v2411_v22, 16  ;;  %v1211_v37 = vshrl.u32 %v2412_v23, 16  ;;  %v1214_v38 = vshll.u32 %v2412_v23, 16  ;;  %v2256_v22 = vld [vmem:[%s2667_s23 + $0x1a4] sm:$0x1] }
  0xb9   : > { %v1192_v41 = vor.u32 %v1190_v18, %v1189_v26  ;;  %v1193_v10 = vrot.slane %v1189_v26, 4  ;;  %v1205_v44 = vrot.slane %v1203_v34, 7  ;;  %v674_v46 = vmax.f32 %v610_v24, 0.0 }
  0xba   : > { %v1200_v42 = vor.u32 %v1198_v20, %v1197_v29  ;;  %v1201_v43 = vrot.slane %v1197_v29, 4  ;;  %v1213_v0 = vrot.slane %v1211_v37, 7  ;;  %v675_v49 = vmax.f32 %v611_v25, 0.0  ;;  %v2252_v20 = vld [vmem:[%s2667_s23 + $0x19c] sm:$0x1]  ;;  %v2592_v37 = vld [vmem:[%s2657_s18 + $0xa0] sm:$0xff]  }
  0xbb   : > { %v1778_v50 = vsel %vm3123_vm4, %v1192_v41, %v2234_v21  ;;  %v1781_v51 = vsel %vm3131_vm5, %v1193_v10, %v2236_v27  ;;  %v1208_v55 = vor.u32 %v1206_v36, %v1205_v44  ;;  %v1209_v39 = vrot.slane %v1205_v44, 4  ;;  %v2254_v21 = vld [vmem:[%s2667_s23 + $0x1a0] sm:$0xf]  ;;  %v2258_v44 = vld [vmem:[%s2667_s23 + $0x1a8] sm:$0xf] }
  0xbc   : > { %v1784_v47 = vsel %vm3123_vm4, %v1200_v42, %v2238_v30  ;;  %v1787_v48 = vsel %vm3131_vm5, %v1201_v43, %v2240_v33  ;;  %2235 = vst [vmem:[%s2667_s23 + $0x168] sm:$0xf] %v1778_v50  ;;  %2237 = vst [vmem:[%s2667_s23 + $0x16c] sm:$0x1] %v1781_v51  ;;  %v1216_v56 = vor.u32 %v1214_v38, %v1213_v0  ;;  %v1217_v28 = vrot.slane %v1213_v0, 4 }
  0xbd   : > { %2239 = vst [vmem:[%s2667_s23 + $0x170] sm:$0xf] %v1784_v47  ;;  %2241 = vst [vmem:[%s2667_s23 + $0x174] sm:$0x1] %v1787_v48  ;;  %v2413_v40 = vpack.c.bf16 %v674_v46, %v674_v46  ;;  %v2414_v57 = vpack.c.bf16 %v675_v49, %v675_v49  ;;  %v612_v59 = vadd.f32 %v3452_v58, %v541_v31  ;;  %v2519_v13 = vunpack.c.l.bf16 %v2590_v62  ;;  %v2260_v49 = vld [vmem:[%s2667_s23 + $0x1ac] sm:$0x1] }
  0xbe   : > { %v613_v60 = vadd.f32 %v3452_v58, %v542_v32  ;;  %v1790_v63 = vsel %vm3123_vm4, %v1208_v55, %v2242_v45  ;;  %v1793_v1 = vsel %vm3131_vm5, %v1209_v39, %v2244_v52  ;;  %v1796_v2 = vsel %vm3123_vm4, %v1216_v56, %v2246_v53  ;;  %v2262_v50 = vld [vmem:[%s2667_s23 + $0x1b0] sm:$0xf]  ;;  %v2264_v51 = vld [vmem:[%s2667_s23 + $0x1b4] sm:$0x1] }
  0xbf   : > { %v1799_v3 = vsel %vm3131_vm5, %v1217_v28, %v2248_v54  ;;  %2243 = vst [vmem:[%s2667_s23 + $0x178] sm:$0xf] %v1790_v63  ;;  %2245 = vst [vmem:[%s2667_s23 + $0x17c] sm:$0x1] %v1793_v1  ;;  %v1219_v6 = vshrl.u32 %v2413_v40, 16  ;;  %v1222_v7 = vshll.u32 %v2413_v40, 16  ;;  %v2520_v14 = vunpack.c.h.bf16 %v2590_v62 }
  0xc0   : > { %2247 = vst [vmem:[%s2667_s23 + $0x180] sm:$0xf] %v1796_v2  ;;  %2249 = vst [vmem:[%s2667_s23 + $0x184] sm:$0x1] %v1799_v3  ;;  %v1227_v8 = vshrl.u32 %v2414_v57, 16  ;;  %v1230_v9 = vshll.u32 %v2414_v57, 16  ;;  %v2523_v18 = vunpack.c.l.bf16 %v2591_v5  ;;  %v2524_v19 = vunpack.c.h.bf16 %v2591_v5 }
  0xc1   : > { %v676_v11 = vmax.f32 %v612_v59, 0.0  ;;  %v677_v12 = vmax.f32 %v613_v60, 0.0  ;;  %v1221_v15 = vrot.slane %v1219_v6, 7  ;;  %v543_v25 = vmul.f32 %v3300_v35, %v2519_v13  ;;  %v2593_v60 = vld [vmem:[%s2657_s18 + $0xa8] sm:$0xff]  }
  0xc2   : > { %v1229_v17 = vrot.slane %v1227_v8, 7  ;;  %v544_v26 = vmul.f32 %v3300_v35, %v2520_v14  ;;  %v545_v47 = vmul.f32 %v3300_v35, %v2523_v18  ;;  %v546_v48 = vmul.f32 %v3300_v35, %v2524_v19 }
  0xc3   : > { %v2415_v23 = vpack.c.bf16 %v676_v11, %v676_v11  ;;  %v2416_v24 = vpack.c.bf16 %v677_v12, %v677_v12  ;;  %v1224_v27 = vor.u32 %v1222_v7, %v1221_v15  ;;  %v1225_v29 = vrot.slane %v1221_v15, 4 }
  0xc4   : > { %v1232_v30 = vor.u32 %v1230_v9, %v1229_v17  ;;  %v1233_v31 = vrot.slane %v1229_v17, 4  ;;  %v614_v0 = vadd.f32 %v3452_v58, %v543_v25  ;;  %v615_v46 = vadd.f32 %v3452_v58, %v544_v26  ;;  %v2266_v17 = vld [vmem:[%s2667_s23 + $0x1b8] sm:$0xf]  ;;  %v2270_v25 = vld [vmem:[%s2667_s23 + $0x1c0] sm:$0xf] }
  0xc5   : > { %v1235_v32 = vshrl.u32 %v2415_v23, 16  ;;  %v1238_v33 = vshll.u32 %v2415_v23, 16  ;;  %v1243_v34 = vshrl.u32 %v2416_v24, 16  ;;  %v1246_v36 = vshll.u32 %v2416_v24, 16  ;;  %v2268_v23 = vld [vmem:[%s2667_s23 + $0x1bc] sm:$0x1] }
  0xc6   : > { %v1802_v38 = vsel %vm3123_vm4, %v1224_v27, %v2250_v16  ;;  %v1805_v41 = vsel %vm3131_vm5, %v1225_v29, %v2252_v20  ;;  %v1808_v10 = vsel %vm3123_vm4, %v1232_v30, %v2254_v21  ;;  %v1811_v42 = vsel %vm3131_vm5, %v1233_v31, %v2256_v22  ;;  %v2272_v29 = vld [vmem:[%s2667_s23 + $0x1c4] sm:$0x1] }
  0xc7   : > { %2251 = vst [vmem:[%s2667_s23 + $0x198] sm:$0xf] %v1802_v38  ;;  %2253 = vst [vmem:[%s2667_s23 + $0x19c] sm:$0x1] %v1805_v41  ;;  %v1237_v43 = vrot.slane %v1235_v32, 7  ;;  %v1245_v45 = vrot.slane %v1243_v34, 7  ;;  %v2527_v52 = vunpack.c.l.bf16 %v2592_v37  ;;  %v2528_v53 = vunpack.c.h.bf16 %v2592_v37 }
  0xc8   : > { %2255 = vst [vmem:[%s2667_s23 + $0x1a0] sm:$0xf] %v1808_v10  ;;  %2257 = vst [vmem:[%s2667_s23 + $0x1a4] sm:$0x1] %v1811_v42  ;;  %v678_v28 = vmax.f32 %v614_v0, 0.0  ;;  %v679_v40 = vmax.f32 %v615_v46, 0.0  ;;  %v616_v57 = vadd.f32 %v3452_v58, %v545_v47  ;;  %v617_v59 = vadd.f32 %v3452_v58, %v546_v48 }
  0xc9   : > { %v1240_v54 = vor.u32 %v1238_v33, %v1237_v43  ;;  %v1241_v55 = vrot.slane %v1237_v43, 4  ;;  %v1248_v39 = vor.u32 %v1246_v36, %v1245_v45  ;;  %v1249_v56 = vrot.slane %v1245_v45, 4  ;;  %v2274_v10 = vld [vmem:[%s2667_s23 + $0x1c8] sm:$0xf]  ;;  %v2280_v47 = vld [vmem:[%s2667_s23 + $0x1d4] sm:$0x1] }
  0xca   : > { %v2417_v3 = vpack.c.bf16 %v678_v28, %v678_v28  ;;  %v2418_v5 = vpack.c.bf16 %v679_v40, %v679_v40  ;;  %v680_v6 = vmax.f32 %v616_v57, 0.0  ;;  %v681_v7 = vmax.f32 %v617_v59, 0.0  ;;  %v2594_v40 = vld [vmem:[%s2657_s18 + $0xb0] sm:$0xff]  }
  0xcb   : > { %v1814_v62 = vsel %vm3123_vm4, %v1240_v54, %v2258_v44  ;;  %v1817_v63 = vsel %vm3131_vm5, %v1241_v55, %v2260_v49  ;;  %v1820_v1 = vsel %vm3123_vm4, %v1248_v39, %v2262_v50  ;;  %v1823_v2 = vsel %vm3131_vm5, %v1249_v56, %v2264_v51  ;;  %v2276_v50 = vld [vmem:[%s2667_s23 + $0x1cc] sm:$0x1]  ;;  %v2278_v51 = vld [vmem:[%s2667_s23 + $0x1d0] sm:$0xf] }
  0xcc   : > { %2259 = vst [vmem:[%s2667_s23 + $0x1a8] sm:$0xf] %v1814_v62  ;;  %2261 = vst [vmem:[%s2667_s23 + $0x1ac] sm:$0x1] %v1817_v63  ;;  %v547_v8 = vmul.f32 %v3300_v35, %v2527_v52  ;;  %v548_v9 = vmul.f32 %v3300_v35, %v2528_v53  ;;  %v2531_v11 = vunpack.c.l.bf16 %v2593_v60  ;;  %v2532_v12 = vunpack.c.h.bf16 %v2593_v60  ;;  %v2595_v63 = vld [vmem:[%s2657_s18 + $0xb8] sm:$0xff]  }
  0xcd   : > { %2263 = vst [vmem:[%s2667_s23 + $0x1b0] sm:$0xf] %v1820_v1  ;;  %2265 = vst [vmem:[%s2667_s23 + $0x1b4] sm:$0x1] %v1823_v2  ;;  %v1251_v13 = vshrl.u32 %v2417_v3, 16  ;;  %v1254_v14 = vshll.u32 %v2417_v3, 16  ;;  %v2419_v18 = vpack.c.bf16 %v680_v6, %v680_v6  ;;  %v2420_v19 = vpack.c.bf16 %v681_v7, %v681_v7 }
  0xce   : > { %v1259_v15 = vshrl.u32 %v2418_v5, 16  ;;  %v1262_v16 = vshll.u32 %v2418_v5, 16  ;;  %v618_v20 = vadd.f32 %v3452_v58, %v547_v8  ;;  %v619_v21 = vadd.f32 %v3452_v58, %v548_v9 }
  0xcf   : > { %v1253_v22 = vrot.slane %v1251_v13, 7  ;;  %v549_v26 = vmul.f32 %v3300_v35, %v2531_v11  ;;  %v550_v27 = vmul.f32 %v3300_v35, %v2532_v12  ;;  %v1267_v30 = vshrl.u32 %v2419_v18, 16  ;;  %v2282_v12 = vld [vmem:[%s2667_s23 + $0x1e8] sm:$0xf] }
  0xd0   : > { %v1261_v24 = vrot.slane %v1259_v15, 7  ;;  %v1270_v31 = vshll.u32 %v2419_v18, 16  ;;  %v1275_v32 = vshrl.u32 %v2420_v19, 16  ;;  %v1278_v33 = vshll.u32 %v2420_v19, 16  ;;  %v2288_v18 = vld [vmem:[%s2667_s23 + $0x1f4] sm:$0x1] }
  0xd1   : > { %v1256_v34 = vor.u32 %v1254_v14, %v1253_v22  ;;  %v1257_v36 = vrot.slane %v1253_v22, 4  ;;  %v1269_v41 = vrot.slane %v1267_v30, 7  ;;  %v682_v43 = vmax.f32 %v618_v20, 0.0 }
  0xd2   : > { %v1264_v37 = vor.u32 %v1262_v16, %v1261_v24  ;;  %v1265_v38 = vrot.slane %v1261_v24, 4  ;;  %v1277_v42 = vrot.slane %v1275_v32, 7  ;;  %v683_v44 = vmax.f32 %v619_v21, 0.0  ;;  %v2284_v16 = vld [vmem:[%s2667_s23 + $0x1ec] sm:$0x1]  ;;  %v2596_v32 = vld [vmem:[%s2657_s18 + $0xc0] sm:$0xff]  }
  0xd3   : > { %v1826_v45 = vsel %vm3123_vm4, %v1256_v34, %v2266_v17  ;;  %v1829_v0 = vsel %vm3131_vm5, %v1257_v36, %v2268_v23  ;;  %v1272_v48 = vor.u32 %v1270_v31, %v1269_v41  ;;  %v1273_v52 = vrot.slane %v1269_v41, 4  ;;  %v2286_v17 = vld [vmem:[%s2667_s23 + $0x1f0] sm:$0xf]  ;;  %v2290_v41 = vld [vmem:[%s2667_s23 + $0x1f8] sm:$0xf] }
  0xd4   : > { %v1832_v46 = vsel %vm3123_vm4, %v1264_v37, %v2270_v25  ;;  %v1835_v49 = vsel %vm3131_vm5, %v1265_v38, %v2272_v29  ;;  %2267 = vst [vmem:[%s2667_s23 + $0x1b8] sm:$0xf] %v1826_v45  ;;  %2269 = vst [vmem:[%s2667_s23 + $0x1bc] sm:$0x1] %v1829_v0  ;;  %v1280_v53 = vor.u32 %v1278_v33, %v1277_v42  ;;  %v1281_v54 = vrot.slane %v1277_v42, 4 }
  0xd5   : > { %2271 = vst [vmem:[%s2667_s23 + $0x1c0] sm:$0xf] %v1832_v46  ;;  %2273 = vst [vmem:[%s2667_s23 + $0x1c4] sm:$0x1] %v1835_v49  ;;  %v2421_v55 = vpack.c.bf16 %v682_v43, %v682_v43  ;;  %v2422_v39 = vpack.c.bf16 %v683_v44, %v683_v44  ;;  %v620_v56 = vadd.f32 %v3452_v58, %v549_v26  ;;  %v2535_v8 = vunpack.c.l.bf16 %v2594_v40  ;;  %v2292_v44 = vld [vmem:[%s2667_s23 + $0x1fc] sm:$0x1] }
  0xd6   : > { %v621_v28 = vadd.f32 %v3452_v58, %v550_v27  ;;  %v1838_v57 = vsel %vm3123_vm4, %v1272_v48, %v2274_v10  ;;  %v1841_v59 = vsel %vm3131_vm5, %v1273_v52, %v2276_v50  ;;  %v1844_v60 = vsel %vm3123_vm4, %v1280_v53, %v2278_v51  ;;  %v2294_v45 = vld [vmem:[%s2667_s23 + $0x200] sm:$0xf]  ;;  %v2296_v0 = vld [vmem:[%s2667_s23 + $0x204] sm:$0x1] }
  0xd7   : > { %v1847_v62 = vsel %vm3131_vm5, %v1281_v54, %v2280_v47  ;;  %2275 = vst [vmem:[%s2667_s23 + $0x1c8] sm:$0xf] %v1838_v57  ;;  %2277 = vst [vmem:[%s2667_s23 + $0x1cc] sm:$0x1] %v1841_v59  ;;  %v1283_v1 = vshrl.u32 %v2421_v55, 16  ;;  %v1286_v2 = vshll.u32 %v2421_v55, 16  ;;  %v2536_v9 = vunpack.c.h.bf16 %v2594_v40 }
  0xd8   : > { %2279 = vst [vmem:[%s2667_s23 + $0x1d0] sm:$0xf] %v1844_v60  ;;  %2281 = vst [vmem:[%s2667_s23 + $0x1d4] sm:$0x1] %v1847_v62  ;;  %v1291_v3 = vshrl.u32 %v2422_v39, 16  ;;  %v1294_v5 = vshll.u32 %v2422_v39, 16  ;;  %v2539_v14 = vunpack.c.l.bf16 %v2595_v63  ;;  %v2540_v15 = vunpack.c.h.bf16 %v2595_v63 }
  0xd9   : > { %v684_v6 = vmax.f32 %v620_v56, 0.0  ;;  %v685_v7 = vmax.f32 %v621_v28, 0.0  ;;  %v1285_v11 = vrot.slane %v1283_v1, 7  ;;  %v551_v21 = vmul.f32 %v3300_v35, %v2535_v8  ;;  %v2597_v28 = vld [vmem:[%s2657_s18 + $0xc8] sm:$0xff]  }
  0xda   : > { %v1293_v13 = vrot.slane %v1291_v3, 7  ;;  %v552_v22 = vmul.f32 %v3300_v35, %v2536_v9  ;;  %v553_v46 = vmul.f32 %v3300_v35, %v2539_v14  ;;  %v554_v49 = vmul.f32 %v3300_v35, %v2540_v15 }
  0xdb   : > { %v2423_v19 = vpack.c.bf16 %v684_v6, %v684_v6  ;;  %v2424_v20 = vpack.c.bf16 %v685_v7, %v685_v7  ;;  %v1288_v23 = vor.u32 %v1286_v2, %v1285_v11  ;;  %v1289_v24 = vrot.slane %v1285_v11, 4 }
  0xdc   : > { %v1296_v25 = vor.u32 %v1294_v5, %v1293_v13  ;;  %v1297_v26 = vrot.slane %v1293_v13, 4  ;;  %v622_v42 = vadd.f32 %v3452_v58, %v551_v21  ;;  %v623_v43 = vadd.f32 %v3452_v58, %v552_v22  ;;  %v2298_v13 = vld [vmem:[%s2667_s23 + $0x208] sm:$0xf]  ;;  %v2302_v21 = vld [vmem:[%s2667_s23 + $0x210] sm:$0xf] }
  0xdd   : > { %v1299_v27 = vshrl.u32 %v2423_v19, 16  ;;  %v1302_v29 = vshll.u32 %v2423_v19, 16  ;;  %v1307_v30 = vshrl.u32 %v2424_v20, 16  ;;  %v1310_v31 = vshll.u32 %v2424_v20, 16  ;;  %v2300_v19 = vld [vmem:[%s2667_s23 + $0x20c] sm:$0x1] }
  0xde   : > { %v1850_v33 = vsel %vm3123_vm4, %v1288_v23, %v2282_v12  ;;  %v1853_v34 = vsel %vm3131_vm5, %v1289_v24, %v2284_v16  ;;  %v1856_v36 = vsel %vm3123_vm4, %v1296_v25, %v2286_v17  ;;  %v1859_v37 = vsel %vm3131_vm5, %v1297_v26, %v2288_v18  ;;  %v2304_v24 = vld [vmem:[%s2667_s23 + $0x214] sm:$0x1] }
  0xdf   : > { %2283 = vst [vmem:[%s2667_s23 + $0x1e8] sm:$0xf] %v1850_v33  ;;  %2285 = vst [vmem:[%s2667_s23 + $0x1ec] sm:$0x1] %v1853_v34  ;;  %v1301_v38 = vrot.slane %v1299_v27, 7  ;;  %v1309_v10 = vrot.slane %v1307_v30, 7  ;;  %v2543_v50 = vunpack.c.l.bf16 %v2596_v32  ;;  %v2544_v51 = vunpack.c.h.bf16 %v2596_v32 }
  0xe0   : > { %2287 = vst [vmem:[%s2667_s23 + $0x1f0] sm:$0xf] %v1856_v36  ;;  %2289 = vst [vmem:[%s2667_s23 + $0x1f4] sm:$0x1] %v1859_v37  ;;  %v686_v54 = vmax.f32 %v622_v42, 0.0  ;;  %v687_v55 = vmax.f32 %v623_v43, 0.0  ;;  %v624_v39 = vadd.f32 %v3452_v58, %v553_v46  ;;  %v625_v56 = vadd.f32 %v3452_v58, %v554_v49 }
  0xe1   : > { %v1304_v47 = vor.u32 %v1302_v29, %v1301_v38  ;;  %v1305_v48 = vrot.slane %v1301_v38, 4  ;;  %v1312_v52 = vor.u32 %v1310_v31, %v1309_v10  ;;  %v1313_v53 = vrot.slane %v1309_v10, 4  ;;  %v2306_v36 = vld [vmem:[%s2667_s23 + $0x218] sm:$0xf] }
  0xe2   : > { %v2425_v62 = vpack.c.bf16 %v686_v54, %v686_v54  ;;  %v2426_v63 = vpack.c.bf16 %v687_v55, %v687_v55  ;;  %v688_v1 = vmax.f32 %v624_v39, 0.0  ;;  %v689_v2 = vmax.f32 %v625_v56, 0.0  ;;  %v2598_v54 = vld [vmem:[%s2657_s18 + $0xd0] sm:$0xff]  }
  0xe3   : > { %v1862_v40 = vsel %vm3123_vm4, %v1304_v47, %v2290_v41  ;;  %v1865_v57 = vsel %vm3131_vm5, %v1305_v48, %v2292_v44  ;;  %v1868_v59 = vsel %vm3123_vm4, %v1312_v52, %v2294_v45  ;;  %v1871_v60 = vsel %vm3131_vm5, %v1313_v53, %v2296_v0  ;;  %v2308_v44 = vld [vmem:[%s2667_s23 + $0x21c] sm:$0x1]  ;;  %v2310_v45 = vld [vmem:[%s2667_s23 + $0x220] sm:$0xf]  ;;  %v2312_v0 = vld [vmem:[%s2667_s23 + $0x224] sm:$0x1] }
  0xe4   : > { %2291 = vst [vmem:[%s2667_s23 + $0x1f8] sm:$0xf] %v1862_v40  ;;  %2293 = vst [vmem:[%s2667_s23 + $0x1fc] sm:$0x1] %v1865_v57  ;;  %v555_v3 = vmul.f32 %v3300_v35, %v2543_v50  ;;  %v556_v5 = vmul.f32 %v3300_v35, %v2544_v51  ;;  %v2547_v6 = vunpack.c.l.bf16 %v2597_v28  ;;  %v2548_v7 = vunpack.c.h.bf16 %v2597_v28  ;;  %v2599_v40 = vld [vmem:[%s2657_s18 + $0xd8] sm:$0xff]  }
  0xe5   : > { %2295 = vst [vmem:[%s2667_s23 + $0x200] sm:$0xf] %v1868_v59  ;;  %2297 = vst [vmem:[%s2667_s23 + $0x204] sm:$0x1] %v1871_v60  ;;  %v1315_v8 = vshrl.u32 %v2425_v62, 16  ;;  %v1318_v9 = vshll.u32 %v2425_v62, 16  ;;  %v2427_v14 = vpack.c.bf16 %v688_v1, %v688_v1  ;;  %v2428_v15 = vpack.c.bf16 %v689_v2, %v689_v2 }
  0xe6   : > { %v1323_v11 = vshrl.u32 %v2426_v63, 16  ;;  %v1326_v12 = vshll.u32 %v2426_v63, 16  ;;  %v626_v16 = vadd.f32 %v3452_v58, %v555_v3  ;;  %v627_v17 = vadd.f32 %v3452_v58, %v556_v5 }
  0xe7   : > { %v1317_v18 = vrot.slane %v1315_v8, 7  ;;  %v557_v22 = vmul.f32 %v3300_v35, %v2547_v6  ;;  %v558_v23 = vmul.f32 %v3300_v35, %v2548_v7  ;;  %v1331_v25 = vshrl.u32 %v2427_v14, 16  ;;  %v2314_v6 = vld [vmem:[%s2667_s23 + $0x238] sm:$0xf] }
  0xe8   : > { %v1325_v20 = vrot.slane %v1323_v11, 7  ;;  %v1334_v26 = vshll.u32 %v2427_v14, 16  ;;  %v1339_v27 = vshrl.u32 %v2428_v15, 16  ;;  %v1342_v29 = vshll.u32 %v2428_v15, 16  ;;  %v2316_v11 = vld [vmem:[%s2667_s23 + $0x23c] sm:$0x1] }
  0xe9   : > { %v1320_v30 = vor.u32 %v1318_v9, %v1317_v18  ;;  %v1321_v31 = vrot.slane %v1317_v18, 4  ;;  %v1333_v34 = vrot.slane %v1331_v25, 7  ;;  %v690_v35 = vmax.f32 %v626_v16, 0.0  ;;  %v3645_v16 = vld [vmem:[%s3803_s1] ss:$0 sm:$0xff] }
  0xea   : > { %v1328_v32 = vor.u32 %v1326_v12, %v1325_v20  ;;  %v1329_v33 = vrot.slane %v1325_v20, 4  ;;  %v1341_v37 = vrot.slane %v1339_v27, 7  ;;  %v691_v38 = vmax.f32 %v627_v17, 0.0  ;;  %v2318_v12 = vld [vmem:[%s2667_s23 + $0x240] sm:$0xf] }
  0xeb   : > { %v1874_v41 = vsel %vm3123_vm4, %v1320_v30, %v2298_v13  ;;  %v1877_v10 = vsel %vm3131_vm5, %v1321_v31, %v2300_v19  ;;  %v1336_v46 = vor.u32 %v1334_v26, %v1333_v34  ;;  %v1337_v49 = vrot.slane %v1333_v34, 4  ;;  %v2320_v13 = vld [vmem:[%s2667_s23 + $0x244] sm:$0x1]  ;;  %v2322_v34 = vld [vmem:[%s2667_s23 + $0x248] sm:$0xf] }
  0xec   : > { %v1880_v42 = vsel %vm3123_vm4, %v1328_v32, %v2302_v21  ;;  %v1883_v43 = vsel %vm3131_vm5, %v1329_v33, %v2304_v24  ;;  %2299 = vst [vmem:[%s2667_s23 + $0x208] sm:$0xf] %v1874_v41  ;;  %2301 = vst [vmem:[%s2667_s23 + $0x20c] sm:$0x1] %v1877_v10  ;;  %v1344_v50 = vor.u32 %v1342_v29, %v1341_v37  ;;  %v1345_v51 = vrot.slane %v1341_v37, 4  ;;  %v2600_v27 = vld [vmem:[%s2657_s18 + $0xe0] sm:$0xff]  }
  0xed   : > { %2303 = vst [vmem:[%s2667_s23 + $0x210] sm:$0xf] %v1880_v42  ;;  %2305 = vst [vmem:[%s2667_s23 + $0x214] sm:$0x1] %v1883_v43  ;;  %v2429_v47 = vpack.c.bf16 %v690_v35, %v690_v35  ;;  %v2430_v48 = vpack.c.bf16 %v691_v38, %v691_v38  ;;  %v628_v52 = vadd.f32 %v3452_v58, %v557_v22  ;;  %v2551_v2 = vunpack.c.l.bf16 %v2598_v54  ;;  %v2324_v38 = vld [vmem:[%s2667_s23 + $0x24c] sm:$0x1] }
  0xee   : > { %v629_v53 = vadd.f32 %v3452_v58, %v558_v23  ;;  %v1886_v55 = vsel %vm3123_vm4, %v1336_v46, %v2306_v36  ;;  %v1889_v39 = vsel %vm3131_vm5, %v1337_v49, %v2308_v44  ;;  %v1892_v56 = vsel %vm3123_vm4, %v1344_v50, %v2310_v45  ;;  %v2326_v41 = vld [vmem:[%s2667_s23 + $0x250] sm:$0xf]  ;;  %v2328_v10 = vld [vmem:[%s2667_s23 + $0x254] sm:$0x1] }
  0xef   : > { %v1895_v28 = vsel %vm3131_vm5, %v1345_v51, %v2312_v0  ;;  %2307 = vst [vmem:[%s2667_s23 + $0x218] sm:$0xf] %v1886_v55  ;;  %2309 = vst [vmem:[%s2667_s23 + $0x21c] sm:$0x1] %v1889_v39  ;;  %v1347_v57 = vshrl.u32 %v2429_v47, 16  ;;  %v1350_v59 = vshll.u32 %v2429_v47, 16  ;;  %v2552_v3 = vunpack.c.h.bf16 %v2598_v54 }
  0xf0   : > { %2311 = vst [vmem:[%s2667_s23 + $0x220] sm:$0xf] %v1892_v56  ;;  %2313 = vst [vmem:[%s2667_s23 + $0x224] sm:$0x1] %v1895_v28  ;;  %v1355_v60 = vshrl.u32 %v2430_v48, 16  ;;  %v1358_v62 = vshll.u32 %v2430_v48, 16  ;;  %v2555_v8 = vunpack.c.l.bf16 %v2599_v40  ;;  %v2556_v9 = vunpack.c.h.bf16 %v2599_v40 }
  0xf1   : > { %v692_v63 = vmax.f32 %v628_v52, 0.0  ;;  %v693_v1 = vmax.f32 %v629_v53, 0.0  ;;  %v1349_v5 = vrot.slane %v1347_v57, 7  ;;  %v559_v17 = vmul.f32 %v3645_v16, %v2551_v2  ;;  %v2601_v53 = vld [vmem:[%s2657_s18 + $0xe8] sm:$0xff]  }
  0xf2   : > { %v1357_v7 = vrot.slane %v1355_v60, 7  ;;  %v560_v18 = vmul.f32 %v3645_v16, %v2552_v3  ;;  %v561_v42 = vmul.f32 %v3645_v16, %v2555_v8  ;;  %v562_v43 = vmul.f32 %v3645_v16, %v2556_v9 }
  0xf3   : > { %v2431_v14 = vpack.c.bf16 %v692_v63, %v692_v63  ;;  %v2432_v15 = vpack.c.bf16 %v693_v1, %v693_v1  ;;  %v1352_v19 = vor.u32 %v1350_v59, %v1349_v5  ;;  %v1353_v20 = vrot.slane %v1349_v5, 4 }
  0xf4   : > { %v1360_v21 = vor.u32 %v1358_v62, %v1357_v7  ;;  %v1361_v22 = vrot.slane %v1357_v7, 4  ;;  %v630_v37 = vadd.f32 %v3452_v58, %v559_v17  ;;  %v631_v35 = vadd.f32 %v3452_v58, %v560_v18  ;;  %v2330_v7 = vld [vmem:[%s2667_s23 + $0x258] sm:$0xf]  ;;  %v2334_v17 = vld [vmem:[%s2667_s23 + $0x260] sm:$0xf] }
  0xf5   : > { %v1363_v23 = vshrl.u32 %v2431_v14, 16  ;;  %v1366_v24 = vshll.u32 %v2431_v14, 16  ;;  %v1371_v25 = vshrl.u32 %v2432_v15, 16  ;;  %v1374_v26 = vshll.u32 %v2432_v15, 16  ;;  %v2332_v14 = vld [vmem:[%s2667_s23 + $0x25c] sm:$0x1] }
  0xf6   : > { %v1898_v29 = vsel %vm3123_vm4, %v1352_v19, %v2314_v6  ;;  %v1901_v30 = vsel %vm3131_vm5, %v1353_v20, %v2316_v11  ;;  %v1904_v31 = vsel %vm3123_vm4, %v1360_v21, %v2318_v12  ;;  %v1907_v32 = vsel %vm3131_vm5, %v1361_v22, %v2320_v13  ;;  %v2336_v20 = vld [vmem:[%s2667_s23 + $0x264] sm:$0x1] }
  0xf7   : > { %2315 = vst [vmem:[%s2667_s23 + $0x238] sm:$0xf] %v1898_v29  ;;  %2317 = vst [vmem:[%s2667_s23 + $0x23c] sm:$0x1] %v1901_v30  ;;  %v1365_v33 = vrot.slane %v1363_v23, 7  ;;  %v1373_v36 = vrot.slane %v1371_v25, 7  ;;  %v2559_v44 = vunpack.c.l.bf16 %v2600_v27  ;;  %v2560_v45 = vunpack.c.h.bf16 %v2600_v27 }
  0xf8   : > { %2319 = vst [vmem:[%s2667_s23 + $0x240] sm:$0xf] %v1904_v31  ;;  %2321 = vst [vmem:[%s2667_s23 + $0x244] sm:$0x1] %v1907_v32  ;;  %v694_v51 = vmax.f32 %v630_v37, 0.0  ;;  %v695_v47 = vmax.f32 %v631_v35, 0.0  ;;  %v632_v48 = vadd.f32 %v3452_v58, %v561_v42  ;;  %v633_v52 = vadd.f32 %v3452_v58, %v562_v43 }
  0xf9   : > { %v1368_v0 = vor.u32 %v1366_v24, %v1365_v33  ;;  %v1369_v46 = vrot.slane %v1365_v33, 4  ;;  %v1376_v49 = vor.u32 %v1374_v26, %v1373_v36  ;;  %v1377_v50 = vrot.slane %v1373_v36, 4  ;;  %v2338_v31 = vld [vmem:[%s2667_s23 + $0x268] sm:$0xf]  ;;  %v2344_v42 = vld [vmem:[%s2667_s23 + $0x274] sm:$0x1] }
  0xfa   : > { %v2433_v28 = vpack.c.bf16 %v694_v51, %v694_v51  ;;  %v2434_v40 = vpack.c.bf16 %v695_v47, %v695_v47  ;;  %v696_v57 = vmax.f32 %v632_v48, 0.0  ;;  %v697_v59 = vmax.f32 %v633_v52, 0.0  ;;  %v2602_v47 = vld [vmem:[%s2657_s18 + $0xf0] sm:$0xff]  }
  0xfb   : > { %v1910_v54 = vsel %vm3123_vm4, %v1368_v0, %v2322_v34  ;;  %v1913_v55 = vsel %vm3131_vm5, %v1369_v46, %v2324_v38  ;;  %v1916_v39 = vsel %vm3123_vm4, %v1376_v49, %v2326_v41  ;;  %v1919_v56 = vsel %vm3131_vm5, %v1377_v50, %v2328_v10  ;;  %v2340_v41 = vld [vmem:[%s2667_s23 + $0x26c] sm:$0x1]  ;;  %v2342_v10 = vld [vmem:[%s2667_s23 + $0x270] sm:$0xf] }
  0xfc   : > { %2323 = vst [vmem:[%s2667_s23 + $0x248] sm:$0xf] %v1910_v54  ;;  %2325 = vst [vmem:[%s2667_s23 + $0x24c] sm:$0x1] %v1913_v55  ;;  %v563_v60 = vmul.f32 %v3645_v16, %v2559_v44  ;;  %v564_v62 = vmul.f32 %v3645_v16, %v2560_v45  ;;  %v2563_v63 = vunpack.c.l.bf16 %v2601_v53  ;;  %v2564_v1 = vunpack.c.h.bf16 %v2601_v53  ;;  %v2603_v55 = vld [vmem:[%s2657_s18 + $0xf8] sm:$0xff]  }
  0xfd   : > { %2327 = vst [vmem:[%s2667_s23 + $0x250] sm:$0xf] %v1916_v39  ;;  %2329 = vst [vmem:[%s2667_s23 + $0x254] sm:$0x1] %v1919_v56  ;;  %v1379_v2 = vshrl.u32 %v2433_v28, 16  ;;  %v1382_v3 = vshll.u32 %v2433_v28, 16  ;;  %v2435_v8 = vpack.c.bf16 %v696_v57, %v696_v57  ;;  %v2436_v9 = vpack.c.bf16 %v697_v59, %v697_v59 }
  0xfe   : > { %v1387_v5 = vshrl.u32 %v2434_v40, 16  ;;  %v1390_v6 = vshll.u32 %v2434_v40, 16  ;;  %v634_v11 = vadd.f32 %v3452_v58, %v563_v60  ;;  %v635_v12 = vadd.f32 %v3452_v58, %v564_v62 }
  0xff   : > { %v1381_v13 = vrot.slane %v1379_v2, 7  ;;  %v565_v18 = vmul.f32 %v3645_v16, %v2563_v63  ;;  %v566_v19 = vmul.f32 %v3645_v16, %v2564_v1  ;;  %v1395_v21 = vshrl.u32 %v2435_v8, 16  ;;  %v2346_v1 = vld [vmem:[%s2667_s23 + $0x288] sm:$0xf] }
 0x100   : > { %v1389_v15 = vrot.slane %v1387_v5, 7  ;;  %v1398_v22 = vshll.u32 %v2435_v8, 16  ;;  %v1403_v23 = vshrl.u32 %v2436_v9, 16  ;;  %v1406_v24 = vshll.u32 %v2436_v9, 16  ;;  %v2352_v8 = vld [vmem:[%s2667_s23 + $0x294] sm:$0x1] }
 0x101   : > { %v1384_v25 = vor.u32 %v1382_v3, %v1381_v13  ;;  %v1385_v26 = vrot.slane %v1381_v13, 4  ;;  %v1397_v30 = vrot.slane %v1395_v21, 7  ;;  %v698_v33 = vmax.f32 %v634_v11, 0.0 }
 0x102   : > { %v1392_v27 = vor.u32 %v1390_v6, %v1389_v15  ;;  %v1393_v29 = vrot.slane %v1389_v15, 4  ;;  %v1405_v32 = vrot.slane %v1403_v23, 7  ;;  %v699_v34 = vmax.f32 %v635_v12, 0.0  ;;  %v2348_v6 = vld [vmem:[%s2667_s23 + $0x28c] sm:$0x1] }
 0x103   : > { %v1922_v36 = vsel %vm3123_vm4, %v1384_v25, %v2330_v7  ;;  %v1925_v37 = vsel %vm3131_vm5, %v1385_v26, %v2332_v14  ;;  %v1400_v43 = vor.u32 %v1398_v22, %v1397_v30  ;;  %v1401_v44 = vrot.slane %v1397_v30, 4  ;;  %v2350_v7 = vld [vmem:[%s2667_s23 + $0x290] sm:$0xf] }
 0x104   : > { %v1928_v35 = vsel %vm3123_vm4, %v1392_v27, %v2334_v17  ;;  %v1931_v38 = vsel %vm3131_vm5, %v1393_v29, %v2336_v20  ;;  %2331 = vst [vmem:[%s2667_s23 + $0x258] sm:$0xf] %v1922_v36  ;;  %2333 = vst [vmem:[%s2667_s23 + $0x25c] sm:$0x1] %v1925_v37  ;;  %v1408_v45 = vor.u32 %v1406_v24, %v1405_v32  ;;  %v1409_v0 = vrot.slane %v1405_v32, 4 }
 0x105   : > { %2335 = vst [vmem:[%s2667_s23 + $0x260] sm:$0xf] %v1928_v35  ;;  %2337 = vst [vmem:[%s2667_s23 + $0x264] sm:$0x1] %v1931_v38  ;;  %v2437_v46 = vpack.c.bf16 %v698_v33, %v698_v33  ;;  %v2438_v49 = vpack.c.bf16 %v699_v34, %v699_v34  ;;  %v636_v50 = vadd.f32 %v3452_v58, %v565_v18  ;;  %v2567_v60 = vunpack.c.l.bf16 %v2602_v47  ;;  %v2354_v29 = vld [vmem:[%s2667_s23 + $0x298] sm:$0xf] }
 0x106   : > { %v637_v51 = vadd.f32 %v3452_v58, %v566_v19  ;;  %v1934_v48 = vsel %vm3123_vm4, %v1400_v43, %v2338_v31  ;;  %v1937_v52 = vsel %vm3131_vm5, %v1401_v44, %v2340_v41  ;;  %v1940_v53 = vsel %vm3123_vm4, %v1408_v45, %v2342_v10  ;;  %v2356_v33 = vld [vmem:[%s2667_s23 + $0x29c] sm:$0x1]  ;;  %v2358_v34 = vld [vmem:[%s2667_s23 + $0x2a0] sm:$0xf]  ;;  %v2360_v36 = vld [vmem:[%s2667_s23 + $0x2a4] sm:$0x1] }
 0x107   : > { %v1943_v54 = vsel %vm3131_vm5, %v1409_v0, %v2344_v42  ;;  %2339 = vst [vmem:[%s2667_s23 + $0x268] sm:$0xf] %v1934_v48  ;;  %2341 = vst [vmem:[%s2667_s23 + $0x26c] sm:$0x1] %v1937_v52  ;;  %v1411_v39 = vshrl.u32 %v2437_v46, 16  ;;  %v1414_v56 = vshll.u32 %v2437_v46, 16  ;;  %v2568_v62 = vunpack.c.h.bf16 %v2602_v47 }
 0x108   : > { %2343 = vst [vmem:[%s2667_s23 + $0x270] sm:$0xf] %v1940_v53  ;;  %2345 = vst [vmem:[%s2667_s23 + $0x274] sm:$0x1] %v1943_v54  ;;  %v1419_v28 = vshrl.u32 %v2438_v49, 16  ;;  %v1422_v40 = vshll.u32 %v2438_v49, 16  ;;  %v2571_v3 = vunpack.c.l.bf16 %v2603_v55  ;;  %v2572_v5 = vunpack.c.h.bf16 %v2603_v55 }
 0x109   : > { %v700_v57 = vmax.f32 %v636_v50, 0.0  ;;  %v701_v59 = vmax.f32 %v637_v51, 0.0  ;;  %v1413_v63 = vrot.slane %v1411_v39, 7  ;;  %v567_v12 = vmul.f32 %v3645_v16, %v2567_v60  ;;  %v2362_v39 = vld [vmem:[%s2667_s23 + $0x2a8] sm:$0xf] }
 0x10a   : > { %v1421_v2 = vrot.slane %v1419_v28, 7  ;;  %v568_v13 = vmul.f32 %v3645_v16, %v2568_v62  ;;  %v569_v37 = vmul.f32 %v3645_v16, %v2571_v3  ;;  %v570_v35 = vmul.f32 %v3645_v16, %v2572_v5  ;;  %v2366_v60 = vld [vmem:[%s2667_s23 + $0x2b0] sm:$0xf]  ;;  %v2368_v62 = vld [vmem:[%s2667_s23 + $0x2b4] sm:$0x1] }
 0x10b   : > { %v2439_v9 = vpack.c.bf16 %v700_v57, %v700_v57  ;;  %v2440_v11 = vpack.c.bf16 %v701_v59, %v701_v59  ;;  %v1416_v14 = vor.u32 %v1414_v56, %v1413_v63  ;;  %v1417_v15 = vrot.slane %v1413_v63, 4  ;;  %v2364_v57 = vld [vmem:[%s2667_s23 + $0x2ac] sm:$0x1] }
 0x10c   : > { %v1424_v17 = vor.u32 %v1422_v40, %v1421_v2  ;;  %v1425_v18 = vrot.slane %v1421_v2, 4  ;;  %v638_v31 = vadd.f32 %v3452_v58, %v567_v12  ;;  %v639_v32 = vadd.f32 %v3452_v58, %v568_v13 }
 0x10d   : > { %v1427_v19 = vshrl.u32 %v2439_v9, 16  ;;  %v1430_v20 = vshll.u32 %v2439_v9, 16  ;;  %v1435_v21 = vshrl.u32 %v2440_v11, 16  ;;  %v1438_v22 = vshll.u32 %v2440_v11, 16  ;;  %v2370_v11 = vld [vmem:[%s2667_s23 + $0x2b8] sm:$0xf] }
 0x10e   : > { %v1946_v23 = vsel %vm3123_vm4, %v1416_v14, %v2346_v1  ;;  %v1949_v24 = vsel %vm3131_vm5, %v1417_v15, %v2348_v6  ;;  %v1952_v25 = vsel %vm3123_vm4, %v1424_v17, %v2350_v7  ;;  %v1955_v26 = vsel %vm3131_vm5, %v1425_v18, %v2352_v8  ;;  %v2372_v18 = vld [vmem:[%s2667_s23 + $0x2bc] sm:$0x1] }
 0x10f   : > { %2347 = vst [vmem:[%s2667_s23 + $0x288] sm:$0xf] %v1946_v23  ;;  %2349 = vst [vmem:[%s2667_s23 + $0x28c] sm:$0x1] %v1949_v24  ;;  %v1429_v27 = vrot.slane %v1427_v19, 7  ;;  %v1437_v30 = vrot.slane %v1435_v21, 7  ;;  %v640_v45 = vadd.f32 %v3452_v58, %v569_v37  ;;  %v641_v0 = vadd.f32 %v3452_v58, %v570_v35 }
 0x110   : > { %2351 = vst [vmem:[%s2667_s23 + $0x290] sm:$0xf] %v1952_v25  ;;  %2353 = vst [vmem:[%s2667_s23 + $0x294] sm:$0x1] %v1955_v26  ;;  %v702_v43 = vmax.f32 %v638_v31, 0.0  ;;  %v703_v44 = vmax.f32 %v639_v32, 0.0 }
 0x111   : > { %v1432_v38 = vor.u32 %v1430_v20, %v1429_v27  ;;  %v1433_v41 = vrot.slane %v1429_v27, 4  ;;  %v1440_v10 = vor.u32 %v1438_v22, %v1437_v30  ;;  %v1441_v42 = vrot.slane %v1437_v30, 4  ;;  %v2374_v19 = vld [vmem:[%s2667_s23 + $0x2c0] sm:$0xf]  ;;  %v2376_v20 = vld [vmem:[%s2667_s23 + $0x2c4] sm:$0x1] }
 0x112   : > { %v2441_v58 = vpack.c.bf16 %v702_v43, %v702_v43  ;;  %v2442_v51 = vpack.c.bf16 %v703_v44, %v703_v44  ;;  %v704_v47 = vmax.f32 %v640_v45, 0.0  ;;  %v705_v48 = vmax.f32 %v641_v0, 0.0 }
 0x113   : > { %v1958_v46 = vsel %vm3123_vm4, %v1432_v38, %v2354_v29  ;;  %v1961_v49 = vsel %vm3131_vm5, %v1433_v41, %v2356_v33  ;;  %v1964_v16 = vsel %vm3123_vm4, %v1440_v10, %v2358_v34  ;;  %v1967_v50 = vsel %vm3131_vm5, %v1441_v42, %v2360_v36 }
 0x114   : > { %2355 = vst [vmem:[%s2667_s23 + $0x298] sm:$0xf] %v1958_v46  ;;  %2357 = vst [vmem:[%s2667_s23 + $0x29c] sm:$0x1] %v1961_v49  ;;  %v1443_v52 = vshrl.u32 %v2441_v58, 16  ;;  %v1446_v53 = vshll.u32 %v2441_v58, 16  ;;  %v2443_v56 = vpack.c.bf16 %v704_v47, %v704_v47  ;;  %v2444_v28 = vpack.c.bf16 %v705_v48, %v705_v48 }
 0x115   : > { %2359 = vst [vmem:[%s2667_s23 + $0x2a0] sm:$0xf] %v1964_v16  ;;  %2361 = vst [vmem:[%s2667_s23 + $0x2a4] sm:$0x1] %v1967_v50  ;;  %v1451_v54 = vshrl.u32 %v2442_v51, 16  ;;  %v1454_v55 = vshll.u32 %v2442_v51, 16 }
 0x116   : > { %v1445_v40 = vrot.slane %v1443_v52, 7  ;;  %v1459_v63 = vshrl.u32 %v2443_v56, 16  ;;  %v1462_v1 = vshll.u32 %v2443_v56, 16  ;;  %v1467_v2 = vshrl.u32 %v2444_v28, 16 }
 0x117   : > { %v1453_v59 = vrot.slane %v1451_v54, 7  ;;  %v1470_v3 = vshll.u32 %v2444_v28, 16 }
 0x118   : > { %v1448_v5 = vor.u32 %v1446_v53, %v1445_v40  ;;  %v1449_v6 = vrot.slane %v1445_v40, 4  ;;  %v1461_v9 = vrot.slane %v1459_v63, 7  ;;  %v1469_v12 = vrot.slane %v1467_v2, 7 }
 0x119   : > { %v1456_v7 = vor.u32 %v1454_v55, %v1453_v59  ;;  %v1457_v8 = vrot.slane %v1453_v59, 4 }
 0x11a   : > { %v1970_v13 = vsel %vm3123_vm4, %v1448_v5, %v2362_v39  ;;  %v1973_v14 = vsel %vm3131_vm5, %v1449_v6, %v2364_v57  ;;  %v1464_v21 = vor.u32 %v1462_v1, %v1461_v9  ;;  %v1465_v22 = vrot.slane %v1461_v9, 4 }
 0x11b   : > { %v1976_v15 = vsel %vm3123_vm4, %v1456_v7, %v2366_v60  ;;  %v1979_v17 = vsel %vm3131_vm5, %v1457_v8, %v2368_v62  ;;  %2363 = vst [vmem:[%s2667_s23 + $0x2a8] sm:$0xf] %v1970_v13  ;;  %2365 = vst [vmem:[%s2667_s23 + $0x2ac] sm:$0x1] %v1973_v14  ;;  %v1472_v23 = vor.u32 %v1470_v3, %v1469_v12  ;;  %v1473_v24 = vrot.slane %v1469_v12, 4 }
 0x11c   : > { %2367 = vst [vmem:[%s2667_s23 + $0x2b0] sm:$0xf] %v1976_v15  ;;  %2369 = vst [vmem:[%s2667_s23 + $0x2b4] sm:$0x1] %v1979_v17  ;;  %v1982_v25 = vsel %vm3123_vm4, %v1464_v21, %v2370_v11  ;;  %v1985_v26 = vsel %vm3131_vm5, %v1465_v22, %v2372_v18 }
 0x11d   : > { %v1988_v27 = vsel %vm3123_vm4, %v1472_v23, %v2374_v19  ;;  %v1991_v29 = vsel %vm3131_vm5, %v1473_v24, %v2376_v20  ;;  %2371 = vst [vmem:[%s2667_s23 + $0x2b8] sm:$0xf] %v1982_v25  ;;  %2373 = vst [vmem:[%s2667_s23 + $0x2bc] sm:$0x1] %v1985_v26 }
 0x11e   : > { %2375 = vst [vmem:[%s2667_s23 + $0x2c0] sm:$0xf] %v1988_v27  ;;  %2377 = vst [vmem:[%s2667_s23 + $0x2c4] sm:$0x1] %v1991_v29 }
 0x11f PF: > { %s13_s12 = sadd.s32 1, %s2623_s12  }
 0x120   : > { %p10_p4 = scmp.ge.s32.totalorder %s13_s12, 4  }
 0x122   :  { %12 = sbr.rel (!%p10_p4) target bundleno = 1 (0x1), region = 63 }

// kernel: double_conv3d.4
= control target key start
LH: loop header
LB: loop body
LE: loop exit
PB: predicated region body
PF: predicated region fallthrough
CT: control target
= control target key end

     0   :  { %s9043_s21 = smov 0   ;;  %s9045_s22 = smov 0   ;;  %s11161_s0 = inlined_call_operand.vmem [shape: bf16[2,10,10,10,128], index: 0, kind: input, shape index: {}, may-alias: {0,1,2}]   ;;  %s11162_s1 = inlined_call_operand.vmem [shape: bf16[2,10,10,10,128], index: 1, kind: input, shape index: {}, may-alias: {0,1,2}]   ;;  %s11163_s2 = inlined_call_operand.vmem [shape: bf16[2,10,10,10,128], index: 2, kind: input, shape index: {}, may-alias: {0,1,2}]   ;;  %s11164_s3 = inlined_call_operand.vmem [shape: bf16[27,128,128], index: 3, kind: input, shape index: {}]   ;;  %s11165_s4 = inlined_call_operand.vmem [shape: bf16[2,8,8,8,128], index: 4, kind: output, shape index: {0}]   ;;  %s11166_s5 = inlined_call_operand.vmem [shape: f32[2,8,8,128], index: 5, kind: output, shape index: {1}]   ;;  %s11167_s6 = inlined_call_operand.vmem [shape: f32[2,8,8,128], index: 6, kind: output, shape index: {2}]  }
   0x1   :  { %s9047_s23 = smov 0   ;;  %s9049_s24 = smov 0  }
   0x2   :  { %s9051_s25 = smov 0  }
   0x3 LB: > { %s26_s26 = sadd.s32 1, %s8998_s23  ;;  %s29_s27 = sadd.s32 1, %s9002_s24  ;;  %s9006_s25 = sphi %s9051_s25, %s17_s25   ;;  %s9002_s24 = sphi %s9049_s24, %s11211_s24   ;;  %s8998_s23 = sphi %s9047_s23, %s11210_s23   ;;  %s8994_s22 = sphi %s9045_s22, %s11209_s22   ;;  %s8990_s21 = sphi %s9043_s21, %s11208_s21  }
   0x4   : > { %p27_p0 = scmp.ge.s32.totalorder %s26_s26, 8  ;;  %p6644_p1 = scmp.ge.s32.totalorder %s9006_s25, 1 }
   0x5   : > { %p281_p2 = scmp.lt.s32.totalorder %s9006_s25, 17 }
   0x6   : > { %s11213_s26 = smov (%p27_p0, %s26_s26), 0  ;;  %s11215_s27 = smov (!%p27_p0, %s29_s27), %s9002_s24 }
   0x7   : > { %p282_p3 = pnand %p6644_p1, %p281_p2  ;;  %p31_p4 = scmp.ge.s32.totalorder %s11215_s27, 2 }
   0x9   : > { %s11217_s27 = smov (%p31_p4, %s11215_s27), 0  ;;  %285 = sbr.rel (%p282_p3) target bundleno = 693 (0x2b5), region = 36 }
   0xe   : > { %v8716_v0 = vld [vmem:[%s11164_s3 + $0x78] sm:$0xff]   ;;  %p355_p5 = scmp.lt.s32.totalorder %s8994_s22, 1  ;;  %p357_p6 = scmp.lt.s32.totalorder %s8990_s21, 9  ;;  %v8718_v2 = vld [vmem:[%s11164_s3 + $0x70] sm:$0xff]   ;;  %v8720_v4 = vld [vmem:[%s11164_s3 + $0x68] sm:$0xff]   ;;  %vm866_vm3 = vcmask 1042432  }
   0xf   : > { %v8717_v1 = vld [vmem:[%s11164_s3 + $0x38] sm:$0xff]   ;;  %8008 = vmatprep.subr.bf16.mxu0 %v8716_v0  ;;  %v8719_v3 = vld [vmem:[%s11164_s3 + $0x30] sm:$0xff]   ;;  %v8721_v5 = vld [vmem:[%s11164_s3 + $0x28] sm:$0xff]   ;;  %vm444_vm0 = vsmask.f32 3328  ;;  %vm867_vm4 = vcmask 1046532  }
  0x10   : > { %s11219_s22 = smov (!%p355_p5, %s8994_s22), 1  ;;  %8032 = vmatprep.subr.bf16.mxu1 %v8717_v1  ;;  %8009 = vmatpush3.bf16.msra.mxu0 %v8716_v0  ;;  %v8722_v6 = vld [vmem:[%s11164_s3 + $0x60] sm:$0xff]   ;;  %v8724_v8 = vld [vmem:[%s11164_s3 + $0x58] sm:$0xff]   ;;  %v8726_v10 = vld [vmem:[%s11164_s3 + $0x50] sm:$0xff]   ;;  %vm445_vm1 = vsmask.f32 7440 }
  0x11   : > { %s358_s12 = scalar_select %p357_p6, %s8990_s21, 9  ;;  %8033 = vmatpush3.bf16.msra.mxu1 %v8717_v1  ;;  %8010 = vmatprep.subr.bf16.mxu0 %v8718_v2  ;;  %v8723_v7 = vld [vmem:[%s11164_s3 + $0x20] sm:$0xff]   ;;  %v8725_v9 = vld [vmem:[%s11164_s3 + $0x18] sm:$0xff]   ;;  %v8727_v13 = vld [vmem:[%s11164_s3 + $0x10] sm:$0xff]  }
  0x12   : > { %s9095_s15 = smul.u32 200, %s11219_s22  ;;  %8034 = vmatprep.subr.bf16.mxu1 %v8719_v3  ;;  %v8728_v20 = vld [vmem:[%s11164_s3 + $0x48] sm:$0xff]   ;;  %v8730_v39 = vld [vmem:[%s11164_s3 + $0x40] sm:$0xff]   ;;  %vm9153_vm2 = vmor %vm444_vm0, %vm445_vm1  ;;  %s364_s10 = sadd.s32 1, %s8990_s21 }
  0x13   : > { %s8672_s18 = smul.u32 20, %s358_s12  ;;  %v8729_v24 = vld [vmem:[%s11164_s3 + $0x8] sm:$0xff]   ;;  %v8731_v49 = vld [vmem:[%s11164_s3] sm:$0xff]   ;;  %v8734_v60 = vld [vmem:[%s11164_s3 + $0xb8] sm:$0xff]   ;;  %p9456_p7 = scmp.lt.s32.totalorder %s364_s10, 9 }
  0x14   : > { %8011 = vmatpush3.bf16.msra.mxu0 %v8718_v2  ;;  %v8735_v62 = vld [vmem:[%s11164_s3 + $0xf8] sm:$0xff]   ;;  %vm9230_vm5 = vmor %vm866_vm3, %vm867_vm4  ;;  %s375_s29 = sadd.s32 2, %s8990_s21  ;;  %p388_p9 = scmp.lt.s32.totalorder %s8990_s21, 7 }
  0x15   : > { %s361_s19 = sadd.s32 %s9095_s15, %s8672_s18  ;;  %8035 = vmatpush3.bf16.msra.mxu1 %v8719_v3  ;;  %8012 = vmatprep.subr.bf16.mxu0 %v8720_v4  ;;  %v8736_v3 = vld [vmem:[%s11164_s3 + $0xb0] sm:$0xff]   ;;  %s11221_s10 = smov (!%p9456_p7, %s364_s10), 9 }
  0x16   : > { %8036 = vmatprep.subr.bf16.mxu1 %v8721_v5  ;;  %s6645_s7 = sshll.u32 %s361_s19, 2  ;;  %s8674_s18 = smul.u32 20, %s11221_s10 }
  0x17   : > { %s9116_s14 = scalar_lea.vmem %s11161_s0, %s6645_s7  ;;  %p9969_p8 = scmp.lt.s32.totalorder %s375_s29, 9 }
  0x18   : > { %8013 = vmatpush3.bf16.msra.mxu0 %v8720_v4  ;;  %v412_v11 = vld [vmem:[%s9116_s14] sm:$0xf]  ;;  %v413_v12 = vld [vmem:[%s9116_s14 + $0x8] sm:$0xf]  ;;  %v9127_v14 = vld [vmem:[%s9116_s14 + $0x4] sm:$0x1]  ;;  %s9534_s7 = sadd.s32 %s8674_s18, %s9095_s15 }
  0x19   : > { %8037 = vmatpush3.bf16.msra.mxu1 %v8721_v5  ;;  %8014 = vmatprep.subr.bf16.mxu0 %v8722_v6  ;;  %v9130_v15 = vld [vmem:[%s9116_s14 + $0xc] sm:$0x1]  ;;  %v6683_v16 = vcombine.low %v412_v11, %v413_v12  ;;  %v448_v17 = vshrl.u32 %v412_v11, 16  ;;  %v451_v18 = vshll.u32 %v412_v11, 16  ;;  %v457_v19 = vshll.u32 %v9127_v14, 16  ;;  %v8737_v5 = vld [vmem:[%s11164_s3 + $0xf0] sm:$0xff]  }
  0x1a   : > { %8038 = vmatprep.subr.bf16.mxu1 %v8723_v7  ;;  %v462_v21 = vshrl.u32 %v413_v12, 16  ;;  %v465_v22 = vshll.u32 %v413_v12, 16  ;;  %v471_v23 = vshll.u32 %v9130_v15, 16  ;;  %v414_v28 = vld [vmem:[%s9116_s14 + $0x10] sm:$0xf]  ;;  %v871_v4 = vrot.slane %v9127_v14, 5 }
  0x1b   : > { %8048 = vmatprep.mubr.bf16.mxu1 %v6683_v16  ;;  %v450_v25 = vrot.slane %v448_v17, 4  ;;  %v453_v26 = vrot.slane %v451_v18, 5  ;;  %v459_v27 = vrot.slane %v457_v19, 5  ;;  %v415_v32 = vld [vmem:[%s9116_s14 + $0x18] sm:$0xf]  ;;  %v476_v33 = vshrl.u32 %v414_v28, 16 }
  0x1c   : > { %8015 = vmatpush3.bf16.msra.mxu0 %v8722_v6  ;;  %v464_v29 = vrot.slane %v462_v21, 4  ;;  %v467_v30 = vrot.slane %v465_v22, 5  ;;  %v473_v31 = vrot.slane %v471_v23, 5  ;;  %v9143_v35 = vld [vmem:[%s9116_s14 + $0x14] sm:$0x1]  ;;  %v479_v37 = vshll.u32 %v414_v28, 16 }
  0x1d   : > { %8039 = vmatpush3.bf16.msra.mxu1 %v8723_v7  ;;  %8016 = vmatprep.subr.bf16.mxu0 %v8724_v8  ;;  %v454_v34 = vor.u32 %v453_v26, %v450_v25  ;;  %v9146_v36 = vld [vmem:[%s9116_s14 + $0x1c] sm:$0x1]  ;;  %v490_v38 = vshrl.u32 %v415_v32, 16  ;;  %v478_v42 = vrot.slane %v476_v33, 4  ;;  %v485_v43 = vshll.u32 %v9143_v35, 16  ;;  %v8738_v6 = vld [vmem:[%s11164_s3 + $0xa8] sm:$0xff]  }
  0x1e   : > { %8040 = vmatprep.subr.bf16.mxu1 %v8725_v9  ;;  %v468_v41 = vor.u32 %v467_v30, %v464_v29  ;;  %v493_v44 = vshll.u32 %v415_v32, 16  ;;  %v481_v46 = vrot.slane %v479_v37, 5  ;;  %v499_v48 = vshll.u32 %v9146_v36, 16  ;;  %v416_v7 = vld [vmem:[%s9116_s14 + $0x20] sm:$0xf]  ;;  %v8748_v14 = vld [vmem:[%s11164_s3 + $0x88] sm:$0xff]  }
  0x1f   : > { %v455_v45 = vrot.slane %v454_v34, 4  ;;  %v492_v47 = vrot.slane %v490_v38, 4  ;;  %v487_v54 = vrot.slane %v485_v43, 5  ;;  %v6684_v1 = vcombine.low %v414_v28, %v415_v32  ;;  %v9195_v11 = vld [vmem:[%s9116_s14 + $0x2c] sm:$0x1]  ;;  %s6646_s11 = sshll.u32 %s9534_s7, 2 }
  0x20   : > { %8017 = vmatpush3.bf16.msra.mxu0 %v8724_v8  ;;  %v469_v50 = vrot.slane %v468_v41, 4  ;;  %v495_v51 = vrot.slane %v493_v44, 5  ;;  %v482_v53 = vor.u32 %v481_v46, %v478_v42  ;;  %v501_v55 = vrot.slane %v499_v48, 5  ;;  %v417_v8 = vld [vmem:[%s9116_s14 + $0x28] sm:$0xf]  ;;  %s9584_s9 = scalar_lea.vmem %s11162_s1, %s6646_s11  ;;  %s11223_s29 = smov (!%p9969_p8, %s375_s29), 9 }
  0x21   : > { %8041 = vmatpush3.bf16.msra.mxu1 %v8725_v9  ;;  %8018 = vmatprep.subr.bf16.mxu0 %v8726_v10  ;;  %v460_v52 = vsel %vm9153_vm2, %v455_v45, %v459_v27  ;;  %v9189_v9 = vld [vmem:[%s9116_s14 + $0x24] sm:$0x1]  ;;  %v504_v12 = vshrl.u32 %v416_v7, 16  ;;  %v518_v17 = vshrl.u32 %v417_v8, 16  ;;  %v521_v18 = vshll.u32 %v417_v8, 16  ;;  %s8675_s11 = smul.u32 20, %s11223_s29 }
  0x22   : > { %8042 = vmatprep.subr.bf16.mxu1 %v8727_v13  ;;  %v474_v56 = vsel %vm9153_vm2, %v469_v50, %v473_v31  ;;  %v496_v57 = vor.u32 %v495_v51, %v492_v47  ;;  %v483_v59 = vrot.slane %v482_v53, 4  ;;  %v513_v16 = vshll.u32 %v9189_v9, 16  ;;  %v418_v21 = vld [vmem:[%s9116_s14 + $0x30] sm:$0xf]  ;;  %v419_v22 = vld [vmem:[%s9116_s14 + $0x38] sm:$0xf] }
  0x23   : > { %v6671_v58 = vcombine.low %v460_v52, %v474_v56  ;;  %v527_v19 = vshll.u32 %v9195_v11, 16  ;;  %v506_v23 = vrot.slane %v504_v12, 4  ;;  %v520_v26 = vrot.slane %v518_v17, 4  ;;  %v9202_v27 = vld [vmem:[%s9116_s14 + $0x34] sm:$0x1]  ;;  %v8741_v45 = vld [vmem:[%s11164_s3 + $0xe0] sm:$0xff]   ;;  %s10100_s8 = sadd.s32 %s8675_s11, %s9095_s15 }
  0x24   : > { %8019 = vmatpush3.bf16.msra.mxu0 %v8726_v10  ;;  %v497_v61 = vrot.slane %v496_v57, 4  ;;  %v488_v63 = vsel %vm9153_vm2, %v483_v59, %v487_v54  ;;  %v8739_v10 = vld [vmem:[%s11164_s3 + $0xe8] sm:$0xff]   ;;  %v515_v25 = vrot.slane %v513_v16, 5  ;;  %v523_v28 = vrot.slane %v521_v18, 5  ;;  %v9205_v30 = vld [vmem:[%s9116_s14 + $0x3c] sm:$0x1] }
  0x25   : > { %8043 = vmatpush3.bf16.msra.mxu1 %v8727_v13  ;;  %8020 = vmatprep.subr.bf16.mxu0 %v8728_v20  ;;  %v507_v13 = vshll.u32 %v416_v7, 16  ;;  %v529_v29 = vrot.slane %v527_v19, 5  ;;  %v532_v31 = vshrl.u32 %v418_v21, 16  ;;  %v535_v32 = vshll.u32 %v418_v21, 16  ;;  %v8742_v56 = vld [vmem:[%s11164_s3 + $0x98] sm:$0xff]   ;;  %s6647_s15 = sshll.u32 %s10100_s8, 2 }
  0x26   : > { %8044 = vmatprep.subr.bf16.mxu1 %v8729_v24  ;;  %8024 = vmatprep.mubr.bf16.mxu0 %v6671_v58  ;;  %v502_v0 = vsel %vm9153_vm2, %v497_v61, %v501_v55  ;;  %v541_v34 = vshll.u32 %v9202_v27, 16  ;;  %v546_v37 = vshrl.u32 %v419_v22, 16  ;;  %v549_v38 = vshll.u32 %v419_v22, 16  ;;  %v8743_v59 = vld [vmem:[%s11164_s3 + $0xd8] sm:$0xff]   ;;  %v844_v12 = vld [vmem:[%s9116_s14 + $0x10] sm:$0xe] }
  0x27   : > { %v6672_v2 = vcombine.low %v488_v63, %v502_v0  ;;  %v524_v41 = vor.u32 %v523_v28, %v520_v26  ;;  %v534_v42 = vrot.slane %v532_v31, 4  ;;  %v537_v43 = vrot.slane %v535_v32, 5  ;;  %v842_v0 = vld [vmem:[%s9116_s14] sm:$0xe]  ;;  %v8752_v16 = vld [vmem:[%s9116_s14 + $0x8] ss:$8 sps:$4 sm:$0xff]  }
  0x28   : > { %8021 = vmatpush3.bf16.msra.mxu0 %v8728_v20  ;;  %v6685_v20 = vcombine.low %v416_v7, %v417_v8  ;;  %v555_v44 = vshll.u32 %v9205_v30, 16  ;;  %v548_v47 = vrot.slane %v546_v37, 4  ;;  %v551_v48 = vrot.slane %v549_v38, 5  ;;  %v8747_v7 = vld [vmem:[%s11164_s3 + $0xd0] sm:$0xff]   ;;  %v8753_v31 = vld [vmem:[%s11164_s3 + $0x138] sm:$0xff]   ;;  %s11225_s21 = smov (!%p388_p9, %s8990_s21), 7 }
  0x29   : > { %8045 = vmatpush3.bf16.msra.mxu1 %v8729_v24  ;;  %8022 = vmatprep.subr.bf16.mxu0 %v8730_v39  ;;  %v509_v24 = vrot.slane %v507_v13, 5  ;;  %v538_v50 = vor.u32 %v537_v43, %v534_v42  ;;  %v543_v51 = vrot.slane %v541_v34, 5  ;;  %v6686_v52 = vcombine.low %v418_v21, %v419_v22  ;;  %v845_v13 = vld [vmem:[%s9116_s14 + $0x18] sm:$0xe]  ;;  %v848_v34 = vld [vmem:[%s9116_s14 + $0x30] sm:$0xe] }
  0x2a   : > { %8046 = vmatprep.subr.bf16.mxu1 %v8731_v49  ;;  %v552_v54 = vor.u32 %v551_v48, %v548_v47  ;;  %v557_v55 = vrot.slane %v555_v44, 5  ;;  %v879_v19 = vrot.slane %v9143_v35, 5  ;;  %v6697_v21 = vrot.slane %v844_v12, 9  ;;  %v8751_v35 = vld [vmem:[%s11164_s3 + $0xc0] sm:$0xff]   ;;  %v8757_v47 = vld [vmem:[%s11164_s3 + $0x170] sm:$0xff]   ;;  %s6649_s17 = sshll.u32 %s11219_s22, 6 }
  0x2b   : > { %v510_v33 = vor.u32 %v509_v24, %v506_v23  ;;  %v539_v58 = vrot.slane %v538_v50, 4  ;;  %v6698_v22 = vrot.slane %v845_v13, 9  ;;  %v846_v23 = vld [vmem:[%s9116_s14 + $0x20] sm:$0xe]  ;;  %v847_v24 = vld [vmem:[%s9116_s14 + $0x28] sm:$0xe] }
  0x2c   : > { %8023 = vmatpush3.bf16.msra.mxu0 %v8730_v39  ;;  %v8740_v39 = vld [vmem:[%s11164_s3 + $0xa0] sm:$0xff]   ;;  %v553_v61 = vrot.slane %v552_v54, 4  ;;  %v887_v26 = vrot.slane %v9189_v9, 5  ;;  %v880_v28 = vsel %vm9230_vm5, %v6697_v21, %v879_v19  ;;  %v6699_v32 = vrot.slane %v846_v23, 9  ;;  %v8758_v50 = vld [vmem:[%s11164_s3 + $0x128] sm:$0xff]   ;;  %v8765_v21 = vld [vmem:[%s11164_s3 + $0x158] sm:$0xff]  }
  0x2d   : > { %8047 = vmatpush3.bf16.msra.mxu1 %v8731_v49  ;;  %8056 = vmatprep.subr.bf16.mxu0 %v8734_v60  ;;  %v511_v46 = vrot.slane %v510_v33, 4  ;;  %v525_v49 = vrot.slane %v524_v41, 4  ;;  %v544_v63 = vsel %vm9153_vm2, %v539_v58, %v543_v51  ;;  %v6700_v9 = vrot.slane %v847_v24, 9  ;;  %v8754_v33 = vld [vmem:[%s11164_s3 + $0x178] sm:$0xff]   ;;  %v8759_v51 = vld [vmem:[%s11164_s3 + $0x168] sm:$0xff]   ;;  %v8762_v54 = vld [vmem:[%s11164_s3 + $0x120] sm:$0xff]  }
  0x2e   : > { %8080 = vmatprep.subr.bf16.mxu1 %v8735_v62  ;;  %v8755_v38 = vld [vmem:[%s9116_s14 + $0x18] ss:$8 sps:$4 sm:$0xff]   ;;  %v895_v42 = vrot.slane %v9202_v27, 5  ;;  %v899_v43 = vrot.slane %v9205_v30, 5  ;;  %v6701_v44 = vrot.slane %v848_v34, 9  ;;  %s6651_s8 = sshll.u32 %s11219_s22, 3 }
  0x2f   : > { %8025 = vmatmul.mubr.bf16.vlgmr.msra.gmra.mxu0 %v6672_v2  ;;  %v516_v53 = vsel %vm9153_vm2, %v511_v46, %v515_v25  ;;  %v530_v57 = vsel %vm9153_vm2, %v525_v49, %v529_v29  ;;  %v558_v2 = vsel %vm9153_vm2, %v553_v61, %v557_v55  ;;  %v8750_v25 = vld [vmem:[%s11164_s3 + $0x80] sm:$0xff]   ;;  %v8756_v46 = vld [vmem:[%s11164_s3 + $0x130] sm:$0xff]   ;;  %v6767_v55 = vld [vmem:[%s9116_s14 + $0x8] sm:$0xf] }
  0x30   : > { %8049 = vmatmul.mubr.bf16.vlgmr.msra.gmra.mxu1 %v6684_v1  ;;  %8057 = vmatpush3.bf16.msra.mxu0 %v8734_v60  ;;  %v6673_v60 = vcombine.low %v516_v53, %v530_v57  ;;  %v8760_v27 = vld [vmem:[%s9116_s14 + $0x28] ss:$8 sps:$4 sm:$0xff]   ;;  %v896_v30 = vsel %vm9230_vm5, %v6701_v44, %v895_v42  ;;  %v8763_v57 = vld [vmem:[%s11164_s3 + $0x160] sm:$0xff]   ;;  %v1246_v61 = vshll.u32 %v6767_v55, 16 }
  0x31   : > { %8081 = vmatpush3.bf16.msra.mxu1 %v8735_v62  ;;  %8058 = vmatprep.subr.bf16.mxu0 %v8736_v3  ;;  %v875_v62 = vrot.slane %v9130_v15, 5  ;;  %v6674_v15 = vcombine.low %v544_v63, %v558_v2  ;;  %v6769_v58 = vld [vmem:[%s9116_s14 + $0x10] sm:$0xf] }
  0x32   : > { %8082 = vmatprep.subr.bf16.mxu1 %v8737_v5  ;;  %8052 = vmatprep.mubr.bf16.mxu1 %v6685_v20  ;;  %v883_v20 = vrot.slane %v9146_v36, 5  ;;  %v891_v36 = vrot.slane %v9195_v11, 5  ;;  %v849_v11 = vld [vmem:[%s9116_s14 + $0x38] sm:$0xe]  ;;  %v1257_v63 = vshrl.u32 %v6769_v58, 16 }
  0x33   : > { %8028 = vmatprep.mubr.bf16.mxu0 %v6673_v60  ;;  %v1243_v60 = vshrl.u32 %v6767_v55, 16  ;;  %v8769_v55 = vld [vmem:[%s11164_s3 + $0x148] sm:$0xff]  }
  0x34   : > { %8059 = vmatpush3.bf16.msra.mxu0 %v8736_v3  ;;  %v843_v3 = vld [vmem:[%s9116_s14 + $0x8] sm:$0xe]  ;;  %v884_v29 = vsel %vm9230_vm5, %v6698_v22, %v883_v20  ;;  %v892_v41 = vsel %vm9230_vm5, %v6700_v9, %v891_v36 }
  0x35   : > { %8083 = vmatpush3.bf16.msra.mxu1 %v8737_v5  ;;  %8060 = vmatprep.subr.bf16.mxu0 %v8738_v6  ;;  %v6695_v5 = vrot.slane %v842_v0, 9  ;;  %v6696_v8 = vrot.slane %v843_v3, 9  ;;  %v6720_v37 = vcombine.low %v880_v28, %v884_v29  ;;  %v1260_v0 = vshll.u32 %v6769_v58, 16  ;;  %v6771_v3 = vld [vmem:[%s9116_s14 + $0x18] sm:$0xf] }
  0x36   : > { %8084 = vmatprep.subr.bf16.mxu1 %v8739_v10  ;;  %v6811_v20 = vld [vmem:[%s9116_s14 + $0x8] sm:$0xe] }
  0x37   : > { %8029 = vmatmul.mubr.bf16.gmra.mxu0 %v6674_v15  ;;  %v876_v17 = vsel %vm9230_vm5, %v6696_v8, %v875_v62  ;;  %v1248_v15 = vrot.slane %v1246_v61, 5  ;;  %v1262_v12 = vrot.slane %v1260_v0, 5  ;;  %v9373_v61 = vld [vmem:[%s9116_s14 + $0x2c] sm:$0x1] }
  0x38   : > { %8061 = vmatpush3.bf16.msra.mxu0 %v8738_v6  ;;  %8053 = vmatmul.mubr.bf16.gmra.mxu1 %v6686_v52  ;;  %v8746_v6 = vld [vmem:[%s11164_s3 + $0x90] sm:$0xff]   ;;  %v8761_v52 = vld [vmem:[%s9116_s14 + $0x38] ss:$8 sps:$4 sm:$0xff]  }
  0x39   : > { %8085 = vmatpush3.bf16.msra.mxu1 %v8739_v10  ;;  %8062 = vmatprep.subr.bf16.mxu0 %v8740_v39  ;;  %v872_v10 = vsel %vm9230_vm5, %v6695_v5, %v871_v4  ;;  %v8749_v4 = vld [vmem:[%s11164_s3 + $0xc8] sm:$0xff]   ;;  %v1245_v5 = vrot.slane %v1243_v60, 4 }
  0x3a   : > { %8086 = vmatprep.subr.bf16.mxu1 %v8741_v45  ;;  %v6719_v18 = vcombine.low %v872_v10, %v876_v17  ;;  %8096 = vmatprep.mubr.bf16.mxu1 %v8752_v16  ;;  %v1259_v10 = vrot.slane %v1257_v63, 4  ;;  %v9329_v16 = vld [vmem:[%s9116_s14 + $0x24] sm:$0x1]  ;;  %v8764_v17 = vld [vmem:[%s11164_s3 + $0x118] sm:$0xff]   ;;  %v9377_v63 = vld [vmem:[%s9116_s14 + $0x34] sm:$0x1] }
  0x3b   : > { %v1546_v58 = vrot.slane %v9329_v16, 5 }
  0x3c   : > { %8063 = vmatpush3.bf16.msra.mxu0 %v8740_v39  ;;  %8072 = vmatprep.mubr.bf16.mxu0 %v6719_v18  ;;  %v888_v39 = vsel %vm9230_vm5, %v6699_v32, %v887_v26  ;;  %v1249_v18 = vor.u32 %v1248_v15, %v1245_v5  ;;  %v1263_v22 = vor.u32 %v1262_v12, %v1259_v10  ;;  %v6812_v26 = vld [vmem:[%s9116_s14 + $0x10] sm:$0xe]  ;;  %v6779_v15 = vld [vmem:[%s9116_s14 + $0x38] sm:$0xf]  ;;  %v1308_v10 = vshll.u32 %v9373_v61, 16 }
  0x3d   : > { %8087 = vmatpush3.bf16.msra.mxu1 %v8741_v45  ;;  %8064 = vmatprep.subr.bf16.mxu0 %v8742_v56  ;;  %v6702_v45 = vrot.slane %v849_v11, 9  ;;  %v6721_v48 = vcombine.low %v888_v39, %v892_v41  ;;  %v8767_v11 = vld [vmem:[%s11164_s3 + $0x150] sm:$0xff]   ;;  %v6819_v39 = vrot.slane %v6811_v20, 9  ;;  %v6820_v44 = vrot.slane %v6812_v26, 9 }
  0x3e   : > { %8088 = vmatprep.subr.bf16.mxu1 %v8743_v59  ;;  %v1264_v32 = vrot.slane %v1263_v22, 4  ;;  %v1310_v20 = vrot.slane %v1308_v10, 5 }
  0x3f   : > { %v900_v49 = vsel %vm9230_vm5, %v6702_v45, %v899_v43 }
  0x40   : > { %8065 = vmatpush3.bf16.msra.mxu0 %v8742_v56  ;;  %v6722_v53 = vcombine.low %v896_v30, %v900_v49  ;;  %v9312_v56 = vld [vmem:[%s9116_s14 + $0xc] sm:$0x1] }
  0x41   : > { %8089 = vmatpush3.bf16.msra.mxu1 %v8743_v59  ;;  %8066 = vmatprep.subr.bf16.mxu0 %v8746_v6  ;;  %v9319_v59 = vld [vmem:[%s9116_s14 + $0x14] sm:$0x1]  ;;  %v1252_v62 = vshll.u32 %v9312_v56, 16  ;;  %v1534_v41 = vrot.slane %v9312_v56, 5 }
  0x42   : > { %8090 = vmatprep.subr.bf16.mxu1 %v8747_v7  ;;  %v1266_v2 = vshll.u32 %v9319_v59, 16  ;;  %v1538_v45 = vrot.slane %v9319_v59, 5  ;;  %v6775_v59 = vld [vmem:[%s9116_s14 + $0x28] sm:$0xf] }
  0x43   : > { %v1254_v8 = vrot.slane %v1252_v62, 5  ;;  %v1535_v30 = vsel %vm9230_vm5, %v6819_v39, %v1534_v41  ;;  %v6777_v62 = vld [vmem:[%s9116_s14 + $0x30] sm:$0xf]  ;;  %v1302_v5 = vshll.u32 %v6775_v59, 16 }
  0x44   : > { %8067 = vmatpush3.bf16.msra.mxu0 %v8746_v6  ;;  %v9325_v6 = vld [vmem:[%s9116_s14 + $0x1c] sm:$0x1]  ;;  %v1268_v13 = vrot.slane %v1266_v2, 5  ;;  %v1313_v12 = vshrl.u32 %v6777_v62, 16 }
  0x45   : > { %8091 = vmatpush3.bf16.msra.mxu1 %v8747_v7  ;;  %8068 = vmatprep.subr.bf16.mxu0 %v8748_v14  ;;  %v6773_v7 = vld [vmem:[%s9116_s14 + $0x20] sm:$0xf]  ;;  %v1280_v19 = vshll.u32 %v9325_v6, 16 }
  0x46   : > { %8092 = vmatprep.subr.bf16.mxu1 %v8749_v4  ;;  %v1285_v23 = vshrl.u32 %v6773_v7, 16  ;;  %v1288_v24 = vshll.u32 %v6773_v7, 16  ;;  %v1269_v42 = vsel %vm9153_vm2, %v1264_v32, %v1268_v13  ;;  %v8770_v7 = vld [vmem:[%s11164_s3 + $0x100] sm:$0xff]   ;;  %v1316_v13 = vshll.u32 %v6777_v62, 16  ;;  %v8775_v62 = vld [vmem:[%s11164_s3 + $0x1f0] sm:$0xff]  }
  0x47   : > { %v1282_v29 = vrot.slane %v1280_v19, 5  ;;  %v1327_v19 = vshrl.u32 %v6779_v15, 16 }
  0x48   : > { %8069 = vmatpush3.bf16.msra.mxu0 %v8748_v14  ;;  %v1271_v14 = vshrl.u32 %v6771_v3, 16  ;;  %v1287_v9 = vrot.slane %v1285_v23, 4  ;;  %v1318_v22 = vrot.slane %v1316_v13, 5  ;;  %v1330_v23 = vshll.u32 %v6779_v15, 16  ;;  %v8778_v13 = vld [vmem:[%s11164_s3 + $0x1a0] sm:$0xff]  }
  0x49   : > { %8093 = vmatpush3.bf16.msra.mxu1 %v8749_v4  ;;  %8070 = vmatprep.subr.bf16.mxu0 %v8750_v25  ;;  %v1274_v4 = vshll.u32 %v6771_v3, 16  ;;  %v1299_v3 = vshrl.u32 %v6775_v59, 16 }
  0x4a   : > { %8094 = vmatprep.subr.bf16.mxu1 %v8751_v35  ;;  %v1273_v36 = vrot.slane %v1271_v14, 4  ;;  %v1322_v14 = vshll.u32 %v9377_v63, 16 }
  0x4b   : > { %v1276_v28 = vrot.slane %v1274_v4, 5  ;;  %v9400_v4 = vld [vmem:[%s9116_s14 + $0x44] sm:$0x1] }
  0x4c   : > { %8071 = vmatpush3.bf16.msra.mxu0 %v8750_v25  ;;  %v1294_v25 = vshll.u32 %v9329_v16, 16  ;;  %v6781_v16 = vld [vmem:[%s9116_s14 + $0x40] sm:$0xf]  ;;  %v1324_v26 = vrot.slane %v1322_v14, 5  ;;  %v6891_v14 = vld [vmem:[%s9116_s14 + $0x10] sm:$0xf] }
  0x4d   : > { %8095 = vmatpush3.bf16.msra.mxu1 %v8751_v35  ;;  %8104 = vmatprep.subr.bf16.mxu0 %v8753_v31  ;;  %v1250_v35 = vrot.slane %v1249_v18, 4  ;;  %v1304_v18 = vrot.slane %v1302_v5, 5  ;;  %v1344_v32 = vshll.u32 %v6781_v16, 16 }
  0x4e   : > { %8128 = vmatprep.subr.bf16.mxu1 %v8754_v33  ;;  %v1296_v34 = vrot.slane %v1294_v25, 5 }
  0x4f   : > { %8073 = vmatmul.mubr.bf16.vlgmr.msra.gmra.mxu0 %v6720_v37  ;;  %v1255_v37 = vsel %vm9153_vm2, %v1250_v35, %v1254_v8  ;;  %v1329_v35 = vrot.slane %v1327_v19, 4  ;;  %v6893_v19 = vld [vmem:[%s9116_s14 + $0x18] sm:$0xf] }
  0x50   : > { %8097 = vmatmul.mubr.bf16.vlgmr.msra.gmra.mxu1 %v8755_v38  ;;  %8105 = vmatpush3.bf16.msra.mxu0 %v8753_v31  ;;  %v8766_v31 = vld [vmem:[%s11164_s3 + $0x110] sm:$0xff]   ;;  %v1277_v38 = vor.u32 %v1276_v28, %v1273_v36 }
  0x51   : > { %8129 = vmatpush3.bf16.msra.mxu1 %v8754_v33  ;;  %8106 = vmatprep.subr.bf16.mxu0 %v8756_v46  ;;  %v1290_v33 = vrot.slane %v1288_v24, 5  ;;  %v8771_v24 = vld [vmem:[%s11164_s3 + $0x140] sm:$0xff]  }
  0x52   : > { %8130 = vmatprep.subr.bf16.mxu1 %v8757_v47  ;;  %8076 = vmatprep.mubr.bf16.mxu0 %v6721_v48  ;;  %v6799_v48 = vcombine.low %v1255_v37, %v1269_v42  ;;  %v8772_v37 = vld [vmem:[%s11164_s3 + $0x1b8] sm:$0xff]   ;;  %v1346_v42 = vrot.slane %v1344_v32, 5 }
  0x53   : > { %8100 = vmatprep.mubr.bf16.mxu1 %v8760_v27  ;;  %v1291_v43 = vor.u32 %v1290_v33, %v1287_v9  ;;  %v1278_v27 = vrot.slane %v1277_v38, 4 }
  0x54   : > { %8107 = vmatpush3.bf16.msra.mxu0 %v8756_v46  ;;  %v6813_v46 = vld [vmem:[%s9116_s14 + $0x18] sm:$0xe] }
  0x55   : > { %8131 = vmatpush3.bf16.msra.mxu1 %v8757_v47  ;;  %8108 = vmatprep.subr.bf16.mxu0 %v8758_v50  ;;  %v6814_v47 = vld [vmem:[%s9116_s14 + $0x20] sm:$0xe]  ;;  %v6821_v49 = vrot.slane %v6813_v46, 9  ;;  %v1283_v56 = vsel %vm9153_vm2, %v1278_v27, %v1282_v29  ;;  %v1332_v29 = vrot.slane %v1330_v23, 5  ;;  %v1554_v27 = vrot.slane %v9377_v63, 5 }
  0x56   : > { %8132 = vmatprep.subr.bf16.mxu1 %v8759_v51 }
  0x57   : > { %8077 = vmatmul.mubr.bf16.gmra.mxu0 %v6722_v53  ;;  %v1542_v53 = vrot.slane %v9325_v6, 5  ;;  %v9387_v6 = vld [vmem:[%s9116_s14 + $0x3c] sm:$0x1]  ;;  %v1333_v39 = vor.u32 %v1332_v29, %v1329_v35 }
  0x58   : > { %8109 = vmatpush3.bf16.msra.mxu0 %v8758_v50  ;;  %8101 = vmatmul.mubr.bf16.gmra.mxu1 %v8761_v52  ;;  %v8768_v50 = vld [vmem:[%s11164_s3 + $0x108] sm:$0xff]   ;;  %v1539_v52 = vsel %vm9230_vm5, %v6820_v44, %v1538_v45  ;;  %v1336_v36 = vshll.u32 %v9387_v6, 16  ;;  %v8773_v44 = vld [vmem:[%s11164_s3 + $0x1f8] sm:$0xff]  }
  0x59   : > { %8133 = vmatpush3.bf16.msra.mxu1 %v8759_v51  ;;  %8110 = vmatprep.subr.bf16.mxu0 %v8762_v54  ;;  %v1292_v51 = vrot.slane %v1291_v43, 4  ;;  %v9383_v2 = vsel %vm9230_vm5, %v6821_v49, %v1542_v53  ;;  %v6815_v43 = vld [vmem:[%s9116_s14 + $0x28] sm:$0xe]  ;;  %v6817_v53 = vld [vmem:[%s9116_s14 + $0x38] sm:$0xe] }
  0x5a   : > { %8134 = vmatprep.subr.bf16.mxu1 %v8763_v57  ;;  %8120 = vmatprep.mubr.bf16.mxu0 %v6799_v48  ;;  %v1338_v33 = vrot.slane %v1336_v36, 5  ;;  %v6823_v48 = vrot.slane %v6815_v43, 9  ;;  %v8782_v36 = vld [vmem:[%s11164_s3 + $0x190] sm:$0xff]  }
  0x5b   : > { %v1297_v60 = vsel %vm9153_vm2, %v1292_v51, %v1296_v34  ;;  %v1350_v34 = vshll.u32 %v9400_v4, 16 }
  0x5c   : > { %8111 = vmatpush3.bf16.msra.mxu0 %v8762_v54  ;;  %v6822_v54 = vrot.slane %v6814_v47, 9  ;;  %v9379_v0 = vcombine.low %v1283_v56, %v1297_v60  ;;  %v6816_v47 = vld [vmem:[%s9116_s14 + $0x30] sm:$0xe] }
  0x5d   : > { %8135 = vmatpush3.bf16.msra.mxu1 %v8763_v57  ;;  %8112 = vmatprep.subr.bf16.mxu0 %v8764_v17  ;;  %v6843_v57 = vcombine.low %v1535_v30, %v1539_v52  ;;  %v1352_v46 = vrot.slane %v1350_v34, 5  ;;  %v8774_v30 = vld [vmem:[%s11164_s3 + $0x1b0] sm:$0xff]   ;;  %v6824_v52 = vrot.slane %v6816_v47, 9  ;;  %v6895_v34 = vld [vmem:[%s9116_s14 + $0x20] sm:$0xf] }
  0x5e   : > { %8136 = vmatprep.subr.bf16.mxu1 %v8765_v21  ;;  %v9394_v8 = vsel %vm9230_vm5, %v6822_v54, %v1546_v58  ;;  %v6818_v54 = vld [vmem:[%s9116_s14 + $0x40] sm:$0xe]  ;;  %v1558_v58 = vrot.slane %v9387_v6, 5  ;;  %v8776_v6 = vld [vmem:[%s11164_s3 + $0x1a8] sm:$0xff]   ;;  %v1934_v43 = vshrl.u32 %v6895_v34, 16 }
  0x5f   : > { %8144 = vmatprep.mubr.bf16.mxu1 %v6843_v57  ;;  %v6825_v57 = vrot.slane %v6817_v53, 9  ;;  %v1555_v60 = vsel %vm9230_vm5, %v6824_v52, %v1554_v27 }
  0x60   : > { %8113 = vmatpush3.bf16.msra.mxu0 %v8764_v17  ;;  %v1301_v17 = vrot.slane %v1299_v3, 4 }
  0x61   : > { %8137 = vmatpush3.bf16.msra.mxu1 %v8765_v21  ;;  %8114 = vmatprep.subr.bf16.mxu0 %v8766_v31  ;;  %v1315_v21 = vrot.slane %v1313_v12, 4 }
  0x62   : > { %8138 = vmatprep.subr.bf16.mxu1 %v8767_v11  ;;  %v1305_v25 = vor.u32 %v1304_v18, %v1301_v17  ;;  %v8788_v17 = vld [vmem:[%s9116_s14 + $0x10] ss:$8 sps:$4 sm:$0xff]  }
  0x63   : > { %v1319_v28 = vor.u32 %v1318_v22, %v1315_v21  ;;  %v8780_v18 = vld [vmem:[%s11164_s3 + $0x198] sm:$0xff]   ;;  %v1906_v21 = vshrl.u32 %v6891_v14, 16  ;;  %v1909_v22 = vshll.u32 %v6891_v14, 16 }
  0x64   : > { %8115 = vmatpush3.bf16.msra.mxu0 %v8766_v31  ;;  %v1341_v31 = vshrl.u32 %v6781_v16, 16  ;;  %v1306_v9 = vrot.slane %v1305_v25, 4  ;;  %v8779_v16 = vld [vmem:[%s11164_s3 + $0x1e0] sm:$0xff]   ;;  %v8781_v25 = vld [vmem:[%s11164_s3 + $0x1d8] sm:$0xff]  }
  0x65   : > { %8139 = vmatpush3.bf16.msra.mxu1 %v8767_v11  ;;  %8116 = vmatprep.subr.bf16.mxu0 %v8768_v50  ;;  %v1550_v11 = vrot.slane %v9373_v61, 5  ;;  %v1320_v38 = vrot.slane %v1319_v28, 4  ;;  %v6826_v61 = vrot.slane %v6818_v54, 9  ;;  %v1908_v28 = vrot.slane %v1906_v21, 4 }
  0x66   : > { %8140 = vmatprep.subr.bf16.mxu1 %v8769_v55  ;;  %v1343_v41 = vrot.slane %v1341_v31, 4  ;;  %v1311_v45 = vsel %vm9153_vm2, %v1306_v9, %v1310_v20  ;;  %v9473_v20 = vld [vmem:[%s9116_s14 + $0x1c] sm:$0x1]  ;;  %v1911_v29 = vrot.slane %v1909_v22, 5  ;;  %v6903_v22 = vld [vmem:[%s9116_s14 + $0x40] sm:$0xf] }
  0x67   : > { %v1325_v49 = vsel %vm9153_vm2, %v1320_v38, %v1324_v26  ;;  %v1551_v56 = vsel %vm9230_vm5, %v6823_v48, %v1550_v11  ;;  %v1923_v26 = vshll.u32 %v6893_v19, 16  ;;  %v1929_v35 = vshll.u32 %v9473_v20, 16  ;;  %v6897_v38 = vld [vmem:[%s9116_s14 + $0x28] sm:$0xf] }
  0x68   : > { %8117 = vmatpush3.bf16.msra.mxu0 %v8768_v50  ;;  %v1334_v50 = vrot.slane %v1333_v39, 4  ;;  %v1347_v51 = vor.u32 %v1346_v42, %v1343_v41  ;;  %v6801_v63 = vcombine.low %v1311_v45, %v1325_v49  ;;  %v6845_v3 = vcombine.low %v1551_v56, %v1555_v60  ;;  %v9493_v39 = vld [vmem:[%s9116_s14 + $0x2c] sm:$0x1]  ;;  %v8783_v41 = vld [vmem:[%s11164_s3 + $0x1d0] sm:$0xff]  }
  0x69   : > { %8141 = vmatpush3.bf16.msra.mxu1 %v8769_v55  ;;  %8118 = vmatprep.subr.bf16.mxu0 %v8770_v7  ;;  %v6844_v55 = vcombine.low %v9383_v2, %v9394_v8  ;;  %v1562_v2 = vrot.slane %v9400_v4, 5  ;;  %v8777_v8 = vld [vmem:[%s11164_s3 + $0x1e8] sm:$0xff]   ;;  %v9469_v4 = vld [vmem:[%s9116_s14 + $0x14] sm:$0x1]  ;;  %v1925_v9 = vrot.slane %v1923_v26, 5  ;;  %v1912_v11 = vor.u32 %v1911_v29, %v1908_v28 }
  0x6a   : > { %8142 = vmatprep.subr.bf16.mxu1 %v8771_v24  ;;  %v1348_v59 = vrot.slane %v1347_v51, 4  ;;  %v1339_v5 = vsel %vm9153_vm2, %v1334_v50, %v1338_v33  ;;  %v1915_v23 = vshll.u32 %v9469_v4, 16  ;;  %v1931_v33 = vrot.slane %v1929_v35, 5  ;;  %v8784_v51 = vld [vmem:[%s11164_s3 + $0x188] sm:$0xff]   ;;  %v9543_v35 = vld [vmem:[%s9116_s14 + $0x44] sm:$0x1] }
  0x6b   : > { %v1948_v47 = vshrl.u32 %v6897_v38, 16  ;;  %v1951_v48 = vshll.u32 %v6897_v38, 16  ;;  %v1957_v27 = vshll.u32 %v9493_v39, 16  ;;  %v1936_v49 = vrot.slane %v1934_v43, 4 }
  0x6c   : > { %8119 = vmatpush3.bf16.msra.mxu0 %v8770_v7  ;;  %v1353_v15 = vsel %vm9153_vm2, %v1348_v59, %v1352_v46  ;;  %v1559_v7 = vsel %vm9230_vm5, %v6825_v57, %v1558_v58  ;;  %v1917_v31 = vrot.slane %v1915_v23, 5  ;;  %v1913_v46 = vrot.slane %v1912_v11, 4  ;;  %v8789_v23 = vld [vmem:[%s9116_s14 + $0x20] ss:$8 sps:$4 sm:$0xff]  }
  0x6d   : > { %8143 = vmatpush3.bf16.msra.mxu1 %v8771_v24  ;;  %8152 = vmatprep.subr.bf16.mxu0 %v8772_v37  ;;  %v6802_v10 = vcombine.low %v1339_v5, %v1353_v15  ;;  %v1920_v24 = vshrl.u32 %v6893_v19, 16  ;;  %v1950_v53 = vrot.slane %v1948_v47, 4  ;;  %v1953_v54 = vrot.slane %v1951_v48, 5  ;;  %v6899_v15 = vld [vmem:[%s9116_s14 + $0x30] sm:$0xf] }
  0x6e   : > { %8176 = vmatprep.subr.bf16.mxu1 %v8773_v44  ;;  %v1918_v52 = vsel %vm9153_vm2, %v1913_v46, %v1917_v31  ;;  %v1999_v38 = vshll.u32 %v9543_v35, 16  ;;  %v8794_v47 = vld [vmem:[%s9116_s14 + $0x30] ss:$8 sps:$4 sm:$0xff]  }
  0x6f   : > { %8121 = vmatmul.mubr.bf16.vlgmr.msra.gmra.mxu0 %v9379_v0  ;;  %v1563_v0 = vsel %vm9230_vm5, %v6826_v61, %v1562_v2  ;;  %v1922_v32 = vrot.slane %v1920_v24, 4  ;;  %v1954_v60 = vor.u32 %v1953_v54, %v1950_v53  ;;  %v1959_v61 = vrot.slane %v1957_v27, 5  ;;  %v8787_v2 = vld [vmem:[%s11164_s3 + $0x1c0] sm:$0xff]   ;;  %v8796_v53 = vld [vmem:[%s11164_s3 + $0x228] sm:$0xff]  }
  0x70   : > { %8145 = vmatmul.mubr.bf16.vlgmr.msra.gmra.mxu1 %v6844_v55  ;;  %8153 = vmatpush3.bf16.msra.mxu0 %v8772_v37  ;;  %v6846_v12 = vcombine.low %v1559_v7, %v1563_v0  ;;  %v9489_v37 = vld [vmem:[%s9116_s14 + $0x24] sm:$0x1]  ;;  %v8785_v55 = vld [vmem:[%s11164_s3 + $0x1c8] sm:$0xff]   ;;  %v6901_v7 = vld [vmem:[%s9116_s14 + $0x38] sm:$0xf] }
  0x71   : > { %8177 = vmatpush3.bf16.msra.mxu1 %v8773_v44  ;;  %8154 = vmatprep.subr.bf16.mxu0 %v8774_v30  ;;  %v1926_v42 = vor.u32 %v1925_v9, %v1922_v32  ;;  %v1937_v44 = vshll.u32 %v6895_v34, 16  ;;  %v1943_v45 = vshll.u32 %v9489_v37, 16  ;;  %v8790_v0 = vld [vmem:[%s11164_s3 + $0x238] sm:$0xff]   ;;  %v1976_v14 = vshrl.u32 %v6901_v7, 16  ;;  %v6905_v32 = vld [vmem:[%s9116_s14 + $0x48] sm:$0xf] }
  0x72   : > { %8178 = vmatprep.subr.bf16.mxu1 %v8775_v62  ;;  %8124 = vmatprep.mubr.bf16.mxu0 %v6801_v63  ;;  %v1979_v19 = vshll.u32 %v6901_v7, 16  ;;  %v1993_v9 = vshll.u32 %v6903_v22, 16  ;;  %v9548_v34 = vld [vmem:[%s9116_s14 + $0x4c] sm:$0x1]  ;;  %v2201_v7 = vrot.slane %v9473_v20, 5 }
  0x73   : > { %8148 = vmatprep.mubr.bf16.mxu1 %v6845_v3  ;;  %v1939_v50 = vrot.slane %v1937_v44, 5  ;;  %v1945_v58 = vrot.slane %v1943_v45, 5  ;;  %v1955_v3 = vrot.slane %v1954_v60, 4  ;;  %v1978_v28 = vrot.slane %v1976_v14, 4  ;;  %v8801_v14 = vld [vmem:[%s11164_s3 + $0x258] sm:$0xff]  }
  0x74   : > { %8155 = vmatpush3.bf16.msra.mxu0 %v8774_v30  ;;  %v1927_v30 = vrot.slane %v1926_v42, 4  ;;  %v1981_v29 = vrot.slane %v1979_v19, 5  ;;  %v8792_v42 = vld [vmem:[%s11164_s3 + $0x230] sm:$0xff]   ;;  %v1995_v44 = vrot.slane %v1993_v9, 5  ;;  %v2007_v45 = vshll.u32 %v6905_v32, 16  ;;  %v8806_v9 = vld [vmem:[%s11164_s3 + $0x200] sm:$0xff]  }
  0x75   : > { %8179 = vmatpush3.bf16.msra.mxu1 %v8775_v62  ;;  %8156 = vmatprep.subr.bf16.mxu0 %v8776_v6  ;;  %v1940_v57 = vor.u32 %v1939_v50, %v1936_v49  ;;  %v8786_v62 = vld [vmem:[%s11164_s3 + $0x180] sm:$0xff]   ;;  %v2013_v46 = vshll.u32 %v9548_v34, 16 }
  0x76   : > { %8180 = vmatprep.subr.bf16.mxu1 %v8777_v8  ;;  %v1932_v56 = vsel %vm9153_vm2, %v1927_v30, %v1931_v33  ;;  %v1982_v43 = vor.u32 %v1981_v29, %v1978_v28  ;;  %v8793_v30 = vld [vmem:[%s11164_s3 + $0x270] sm:$0xff]   ;;  %v2205_v28 = vrot.slane %v9489_v37, 5 }
  0x77   : > { %8125 = vmatmul.mubr.bf16.gmra.mxu0 %v6802_v10  ;;  %v6923_v59 = vcombine.low %v1918_v52, %v1932_v56  ;;  %v1941_v63 = vrot.slane %v1940_v57, 4  ;;  %v9530_v10 = vld [vmem:[%s9116_s14 + $0x3c] sm:$0x1]  ;;  %v2009_v52 = vrot.slane %v2007_v45, 5  ;;  %v6941_v45 = vld [vmem:[%s9116_s14 + $0x40] sm:$0xe] }
  0x78   : > { %8157 = vmatpush3.bf16.msra.mxu0 %v8776_v6  ;;  %8149 = vmatmul.mubr.bf16.gmra.mxu1 %v6846_v12  ;;  %v9521_v6 = vld [vmem:[%s9116_s14 + $0x34] sm:$0x1]  ;;  %v1962_v12 = vshrl.u32 %v6899_v15, 16  ;;  %v1985_v21 = vshll.u32 %v9530_v10, 16  ;;  %v1983_v49 = vrot.slane %v1982_v43, 4 }
  0x79   : > { %8181 = vmatpush3.bf16.msra.mxu1 %v8777_v8  ;;  %8158 = vmatprep.subr.bf16.mxu0 %v8778_v13  ;;  %v1946_v5 = vsel %vm9153_vm2, %v1941_v63, %v1945_v58  ;;  %v1960_v8 = vsel %vm9153_vm2, %v1955_v3, %v1959_v61  ;;  %v2015_v58 = vrot.slane %v2013_v46, 5  ;;  %v8797_v61 = vld [vmem:[%s11164_s3 + $0x268] sm:$0xff]   ;;  %v8798_v3 = vld [vmem:[%s11164_s3 + $0x220] sm:$0xff]   ;;  %v2213_v37 = vrot.slane %v9521_v6, 5 }
  0x7a   : > { %8182 = vmatprep.subr.bf16.mxu1 %v8779_v16  ;;  %8168 = vmatprep.mubr.bf16.mxu0 %v8788_v17  ;;  %v8791_v17 = vld [vmem:[%s11164_s3 + $0x278] sm:$0xff]   ;;  %v1964_v24 = vrot.slane %v1962_v12, 4  ;;  %v1987_v31 = vrot.slane %v1985_v21, 5  ;;  %v8802_v21 = vld [vmem:[%s11164_s3 + $0x210] sm:$0xff]   ;;  %v6942_v46 = vld [vmem:[%s9116_s14 + $0x48] sm:$0xe] }
  0x7b   : > { %8192 = vmatprep.mubr.bf16.mxu1 %v6923_v59  ;;  %v8795_v59 = vld [vmem:[%s9116_s14 + $0x40] ss:$8 sps:$4 sm:$0xff]   ;;  %v6936_v12 = vld [vmem:[%s9116_s14 + $0x18] sm:$0xe] }
  0x7c   : > { %8159 = vmatpush3.bf16.msra.mxu0 %v8778_v13  ;;  %v1965_v13 = vshll.u32 %v6899_v15, 16  ;;  %v2197_v15 = vrot.slane %v9469_v4, 5  ;;  %v8800_v4 = vld [vmem:[%s11164_s3 + $0x218] sm:$0xff]  }
  0x7d   : > { %8183 = vmatpush3.bf16.msra.mxu1 %v8779_v16  ;;  %8160 = vmatprep.subr.bf16.mxu0 %v8780_v18  ;;  %v1971_v16 = vshll.u32 %v9521_v6, 16  ;;  %v8810_v6 = vld [vmem:[%s11164_s3 + $0x2f8] sm:$0xff]  }
  0x7e   : > { %8184 = vmatprep.subr.bf16.mxu1 %v8781_v25 }
  0x7f   : > { %v1973_v26 = vrot.slane %v1971_v16, 5  ;;  %v6944_v16 = vrot.slane %v6936_v12, 9 }
  0x80   : > { %8161 = vmatpush3.bf16.msra.mxu0 %v8780_v18  ;;  %v6924_v18 = vcombine.low %v1946_v5, %v1960_v8  ;;  %v6935_v8 = vld [vmem:[%s9116_s14 + $0x10] sm:$0xe] }
  0x81   : > { %8185 = vmatpush3.bf16.msra.mxu1 %v8781_v25  ;;  %8162 = vmatprep.subr.bf16.mxu0 %v8782_v36  ;;  %v1967_v25 = vrot.slane %v1965_v13, 5  ;;  %v6943_v13 = vrot.slane %v6935_v8, 9  ;;  %v2557_v8 = vld [vmem:[%s9584_s9 + $0x18] sm:$0xf] }
  0x82   : > { %8186 = vmatprep.subr.bf16.mxu1 %v8783_v41 }
  0x83   : > { %v1968_v33 = vor.u32 %v1967_v25, %v1964_v24  ;;  %v2198_v20 = vsel %vm9230_vm5, %v6943_v13, %v2197_v15  ;;  %v6938_v24 = vld [vmem:[%s9116_s14 + $0x28] sm:$0xe] }
  0x84   : > { %8163 = vmatpush3.bf16.msra.mxu0 %v8782_v36  ;;  %v1990_v36 = vshrl.u32 %v6903_v22, 16  ;;  %v6937_v22 = vld [vmem:[%s9116_s14 + $0x20] sm:$0xe]  ;;  %v8804_v25 = vld [vmem:[%s11164_s3 + $0x208] sm:$0xff]   ;;  %v6946_v29 = vrot.slane %v6938_v24, 9 }
  0x85   : > { %8187 = vmatpush3.bf16.msra.mxu1 %v8783_v41  ;;  %8164 = vmatprep.subr.bf16.mxu0 %v8784_v51  ;;  %v2004_v41 = vshrl.u32 %v6905_v32, 16  ;;  %v1969_v48 = vrot.slane %v1968_v33, 4  ;;  %v6939_v32 = vld [vmem:[%s9116_s14 + $0x30] sm:$0xe]  ;;  %v6940_v33 = vld [vmem:[%s9116_s14 + $0x38] sm:$0xe]  ;;  %s10226_s14 = scalar_lea.vmem %s11163_s2, %s6647_s15  ;;  %s400_s15 = sadd.s32 %s6651_s8, %s11225_s21 }
  0x86   : > { %8188 = vmatprep.subr.bf16.mxu1 %v8785_v55  ;;  %v1992_v11 = vrot.slane %v1990_v36, 4  ;;  %v6945_v36 = vrot.slane %v6937_v22, 9  ;;  %v8814_v15 = vld [vmem:[%s11164_s3 + $0x2a8] sm:$0xff]   ;;  %v9684_v22 = vld [vmem:[%s9584_s9 + $0x1c] sm:$0x1]  ;;  %s6652_s10 = sshll.u32 %s400_s15, 3 }
  0x87   : > { %v2006_v27 = vrot.slane %v2004_v41, 4  ;;  %v1974_v54 = vsel %vm9153_vm2, %v1969_v48, %v1973_v26  ;;  %v8805_v26 = vld [vmem:[%s11164_s3 + $0x248] sm:$0xff]   ;;  %v6948_v41 = vrot.slane %v6940_v33, 9  ;;  %v2221_v48 = vrot.slane %v9543_v35, 5  ;;  %v8813_v35 = vld [vmem:[%s11164_s3 + $0x2f0] sm:$0xff]   ;;  %s402_s16 = scalar_lea.vmem %s11166_s5, %s6652_s10  ;;  %s410_s13 = scalar_lea.vmem %s11167_s6, %s6652_s10 }
  0x88   : > { %8165 = vmatpush3.bf16.msra.mxu0 %v8784_v51  ;;  %v1996_v50 = vor.u32 %v1995_v44, %v1992_v11  ;;  %v2001_v51 = vrot.slane %v1999_v38, 5  ;;  %v8807_v11 = vld [vmem:[%s11164_s3 + $0x240] sm:$0xff]   ;;  %v6947_v38 = vrot.slane %v6939_v32, 9  ;;  %v8809_v44 = vld [vmem:[%s11164_s3 + $0x2b8] sm:$0xff]   ;;  %v8815_v13 = vld [vmem:[%s11164_s3 + $0x2e8] sm:$0xff]  }
  0x89   : > { %8189 = vmatpush3.bf16.msra.mxu1 %v8785_v55  ;;  %8166 = vmatprep.subr.bf16.mxu0 %v8786_v62  ;;  %v1988_v55 = vsel %vm9153_vm2, %v1983_v49, %v1987_v31  ;;  %v2010_v57 = vor.u32 %v2009_v52, %v2006_v27  ;;  %v2209_v31 = vrot.slane %v9493_v39, 5  ;;  %v2217_v39 = vrot.slane %v9530_v10, 5  ;;  %v8812_v52 = vld [vmem:[%s11164_s3 + $0x2b0] sm:$0xff]  }
  0x8a   : > { %8190 = vmatprep.subr.bf16.mxu1 %v8787_v2  ;;  %v1997_v56 = vrot.slane %v1996_v50, 4  ;;  %v6925_v60 = vcombine.low %v1974_v54, %v1988_v55  ;;  %v2225_v27 = vrot.slane %v9548_v34, 5  ;;  %v6949_v50 = vrot.slane %v6941_v45, 9  ;;  %v2551_v54 = vld [vmem:[%s9584_s9] sm:$0xf] }
  0x8b   : > { %v2011_v63 = vrot.slane %v2010_v57, 4  ;;  %v2210_v43 = vsel %vm9230_vm5, %v6946_v29, %v2209_v31  ;;  %v2218_v49 = vsel %vm9230_vm5, %v6948_v41, %v2217_v39  ;;  %v9656_v55 = vld [vmem:[%s9584_s9 + $0x4] sm:$0x1]  ;;  %v2833_v29 = vld [vmem:[%s9584_s9] sm:$0xe]  ;;  %v2619_v41 = vshll.u32 %v9684_v22, 16 }
  0x8c   : > { %8167 = vmatpush3.bf16.msra.mxu0 %v8786_v62  ;;  %v2002_v62 = vsel %vm9153_vm2, %v1997_v56, %v2001_v51  ;;  %v6950_v51 = vrot.slane %v6942_v46, 9  ;;  %v2222_v56 = vsel %vm9230_vm5, %v6949_v50, %v2221_v48  ;;  %v2834_v31 = vld [vmem:[%s9584_s9 + $0x8] sm:$0xe]  ;;  %v2859_v45 = vrot.slane %v9656_v55, 5  ;;  %v8820_v46 = vld [vmem:[%s11164_s3 + $0x298] sm:$0xff]  }
  0x8d   : > { %8191 = vmatpush3.bf16.msra.mxu1 %v8787_v2  ;;  %8200 = vmatprep.subr.bf16.mxu0 %v8790_v0  ;;  %v2016_v2 = vsel %vm9153_vm2, %v2011_v63, %v2015_v58  ;;  %v2553_v58 = vld [vmem:[%s9584_s9 + $0x8] sm:$0xf] }
  0x8e   : > { %8224 = vmatprep.subr.bf16.mxu1 %v8791_v17  ;;  %v6926_v5 = vcombine.low %v2002_v62, %v2016_v2  ;;  %v2226_v57 = vsel %vm9230_vm5, %v6950_v51, %v2225_v27  ;;  %v2577_v62 = vshll.u32 %v9656_v55, 16  ;;  %v2582_v63 = vshrl.u32 %v2553_v58, 16  ;;  %v9703_v27 = vld [vmem:[%s9584_s9 + $0x10] sm:$0xe] }
  0x8f   : > { %8169 = vmatmul.mubr.bf16.vlgmr.msra.gmra.mxu0 %v8789_v23  ;;  %v8803_v23 = vld [vmem:[%s11164_s3 + $0x250] sm:$0xff]   ;;  %v2585_v2 = vshll.u32 %v2553_v58, 16  ;;  %v6970_v12 = vcombine.low %v2222_v56, %v2226_v57  ;;  %v7037_v56 = vrot.slane %v9703_v27, 9  ;;  %v2559_v57 = vld [vmem:[%s9584_s9 + $0x20] sm:$0xf] }
  0x90   : > { %8193 = vmatmul.mubr.bf16.vlgmr.msra.gmra.mxu1 %v6924_v18  ;;  %8201 = vmatpush3.bf16.msra.mxu0 %v8790_v0  ;;  %v8799_v0 = vld [vmem:[%s11164_s3 + $0x260] sm:$0xff]   ;;  %v8823_v58 = vld [vmem:[%s11164_s3 + $0x2d0] sm:$0xff]  }
  0x91   : > { %8225 = vmatpush3.bf16.msra.mxu1 %v8791_v17  ;;  %8202 = vmatprep.subr.bf16.mxu0 %v8792_v42  ;;  %v2202_v17 = vsel %vm9230_vm5, %v6944_v16, %v2201_v7  ;;  %v8808_v18 = vld [vmem:[%s9584_s9] ss:$8 sps:$4 sm:$0xff]   ;;  %v8817_v16 = vld [vmem:[%s9584_s9 + $0x30] ss:$8 sps:$4 sm:$0xff]  }
  0x92   : > { %8226 = vmatprep.subr.bf16.mxu1 %v8793_v30  ;;  %8172 = vmatprep.mubr.bf16.mxu0 %v8794_v47  ;;  %v6967_v19 = vcombine.low %v2198_v20, %v2202_v17  ;;  %v8811_v47 = vld [vmem:[%s9584_s9 + $0x10] ss:$8 sps:$4 sm:$0xff]   ;;  %v2584_v20 = vrot.slane %v2582_v63, 4  ;;  %v2587_v17 = vrot.slane %v2585_v2, 5  ;;  %v9737_v63 = vld [vmem:[%s9584_s9 + $0x2c] sm:$0x1] }
  0x93   : > { %8196 = vmatprep.mubr.bf16.mxu1 %v6925_v60  ;;  %v2568_v60 = vshrl.u32 %v2551_v54, 16  ;;  %v2624_v2 = vshrl.u32 %v2559_v57, 16 }
  0x94   : > { %8203 = vmatpush3.bf16.msra.mxu0 %v8792_v42  ;;  %v2206_v42 = vsel %vm9230_vm5, %v6945_v36, %v2205_v28  ;;  %v2610_v36 = vshrl.u32 %v2557_v8, 16  ;;  %v2613_v28 = vshll.u32 %v2557_v8, 16  ;;  %v2565_v8 = vld [vmem:[%s9584_s9 + $0x38] sm:$0xf] }
  0x95   : > { %8227 = vmatpush3.bf16.msra.mxu1 %v8793_v30  ;;  %8204 = vmatprep.subr.bf16.mxu0 %v8796_v53  ;;  %v6968_v10 = vcombine.low %v2206_v42, %v2210_v43  ;;  %v2214_v30 = vsel %vm9230_vm5, %v6947_v38, %v2213_v37  ;;  %v2570_v7 = vrot.slane %v2568_v60, 4 }
  0x96   : > { %8228 = vmatprep.subr.bf16.mxu1 %v8797_v61  ;;  %v6969_v34 = vcombine.low %v2214_v30, %v2218_v49  ;;  %v2612_v39 = vrot.slane %v2610_v36, 4  ;;  %v2615_v38 = vrot.slane %v2613_v28, 5  ;;  %v8821_v30 = vld [vmem:[%s11164_s3 + $0x2d8] sm:$0xff]   ;;  %v8825_v36 = vld [vmem:[%s11164_s3 + $0x2c8] sm:$0xff]  }
  0x97   : > { %8173 = vmatmul.mubr.bf16.gmra.mxu0 %v8795_v59  ;;  %v9664_v59 = vld [vmem:[%s9584_s9 + $0xc] sm:$0x1] }
  0x98   : > { %8205 = vmatpush3.bf16.msra.mxu0 %v8796_v53  ;;  %8197 = vmatmul.mubr.bf16.gmra.mxu1 %v6926_v5  ;;  %v8816_v53 = vld [vmem:[%s9584_s9 + $0x20] ss:$8 sps:$4 sm:$0xff]   ;;  %v2555_v5 = vld [vmem:[%s9584_s9 + $0x10] sm:$0xf]  ;;  %v2863_v48 = vrot.slane %v9664_v59, 5 }
  0x99   : > { %8229 = vmatpush3.bf16.msra.mxu1 %v8797_v61  ;;  %8206 = vmatprep.subr.bf16.mxu0 %v8798_v3  ;;  %v2571_v61 = vshll.u32 %v2551_v54, 16  ;;  %v2599_v24 = vshll.u32 %v2555_v5, 16 }
  0x9a   : > { %8230 = vmatprep.subr.bf16.mxu1 %v8799_v0  ;;  %8240 = vmatprep.mubr.bf16.mxu1 %v8808_v18  ;;  %v9678_v18 = vld [vmem:[%s9584_s9 + $0x14] sm:$0x1] }
  0x9b   : > { %8216 = vmatprep.mubr.bf16.mxu0 %v6967_v19  ;;  %v2601_v33 = vrot.slane %v2599_v24, 5  ;;  %v2867_v60 = vrot.slane %v9678_v18, 5  ;;  %v2647_v24 = vshll.u32 %v9737_v63, 16 }
  0x9c   : > { %8207 = vmatpush3.bf16.msra.mxu0 %v8798_v3  ;;  %v2591_v3 = vshll.u32 %v9664_v59, 16 }
  0x9d   : > { %8231 = vmatpush3.bf16.msra.mxu1 %v8799_v0  ;;  %8208 = vmatprep.subr.bf16.mxu0 %v8800_v4  ;;  %v2573_v0 = vrot.slane %v2571_v61, 5  ;;  %v9733_v61 = vld [vmem:[%s9584_s9 + $0x24] sm:$0x1] }
  0x9e   : > { %8232 = vmatprep.subr.bf16.mxu1 %v8801_v14 }
  0x9f   : > { %v2574_v19 = vor.u32 %v2573_v0, %v2570_v7  ;;  %v9741_v0 = vld [vmem:[%s9584_s9 + $0x34] sm:$0x1] }
  0xa0   : > { %8209 = vmatpush3.bf16.msra.mxu0 %v8800_v4  ;;  %v2579_v4 = vrot.slane %v2577_v62, 5  ;;  %v2561_v62 = vld [vmem:[%s9584_s9 + $0x28] sm:$0xf] }
  0xa1   : > { %8233 = vmatpush3.bf16.msra.mxu1 %v8801_v14  ;;  %8210 = vmatprep.subr.bf16.mxu0 %v8802_v21  ;;  %v8818_v14 = vld [vmem:[%s11164_s3 + $0x2a0] sm:$0xff]   ;;  %v2575_v32 = vrot.slane %v2574_v19, 4  ;;  %v2641_v7 = vshll.u32 %v2561_v62, 16 }
  0xa2   : > { %8234 = vmatprep.subr.bf16.mxu1 %v8803_v23 }
  0xa3   : > { %v2580_v42 = vsel %vm9153_vm2, %v2575_v32, %v2579_v4  ;;  %v9746_v4 = vld [vmem:[%s9584_s9 + $0x3c] sm:$0x1]  ;;  %v2669_v32 = vshll.u32 %v2565_v8, 16 }
  0xa4   : > { %8211 = vmatpush3.bf16.msra.mxu0 %v8802_v21  ;;  %v2593_v21 = vrot.slane %v2591_v3, 5  ;;  %v2627_v3 = vshll.u32 %v2559_v57, 16 }
  0xa5   : > { %8235 = vmatpush3.bf16.msra.mxu1 %v8803_v23  ;;  %8212 = vmatprep.subr.bf16.mxu0 %v8804_v25  ;;  %v2596_v23 = vshrl.u32 %v2555_v5, 16  ;;  %v2563_v5 = vld [vmem:[%s9584_s9 + $0x30] sm:$0xf] }
  0xa6   : > { %8236 = vmatprep.subr.bf16.mxu1 %v8805_v26  ;;  %v2655_v19 = vshll.u32 %v2563_v5, 16 }
  0xa8   : > { %8213 = vmatpush3.bf16.msra.mxu0 %v8804_v25  ;;  %v8819_v25 = vld [vmem:[%s11164_s3 + $0x2e0] sm:$0xff]  }
  0xa9   : > { %8237 = vmatpush3.bf16.msra.mxu1 %v8805_v26  ;;  %8214 = vmatprep.subr.bf16.mxu0 %v8806_v9  ;;  %v2588_v26 = vor.u32 %v2587_v17, %v2584_v20  ;;  %v2652_v20 = vshrl.u32 %v2563_v5, 16  ;;  %v2633_v17 = vshll.u32 %v9733_v61, 16 }
  0xaa   : > { %8238 = vmatprep.subr.bf16.mxu1 %v8807_v11 }
  0xab   : > { %v2589_v37 = vrot.slane %v2588_v26, 4  ;;  %v2661_v26 = vshll.u32 %v9741_v0, 16 }
  0xac   : > { %8215 = vmatpush3.bf16.msra.mxu0 %v8806_v9  ;;  %v2598_v9 = vrot.slane %v2596_v23, 4 }
  0xad   : > { %8239 = vmatpush3.bf16.msra.mxu1 %v8807_v11  ;;  %8248 = vmatprep.subr.bf16.mxu0 %v8809_v44  ;;  %v2605_v11 = vshll.u32 %v9678_v18, 16 }
  0xae   : > { %8272 = vmatprep.subr.bf16.mxu1 %v8810_v6  ;;  %v2602_v43 = vor.u32 %v2601_v33, %v2598_v9 }
  0xaf   : > { %8217 = vmatmul.mubr.bf16.vlgmr.msra.gmra.mxu0 %v6968_v10  ;;  %v2616_v10 = vor.u32 %v2615_v38, %v2612_v39  ;;  %v9710_v51 = vrot.slane %v2605_v11, 5  ;;  %v2871_v11 = vrot.slane %v9684_v22, 5  ;;  %v8826_v39 = vld [vmem:[%s11164_s3 + $0x280] sm:$0xff]   ;;  %v2868_v38 = vsel %vm9230_vm5, %v7037_v56, %v2867_v60 }
  0xb0   : > { %8241 = vmatmul.mubr.bf16.vlgmr.msra.gmra.mxu1 %v8811_v47  ;;  %8249 = vmatpush3.bf16.msra.mxu0 %v8809_v44  ;;  %v7035_v44 = vrot.slane %v2833_v29, 9  ;;  %v7036_v47 = vrot.slane %v2834_v31, 9  ;;  %v9722_v54 = vrot.slane %v2602_v43, 4  ;;  %v2657_v29 = vrot.slane %v2655_v19, 5  ;;  %v8827_v22 = vld [vmem:[%s11164_s3 + $0x2c0] sm:$0xff]  }
  0xb1   : > { %8273 = vmatpush3.bf16.msra.mxu1 %v8810_v6  ;;  %8250 = vmatprep.subr.bf16.mxu0 %v8812_v52  ;;  %v2594_v6 = vsel %vm9153_vm2, %v2589_v37, %v2593_v21  ;;  %v9729_v59 = vrot.slane %v2616_v10, 4  ;;  %v8824_v21 = vld [vmem:[%s11164_s3 + $0x288] sm:$0xff]   ;;  %v2666_v31 = vshrl.u32 %v2565_v8, 16  ;;  %v2675_v37 = vshll.u32 %v9746_v4, 16 }
  0xb2   : > { %8274 = vmatprep.subr.bf16.mxu1 %v8813_v35  ;;  %8220 = vmatprep.mubr.bf16.mxu0 %v6969_v34  ;;  %v7023_v49 = vcombine.low %v2580_v42, %v2594_v6  ;;  %v2860_v50 = vsel %vm9230_vm5, %v7035_v44, %v2859_v45  ;;  %v9717_v34 = vld [vmem:[%s9584_s9 + $0x18] sm:$0xe]  ;;  %v2608_v9 = vsel %vm9153_vm2, %v9722_v54, %v9710_v51  ;;  %v2671_v43 = vrot.slane %v2669_v32, 5  ;;  %v2837_v44 = vld [vmem:[%s9584_s9 + $0x20] sm:$0xe] }
  0xb3   : > { %8244 = vmatprep.mubr.bf16.mxu1 %v8816_v53  ;;  %v8822_v53 = vld [vmem:[%s11164_s3 + $0x290] sm:$0xff]   ;;  %v2668_v42 = vrot.slane %v2666_v31, 4  ;;  %v2663_v10 = vrot.slane %v2661_v26, 5  ;;  %v2677_v27 = vrot.slane %v2675_v37, 5  ;;  %v8828_v51 = vld [vmem:[%s11164_s3 + $0x338] sm:$0xff]  }
  0xb4   : > { %8251 = vmatpush3.bf16.msra.mxu0 %v8812_v52  ;;  %v9712_v52 = vrot.slane %v2619_v41, 5  ;;  %v2635_v41 = vrot.slane %v2633_v17, 5  ;;  %v8829_v54 = vld [vmem:[%s11164_s3 + $0x378] sm:$0xff]   ;;  %v8832_v17 = vld [vmem:[%s11164_s3 + $0x328] sm:$0xff]   ;;  %v9828_v26 = vld [vmem:[%s9584_s9 + $0x14] sm:$0x1] }
  0xb5   : > { %8275 = vmatpush3.bf16.msra.mxu1 %v8813_v35  ;;  %8252 = vmatprep.subr.bf16.mxu0 %v8814_v15  ;;  %v2864_v35 = vsel %vm9230_vm5, %v7036_v47, %v2863_v48  ;;  %v2838_v47 = vld [vmem:[%s9584_s9 + $0x28] sm:$0xe] }
  0xb6   : > { %8276 = vmatprep.subr.bf16.mxu1 %v8815_v13  ;;  %v7059_v55 = vcombine.low %v2860_v50, %v2864_v35  ;;  %v2622_v33 = vsel %vm9153_vm2, %v9729_v59, %v9712_v52  ;;  %v2839_v50 = vld [vmem:[%s9584_s9 + $0x30] sm:$0xe]  ;;  %v2672_v35 = vor.u32 %v2671_v43, %v2668_v42  ;;  %v7111_v43 = vld [vmem:[%s9584_s9 + $0x18] sm:$0xf] }
  0xb7   : > { %8221 = vmatmul.mubr.bf16.gmra.mxu0 %v6970_v12  ;;  %v7038_v12 = vrot.slane %v9717_v34, 9  ;;  %v7040_v34 = vrot.slane %v2838_v47, 9  ;;  %v7041_v57 = vrot.slane %v2839_v50, 9  ;;  %v8844_v32 = vld [vmem:[%s9584_s9 + $0x8] ss:$8 sps:$4 sm:$0xff]  }
  0xb8   : > { %8253 = vmatpush3.bf16.msra.mxu0 %v8814_v15  ;;  %8245 = vmatmul.mubr.bf16.gmra.mxu1 %v8817_v16  ;;  %v2638_v15 = vshrl.u32 %v2561_v62, 16  ;;  %v2629_v16 = vrot.slane %v2627_v3, 5  ;;  %v2673_v62 = vrot.slane %v2672_v35, 4  ;;  %v9845_v47 = vld [vmem:[%s9584_s9 + $0x24] sm:$0x1] }
  0xb9   : > { %8277 = vmatpush3.bf16.msra.mxu1 %v8815_v13  ;;  %8254 = vmatprep.subr.bf16.mxu0 %v8818_v14  ;;  %v2626_v13 = vrot.slane %v2624_v2, 4  ;;  %v2872_v52 = vsel %vm9230_vm5, %v7038_v12, %v2871_v11  ;;  %v8835_v11 = vld [vmem:[%s11164_s3 + $0x360] sm:$0xff]  }
  0xba   : > { %8278 = vmatprep.subr.bf16.mxu1 %v8819_v25  ;;  %8264 = vmatprep.mubr.bf16.mxu0 %v7023_v49  ;;  %v2640_v18 = vrot.slane %v2638_v15, 4  ;;  %v2875_v49 = vrot.slane %v9733_v61, 5  ;;  %v7060_v59 = vcombine.low %v2868_v38, %v2872_v52  ;;  %v2887_v15 = vrot.slane %v9746_v4, 5 }
  0xbb   : > { %8288 = vmatprep.mubr.bf16.mxu1 %v7059_v55  ;;  %v2630_v23 = vor.u32 %v2629_v16, %v2626_v13  ;;  %v2840_v55 = vld [vmem:[%s9584_s9 + $0x38] sm:$0xe]  ;;  %v2678_v16 = vsel %vm9153_vm2, %v2673_v62, %v2677_v27  ;;  %v3262_v27 = vshll.u32 %v7111_v43, 16  ;;  %v3282_v62 = vshll.u32 %v9845_v47, 16 }
  0xbc   : > { %8255 = vmatpush3.bf16.msra.mxu0 %v8818_v14  ;;  %v2643_v14 = vrot.slane %v2641_v7, 5  ;;  %v7042_v5 = vrot.slane %v2840_v55, 9  ;;  %v8830_v7 = vld [vmem:[%s11164_s3 + $0x330] sm:$0xff]  }
  0xbd   : > { %8279 = vmatpush3.bf16.msra.mxu1 %v8819_v25  ;;  %8256 = vmatprep.subr.bf16.mxu0 %v8820_v46  ;;  %v2654_v25 = vrot.slane %v2652_v20, 4  ;;  %v2631_v45 = vrot.slane %v2630_v23, 4  ;;  %v8834_v23 = vld [vmem:[%s11164_s3 + $0x320] sm:$0xff]  }
  0xbe   : > { %8280 = vmatprep.subr.bf16.mxu1 %v8821_v30  ;;  %v2644_v28 = vor.u32 %v2643_v14, %v2640_v18  ;;  %v2888_v20 = vsel %vm9230_vm5, %v7042_v5, %v2887_v15  ;;  %v8833_v18 = vld [vmem:[%s11164_s3 + $0x368] sm:$0xff]  }
  0xbf   : > { %v2658_v6 = vor.u32 %v2657_v29, %v2654_v25  ;;  %v2636_v60 = vsel %vm9153_vm2, %v2631_v45, %v2635_v41  ;;  %v7107_v14 = vld [vmem:[%s9584_s9 + $0x8] sm:$0xf]  ;;  %v7109_v25 = vld [vmem:[%s9584_s9 + $0x10] sm:$0xf]  ;;  %v8836_v41 = vld [vmem:[%s11164_s3 + $0x318] sm:$0xff]  }
  0xc0   : > { %8257 = vmatpush3.bf16.msra.mxu0 %v8820_v46  ;;  %v2649_v46 = vrot.slane %v2647_v24, 5  ;;  %v2645_v48 = vrot.slane %v2644_v28, 4  ;;  %v9824_v24 = vld [vmem:[%s9584_s9 + $0xc] sm:$0x1]  ;;  %v3234_v28 = vshll.u32 %v7107_v14, 16  ;;  %v3245_v31 = vshrl.u32 %v7109_v25, 16 }
  0xc1   : > { %8281 = vmatpush3.bf16.msra.mxu1 %v8821_v30  ;;  %8258 = vmatprep.subr.bf16.mxu0 %v8822_v53  ;;  %v7039_v30 = vrot.slane %v2837_v44, 9  ;;  %v2659_v56 = vrot.slane %v2658_v6, 4  ;;  %v3240_v29 = vshll.u32 %v9824_v24, 16  ;;  %v7113_v6 = vld [vmem:[%s9584_s9 + $0x20] sm:$0xf] }
  0xc2   : > { %8282 = vmatprep.subr.bf16.mxu1 %v8823_v58  ;;  %v2650_v61 = vsel %vm9153_vm2, %v2645_v48, %v2649_v46  ;;  %v3247_v38 = vrot.slane %v3245_v31, 4  ;;  %v9841_v46 = vld [vmem:[%s9584_s9 + $0x1c] sm:$0x1]  ;;  %v3259_v48 = vshrl.u32 %v7111_v43, 16  ;;  %v3273_v50 = vshrl.u32 %v7113_v6, 16 }
  0xc3   : > { %v2876_v2 = vsel %vm9230_vm5, %v7039_v30, %v2875_v49  ;;  %v7025_v8 = vcombine.low %v2636_v60, %v2650_v61  ;;  %v2664_v12 = vsel %vm9153_vm2, %v2659_v56, %v2663_v10  ;;  %v8837_v30 = vld [vmem:[%s11164_s3 + $0x358] sm:$0xff]   ;;  %v8839_v60 = vld [vmem:[%s11164_s3 + $0x350] sm:$0xff]   ;;  %v7115_v15 = vld [vmem:[%s9584_s9 + $0x28] sm:$0xf] }
  0xc4   : > { %8259 = vmatpush3.bf16.msra.mxu0 %v8822_v53  ;;  %v2879_v53 = vrot.slane %v9737_v63, 5  ;;  %v2883_v63 = vrot.slane %v9741_v0, 5  ;;  %v8831_v0 = vld [vmem:[%s11164_s3 + $0x370] sm:$0xff]   ;;  %v7026_v19 = vcombine.low %v2664_v12, %v2678_v16  ;;  %v3261_v35 = vrot.slane %v3259_v48, 4 }
  0xc5   : > { %8283 = vmatpush3.bf16.msra.mxu1 %v8823_v58  ;;  %8260 = vmatprep.subr.bf16.mxu0 %v8824_v21  ;;  %v7024_v58 = vcombine.low %v2608_v9, %v2622_v33  ;;  %v3248_v9 = vshll.u32 %v7109_v25, 16  ;;  %v3254_v33 = vshll.u32 %v9828_v26, 16  ;;  %v3275_v55 = vrot.slane %v3273_v50, 4  ;;  %v8846_v50 = vld [vmem:[%s11164_s3 + $0x3b8] sm:$0xff]  }
  0xc6   : > { %8284 = vmatprep.subr.bf16.mxu1 %v8825_v36  ;;  %v2880_v3 = vsel %vm9230_vm5, %v7040_v34, %v2879_v53  ;;  %v2884_v4 = vsel %vm9230_vm5, %v7041_v57, %v2883_v63  ;;  %v3264_v34 = vrot.slane %v3262_v27, 5  ;;  %v8838_v57 = vld [vmem:[%s11164_s3 + $0x310] sm:$0xff]   ;;  %v8840_v63 = vld [vmem:[%s11164_s3 + $0x308] sm:$0xff]   ;;  %v3284_v12 = vrot.slane %v3282_v62, 5 }
  0xc7   : > { %v7061_v13 = vcombine.low %v2876_v2, %v2880_v3  ;;  %v3250_v42 = vrot.slane %v3248_v9, 5  ;;  %v3256_v45 = vrot.slane %v3254_v33, 5  ;;  %v3287_v16 = vshrl.u32 %v7115_v15, 16  ;;  %v7121_v33 = vld [vmem:[%s9584_s9 + $0x40] sm:$0xf] }
  0xc8   : > { %8261 = vmatpush3.bf16.msra.mxu0 %v8824_v21  ;;  %v7062_v21 = vcombine.low %v2884_v4, %v2888_v20  ;;  %v3290_v4 = vshll.u32 %v7115_v15, 16  ;;  %v3329_v43 = vshrl.u32 %v7121_v33, 16 }
  0xc9   : > { %8285 = vmatpush3.bf16.msra.mxu1 %v8825_v36  ;;  %8262 = vmatprep.subr.bf16.mxu0 %v8826_v39  ;;  %v3231_v36 = vshrl.u32 %v7107_v14, 16  ;;  %v3251_v10 = vor.u32 %v3250_v42, %v3247_v38  ;;  %v9898_v38 = vld [vmem:[%s9584_s9 + $0x44] sm:$0x1] }
  0xca   : > { %8286 = vmatprep.subr.bf16.mxu1 %v8827_v22 }
  0xcb   : > { %v3233_v37 = vrot.slane %v3231_v36, 4  ;;  %v3252_v52 = vrot.slane %v3251_v10, 4  ;;  %v9884_v36 = vld [vmem:[%s9584_s9 + $0x3c] sm:$0x1] }
  0xcc   : > { %8263 = vmatpush3.bf16.msra.mxu0 %v8826_v39  ;;  %v3236_v39 = vrot.slane %v3234_v28, 5  ;;  %v3324_v42 = vshll.u32 %v9884_v36, 16 }
  0xcd   : > { %8287 = vmatpush3.bf16.msra.mxu1 %v8827_v22  ;;  %8296 = vmatprep.subr.bf16.mxu0 %v8828_v51  ;;  %v3242_v22 = vrot.slane %v3240_v29, 5  ;;  %v8842_v29 = vld [vmem:[%s11164_s3 + $0x300] sm:$0xff]  }
  0xce   : > { %8320 = vmatprep.subr.bf16.mxu1 %v8829_v54  ;;  %v3237_v44 = vor.u32 %v3236_v39, %v3233_v37  ;;  %v8843_v37 = vld [vmem:[%s11164_s3 + $0x340] sm:$0xff]  }
  0xcf   : > { %8265 = vmatmul.mubr.bf16.vlgmr.msra.gmra.mxu0 %v7024_v58  ;;  %v3257_v58 = vsel %vm9153_vm2, %v3252_v52, %v3256_v45  ;;  %v3332_v45 = vshll.u32 %v7121_v33, 16 }
  0xd0   : > { %8289 = vmatmul.mubr.bf16.vlgmr.msra.gmra.mxu1 %v7060_v59  ;;  %8297 = vmatpush3.bf16.msra.mxu0 %v8828_v51  ;;  %v3238_v49 = vrot.slane %v3237_v44, 4  ;;  %v3276_v51 = vshll.u32 %v7113_v6, 16  ;;  %v3265_v59 = vor.u32 %v3264_v34, %v3261_v35  ;;  %v3338_v6 = vshll.u32 %v9898_v38, 16 }
  0xd1   : > { %8321 = vmatpush3.bf16.msra.mxu1 %v8829_v54  ;;  %8298 = vmatprep.subr.bf16.mxu0 %v8830_v7  ;;  %v3268_v54 = vshll.u32 %v9841_v46, 16 }
  0xd2   : > { %8322 = vmatprep.subr.bf16.mxu1 %v8831_v0  ;;  %8268 = vmatprep.mubr.bf16.mxu0 %v7025_v8  ;;  %v3243_v53 = vsel %vm9153_vm2, %v3238_v49, %v3242_v22  ;;  %v3278_v56 = vrot.slane %v3276_v51, 5  ;;  %v9865_v3 = vrot.slane %v3265_v59, 4  ;;  %v8841_v8 = vld [vmem:[%s11164_s3 + $0x348] sm:$0xff]   ;;  %v8845_v49 = vld [vmem:[%s9584_s9 + $0x18] ss:$8 sps:$4 sm:$0xff]   ;;  %v8849_v59 = vld [vmem:[%s11164_s3 + $0x3f0] sm:$0xff]  }
  0xd3   : > { %8292 = vmatprep.mubr.bf16.mxu1 %v7061_v13  ;;  %v7139_v61 = vcombine.low %v3243_v53, %v3257_v58  ;;  %v9867_v5 = vrot.slane %v3268_v54, 5  ;;  %v9878_v13 = vld [vmem:[%s9584_s9 + $0x34] sm:$0x1]  ;;  %v8847_v51 = vld [vmem:[%s11164_s3 + $0x3f8] sm:$0xff]   ;;  %v3334_v53 = vrot.slane %v3332_v45, 5 }
  0xd4   : > { %8299 = vmatpush3.bf16.msra.mxu0 %v8830_v7  ;;  %v3279_v2 = vor.u32 %v3278_v56, %v3275_v55  ;;  %v9871_v7 = vld [vmem:[%s9584_s9 + $0x2c] sm:$0x1]  ;;  %v3310_v25 = vshll.u32 %v9878_v13, 16  ;;  %v8848_v54 = vld [vmem:[%s11164_s3 + $0x3b0] sm:$0xff]   ;;  %v3326_v55 = vrot.slane %v3324_v42, 5  ;;  %v8857_v45 = vld [vmem:[%s11164_s3 + $0x3d8] sm:$0xff]  }
  0xd5   : > { %8323 = vmatpush3.bf16.msra.mxu1 %v8831_v0  ;;  %8300 = vmatprep.subr.bf16.mxu0 %v8832_v17  ;;  %v7117_v0 = vld [vmem:[%s9584_s9 + $0x30] sm:$0xf]  ;;  %v3271_v31 = vsel %vm9153_vm2, %v9865_v3, %v9867_v5 }
  0xd6   : > { %8324 = vmatprep.subr.bf16.mxu1 %v8833_v18  ;;  %v3280_v20 = vrot.slane %v3279_v2, 4  ;;  %v3304_v14 = vshll.u32 %v7117_v0, 16  ;;  %v3312_v27 = vrot.slane %v3310_v25, 5 }
  0xd7   : > { %8269 = vmatmul.mubr.bf16.gmra.mxu0 %v7026_v19  ;;  %v7119_v19 = vld [vmem:[%s9584_s9 + $0x38] sm:$0xf] }
  0xd8   : > { %8301 = vmatpush3.bf16.msra.mxu0 %v8832_v17  ;;  %8293 = vmatmul.mubr.bf16.gmra.mxu1 %v7062_v21  ;;  %v3296_v17 = vshll.u32 %v9871_v7, 16  ;;  %v3289_v21 = vrot.slane %v3287_v16, 4  ;;  %v3315_v28 = vshrl.u32 %v7119_v19, 16  ;;  %v3306_v9 = vrot.slane %v3304_v14, 5 }
  0xd9   : > { %8325 = vmatpush3.bf16.msra.mxu1 %v8833_v18  ;;  %8302 = vmatprep.subr.bf16.mxu0 %v8834_v23  ;;  %v3301_v18 = vshrl.u32 %v7117_v0, 16  ;;  %v3285_v52 = vsel %vm9153_vm2, %v3280_v20, %v3284_v12  ;;  %v3522_v0 = vrot.slane %v9824_v24, 5  ;;  %v7152_v24 = vld [vmem:[%s9584_s9 + $0x10] sm:$0xe] }
  0xda   : > { %8326 = vmatprep.subr.bf16.mxu1 %v8835_v11  ;;  %8312 = vmatprep.mubr.bf16.mxu0 %v8844_v32  ;;  %v3298_v48 = vrot.slane %v3296_v17, 5  ;;  %v7140_v58 = vcombine.low %v3271_v31, %v3285_v52  ;;  %v8860_v52 = vld [vmem:[%s11164_s3 + $0x388] sm:$0xff]  }
  0xdb   : > { %8336 = vmatprep.mubr.bf16.mxu1 %v7139_v61  ;;  %v3303_v32 = vrot.slane %v3301_v18, 4  ;;  %v7151_v18 = vld [vmem:[%s9584_s9 + $0x8] sm:$0xe] }
  0xdc   : > { %8303 = vmatpush3.bf16.msra.mxu0 %v8834_v23  ;;  %v3292_v23 = vrot.slane %v3290_v4, 5  ;;  %v8852_v4 = vld [vmem:[%s11164_s3 + $0x3a8] sm:$0xff]  }
  0xdd   : > { %8327 = vmatpush3.bf16.msra.mxu1 %v8835_v11  ;;  %8304 = vmatprep.subr.bf16.mxu0 %v8836_v41  ;;  %v3318_v11 = vshll.u32 %v7119_v19, 16  ;;  %v3307_v44 = vor.u32 %v3306_v9, %v3303_v32  ;;  %v7159_v19 = vrot.slane %v7151_v18, 9  ;;  %v3546_v18 = vrot.slane %v9884_v36, 5  ;;  %v7233_v36 = vld [vmem:[%s9584_s9 + $0x18] sm:$0xf] }
  0xde   : > { %8328 = vmatprep.subr.bf16.mxu1 %v8837_v30  ;;  %v3293_v39 = vor.u32 %v3292_v23, %v3289_v21  ;;  %v7160_v21 = vrot.slane %v7152_v24, 9  ;;  %v3550_v24 = vrot.slane %v9898_v38, 5 }
  0xdf   : > { %v3320_v22 = vrot.slane %v3318_v11, 5  ;;  %v3308_v35 = vrot.slane %v3307_v44, 4  ;;  %v3523_v32 = vsel %vm9230_vm5, %v7159_v19, %v3522_v0  ;;  %v8864_v44 = vld [vmem:[%s9584_s9 + $0x10] ss:$8 sps:$4 sm:$0xff]  }
  0xe0   : > { %8305 = vmatpush3.bf16.msra.mxu0 %v8836_v41  ;;  %v3317_v41 = vrot.slane %v3315_v28, 4  ;;  %v3294_v10 = vrot.slane %v3293_v39, 4  ;;  %v8851_v28 = vld [vmem:[%s9584_s9 + $0x38] ss:$8 sps:$4 sm:$0xff]  }
  0xe1   : > { %8329 = vmatpush3.bf16.msra.mxu1 %v8837_v30  ;;  %8306 = vmatprep.subr.bf16.mxu0 %v8838_v57  ;;  %v3331_v30 = vrot.slane %v3329_v43, 4  ;;  %v3313_v62 = vsel %vm9153_vm2, %v3308_v35, %v3312_v27  ;;  %v7153_v27 = vld [vmem:[%s9584_s9 + $0x18] sm:$0xe] }
  0xe2   : > { %8330 = vmatprep.subr.bf16.mxu1 %v8839_v60  ;;  %v3321_v34 = vor.u32 %v3320_v22, %v3317_v41  ;;  %v3299_v61 = vsel %vm9153_vm2, %v3294_v10, %v3298_v48  ;;  %v8855_v41 = vld [vmem:[%s11164_s3 + $0x3e0] sm:$0xff]   ;;  %v8856_v22 = vld [vmem:[%s11164_s3 + $0x398] sm:$0xff]   ;;  %v8858_v10 = vld [vmem:[%s11164_s3 + $0x390] sm:$0xff]   ;;  %v7161_v35 = vrot.slane %v7153_v27, 9 }
  0xe3   : > { %v3335_v56 = vor.u32 %v3334_v53, %v3331_v30  ;;  %v7141_v5 = vcombine.low %v3299_v61, %v3313_v62  ;;  %v8859_v30 = vld [vmem:[%s11164_s3 + $0x3d0] sm:$0xff]   ;;  %v8862_v62 = vld [vmem:[%s11164_s3 + $0x380] sm:$0xff]  }
  0xe4   : > { %8307 = vmatpush3.bf16.msra.mxu0 %v8838_v57  ;;  %v3340_v57 = vrot.slane %v3338_v6, 5 }
  0xe5   : > { %8331 = vmatpush3.bf16.msra.mxu1 %v8839_v60  ;;  %8308 = vmatprep.subr.bf16.mxu0 %v8840_v63  ;;  %v8850_v60 = vld [vmem:[%s9584_s9 + $0x28] ss:$8 sps:$4 sm:$0xff]   ;;  %v3336_v2 = vrot.slane %v3335_v56, 4 }
  0xe6   : > { %8332 = vmatprep.subr.bf16.mxu1 %v8841_v8 }
  0xe7   : > { %v3341_v17 = vsel %vm9153_vm2, %v3336_v2, %v3340_v57  ;;  %v7156_v57 = vld [vmem:[%s9584_s9 + $0x30] sm:$0xe]  ;;  %v3542_v2 = vrot.slane %v9878_v13, 5 }
  0xe8   : > { %8309 = vmatpush3.bf16.msra.mxu0 %v8840_v63  ;;  %v3322_v63 = vrot.slane %v3321_v34, 4  ;;  %v3530_v34 = vrot.slane %v9841_v46, 5 }
  0xe9   : > { %8333 = vmatpush3.bf16.msra.mxu1 %v8841_v8  ;;  %8310 = vmatprep.subr.bf16.mxu0 %v8842_v29  ;;  %v3526_v8 = vrot.slane %v9828_v26, 5  ;;  %v8853_v26 = vld [vmem:[%s11164_s3 + $0x3e8] sm:$0xff]  }
  0xea   : > { %8334 = vmatprep.subr.bf16.mxu1 %v8843_v37  ;;  %v3327_v20 = vsel %vm9153_vm2, %v3322_v63, %v3326_v55  ;;  %v7155_v55 = vld [vmem:[%s9584_s9 + $0x28] sm:$0xe]  ;;  %v3538_v63 = vrot.slane %v9871_v7, 5  ;;  %v3531_v13 = vsel %vm9230_vm5, %v7161_v35, %v3530_v34 }
  0xeb   : > { %v7142_v31 = vcombine.low %v3327_v20, %v3341_v17  ;;  %v3527_v9 = vsel %vm9230_vm5, %v7160_v21, %v3526_v8  ;;  %v7157_v8 = vld [vmem:[%s9584_s9 + $0x38] sm:$0xe]  ;;  %v7231_v21 = vld [vmem:[%s9584_s9 + $0x10] sm:$0xf]  ;;  %v10061_v34 = vld [vmem:[%s11164_s3 + $0x428] sm:$0xff]  }
  0xec   : > { %8311 = vmatpush3.bf16.msra.mxu0 %v8842_v29  ;;  %v7183_v42 = vcombine.low %v3523_v32, %v3527_v9  ;;  %v8865_v20 = vld [vmem:[%s11164_s3 + $0x438] sm:$0xff]   ;;  %v3894_v38 = vshrl.u32 %v7231_v21, 16  ;;  %v3897_v32 = vshll.u32 %v7231_v21, 16 }
  0xed   : > { %8335 = vmatpush3.bf16.msra.mxu1 %v8843_v37  ;;  %8344 = vmatprep.subr.bf16.mxu0 %v8846_v50  ;;  %v8854_v37 = vld [vmem:[%s11164_s3 + $0x3a0] sm:$0xff]   ;;  %v8866_v17 = vld [vmem:[%s11164_s3 + $0x478] sm:$0xff]  }
  0xee   : > { %8368 = vmatprep.subr.bf16.mxu1 %v8847_v51 }
  0xef   : > { %v8026_v3 = vpop.f32.mrf.mxu0  ;;  %8313 = vmatmul.mubr.bf16.vlgmr.msra.gmra.mxu0 %v8845_v49  ;;  %v7154_v49 = vld [vmem:[%s9584_s9 + $0x20] sm:$0xe] }
  0xf0   : > { %v8050_v15 = vpop.f32.mrf.mxu1  ;;  %8337 = vmatmul.mubr.bf16.vlgmr.msra.gmra.mxu1 %v7140_v58  ;;  %8345 = vmatpush3.bf16.msra.mxu0 %v8846_v50 }
  0xf1   : > { %v9924_v12 = vadd.f32 %v8050_v15, %v8026_v3  ;;  %8369 = vmatpush3.bf16.msra.mxu1 %v8847_v51  ;;  %v674_v16 = vpop.f32.mrf.mxu0  ;;  %8346 = vmatprep.subr.bf16.mxu0 %v8848_v54  ;;  %v7164_v15 = vrot.slane %v7156_v57, 9 }
  0xf2   : > { %v811_v14 = vpop.f32.mrf.mxu1  ;;  %8370 = vmatprep.subr.bf16.mxu1 %v8849_v59  ;;  %8316 = vmatprep.mubr.bf16.mxu0 %v8850_v60  ;;  %v3534_v60 = vrot.slane %v9845_v47, 5  ;;  %v8863_v47 = vld [vmem:[%s11164_s3 + $0x3c0] sm:$0xff]  }
  0xf3   : > { %v9938_v23 = vadd.f32 %v811_v14, %v674_v16  ;;  %v8027_v25 = vpop.f32.mrf.mxu0  ;;  %8340 = vmatprep.mubr.bf16.mxu1 %v7141_v5  ;;  %v7163_v5 = vrot.slane %v7155_v55, 9 }
  0xf4   : > { %v8051_v29 = vpop.f32.mrf.mxu1  ;;  %8347 = vmatpush3.bf16.msra.mxu0 %v8848_v54  ;;  %v8861_v54 = vld [vmem:[%s11164_s3 + $0x3c8] sm:$0xff]  }
  0xf5   : > { %v9945_v33 = vadd.f32 %v8051_v29, %v8027_v25  ;;  %8371 = vmatpush3.bf16.msra.mxu1 %v8849_v59  ;;  %v677_v11 = vpop.f32.mrf.mxu0  ;;  %8348 = vmatprep.subr.bf16.mxu0 %v8852_v4  ;;  %v7162_v59 = vrot.slane %v7154_v49, 9  ;;  %v10025_v25 = vld [vmem:[%s9584_s9 + $0x14] sm:$0x1]  ;;  %v3543_v29 = vsel %vm9230_vm5, %v7164_v15, %v3542_v2  ;;  %v7275_v2 = vld [vmem:[%s9584_s9 + $0x10] sm:$0xe] }
  0xf6   : > { %v814_v39 = vpop.f32.mrf.mxu1  ;;  %8372 = vmatprep.subr.bf16.mxu1 %v8853_v26  ;;  %v3903_v9 = vshll.u32 %v10025_v25, 16  ;;  %v7283_v21 = vrot.slane %v7275_v2, 9  ;;  %v7243_v2 = vld [vmem:[%s9584_s9 + $0x40] sm:$0xf] }
  0xf7   : > { %v9953_v43 = vadd.f32 %v814_v39, %v677_v11  ;;  %8317 = vmatmul.mubr.bf16.gmra.mxu0 %v8851_v28  ;;  %v8030_v50 = vpop.f32.mrf.mxu0  ;;  %v3535_v16 = vsel %vm9230_vm5, %v7162_v59, %v3534_v60  ;;  %v3539_v28 = vsel %vm9230_vm5, %v7163_v5, %v3538_v63  ;;  %v3908_v11 = vshrl.u32 %v7233_v36, 16 }
  0xf8   : > { %8349 = vmatpush3.bf16.msra.mxu0 %v8852_v4  ;;  %8341 = vmatmul.mubr.bf16.gmra.mxu1 %v7142_v31  ;;  %v8054_v6 = vpop.f32.mrf.mxu1  ;;  %v7158_v4 = vld [vmem:[%s9584_s9 + $0x40] sm:$0xe]  ;;  %v7184_v14 = vcombine.low %v3531_v13, %v3535_v16  ;;  %v10033_v31 = vld [vmem:[%s9584_s9 + $0x1c] sm:$0x1]  ;;  %v7185_v27 = vcombine.low %v3539_v28, %v3543_v29  ;;  %v3905_v55 = vrot.slane %v3903_v9, 5 }
  0xf9   : > { %8373 = vmatpush3.bf16.msra.mxu1 %v8853_v26  ;;  %8350 = vmatprep.subr.bf16.mxu0 %v8854_v37  ;;  %v9981_v53 = vadd.f32 %v8054_v6, %v8030_v50  ;;  %v690_v56 = vpop.f32.mrf.mxu0  ;;  %v7165_v26 = vrot.slane %v7157_v8, 9  ;;  %v7166_v19 = vrot.slane %v7158_v4, 9  ;;  %v3917_v39 = vshll.u32 %v10033_v31, 16 }
  0xfa   : > { %8374 = vmatprep.subr.bf16.mxu1 %v8855_v41  ;;  %8360 = vmatprep.mubr.bf16.mxu0 %v7183_v42  ;;  %v827_v48 = vpop.f32.mrf.mxu1  ;;  %v3896_v42 = vrot.slane %v3894_v38, 4  ;;  %v3910_v6 = vrot.slane %v3908_v11, 4 }
  0xfb   : > { %8384 = vmatprep.mubr.bf16.mxu1 %v8864_v44  ;;  %v9988_v58 = vadd.f32 %v827_v48, %v690_v56  ;;  %v8031_v46 = vpop.f32.mrf.mxu0  ;;  %v3899_v44 = vrot.slane %v3897_v32, 5  ;;  %v8869_v48 = vld [vmem:[%s11164_s3 + $0x470] sm:$0xff]   ;;  %v10052_v49 = vsel %vm9230_vm5, %v7166_v19, %v3550_v24  ;;  %v3919_v57 = vrot.slane %v3917_v39, 5  ;;  %v10080_v24 = vld [vmem:[%s11164_s3 + $0x420] sm:$0xff]  }
  0xfc   : > { %8351 = vmatpush3.bf16.msra.mxu0 %v8854_v37  ;;  %v8055_v51 = vpop.f32.mrf.mxu1  ;;  %v3911_v37 = vshll.u32 %v7233_v36, 16  ;;  %v4185_v32 = vrot.slane %v10025_v25, 5  ;;  %v8875_v25 = vld [vmem:[%s11164_s3 + $0x460] sm:$0xff]  }
  0xfd   : > { %8375 = vmatpush3.bf16.msra.mxu1 %v8855_v41  ;;  %8352 = vmatprep.subr.bf16.mxu0 %v8856_v22  ;;  %v9996_v3 = vadd.f32 %v8055_v51, %v8031_v46  ;;  %v693_v0 = vpop.f32.mrf.mxu0  ;;  %v8867_v41 = vld [vmem:[%s9584_s9 + $0x20] ss:$8 sps:$4 sm:$0xff]   ;;  %v3900_v50 = vor.u32 %v3899_v44, %v3896_v42  ;;  %v10055_v51 = vld [vmem:[%s9584_s9 + $0x24] sm:$0x1] }
  0xfe   : > { %8376 = vmatprep.subr.bf16.mxu1 %v8857_v45  ;;  %v830_v61 = vpop.f32.mrf.mxu1  ;;  %v3931_v15 = vshll.u32 %v10055_v51, 16 }
  0xff   : > { %v10002_v7 = vadd.f32 %v830_v61, %v693_v0  ;;  %v8871_v61 = vld [vmem:[%s11164_s3 + $0x468] sm:$0xff]  }
 0x100   : > { %8353 = vmatpush3.bf16.msra.mxu0 %v8856_v22  ;;  %v7235_v22 = vld [vmem:[%s9584_s9 + $0x20] sm:$0xf] }
 0x101   : > { %8377 = vmatpush3.bf16.msra.mxu1 %v8857_v45  ;;  %8354 = vmatprep.subr.bf16.mxu0 %v8858_v10  ;;  %v8868_v45 = vld [vmem:[%s11164_s3 + $0x430] sm:$0xff]   ;;  %v3922_v59 = vshrl.u32 %v7235_v22, 16  ;;  %v3925_v63 = vshll.u32 %v7235_v22, 16 }
 0x102   : > { %8378 = vmatprep.subr.bf16.mxu1 %v8859_v30 }
 0x103   : > { %v10089_v19 = vrot.slane %v3922_v59, 4  ;;  %v3927_v38 = vrot.slane %v3925_v63, 5 }
 0x104   : > { %8355 = vmatpush3.bf16.msra.mxu0 %v8858_v10  ;;  %v3913_v10 = vrot.slane %v3911_v37, 5 }
 0x105   : > { %8379 = vmatpush3.bf16.msra.mxu1 %v8859_v30  ;;  %8356 = vmatprep.subr.bf16.mxu0 %v8860_v52  ;;  %v10048_v30 = vsel %vm9230_vm5, %v7165_v26, %v3546_v18  ;;  %v10087_v26 = vld [vmem:[%s9584_s9 + $0x2c] sm:$0x1] }
 0x106   : > { %8380 = vmatprep.subr.bf16.mxu1 %v8861_v54  ;;  %v3914_v56 = vor.u32 %v3913_v10, %v3910_v6  ;;  %v7186_v4 = vcombine.low %v10048_v30, %v10052_v49  ;;  %v3945_v10 = vshll.u32 %v10087_v26, 16  ;;  %v3928_v49 = vor.u32 %v3927_v38, %v10089_v19 }
 0x108   : > { %8357 = vmatpush3.bf16.msra.mxu0 %v8860_v52  ;;  %v7237_v52 = vld [vmem:[%s9584_s9 + $0x28] sm:$0xf]  ;;  %v3915_v5 = vrot.slane %v3914_v56, 4 }
 0x109   : > { %8381 = vmatpush3.bf16.msra.mxu1 %v8861_v54  ;;  %8358 = vmatprep.subr.bf16.mxu0 %v8862_v62  ;;  %v8872_v54 = vld [vmem:[%s9584_s9 + $0x30] ss:$8 sps:$4 sm:$0xff]   ;;  %v3939_v0 = vshll.u32 %v7237_v52, 16 }
 0x10a   : > { %8382 = vmatprep.subr.bf16.mxu1 %v8863_v47 }
 0x10b   : > { %v3941_v37 = vrot.slane %v3939_v0, 5 }
 0x10c   : > { %8359 = vmatpush3.bf16.msra.mxu0 %v8862_v62  ;;  %v3901_v62 = vrot.slane %v3900_v50, 4  ;;  %v7241_v50 = vld [vmem:[%s9584_s9 + $0x38] sm:$0xf] }
 0x10d   : > { %8383 = vmatpush3.bf16.msra.mxu1 %v8863_v47  ;;  %8392 = vmatprep.subr.bf16.mxu0 %v8865_v20  ;;  %v3964_v0 = vshrl.u32 %v7241_v50, 16 }
 0x10e   : > { %8416 = vmatprep.subr.bf16.mxu1 %v8866_v17 }
 0x10f   : > { %v8074_v35 = vpop.f32.mrf.mxu0  ;;  %8361 = vmatmul.mubr.bf16.vlgmr.msra.gmra.mxu0 %v7184_v14  ;;  %v3920_v14 = vsel %vm9153_vm2, %v3915_v5, %v3919_v57  ;;  %v10148_v5 = vrot.slane %v3945_v10, 5  ;;  %v3966_v19 = vrot.slane %v3964_v0, 4  ;;  %v7279_v10 = vld [vmem:[%s9584_s9 + $0x30] sm:$0xe] }
 0x110   : > { %v1049_v60 = vadd.f32 %v8074_v35, %v9924_v12  ;;  %8385 = vmatmul.mubr.bf16.vlgmr.msra.gmra.mxu1 %v8867_v41  ;;  %8393 = vmatpush3.bf16.msra.mxu0 %v8865_v20  ;;  %v8098_v46 = vpop.f32.mrf.mxu1  ;;  %v3936_v12 = vshrl.u32 %v7237_v52, 16  ;;  %v8873_v20 = vld [vmem:[%s9584_s9 + $0x40] ss:$8 sps:$4 sm:$0xff]   ;;  %v4189_v41 = vrot.slane %v10033_v31, 5  ;;  %v7239_v31 = vld [vmem:[%s9584_s9 + $0x30] sm:$0xf] }
 0x111   : > { %8417 = vmatpush3.bf16.msra.mxu1 %v8866_v17  ;;  %v1016_v47 = vpop.f32.mrf.mxu0  ;;  %8394 = vmatprep.subr.bf16.mxu0 %v8868_v45  ;;  %v7276_v17 = vld [vmem:[%s9584_s9 + $0x18] sm:$0xe]  ;;  %v3950_v56 = vshrl.u32 %v7239_v31, 16  ;;  %v3953_v63 = vshll.u32 %v7239_v31, 16 }
 0x112   : > { %v1047_v8 = vadd.f32 %v1016_v47, %v9938_v23  ;;  %v10071_v13 = vadd.f32 %v8098_v46, %v1049_v60  ;;  %v1187_v16 = vpop.f32.mrf.mxu1  ;;  %8418 = vmatprep.subr.bf16.mxu1 %v8869_v48  ;;  %8364 = vmatprep.mubr.bf16.mxu0 %v7185_v27  ;;  %v3906_v23 = vsel %vm9153_vm2, %v3901_v62, %v3905_v55  ;;  %v3938_v11 = vrot.slane %v3936_v12, 4  ;;  %v8877_v35 = vld [vmem:[%s11164_s3 + $0x458] sm:$0xff]   ;;  %v10129_v55 = vld [vmem:[%s9584_s9 + $0x20] sm:$0xe] }
 0x113   : > { %v8075_v18 = vpop.f32.mrf.mxu0  ;;  %8388 = vmatprep.mubr.bf16.mxu1 %v8872_v54  ;;  %v7284_v39 = vrot.slane %v7276_v17, 9  ;;  %v7263_v22 = vcombine.low %v3906_v23, %v3920_v14  ;;  %v10136_v46 = vrot.slane %v3931_v15, 5  ;;  %v10142_v62 = vld [vmem:[%s9584_s9 + $0x3c] sm:$0x1]  ;;  %v3952_v12 = vrot.slane %v3950_v56, 4 }
 0x114   : > { %v1050_v28 = vadd.f32 %v8075_v18, %v9945_v33  ;;  %v10092_v29 = vadd.f32 %v1187_v16, %v1047_v8  ;;  %8395 = vmatpush3.bf16.msra.mxu0 %v8868_v45  ;;  %v8099_v36 = vpop.f32.mrf.mxu1  ;;  %v4186_v45 = vsel %vm9230_vm5, %v7283_v21, %v4185_v32  ;;  %v3967_v8 = vshll.u32 %v7241_v50, 16  ;;  %v7245_v21 = vld [vmem:[%s9584_s9 + $0x48] sm:$0xf] }
 0x115   : > { %8419 = vmatpush3.bf16.msra.mxu1 %v8869_v48  ;;  %v1019_v9 = vpop.f32.mrf.mxu0  ;;  %8396 = vmatprep.subr.bf16.mxu0 %v10061_v34  ;;  %v10157_v17 = vrot.slane %v3928_v49, 4  ;;  %v3955_v18 = vrot.slane %v3953_v63, 5  ;;  %v7278_v32 = vld [vmem:[%s9584_s9 + $0x28] sm:$0xe]  ;;  %v3995_v49 = vshll.u32 %v7245_v21, 16 }
 0x116   : > { %v1048_v33 = vadd.f32 %v1019_v9, %v9953_v43  ;;  %v10103_v42 = vadd.f32 %v8099_v36, %v1050_v28  ;;  %v1190_v44 = vpop.f32.mrf.mxu1  ;;  %8420 = vmatprep.subr.bf16.mxu1 %v8871_v61  ;;  %v4190_v43 = vsel %vm9230_vm5, %v7284_v39, %v4189_v41  ;;  %v4193_v9 = vrot.slane %v10055_v51, 5  ;;  %v8880_v39 = vld [vmem:[%s11164_s3 + $0x408] sm:$0xff]  }
 0x117   : > { %v8078_v6 = vpop.f32.mrf.mxu0  ;;  %8365 = vmatmul.mubr.bf16.gmra.mxu0 %v7186_v4  ;;  %v7307_v54 = vcombine.low %v4186_v45, %v4190_v43  ;;  %v3956_v41 = vor.u32 %v3955_v18, %v3952_v12  ;;  %v8881_v51 = vld [vmem:[%s11164_s3 + $0x448] sm:$0xff]   ;;  %v7286_v43 = vrot.slane %v7278_v32, 9  ;;  %v7281_v18 = vld [vmem:[%s9584_s9 + $0x40] sm:$0xe] }
 0x118   : > { %v1053_v48 = vadd.f32 %v8078_v6, %v9981_v53  ;;  %v10115_v27 = vadd.f32 %v1190_v44, %v1048_v33  ;;  %8397 = vmatpush3.bf16.msra.mxu0 %v10061_v34  ;;  %v8102_v30 = vpop.f32.mrf.mxu1  ;;  %8389 = vmatmul.mubr.bf16.gmra.mxu1 %v8873_v20  ;;  %v8876_v53 = vld [vmem:[%s11164_s3 + $0x418] sm:$0xff]   ;;  %v3942_v34 = vor.u32 %v3941_v37, %v3938_v11  ;;  %v8879_v20 = vld [vmem:[%s11164_s3 + $0x450] sm:$0xff]   ;;  %v10169_v11 = vld [vmem:[%s9584_s9 + $0x44] sm:$0x1]  ;;  %v3978_v37 = vshrl.u32 %v7243_v2, 16 }
 0x119   : > { %8421 = vmatpush3.bf16.msra.mxu1 %v8871_v61  ;;  %v1032_v52 = vpop.f32.mrf.mxu0  ;;  %8398 = vmatprep.subr.bf16.mxu0 %v10080_v24  ;;  %v10139_v61 = vld [vmem:[%s9584_s9 + $0x34] sm:$0x1]  ;;  %v10177_v44 = vld [vmem:[%s9584_s9 + $0x4c] sm:$0x1]  ;;  %v3992_v6 = vshrl.u32 %v7245_v21, 16  ;;  %v3934_v21 = vsel %vm9153_vm2, %v10157_v17, %v10136_v46  ;;  %v4209_v32 = vrot.slane %v10169_v11, 5 }
 0x11a   : > { %v1051_v57 = vadd.f32 %v1032_v52, %v9988_v58  ;;  %v10132_v59 = vadd.f32 %v8102_v30, %v1053_v48  ;;  %v1203_v60 = vpop.f32.mrf.mxu1  ;;  %8422 = vmatprep.subr.bf16.mxu1 %v8875_v25  ;;  %8408 = vmatprep.mubr.bf16.mxu0 %v7263_v22  ;;  %v8878_v58 = vld [vmem:[%s11164_s3 + $0x410] sm:$0xff]   ;;  %v10159_v14 = vrot.slane %v3942_v34, 4  ;;  %v3959_v33 = vshll.u32 %v10139_v61, 16  ;;  %v8882_v34 = vld [vmem:[%s11164_s3 + $0x400] sm:$0xff]  }
 0x11b   : > { %v8079_v47 = vpop.f32.mrf.mxu0  ;;  %8432 = vmatprep.mubr.bf16.mxu1 %v7307_v54  ;;  %v3980_v31 = vrot.slane %v3978_v37, 4  ;;  %v3987_v30 = vshll.u32 %v10169_v11, 16  ;;  %v3994_v50 = vrot.slane %v3992_v6, 4  ;;  %v4001_v52 = vshll.u32 %v10177_v44, 16  ;;  %v10259_v6 = vld [vmem:[%s10226_s14 + $0xc] sm:$0x1] }
 0x11c   : > { %v1054_v15 = vadd.f32 %v8079_v47, %v9996_v3  ;;  %v10151_v16 = vadd.f32 %v1203_v60, %v1051_v57  ;;  %8399 = vmatpush3.bf16.msra.mxu0 %v10080_v24  ;;  %v8103_v4 = vpop.f32.mrf.mxu1  ;;  %v7285_v3 = vrot.slane %v10129_v55, 9  ;;  %v3969_v24 = vrot.slane %v3967_v8, 5 }
 0x11d   : > { %8423 = vmatpush3.bf16.msra.mxu1 %v8875_v25  ;;  %v1035_v23 = vpop.f32.mrf.mxu0  ;;  %8400 = vmatprep.subr.bf16.mxu0 %v8876_v53  ;;  %v3981_v25 = vshll.u32 %v7243_v2, 16  ;;  %v4197_v54 = vrot.slane %v10087_v26, 5  ;;  %v3997_v57 = vrot.slane %v3995_v49, 5  ;;  %v3957_v60 = vrot.slane %v3956_v41, 4 }
 0x11e   : > { %v1052_v28 = vadd.f32 %v1035_v23, %v10002_v7  ;;  %v10164_v36 = vadd.f32 %v8103_v4, %v1054_v15  ;;  %v1206_v38 = vpop.f32.mrf.mxu1  ;;  %8424 = vmatprep.subr.bf16.mxu1 %v8877_v35  ;;  %v3973_v7 = vshll.u32 %v10142_v62, 16  ;;  %v3970_v45 = vor.u32 %v3969_v24, %v3966_v19  ;;  %v8884_v23 = vld [vmem:[%s11164_s3 + $0x4b8] sm:$0xff]   ;;  %v7282_v24 = vld [vmem:[%s9584_s9 + $0x48] sm:$0xe] }
 0x11f   : > { %v3983_v48 = vrot.slane %v3981_v25, 5  ;;  %v3961_v63 = vrot.slane %v3959_v33, 5  ;;  %v10195_v12 = vrot.slane %v3987_v30, 5  ;;  %v3998_v0 = vor.u32 %v3997_v57, %v3994_v50 }
 0x120   : > { %v10179_v22 = vadd.f32 %v1206_v38, %v1052_v28  ;;  %8401 = vmatpush3.bf16.msra.mxu0 %v8876_v53  ;;  %v7280_v53 = vld [vmem:[%s9584_s9 + $0x38] sm:$0xe]  ;;  %v3971_v2 = vrot.slane %v3970_v45, 4  ;;  %v3975_v47 = vrot.slane %v3973_v7, 5  ;;  %v7287_v8 = vrot.slane %v7279_v10, 9 }
 0x121   : > { %8425 = vmatpush3.bf16.msra.mxu1 %v8877_v35  ;;  %8402 = vmatprep.subr.bf16.mxu0 %v8878_v58  ;;  %v3984_v56 = vor.u32 %v3983_v48, %v3980_v31  ;;  %v8883_v35 = vld [vmem:[%s11164_s3 + $0x440] sm:$0xff]   ;;  %v4003_v26 = vrot.slane %v4001_v52, 5  ;;  %v7288_v15 = vrot.slane %v7280_v53, 9  ;;  %v4205_v4 = vrot.slane %v10142_v62, 5  ;;  %v8885_v62 = vld [vmem:[%s11164_s3 + $0x4f8] sm:$0xff]  }
 0x122   : > { %8426 = vmatprep.subr.bf16.mxu1 %v8879_v20  ;;  %v4194_v28 = vsel %vm9230_vm5, %v7285_v3, %v4193_v9  ;;  %v4198_v38 = vsel %vm9230_vm5, %v7286_v43, %v4197_v54  ;;  %v3962_v46 = vsel %vm9153_vm2, %v3957_v60, %v3961_v63  ;;  %v3976_v55 = vsel %vm9153_vm2, %v3971_v2, %v3975_v47  ;;  %v10241_v9 = vld [vmem:[%s11164_s3 + $0x4f0] sm:$0xff]   ;;  %v10255_v45 = vld [vmem:[%s10226_s14 + $0x4] sm:$0x1]  ;;  %v4541_v31 = vld [vmem:[%s10226_s14 + $0x8] sm:$0xf] }
 0x123   : > { %v3985_v19 = vrot.slane %v3984_v56, 4  ;;  %v7308_v17 = vcombine.low %v4194_v28, %v4198_v38  ;;  %v7289_v3 = vrot.slane %v7281_v18, 9  ;;  %v7290_v41 = vrot.slane %v7282_v24, 9  ;;  %v8888_v63 = vld [vmem:[%s11164_s3 + $0x4a8] sm:$0xff]   ;;  %v10281_v18 = vld [vmem:[%s10226_s14 + $0x14] sm:$0x1] }
 0x124   : > { %8403 = vmatpush3.bf16.msra.mxu0 %v8878_v58  ;;  %v4201_v58 = vrot.slane %v10139_v61, 5  ;;  %v3948_v61 = vsel %vm9153_vm2, %v10159_v14, %v10148_v5  ;;  %v10235_v14 = vld [vmem:[%s11164_s3 + $0x4b0] sm:$0xff]   ;;  %v4213_v33 = vrot.slane %v10177_v44, 5  ;;  %v7265_v7 = vcombine.low %v3962_v46, %v3976_v55  ;;  %v4545_v24 = vld [vmem:[%s10226_s14 + $0x18] sm:$0xf]  ;;  %v8891_v55 = vld [vmem:[%s11164_s3 + $0x4e0] sm:$0xff]  }
 0x125   : > { %8427 = vmatpush3.bf16.msra.mxu1 %v8879_v20  ;;  %8404 = vmatprep.subr.bf16.mxu0 %v8880_v39  ;;  %v3999_v20 = vrot.slane %v3998_v0, 4  ;;  %v7264_v5 = vcombine.low %v3934_v21, %v3948_v61  ;;  %v3990_v11 = vsel %vm9153_vm2, %v3985_v19, %v10195_v12  ;;  %v4565_v44 = vshll.u32 %v10255_v45, 16 }
 0x126   : > { %8428 = vmatprep.subr.bf16.mxu1 %v8881_v51  ;;  %v4202_v37 = vsel %vm9230_vm5, %v7287_v8, %v4201_v58  ;;  %v4570_v48 = vshrl.u32 %v4541_v31, 16  ;;  %v4573_v50 = vshll.u32 %v4541_v31, 16  ;;  %v4579_v52 = vshll.u32 %v10259_v6, 16 }
 0x127   : > { %v4004_v25 = vsel %vm9153_vm2, %v3999_v20, %v4003_v26  ;;  %v4210_v54 = vsel %vm9230_vm5, %v7289_v3, %v4209_v32  ;;  %v8889_v26 = vld [vmem:[%s11164_s3 + $0x4e8] sm:$0xff]  }
 0x128   : > { %8405 = vmatpush3.bf16.msra.mxu0 %v8880_v39  ;;  %v4206_v39 = vsel %vm9230_vm5, %v7288_v15, %v4205_v4  ;;  %v7266_v60 = vcombine.low %v3990_v11, %v4004_v25  ;;  %v4572_v2 = vrot.slane %v4570_v48, 4  ;;  %v4575_v47 = vrot.slane %v4573_v50, 5  ;;  %v4543_v4 = vld [vmem:[%s10226_s14 + $0x10] sm:$0xf] }
 0x129   : > { %8429 = vmatpush3.bf16.msra.mxu1 %v8881_v51  ;;  %8406 = vmatprep.subr.bf16.mxu0 %v8882_v34  ;;  %v4539_v51 = vld [vmem:[%s10226_s14] sm:$0xf]  ;;  %v7309_v49 = vcombine.low %v4202_v37, %v4206_v39  ;;  %v4567_v15 = vrot.slane %v4565_v44, 5  ;;  %v4581_v20 = vrot.slane %v4579_v52, 5  ;;  %v4584_v21 = vshrl.u32 %v4543_v4, 16 }
 0x12a   : > { %8430 = vmatprep.subr.bf16.mxu1 %v8883_v35  ;;  %v4556_v10 = vshrl.u32 %v4539_v51, 16  ;;  %v4559_v43 = vshll.u32 %v4539_v51, 16  ;;  %v4576_v19 = vor.u32 %v4575_v47, %v4572_v2  ;;  %v4587_v61 = vshll.u32 %v4543_v4, 16 }
 0x12b   : > { %v4586_v32 = vrot.slane %v4584_v21, 4  ;;  %v4598_v25 = vshrl.u32 %v4545_v24, 16  ;;  %v4601_v51 = vshll.u32 %v4545_v24, 16 }
 0x12c   : > { %8407 = vmatpush3.bf16.msra.mxu0 %v8882_v34  ;;  %v4558_v56 = vrot.slane %v4556_v10, 4  ;;  %v4561_v57 = vrot.slane %v4559_v43, 5  ;;  %v4577_v3 = vrot.slane %v4576_v19, 4  ;;  %v4589_v37 = vrot.slane %v4587_v61, 5  ;;  %v8892_v43 = vld [vmem:[%s11164_s3 + $0x498] sm:$0xff]  }
 0x12d   : > { %8431 = vmatpush3.bf16.msra.mxu1 %v8883_v35  ;;  %8440 = vmatprep.subr.bf16.mxu0 %v8884_v23  ;;  %v4551_v61 = vld [vmem:[%s10226_s14 + $0x30] sm:$0xf] }
 0x12e   : > { %8464 = vmatprep.subr.bf16.mxu1 %v8885_v62  ;;  %v4562_v58 = vor.u32 %v4561_v57, %v4558_v56  ;;  %v4600_v56 = vrot.slane %v4598_v25, 4  ;;  %v4603_v57 = vrot.slane %v4601_v51, 5 }
 0x12f   : > { %v8122_v30 = vpop.f32.mrf.mxu0  ;;  %8409 = vmatmul.mubr.bf16.vlgmr.msra.gmra.mxu0 %v7264_v5 }
 0x130   : > { %v1502_v53 = vadd.f32 %v8122_v30, %v10071_v13  ;;  %8433 = vmatmul.mubr.bf16.vlgmr.msra.gmra.mxu1 %v7308_v17  ;;  %8441 = vmatpush3.bf16.msra.mxu0 %v8884_v23  ;;  %v8146_v34 = vpop.f32.mrf.mxu1  ;;  %v4214_v13 = vsel %vm9230_vm5, %v7290_v41, %v4213_v33  ;;  %v4563_v5 = vrot.slane %v4562_v58, 4  ;;  %v8900_v33 = vld [vmem:[%s10226_s14] ss:$8 sps:$4 sm:$0xff]   ;;  %v8893_v30 = vld [vmem:[%s11164_s3 + $0x4d8] sm:$0xff]  }
 0x131   : > { %8465 = vmatpush3.bf16.msra.mxu1 %v8885_v62  ;;  %v1469_v35 = vpop.f32.mrf.mxu0  ;;  %8442 = vmatprep.subr.bf16.mxu0 %v10235_v14  ;;  %v7310_v46 = vcombine.low %v4210_v54, %v4214_v13 }
 0x132   : > { %v1500_v12 = vadd.f32 %v1469_v35, %v10092_v29  ;;  %v10273_v0 = vadd.f32 %v8146_v34, %v1502_v53  ;;  %v1679_v8 = vpop.f32.mrf.mxu1  ;;  %8466 = vmatprep.subr.bf16.mxu1 %v10241_v9  ;;  %8412 = vmatprep.mubr.bf16.mxu0 %v7265_v7  ;;  %v8890_v29 = vld [vmem:[%s11164_s3 + $0x4a0] sm:$0xff]   ;;  %v4568_v7 = vsel %vm9153_vm2, %v4563_v5, %v4567_v15  ;;  %v4553_v5 = vld [vmem:[%s10226_s14 + $0x38] sm:$0xf] }
 0x133   : > { %v8123_v23 = vpop.f32.mrf.mxu0  ;;  %8436 = vmatprep.mubr.bf16.mxu1 %v7309_v49  ;;  %v4590_v49 = vor.u32 %v4589_v37, %v4586_v32  ;;  %v4547_v35 = vld [vmem:[%s10226_s14 + $0x20] sm:$0xf] }
 0x134   : > { %v1503_v62 = vadd.f32 %v8123_v23, %v10103_v42  ;;  %v10288_v28 = vadd.f32 %v1679_v8, %v1500_v12  ;;  %8443 = vmatpush3.bf16.msra.mxu0 %v10235_v14  ;;  %v8147_v38 = vpop.f32.mrf.mxu1  ;;  %v4593_v42 = vshll.u32 %v10281_v18, 16  ;;  %v4612_v47 = vshrl.u32 %v4547_v35, 16  ;;  %v8894_v8 = vld [vmem:[%s11164_s3 + $0x490] sm:$0xff]  }
 0x135   : > { %8467 = vmatpush3.bf16.msra.mxu1 %v10241_v9  ;;  %v1472_v17 = vpop.f32.mrf.mxu0  ;;  %8444 = vmatprep.subr.bf16.mxu0 %v8888_v63  ;;  %v4582_v9 = vsel %vm9153_vm2, %v4577_v3, %v4581_v20  ;;  %v10339_v20 = vld [vmem:[%s10226_s14 + $0x24] sm:$0x1]  ;;  %v10352_v3 = vld [vmem:[%s10226_s14 + $0x2c] sm:$0x1] }
 0x136   : > { %v1501_v39 = vadd.f32 %v1472_v17, %v10115_v27  ;;  %v10297_v14 = vadd.f32 %v8147_v38, %v1503_v62  ;;  %v1682_v41 = vpop.f32.mrf.mxu1  ;;  %8468 = vmatprep.subr.bf16.mxu1 %v8889_v26  ;;  %v7363_v44 = vcombine.low %v4568_v7, %v4582_v9  ;;  %v10316_v50 = vrot.slane %v4593_v42, 5  ;;  %v8896_v62 = vld [vmem:[%s11164_s3 + $0x488] sm:$0xff]  }
 0x137   : > { %v8126_v11 = vpop.f32.mrf.mxu0  ;;  %8413 = vmatmul.mubr.bf16.gmra.mxu0 %v7266_v60  ;;  %v4549_v60 = vld [vmem:[%s10226_s14 + $0x28] sm:$0xf]  ;;  %v4614_v24 = vrot.slane %v4612_v47, 4  ;;  %v4604_v38 = vor.u32 %v4603_v57, %v4600_v56  ;;  %v4621_v37 = vshll.u32 %v10339_v20, 16  ;;  %v4640_v42 = vshrl.u32 %v4551_v61, 16 }
 0x138   : > { %v1506_v31 = vadd.f32 %v8126_v11, %v10132_v59  ;;  %v10305_v10 = vadd.f32 %v1682_v41, %v1501_v39  ;;  %8445 = vmatpush3.bf16.msra.mxu0 %v8888_v63  ;;  %v8150_v27 = vpop.f32.mrf.mxu1  ;;  %8437 = vmatmul.mubr.bf16.gmra.mxu1 %v7310_v46  ;;  %v10314_v59 = vld [vmem:[%s10226_s14 + $0x1c] sm:$0x1]  ;;  %v4626_v15 = vshrl.u32 %v4549_v60, 16  ;;  %v4629_v4 = vshll.u32 %v4549_v60, 16  ;;  %v8897_v17 = vld [vmem:[%s11164_s3 + $0x4c8] sm:$0xff]   ;;  %v8898_v11 = vld [vmem:[%s11164_s3 + $0x480] sm:$0xff]  }
 0x139   : > { %8469 = vmatpush3.bf16.msra.mxu1 %v8889_v26  ;;  %v1485_v48 = vpop.f32.mrf.mxu0  ;;  %8446 = vmatprep.subr.bf16.mxu0 %v8890_v29  ;;  %v8895_v26 = vld [vmem:[%s11164_s3 + $0x4d0] sm:$0xff]   ;;  %v4607_v58 = vshll.u32 %v10314_v59, 16  ;;  %v4643_v39 = vshll.u32 %v4551_v61, 16  ;;  %v4657_v7 = vshll.u32 %v4553_v5, 16  ;;  %v4605_v9 = vrot.slane %v4604_v38, 4 }
 0x13a   : > { %v1504_v52 = vadd.f32 %v1485_v48, %v10151_v16  ;;  %v10319_v53 = vadd.f32 %v8150_v27, %v1506_v31  ;;  %v1695_v34 = vpop.f32.mrf.mxu1  ;;  %8470 = vmatprep.subr.bf16.mxu1 %v8891_v55  ;;  %8456 = vmatprep.mubr.bf16.mxu0 %v8900_v33  ;;  %v4615_v16 = vshll.u32 %v4547_v35, 16  ;;  %v4628_v46 = vrot.slane %v4626_v15, 4  ;;  %v10356_v41 = vld [vmem:[%s10226_s14 + $0x34] sm:$0x1]  ;;  %v10363_v27 = vld [vmem:[%s10226_s14 + $0x3c] sm:$0x1] }
 0x13b   : > { %v8127_v54 = vpop.f32.mrf.mxu0  ;;  %8480 = vmatprep.mubr.bf16.mxu1 %v7363_v44  ;;  %v4609_v32 = vrot.slane %v4607_v58, 5  ;;  %v4654_v33 = vshrl.u32 %v4553_v5, 16  ;;  %v4635_v31 = vshll.u32 %v10352_v3, 16  ;;  %v4642_v44 = vrot.slane %v4640_v42, 4  ;;  %v8906_v58 = vld [vmem:[%s10226_s14 + $0x20] ss:$8 sps:$4 sm:$0xff]  }
 0x13c   : > { %v1507_v63 = vadd.f32 %v8127_v54, %v10164_v36  ;;  %v10324_v13 = vadd.f32 %v1695_v34, %v1504_v52  ;;  %8447 = vmatpush3.bf16.msra.mxu0 %v8890_v29  ;;  %v8151_v2 = vpop.f32.mrf.mxu1  ;;  %v10332_v36 = vrot.slane %v4590_v49, 4  ;;  %v4617_v21 = vrot.slane %v4615_v16, 5 }
 0x13d   : > { %8471 = vmatpush3.bf16.msra.mxu1 %v8891_v55  ;;  %v1488_v12 = vpop.f32.mrf.mxu0  ;;  %8448 = vmatprep.subr.bf16.mxu0 %v8892_v43  ;;  %v4631_v55 = vrot.slane %v4629_v4, 5  ;;  %v4645_v48 = vrot.slane %v4643_v39, 5  ;;  %v4659_v49 = vrot.slane %v4657_v7, 5  ;;  %v4623_v52 = vrot.slane %v4621_v37, 5 }
 0x13e   : > { %v1505_v23 = vadd.f32 %v1488_v12, %v10179_v22  ;;  %v10336_v29 = vadd.f32 %v8151_v2, %v1507_v63  ;;  %v1698_v19 = vpop.f32.mrf.mxu1  ;;  %8472 = vmatprep.subr.bf16.mxu1 %v8893_v30  ;;  %v4618_v25 = vor.u32 %v4617_v21, %v4614_v24  ;;  %v4649_v34 = vshll.u32 %v10356_v41, 16  ;;  %v8902_v2 = vld [vmem:[%s11164_s3 + $0x538] sm:$0xff]   ;;  %v4821_v24 = vld [vmem:[%s10226_s14] sm:$0xe]  ;;  %v4822_v21 = vld [vmem:[%s10226_s14 + $0x8] sm:$0xe] }
 0x13f   : > { %v4632_v51 = vor.u32 %v4631_v55, %v4628_v46  ;;  %v4637_v56 = vrot.slane %v4635_v31, 5  ;;  %v4596_v57 = vsel %vm9153_vm2, %v10332_v36, %v10316_v50  ;;  %v4610_v35 = vsel %vm9153_vm2, %v4605_v9, %v4609_v32  ;;  %v8903_v50 = vld [vmem:[%s11164_s3 + $0x578] sm:$0xff]   ;;  %v8905_v36 = vld [vmem:[%s11164_s3 + $0x570] sm:$0xff]   ;;  %v8909_v9 = vld [vmem:[%s11164_s3 + $0x568] sm:$0xff]  }
 0x140   : > { %v10346_v22 = vadd.f32 %v1698_v19, %v1505_v23  ;;  %8449 = vmatpush3.bf16.msra.mxu0 %v8892_v43  ;;  %v8899_v43 = vld [vmem:[%s11164_s3 + $0x4c0] sm:$0xff]   ;;  %v4619_v54 = vrot.slane %v4618_v25, 4  ;;  %v4663_v63 = vshll.u32 %v10363_v27, 16  ;;  %v4646_v47 = vor.u32 %v4645_v48, %v4642_v44  ;;  %v8901_v12 = vld [vmem:[%s10226_s14 + $0x10] ss:$8 sps:$4 sm:$0xff]  }
 0x141   : > { %8473 = vmatpush3.bf16.msra.mxu1 %v8893_v30  ;;  %8450 = vmatprep.subr.bf16.mxu0 %v8894_v8  ;;  %v4656_v30 = vrot.slane %v4654_v33, 4  ;;  %v4633_v60 = vrot.slane %v4632_v51, 4  ;;  %v4651_v23 = vrot.slane %v4649_v34, 5  ;;  %v4847_v38 = vrot.slane %v10255_v45, 5  ;;  %v8908_v45 = vld [vmem:[%s11164_s3 + $0x528] sm:$0xff]  }
 0x142   : > { %8474 = vmatprep.subr.bf16.mxu1 %v8895_v26  ;;  %v4624_v15 = vsel %vm9153_vm2, %v4619_v54, %v4623_v52  ;;  %v4665_v19 = vrot.slane %v4663_v63, 5  ;;  %v4647_v61 = vrot.slane %v4646_v47, 4  ;;  %v4851_v46 = vrot.slane %v10259_v6, 5  ;;  %v8907_v51 = vld [vmem:[%s10226_s14 + $0x30] ss:$8 sps:$4 sm:$0xff]   ;;  %v8910_v52 = vld [vmem:[%s11164_s3 + $0x520] sm:$0xff]  }
 0x143   : > { %v4660_v16 = vor.u32 %v4659_v49, %v4656_v30  ;;  %v4638_v4 = vsel %vm9153_vm2, %v4633_v60, %v4637_v56  ;;  %v7376_v32 = vrot.slane %v4822_v21, 9  ;;  %v8920_v60 = vld [vmem:[%s10226_s14 + $0x8] ss:$8 sps:$4 sm:$0xff]  }
 0x144   : > { %8451 = vmatpush3.bf16.msra.mxu0 %v8894_v8  ;;  %v7364_v8 = vcombine.low %v4596_v57, %v4610_v35  ;;  %v7365_v5 = vcombine.low %v4624_v15, %v4638_v4  ;;  %v4652_v6 = vsel %vm9153_vm2, %v4647_v61, %v4651_v23  ;;  %v8914_v4 = vld [vmem:[%s11164_s3 + $0x510] sm:$0xff]  }
 0x145   : > { %8475 = vmatpush3.bf16.msra.mxu1 %v8895_v26  ;;  %8452 = vmatprep.subr.bf16.mxu0 %v8896_v62  ;;  %v8904_v26 = vld [vmem:[%s11164_s3 + $0x530] sm:$0xff]  }
 0x146   : > { %8476 = vmatprep.subr.bf16.mxu1 %v8897_v17 }
 0x148   : > { %8453 = vmatpush3.bf16.msra.mxu0 %v8896_v62  ;;  %v4661_v62 = vrot.slane %v4660_v16, 4  ;;  %v8912_v16 = vld [vmem:[%s11164_s3 + $0x518] sm:$0xff]  }
 0x149   : > { %8477 = vmatpush3.bf16.msra.mxu1 %v8897_v17  ;;  %8454 = vmatprep.subr.bf16.mxu0 %v8898_v11  ;;  %v7375_v17 = vrot.slane %v4821_v24, 9 }
 0x14a   : > { %8478 = vmatprep.subr.bf16.mxu1 %v8899_v43  ;;  %v4666_v33 = vsel %vm9153_vm2, %v4661_v62, %v4665_v19  ;;  %v4824_v19 = vld [vmem:[%s10226_s14 + $0x18] sm:$0xe] }
 0x14b   : > { %v4848_v31 = vsel %vm9230_vm5, %v7375_v17, %v4847_v38  ;;  %v7366_v30 = vcombine.low %v4652_v6, %v4666_v33  ;;  %v8916_v38 = vld [vmem:[%s11164_s3 + $0x508] sm:$0xff]   ;;  %v4855_v17 = vrot.slane %v10281_v18, 5  ;;  %v4867_v33 = vrot.slane %v10352_v3, 5  ;;  %v8919_v18 = vld [vmem:[%s11164_s3 + $0x540] sm:$0xff]   ;;  %v7451_v3 = vld [vmem:[%s10226_s14 + $0x18] sm:$0xf] }
 0x14c   : > { %8455 = vmatpush3.bf16.msra.mxu0 %v8898_v11 }
 0x14d   : > { %8479 = vmatpush3.bf16.msra.mxu1 %v8899_v43  ;;  %8488 = vmatprep.subr.bf16.mxu0 %v8902_v2  ;;  %v4852_v43 = vsel %vm9230_vm5, %v7376_v32, %v4851_v46  ;;  %v4825_v46 = vld [vmem:[%s10226_s14 + $0x20] sm:$0xe]  ;;  %v7378_v32 = vrot.slane %v4824_v19, 9  ;;  %v10513_v19 = vld [vmem:[%s10226_s14 + $0x24] sm:$0x1] }
 0x14e   : > { %8512 = vmatprep.subr.bf16.mxu1 %v8903_v50  ;;  %v7399_v57 = vcombine.low %v4848_v31, %v4852_v43 }
 0x14f   : > { %v8170_v55 = vpop.f32.mrf.mxu0  ;;  %8457 = vmatmul.mubr.bf16.vlgmr.msra.gmra.mxu0 %v8901_v12 }
 0x150   : > { %v1883_v37 = vadd.f32 %v8170_v55, %v10273_v0  ;;  %8481 = vmatmul.mubr.bf16.vlgmr.msra.gmra.mxu1 %v7364_v8  ;;  %8489 = vmatpush3.bf16.msra.mxu0 %v8902_v2  ;;  %v8194_v42 = vpop.f32.mrf.mxu1 }
 0x151   : > { %8513 = vmatpush3.bf16.msra.mxu1 %v8903_v50  ;;  %v1850_v39 = vpop.f32.mrf.mxu0  ;;  %8490 = vmatprep.subr.bf16.mxu0 %v8904_v26 }
 0x152   : > { %v1881_v7 = vadd.f32 %v1850_v39, %v10288_v28  ;;  %v10407_v0 = vadd.f32 %v8194_v42, %v1883_v37  ;;  %v2132_v11 = vpop.f32.mrf.mxu1  ;;  %8514 = vmatprep.subr.bf16.mxu1 %v8905_v36  ;;  %8460 = vmatprep.mubr.bf16.mxu0 %v8906_v58  ;;  %v4859_v37 = vrot.slane %v10314_v59, 5  ;;  %v4863_v42 = vrot.slane %v10339_v20, 5  ;;  %v8918_v39 = vld [vmem:[%s11164_s3 + $0x500] sm:$0xff]   ;;  %v4827_v59 = vld [vmem:[%s10226_s14 + $0x30] sm:$0xe] }
 0x153   : > { %v8171_v25 = vpop.f32.mrf.mxu0  ;;  %8484 = vmatprep.mubr.bf16.mxu1 %v7365_v5  ;;  %v4826_v5 = vld [vmem:[%s10226_s14 + $0x28] sm:$0xe]  ;;  %v7449_v20 = vld [vmem:[%s10226_s14 + $0x10] sm:$0xf] }
 0x154   : > { %v1884_v28 = vadd.f32 %v8171_v25, %v10297_v14  ;;  %v10418_v44 = vadd.f32 %v2132_v11, %v1881_v7  ;;  %8491 = vmatpush3.bf16.msra.mxu0 %v8904_v26  ;;  %v8195_v48 = vpop.f32.mrf.mxu1  ;;  %v8911_v14 = vld [vmem:[%s11164_s3 + $0x560] sm:$0xff]   ;;  %v7380_v6 = vrot.slane %v4826_v5, 9  ;;  %v4871_v7 = vrot.slane %v10356_v41, 5  ;;  %v7447_v11 = vld [vmem:[%s10226_s14 + $0x8] sm:$0xf] }
 0x155   : > { %8515 = vmatpush3.bf16.msra.mxu1 %v8905_v36  ;;  %v1853_v49 = vpop.f32.mrf.mxu0  ;;  %8492 = vmatprep.subr.bf16.mxu0 %v8908_v45  ;;  %v4823_v36 = vld [vmem:[%s10226_s14 + $0x10] sm:$0xe]  ;;  %v5222_v25 = vshll.u32 %v7447_v11, 16  ;;  %v5233_v31 = vshrl.u32 %v7449_v20, 16  ;;  %v5236_v43 = vshll.u32 %v7449_v20, 16 }
 0x156   : > { %v1882_v34 = vadd.f32 %v1853_v49, %v10305_v10  ;;  %v10424_v54 = vadd.f32 %v8195_v48, %v1884_v28  ;;  %v2135_v56 = vpop.f32.mrf.mxu1  ;;  %8516 = vmatprep.subr.bf16.mxu1 %v8909_v9  ;;  %v7377_v62 = vrot.slane %v4823_v36, 9  ;;  %v4860_v48 = vsel %vm9230_vm5, %v7378_v32, %v4859_v37  ;;  %v10490_v49 = vld [vmem:[%s10226_s14 + $0x14] sm:$0x1]  ;;  %v7491_v5 = vld [vmem:[%s10226_s14 + $0x8] sm:$0xe] }
 0x157   : > { %v8174_v35 = vpop.f32.mrf.mxu0  ;;  %8461 = vmatmul.mubr.bf16.gmra.mxu0 %v8907_v51  ;;  %v4828_v51 = vld [vmem:[%s10226_s14 + $0x38] sm:$0xe]  ;;  %v5242_v36 = vshll.u32 %v10490_v49, 16 }
 0x158   : > { %v1887_v63 = vadd.f32 %v8174_v35, %v10319_v53  ;;  %v10431_v2 = vadd.f32 %v2135_v56, %v1882_v34  ;;  %8493 = vmatpush3.bf16.msra.mxu0 %v8908_v45  ;;  %v8198_v47 = vpop.f32.mrf.mxu1  ;;  %8485 = vmatmul.mubr.bf16.gmra.mxu1 %v7366_v30  ;;  %v8913_v53 = vld [vmem:[%s11164_s3 + $0x558] sm:$0xff]   ;;  %v7379_v45 = vrot.slane %v4825_v46, 9  ;;  %v4856_v28 = vsel %vm9230_vm5, %v7377_v62, %v4855_v17  ;;  %v10487_v30 = vld [vmem:[%s10226_s14 + $0xc] sm:$0x1]  ;;  %v8925_v46 = vld [vmem:[%s11164_s3 + $0x5f0] sm:$0xff]  }
 0x159   : > { %8517 = vmatpush3.bf16.msra.mxu1 %v8909_v9  ;;  %v1866_v10 = vpop.f32.mrf.mxu0  ;;  %8494 = vmatprep.subr.bf16.mxu0 %v8910_v52  ;;  %v5219_v9 = vshrl.u32 %v7447_v11, 16  ;;  %v5224_v34 = vrot.slane %v5222_v25, 5  ;;  %v7381_v56 = vrot.slane %v4827_v59, 9  ;;  %v5238_v35 = vrot.slane %v5236_v43, 5  ;;  %v8928_v17 = vld [vmem:[%s10226_s14 + $0x28] ss:$8 sps:$4 sm:$0xff]  }
 0x15a   : > { %v1885_v50 = vadd.f32 %v1866_v10, %v10324_v13  ;;  %v10437_v12 = vadd.f32 %v8198_v47, %v1887_v63  ;;  %v2148_v8 = vpop.f32.mrf.mxu1  ;;  %8518 = vmatprep.subr.bf16.mxu1 %v8911_v14  ;;  %8504 = vmatprep.mubr.bf16.mxu0 %v7399_v57  ;;  %v5235_v57 = vrot.slane %v5233_v31, 4  ;;  %v7382_v63 = vrot.slane %v4828_v51, 9  ;;  %v7453_v47 = vld [vmem:[%s10226_s14 + $0x20] sm:$0xf] }
 0x15b   : > { %v8175_v26 = vpop.f32.mrf.mxu0  ;;  %8528 = vmatprep.mubr.bf16.mxu1 %v8920_v60  ;;  %v10495_v60 = vsel %vm9230_vm5, %v7379_v45, %v4863_v42  ;;  %v5247_v10 = vshrl.u32 %v7451_v3, 16  ;;  %v5261_v62 = vshrl.u32 %v7453_v47, 16  ;;  %v5244_v42 = vrot.slane %v5242_v36, 5 }
 0x15c   : > { %v1888_v58 = vadd.f32 %v8175_v26, %v10336_v29  ;;  %v10444_v15 = vadd.f32 %v2148_v8, %v1885_v50  ;;  %8495 = vmatpush3.bf16.msra.mxu0 %v8910_v52  ;;  %v8199_v13 = vpop.f32.mrf.mxu1  ;;  %v8915_v29 = vld [vmem:[%s11164_s3 + $0x550] sm:$0xff]   ;;  %v5221_v52 = vrot.slane %v5219_v9, 4  ;;  %v8922_v50 = vld [vmem:[%s11164_s3 + $0x5f8] sm:$0xff]   ;;  %v4868_v8 = vsel %vm9230_vm5, %v7380_v6, %v4867_v33 }
 0x15d   : > { %8519 = vmatpush3.bf16.msra.mxu1 %v8911_v14  ;;  %v1869_v23 = vpop.f32.mrf.mxu0  ;;  %8496 = vmatprep.subr.bf16.mxu0 %v8912_v16  ;;  %v4875_v14 = vrot.slane %v10363_v27, 5  ;;  %v8921_v27 = vld [vmem:[%s11164_s3 + $0x5b8] sm:$0xff]   ;;  %v5228_v26 = vshll.u32 %v10487_v30, 16  ;;  %v7492_v6 = vld [vmem:[%s10226_s14 + $0x10] sm:$0xe]  ;;  %v5263_v9 = vrot.slane %v5261_v62, 4 }
 0x15e   : > { %v1886_v24 = vadd.f32 %v1869_v23, %v10346_v22  ;;  %v10451_v21 = vadd.f32 %v8199_v13, %v1888_v58  ;;  %v2151_v61 = vpop.f32.mrf.mxu1  ;;  %8520 = vmatprep.subr.bf16.mxu1 %v8913_v53  ;;  %v8917_v22 = vld [vmem:[%s11164_s3 + $0x548] sm:$0xff]   ;;  %v7400_v58 = vcombine.low %v4856_v28, %v4860_v48  ;;  %v8923_v13 = vld [vmem:[%s10226_s14 + $0x18] ss:$8 sps:$4 sm:$0xff]   ;;  %v10510_v23 = vld [vmem:[%s10226_s14 + $0x1c] sm:$0x1]  ;;  %v7499_v51 = vrot.slane %v7491_v5, 9 }
 0x15f   : > { %v5230_v37 = vrot.slane %v5228_v26, 5  ;;  %v5256_v45 = vshll.u32 %v10510_v23, 16  ;;  %v4876_v33 = vsel %vm9230_vm5, %v7382_v63, %v4875_v14  ;;  %v7500_v43 = vrot.slane %v7492_v6, 9  ;;  %v8926_v48 = vld [vmem:[%s11164_s3 + $0x5a8] sm:$0xff]   ;;  %v8931_v26 = vld [vmem:[%s11164_s3 + $0x5e0] sm:$0xff]  }
 0x160   : > { %v10460_v55 = vadd.f32 %v2151_v61, %v1886_v24  ;;  %8497 = vmatpush3.bf16.msra.mxu0 %v8912_v16  ;;  %v5250_v16 = vshll.u32 %v7451_v3, 16  ;;  %v8924_v24 = vld [vmem:[%s11164_s3 + $0x5b0] sm:$0xff]   ;;  %v5249_v61 = vrot.slane %v5247_v10, 4  ;;  %v5514_v3 = vrot.slane %v10490_v49, 5  ;;  %v8927_v49 = vld [vmem:[%s11164_s3 + $0x5e8] sm:$0xff]  }
 0x161   : > { %8521 = vmatpush3.bf16.msra.mxu1 %v8913_v53  ;;  %8498 = vmatprep.subr.bf16.mxu0 %v8914_v4  ;;  %v5225_v53 = vor.u32 %v5224_v34, %v5221_v52 }
 0x162   : > { %8522 = vmatprep.subr.bf16.mxu1 %v8915_v29 }
 0x163   : > { %v5226_v32 = vrot.slane %v5225_v53, 4 }
 0x164   : > { %8499 = vmatpush3.bf16.msra.mxu0 %v8914_v4  ;;  %v5239_v4 = vor.u32 %v5238_v35, %v5235_v57  ;;  %v10550_v57 = vrot.slane %v5256_v45, 5  ;;  %v5518_v45 = vrot.slane %v10510_v23, 5 }
 0x165   : > { %8523 = vmatpush3.bf16.msra.mxu1 %v8915_v29  ;;  %8500 = vmatprep.subr.bf16.mxu0 %v8916_v38  ;;  %v5252_v29 = vrot.slane %v5250_v16, 5  ;;  %v5231_v52 = vsel %vm9153_vm2, %v5226_v32, %v5230_v37  ;;  %v10562_v16 = vld [vmem:[%s10226_s14 + $0x18] sm:$0xe] }
 0x166   : > { %8524 = vmatprep.subr.bf16.mxu1 %v8917_v22  ;;  %v5240_v11 = vrot.slane %v5239_v4, 4  ;;  %v10579_v4 = vld [vmem:[%s10226_s14 + $0x2c] sm:$0x1] }
 0x167   : > { %v5253_v20 = vor.u32 %v5252_v29, %v5249_v61  ;;  %v7459_v29 = vld [vmem:[%s10226_s14 + $0x38] sm:$0xf]  ;;  %v5526_v23 = vrot.slane %v10579_v4, 5 }
 0x168   : > { %8501 = vmatpush3.bf16.msra.mxu0 %v8916_v38  ;;  %v5264_v38 = vshll.u32 %v7453_v47, 16  ;;  %v5245_v14 = vsel %vm9153_vm2, %v5240_v11, %v5244_v42 }
 0x169   : > { %8525 = vmatpush3.bf16.msra.mxu1 %v8917_v22  ;;  %8502 = vmatprep.subr.bf16.mxu0 %v8918_v39  ;;  %v7401_v22 = vcombine.low %v10495_v60, %v4868_v8  ;;  %v10555_v60 = vld [vmem:[%s11164_s3 + $0x5a0] sm:$0xff]   ;;  %v10557_v63 = vrot.slane %v5253_v20, 4  ;;  %v7479_v61 = vcombine.low %v5231_v52, %v5245_v14  ;;  %v8932_v20 = vld [vmem:[%s11164_s3 + $0x598] sm:$0xff]  }
 0x16a   : > { %8526 = vmatprep.subr.bf16.mxu1 %v8919_v18  ;;  %v5266_v25 = vrot.slane %v5264_v38, 5 }
 0x16c   : > { %8503 = vmatpush3.bf16.msra.mxu0 %v8918_v39  ;;  %v4872_v39 = vsel %vm9230_vm5, %v7381_v56, %v4871_v7  ;;  %v5510_v7 = vrot.slane %v10487_v30, 5  ;;  %v8929_v56 = vld [vmem:[%s10226_s14 + $0x38] ss:$8 sps:$4 sm:$0xff]   ;;  %v5267_v47 = vor.u32 %v5266_v25, %v5263_v9  ;;  %v5284_v25 = vshll.u32 %v10579_v4, 16 }
 0x16d   : > { %8527 = vmatpush3.bf16.msra.mxu1 %v8919_v18  ;;  %8536 = vmatprep.subr.bf16.mxu0 %v8921_v27  ;;  %v5270_v18 = vshll.u32 %v10513_v19, 16 }
 0x16e   : > { %8560 = vmatprep.subr.bf16.mxu1 %v8922_v50  ;;  %v5511_v36 = vsel %vm9230_vm5, %v7499_v51, %v5510_v7  ;;  %v10586_v37 = vrot.slane %v5267_v47, 4  ;;  %v5303_v51 = vshrl.u32 %v7459_v29, 16 }
 0x16f   : > { %v8218_v59 = vpop.f32.mrf.mxu0  ;;  %8505 = vmatmul.mubr.bf16.vlgmr.msra.gmra.mxu0 %v7400_v58  ;;  %v10559_v10 = vrot.slane %v5270_v18, 5  ;;  %v5515_v58 = vsel %vm9230_vm5, %v7500_v43, %v5514_v3  ;;  %v7461_v18 = vld [vmem:[%s10226_s14 + $0x40] sm:$0xf]  ;;  %v10607_v3 = vld [vmem:[%s10226_s14 + $0x34] sm:$0x1] }
 0x170   : > { %v2375_v31 = vadd.f32 %v8218_v59, %v10407_v0  ;;  %8529 = vmatmul.mubr.bf16.vlgmr.msra.gmra.mxu1 %v8923_v13  ;;  %8537 = vmatpush3.bf16.msra.mxu0 %v8921_v27  ;;  %v8242_v41 = vpop.f32.mrf.mxu1  ;;  %v7455_v27 = vld [vmem:[%s10226_s14 + $0x28] sm:$0xf]  ;;  %v10576_v13 = vld [vmem:[%s10226_s14 + $0x20] sm:$0xe]  ;;  %v7523_v42 = vcombine.low %v5511_v36, %v5515_v58  ;;  %v5305_v36 = vrot.slane %v5303_v51, 4 }
 0x171   : > { %8561 = vmatpush3.bf16.msra.mxu1 %v8922_v50  ;;  %v2342_v28 = vpop.f32.mrf.mxu0  ;;  %8538 = vmatprep.subr.bf16.mxu0 %v8924_v24  ;;  %v5275_v5 = vshrl.u32 %v7455_v27, 16  ;;  %v7502_v9 = vrot.slane %v10576_v13, 9 }
 0x172   : > { %v2373_v0 = vadd.f32 %v2342_v28, %v10418_v44  ;;  %v10542_v34 = vadd.f32 %v8242_v41, %v2375_v31  ;;  %v2512_v30 = vpop.f32.mrf.mxu1  ;;  %8562 = vmatprep.subr.bf16.mxu1 %v8925_v46  ;;  %8508 = vmatprep.mubr.bf16.mxu0 %v7401_v22  ;;  %v7402_v44 = vcombine.low %v4872_v39, %v4876_v33  ;;  %v5306_v31 = vshll.u32 %v7459_v29, 16 }
 0x173   : > { %v8219_v35 = vpop.f32.mrf.mxu0  ;;  %8532 = vmatprep.mubr.bf16.mxu1 %v8928_v17  ;;  %v5278_v17 = vshll.u32 %v7455_v27, 16  ;;  %v5277_v28 = vrot.slane %v5275_v5, 4  ;;  %v5522_v5 = vrot.slane %v10513_v19, 5 }
 0x174   : > { %v2376_v50 = vadd.f32 %v8219_v35, %v10424_v54  ;;  %v10566_v8 = vadd.f32 %v2512_v30, %v2373_v0  ;;  %8539 = vmatpush3.bf16.msra.mxu0 %v8924_v24  ;;  %v8243_v53 = vpop.f32.mrf.mxu1  ;;  %v7457_v24 = vld [vmem:[%s10226_s14 + $0x30] sm:$0xf]  ;;  %v10613_v30 = vld [vmem:[%s10226_s14 + $0x3c] sm:$0x1]  ;;  %v5308_v58 = vrot.slane %v5306_v31, 5  ;;  %v5273_v31 = vsel %vm9153_vm2, %v10586_v37, %v10559_v10 }
 0x175   : > { %8563 = vmatpush3.bf16.msra.mxu1 %v8925_v46  ;;  %v2345_v54 = vpop.f32.mrf.mxu0  ;;  %8540 = vmatprep.subr.bf16.mxu0 %v8926_v48  ;;  %v7501_v46 = vrot.slane %v10562_v16, 9  ;;  %v5289_v33 = vshrl.u32 %v7457_v24, 16  ;;  %v5292_v11 = vshll.u32 %v7457_v24, 16  ;;  %v8934_v0 = vld [vmem:[%s11164_s3 + $0x590] sm:$0xff]   ;;  %v5298_v24 = vshll.u32 %v10607_v3, 16  ;;  %v8940_v16 = vld [vmem:[%s11164_s3 + $0x638] sm:$0xff]  }
 0x176   : > { %v2374_v62 = vadd.f32 %v2345_v54, %v10431_v2  ;;  %v10584_v38 = vadd.f32 %v8243_v53, %v2376_v50  ;;  %v2515_v22 = vpop.f32.mrf.mxu1  ;;  %8564 = vmatprep.subr.bf16.mxu1 %v8927_v49  ;;  %v10623_v53 = vld [vmem:[%s10226_s14 + $0x44] sm:$0x1]  ;;  %v7498_v37 = vld [vmem:[%s10226_s14 + $0x40] sm:$0xe] }
 0x177   : > { %v8222_v32 = vpop.f32.mrf.mxu0  ;;  %8509 = vmatmul.mubr.bf16.gmra.mxu0 %v7402_v44  ;;  %v8935_v44 = vld [vmem:[%s11164_s3 + $0x5d0] sm:$0xff]   ;;  %v5291_v47 = vrot.slane %v5289_v33, 4  ;;  %v5294_v27 = vrot.slane %v5292_v11, 5  ;;  %v7495_v33 = vld [vmem:[%s10226_s14 + $0x28] sm:$0xe] }
 0x178   : > { %v2379_v6 = vadd.f32 %v8222_v32, %v10437_v12  ;;  %v10591_v39 = vadd.f32 %v2515_v22, %v2374_v62  ;;  %8541 = vmatpush3.bf16.msra.mxu0 %v8926_v48  ;;  %v8246_v2 = vpop.f32.mrf.mxu1  ;;  %8533 = vmatmul.mubr.bf16.gmra.mxu1 %v8929_v56  ;;  %v8933_v12 = vld [vmem:[%s11164_s3 + $0x5d8] sm:$0xff]   ;;  %v5280_v48 = vrot.slane %v5278_v17, 5  ;;  %v8936_v22 = vld [vmem:[%s11164_s3 + $0x588] sm:$0xff]   ;;  %v5312_v32 = vshll.u32 %v10613_v30, 16  ;;  %v7496_v11 = vld [vmem:[%s10226_s14 + $0x30] sm:$0xe] }
 0x179   : > { %8565 = vmatpush3.bf16.msra.mxu1 %v8927_v49  ;;  %v2358_v59 = vpop.f32.mrf.mxu0  ;;  %8542 = vmatprep.subr.bf16.mxu0 %v10555_v60  ;;  %v5317_v49 = vshrl.u32 %v7461_v18, 16  ;;  %v5295_v17 = vor.u32 %v5294_v27, %v5291_v47  ;;  %v7504_v13 = vrot.slane %v7496_v11, 9  ;;  %v10700_v27 = vld [vmem:[%s10226_s14 + $0x1c] sm:$0x1] }
 0x17a   : > { %v2377_v41 = vadd.f32 %v2358_v59, %v10444_v15  ;;  %v10604_v7 = vadd.f32 %v8246_v2, %v2379_v6  ;;  %v2528_v43 = vpop.f32.mrf.mxu1  ;;  %8566 = vmatprep.subr.bf16.mxu1 %v8931_v26  ;;  %8552 = vmatprep.mubr.bf16.mxu0 %v7479_v61  ;;  %v5320_v15 = vshll.u32 %v7461_v18, 16  ;;  %v5309_v6 = vor.u32 %v5308_v58, %v5305_v36  ;;  %v10645_v18 = vld [vmem:[%s10226_s14 + $0x38] sm:$0xe]  ;;  %v8938_v59 = vld [vmem:[%s11164_s3 + $0x580] sm:$0xff]  }
 0x17b   : > { %v8223_v52 = vpop.f32.mrf.mxu0  ;;  %8576 = vmatprep.mubr.bf16.mxu1 %v7523_v42  ;;  %v5319_v29 = vrot.slane %v5317_v49, 4  ;;  %v10639_v42 = vrot.slane %v5284_v25, 5  ;;  %v5326_v2 = vshll.u32 %v10623_v53, 16  ;;  %v5259_v25 = vsel %vm9153_vm2, %v10557_v63, %v10550_v57  ;;  %v8941_v49 = vld [vmem:[%s11164_s3 + $0x678] sm:$0xff]  }
 0x17c   : > { %v2380_v56 = vadd.f32 %v8223_v52, %v10451_v21  ;;  %v10616_v14 = vadd.f32 %v2528_v43, %v2377_v41  ;;  %8543 = vmatpush3.bf16.msra.mxu0 %v10555_v60  ;;  %v8247_v35 = vpop.f32.mrf.mxu1  ;;  %v5281_v60 = vor.u32 %v5280_v48, %v5277_v28  ;;  %v5322_v62 = vrot.slane %v5320_v15, 5  ;;  %v7571_v52 = vld [vmem:[%s10226_s14 + $0x10] sm:$0xf]  ;;  %v10691_v15 = vld [vmem:[%s10226_s14 + $0x14] sm:$0x1] }
 0x17d   : > { %8567 = vmatpush3.bf16.msra.mxu1 %v8931_v26  ;;  %v2361_v50 = vpop.f32.mrf.mxu0  ;;  %8544 = vmatprep.subr.bf16.mxu0 %v8932_v20  ;;  %v5296_v41 = vrot.slane %v5295_v17, 4  ;;  %v10661_v43 = vrot.slane %v5312_v32, 5  ;;  %v5519_v28 = vsel %vm9230_vm5, %v7501_v46, %v5518_v45  ;;  %v5523_v57 = vsel %vm9230_vm5, %v7502_v9, %v5522_v5 }
 0x17e   : > { %v2378_v21 = vadd.f32 %v2361_v50, %v10460_v55  ;;  %v10626_v54 = vadd.f32 %v8247_v35, %v2380_v56  ;;  %v2531_v61 = vpop.f32.mrf.mxu1  ;;  %8568 = vmatprep.subr.bf16.mxu1 %v8933_v12  ;;  %v8937_v55 = vld [vmem:[%s11164_s3 + $0x5c8] sm:$0xff]   ;;  %v5282_v19 = vrot.slane %v5281_v60, 4  ;;  %v5323_v51 = vor.u32 %v5322_v62, %v5319_v29  ;;  %v7573_v56 = vld [vmem:[%s10226_s14 + $0x18] sm:$0xf] }
 0x17f   : > { %v10673_v63 = vrot.slane %v5309_v6, 4  ;;  %v10675_v10 = vrot.slane %v5326_v2, 5  ;;  %v7503_v48 = vrot.slane %v7495_v33, 9  ;;  %v5530_v45 = vrot.slane %v10607_v3, 5 }
 0x180   : > { %v10629_v26 = vadd.f32 %v2531_v61, %v2378_v21  ;;  %8545 = vmatpush3.bf16.msra.mxu0 %v8932_v20  ;;  %v5300_v20 = vrot.slane %v5298_v24, 5  ;;  %v10682_v46 = vrot.slane %v5323_v51, 4  ;;  %v7505_v9 = vrot.slane %v10645_v18, 9 }
 0x181   : > { %8569 = vmatpush3.bf16.msra.mxu1 %v8933_v12  ;;  %8546 = vmatprep.subr.bf16.mxu0 %v8934_v0  ;;  %v8939_v12 = vld [vmem:[%s11164_s3 + $0x5c0] sm:$0xff]   ;;  %v7524_v4 = vcombine.low %v5519_v28, %v5523_v57  ;;  %v5882_v35 = vshrl.u32 %v7571_v52, 16  ;;  %v5287_v3 = vsel %vm9153_vm2, %v5282_v19, %v10639_v42  ;;  %v5896_v50 = vshrl.u32 %v7573_v56, 16  ;;  %v8943_v42 = vld [vmem:[%s11164_s3 + $0x670] sm:$0xff]   ;;  %v8944_v28 = vld [vmem:[%s11164_s3 + $0x628] sm:$0xff]  }
 0x182   : > { %8570 = vmatprep.subr.bf16.mxu1 %v8935_v44  ;;  %v5301_v47 = vsel %vm9153_vm2, %v5296_v41, %v5300_v20  ;;  %v5899_v36 = vshll.u32 %v7573_v56, 16  ;;  %v5534_v58 = vrot.slane %v10613_v30, 5  ;;  %v7506_v21 = vrot.slane %v7498_v37, 9  ;;  %v8942_v30 = vld [vmem:[%s11164_s3 + $0x630] sm:$0xff]  }
 0x183   : > { %v5884_v61 = vrot.slane %v5882_v35, 4  ;;  %v5538_v24 = vrot.slane %v10623_v53, 5  ;;  %v5891_v29 = vshll.u32 %v10691_v15, 16  ;;  %v5898_v62 = vrot.slane %v5896_v50, 4  ;;  %v8947_v35 = vld [vmem:[%s11164_s3 + $0x660] sm:$0xff]  }
 0x184   : > { %8547 = vmatpush3.bf16.msra.mxu0 %v8934_v0  ;;  %v7480_v0 = vcombine.low %v5259_v25, %v5273_v31  ;;  %v5531_v5 = vsel %vm9230_vm5, %v7504_v13, %v5530_v45  ;;  %v5905_v32 = vshll.u32 %v10700_v27, 16  ;;  %v7481_v6 = vcombine.low %v5287_v3, %v5301_v47 }
 0x185   : > { %8571 = vmatpush3.bf16.msra.mxu1 %v8935_v44  ;;  %8548 = vmatprep.subr.bf16.mxu0 %v8936_v22  ;;  %v5885_v44 = vshll.u32 %v7571_v52, 16  ;;  %v5315_v2 = vsel %vm9153_vm2, %v10673_v63, %v10661_v43  ;;  %v5329_v33 = vsel %vm9153_vm2, %v10682_v46, %v10675_v10  ;;  %v5539_v19 = vsel %vm9230_vm5, %v7506_v21, %v5538_v24  ;;  %v8945_v10 = vld [vmem:[%s11164_s3 + $0x668] sm:$0xff]  }
 0x186   : > { %8572 = vmatprep.subr.bf16.mxu1 %v8937_v55  ;;  %v5893_v20 = vrot.slane %v5891_v29, 5  ;;  %v5907_v41 = vrot.slane %v5905_v32, 5  ;;  %v7577_v52 = vld [vmem:[%s10226_s14 + $0x28] sm:$0xf] }
 0x187   : > { %v5887_v60 = vrot.slane %v5885_v44, 5  ;;  %v8956_v44 = vld [vmem:[%s10226_s14 + $0x10] ss:$8 sps:$4 sm:$0xff]   ;;  %v5927_v21 = vshll.u32 %v7577_v52, 16 }
 0x188   : > { %8549 = vmatpush3.bf16.msra.mxu0 %v8936_v22  ;;  %v5901_v22 = vrot.slane %v5899_v36, 5  ;;  %v8948_v36 = vld [vmem:[%s11164_s3 + $0x618] sm:$0xff]  }
 0x189   : > { %8573 = vmatpush3.bf16.msra.mxu1 %v8937_v55  ;;  %8550 = vmatprep.subr.bf16.mxu0 %v8938_v59  ;;  %v5527_v55 = vsel %vm9230_vm5, %v7503_v48, %v5526_v23  ;;  %v5888_v17 = vor.u32 %v5887_v60, %v5884_v61  ;;  %v7482_v48 = vcombine.low %v5315_v2, %v5329_v33  ;;  %v7579_v61 = vld [vmem:[%s10226_s14 + $0x30] sm:$0xf] }
 0x18a   : > { %8574 = vmatprep.subr.bf16.mxu1 %v8939_v12  ;;  %v5902_v53 = vor.u32 %v5901_v22, %v5898_v62  ;;  %v7525_v18 = vcombine.low %v5527_v55, %v5531_v5  ;;  %v7581_v62 = vld [vmem:[%s10226_s14 + $0x38] sm:$0xf]  ;;  %v10769_v5 = vld [vmem:[%s10226_s14 + $0x24] sm:$0x1]  ;;  %v5938_v2 = vshrl.u32 %v7579_v61, 16  ;;  %v5941_v33 = vshll.u32 %v7579_v61, 16 }
 0x18b   : > { %v5889_v25 = vrot.slane %v5888_v17, 4  ;;  %v8949_v55 = vld [vmem:[%s11164_s3 + $0x658] sm:$0xff]   ;;  %v8954_v61 = vld [vmem:[%s11164_s3 + $0x600] sm:$0xff]  }
 0x18c   : > { %8551 = vmatpush3.bf16.msra.mxu0 %v8938_v59  ;;  %v5535_v59 = vsel %vm9230_vm5, %v7505_v9, %v5534_v58  ;;  %v5903_v31 = vrot.slane %v5902_v53, 4  ;;  %v5924_v58 = vshrl.u32 %v7577_v52, 16  ;;  %v8952_v52 = vld [vmem:[%s11164_s3 + $0x608] sm:$0xff]  }
 0x18d   : > { %8575 = vmatpush3.bf16.msra.mxu1 %v8939_v12  ;;  %8584 = vmatprep.subr.bf16.mxu0 %v8940_v16  ;;  %v7526_v23 = vcombine.low %v5535_v59, %v5539_v19  ;;  %v5894_v45 = vsel %vm9153_vm2, %v5889_v25, %v5893_v20  ;;  %v10781_v25 = vld [vmem:[%s10226_s14 + $0x2c] sm:$0x1] }
 0x18e   : > { %8608 = vmatprep.subr.bf16.mxu1 %v8941_v49  ;;  %v5908_v9 = vsel %vm9153_vm2, %v5903_v31, %v5907_v41  ;;  %v5926_v20 = vrot.slane %v5924_v58, 4 }
 0x18f   : > { %v8266_v11 = vpop.f32.mrf.mxu0  ;;  %8553 = vmatmul.mubr.bf16.vlgmr.msra.gmra.mxu0 %v7480_v0 }
 0x190   : > { %v2827_v51 = vadd.f32 %v8266_v11, %v10542_v34  ;;  %8577 = vmatmul.mubr.bf16.vlgmr.msra.gmra.mxu1 %v7524_v4  ;;  %8585 = vmatpush3.bf16.msra.mxu0 %v8940_v16  ;;  %v8290_v12 = vpop.f32.mrf.mxu1  ;;  %v7575_v16 = vld [vmem:[%s10226_s14 + $0x20] sm:$0xf]  ;;  %v5952_v11 = vshrl.u32 %v7581_v62, 16 }
 0x191   : > { %8609 = vmatpush3.bf16.msra.mxu1 %v8941_v49  ;;  %v2794_v43 = vpop.f32.mrf.mxu0  ;;  %8586 = vmatprep.subr.bf16.mxu0 %v8942_v30  ;;  %v5910_v3 = vshrl.u32 %v7575_v16, 16  ;;  %v5913_v47 = vshll.u32 %v7575_v16, 16 }
 0x192   : > { %v2825_v57 = vadd.f32 %v2794_v43, %v10566_v8  ;;  %v10733_v63 = vadd.f32 %v8290_v12, %v2827_v51  ;;  %v3004_v34 = vpop.f32.mrf.mxu1  ;;  %8610 = vmatprep.subr.bf16.mxu1 %v8943_v42  ;;  %8556 = vmatprep.mubr.bf16.mxu0 %v7481_v6  ;;  %v8950_v6 = vld [vmem:[%s11164_s3 + $0x610] sm:$0xff]   ;;  %v5929_v51 = vrot.slane %v5927_v21, 5 }
 0x193   : > { %v8267_v37 = vpop.f32.mrf.mxu0  ;;  %8580 = vmatprep.mubr.bf16.mxu1 %v7525_v18  ;;  %v5915_v53 = vrot.slane %v5913_v47, 5  ;;  %v5955_v18 = vshll.u32 %v7581_v62, 16 }
 0x194   : > { %v2828_v46 = vadd.f32 %v8267_v37, %v10584_v38  ;;  %v10740_v13 = vadd.f32 %v3004_v34, %v2825_v57  ;;  %8587 = vmatpush3.bf16.msra.mxu0 %v8942_v30  ;;  %v8291_v8 = vpop.f32.mrf.mxu1  ;;  %v8946_v38 = vld [vmem:[%s11164_s3 + $0x620] sm:$0xff]   ;;  %v5912_v30 = vrot.slane %v5910_v3, 4  ;;  %v7585_v34 = vld [vmem:[%s10226_s14 + $0x48] sm:$0xf]  ;;  %v5943_v37 = vrot.slane %v5941_v33, 5 }
 0x195   : > { %8611 = vmatpush3.bf16.msra.mxu1 %v8943_v42  ;;  %v2797_v0 = vpop.f32.mrf.mxu0  ;;  %8588 = vmatprep.subr.bf16.mxu0 %v8944_v28  ;;  %v7583_v57 = vld [vmem:[%s10226_s14 + $0x40] sm:$0xf] }
 0x196   : > { %v2826_v49 = vadd.f32 %v2797_v0, %v10591_v39  ;;  %v10751_v4 = vadd.f32 %v8291_v8, %v2828_v46  ;;  %v3007_v56 = vpop.f32.mrf.mxu1  ;;  %8612 = vmatprep.subr.bf16.mxu1 %v8945_v10  ;;  %v7603_v39 = vcombine.low %v5894_v45, %v5908_v9  ;;  %v5930_v46 = vor.u32 %v5929_v51, %v5926_v20  ;;  %v10796_v45 = vld [vmem:[%s10226_s14 + $0x34] sm:$0x1]  ;;  %v10799_v9 = vld [vmem:[%s10226_s14 + $0x3c] sm:$0x1]  ;;  %v8957_v51 = vld [vmem:[%s10226_s14 + $0x20] ss:$8 sps:$4 sm:$0xff]  }
 0x197   : > { %v8270_v50 = vpop.f32.mrf.mxu0  ;;  %8557 = vmatmul.mubr.bf16.gmra.mxu0 %v7482_v48  ;;  %v5954_v48 = vrot.slane %v5952_v11, 4  ;;  %v5933_v8 = vshll.u32 %v10781_v25, 16  ;;  %v5966_v0 = vshrl.u32 %v7583_v57, 16  ;;  %v5947_v3 = vshll.u32 %v10796_v45, 16  ;;  %v8958_v11 = vld [vmem:[%s11164_s3 + $0x6b8] sm:$0xff]  }
 0x198   : > { %v2831_v60 = vadd.f32 %v8270_v50, %v10604_v7  ;;  %v10762_v24 = vadd.f32 %v3007_v56, %v2826_v49  ;;  %8589 = vmatpush3.bf16.msra.mxu0 %v8944_v28  ;;  %v8294_v29 = vpop.f32.mrf.mxu1  ;;  %8581 = vmatmul.mubr.bf16.gmra.mxu1 %v7526_v23  ;;  %v5919_v28 = vshll.u32 %v10769_v5, 16  ;;  %v5957_v23 = vrot.slane %v5955_v18, 5 }
 0x199   : > { %8613 = vmatpush3.bf16.msra.mxu1 %v8945_v10  ;;  %v2810_v22 = vpop.f32.mrf.mxu0  ;;  %8590 = vmatprep.subr.bf16.mxu0 %v8946_v38  ;;  %v5940_v10 = vrot.slane %v5938_v2, 4  ;;  %v5980_v49 = vshrl.u32 %v7585_v34, 16  ;;  %v5983_v56 = vshll.u32 %v7585_v34, 16  ;;  %v5961_v50 = vshll.u32 %v10799_v9, 16  ;;  %v7619_v34 = vld [vmem:[%s10226_s14 + $0x30] sm:$0xe] }
 0x19a   : > { %v2829_v17 = vadd.f32 %v2810_v22, %v10616_v14  ;;  %v10772_v32 = vadd.f32 %v8294_v29, %v2831_v60  ;;  %v3020_v7 = vpop.f32.mrf.mxu1  ;;  %8614 = vmatprep.subr.bf16.mxu1 %v8947_v35  ;;  %8600 = vmatprep.mubr.bf16.mxu0 %v8956_v44  ;;  %v5958_v47 = vor.u32 %v5957_v23, %v5954_v48  ;;  %v5931_v58 = vrot.slane %v5930_v46, 4  ;;  %v8960_v46 = vld [vmem:[%s10226_s14 + $0x30] ss:$8 sps:$4 sm:$0xff]  }
 0x19b   : > { %v8271_v42 = vpop.f32.mrf.mxu0  ;;  %8624 = vmatprep.mubr.bf16.mxu1 %v7603_v39  ;;  %v5944_v44 = vor.u32 %v5943_v37, %v5940_v10  ;;  %v5921_v39 = vrot.slane %v5919_v28, 5  ;;  %v5935_v21 = vrot.slane %v5933_v8, 5  ;;  %v5968_v60 = vrot.slane %v5966_v0, 4  ;;  %v8959_v28 = vld [vmem:[%s11164_s3 + $0x6b0] sm:$0xff]  }
 0x19c   : > { %v2832_v14 = vadd.f32 %v8271_v42, %v10626_v54  ;;  %v10778_v59 = vadd.f32 %v3020_v7, %v2829_v17  ;;  %8591 = vmatpush3.bf16.msra.mxu0 %v8946_v38  ;;  %v8295_v19 = vpop.f32.mrf.mxu1  ;;  %v8951_v54 = vld [vmem:[%s11164_s3 + $0x650] sm:$0xff]   ;;  %v5969_v38 = vshll.u32 %v7583_v57, 16  ;;  %v5982_v62 = vrot.slane %v5980_v49, 4  ;;  %v10816_v17 = vld [vmem:[%s10226_s14 + $0x44] sm:$0x1] }
 0x19d   : > { %8615 = vmatpush3.bf16.msra.mxu1 %v8947_v35  ;;  %v2813_v12 = vpop.f32.mrf.mxu0  ;;  %8592 = vmatprep.subr.bf16.mxu0 %v8948_v36  ;;  %v8953_v35 = vld [vmem:[%s11164_s3 + $0x648] sm:$0xff]   ;;  %v5985_v22 = vrot.slane %v5983_v56, 5  ;;  %v5959_v42 = vrot.slane %v5958_v47, 4  ;;  %v5936_v33 = vsel %vm9153_vm2, %v5931_v58, %v5935_v21  ;;  %v7616_v57 = vld [vmem:[%s10226_s14 + $0x18] sm:$0xe]  ;;  %v6173_v0 = vrot.slane %v10691_v15, 5 }
 0x19e   : > { %v2830_v31 = vadd.f32 %v2813_v12, %v10629_v26  ;;  %v10784_v41 = vadd.f32 %v8295_v19, %v2832_v14  ;;  %v3023_v43 = vpop.f32.mrf.mxu1  ;;  %8616 = vmatprep.subr.bf16.mxu1 %v8949_v55  ;;  %v5916_v26 = vor.u32 %v5915_v53, %v5912_v30  ;;  %v5971_v29 = vrot.slane %v5969_v38, 5  ;;  %v10819_v7 = vld [vmem:[%s10226_s14 + $0x4c] sm:$0x1] }
 0x19f   : > { %v5945_v30 = vrot.slane %v5944_v44, 4  ;;  %v5949_v53 = vrot.slane %v5947_v3, 5  ;;  %v5975_v14 = vshll.u32 %v10816_v17, 16  ;;  %v5986_v19 = vor.u32 %v5985_v22, %v5982_v62  ;;  %v8962_v15 = vld [vmem:[%s11164_s3 + $0x6a8] sm:$0xff]  }
 0x1a0   : > { %v10792_v16 = vadd.f32 %v3023_v43, %v2830_v31  ;;  %8593 = vmatpush3.bf16.msra.mxu0 %v8948_v36  ;;  %v5917_v36 = vrot.slane %v5916_v26, 4  ;;  %v5972_v18 = vor.u32 %v5971_v29, %v5968_v60  ;;  %v5989_v20 = vshll.u32 %v10819_v7, 16  ;;  %v7615_v43 = vld [vmem:[%s10226_s14 + $0x10] sm:$0xe]  ;;  %v7620_v26 = vld [vmem:[%s10226_s14 + $0x38] sm:$0xe] }
 0x1a1   : > { %8617 = vmatpush3.bf16.msra.mxu1 %v8949_v55  ;;  %8594 = vmatprep.subr.bf16.mxu0 %v8950_v6  ;;  %v8955_v55 = vld [vmem:[%s11164_s3 + $0x640] sm:$0xff]   ;;  %v5950_v12 = vsel %vm9153_vm2, %v5945_v30, %v5949_v53  ;;  %v5977_v37 = vrot.slane %v5975_v14, 5  ;;  %v5987_v48 = vrot.slane %v5986_v19, 4  ;;  %v7624_v49 = vrot.slane %v7616_v57, 9 }
 0x1a2   : > { %8618 = vmatprep.subr.bf16.mxu1 %v8951_v54  ;;  %v5922_v2 = vsel %vm9153_vm2, %v5917_v36, %v5921_v39  ;;  %v5973_v10 = vrot.slane %v5972_v18, 4  ;;  %v5991_v23 = vrot.slane %v5989_v20, 5  ;;  %v6177_v56 = vrot.slane %v10700_v27, 5 }
 0x1a3   : > { %v6189_v44 = vrot.slane %v10796_v45, 5  ;;  %v6193_v36 = vrot.slane %v10799_v9, 5 }
 0x1a4   : > { %8595 = vmatpush3.bf16.msra.mxu0 %v8950_v6  ;;  %v5963_v6 = vrot.slane %v5961_v50, 5  ;;  %v7628_v50 = vrot.slane %v7620_v26, 9  ;;  %v5978_v27 = vsel %vm9153_vm2, %v5973_v10, %v5977_v37  ;;  %v6178_v29 = vsel %vm9230_vm5, %v7624_v49, %v6177_v56  ;;  %v7617_v26 = vld [vmem:[%s10226_s14 + $0x20] sm:$0xe] }
 0x1a5   : > { %8619 = vmatpush3.bf16.msra.mxu1 %v8951_v54  ;;  %8596 = vmatprep.subr.bf16.mxu0 %v8952_v52  ;;  %v7604_v54 = vcombine.low %v5922_v2, %v5936_v33  ;;  %v6185_v49 = vrot.slane %v10781_v25, 5  ;;  %v6197_v56 = vrot.slane %v10816_v17, 5 }
 0x1a6   : > { %8620 = vmatprep.subr.bf16.mxu1 %v8953_v35  ;;  %v5964_v31 = vsel %vm9153_vm2, %v5959_v42, %v5963_v6  ;;  %v6194_v30 = vsel %vm9230_vm5, %v7628_v50, %v6193_v36  ;;  %v8963_v42 = vld [vmem:[%s11164_s3 + $0x6a0] sm:$0xff]  }
 0x1a7   : > { %v7605_v8 = vcombine.low %v5950_v12, %v5964_v31 }
 0x1a8   : > { %8597 = vmatpush3.bf16.msra.mxu0 %v8952_v52  ;;  %v7623_v52 = vrot.slane %v7615_v43, 9 }
 0x1a9   : > { %8621 = vmatpush3.bf16.msra.mxu1 %v8953_v35  ;;  %8598 = vmatprep.subr.bf16.mxu0 %v8954_v61  ;;  %v7627_v35 = vrot.slane %v7619_v34, 9 }
 0x1aa   : > { %8622 = vmatprep.subr.bf16.mxu1 %v8955_v55  ;;  %v6174_v60 = vsel %vm9230_vm5, %v7623_v52, %v6173_v0  ;;  %v7622_v52 = vld [vmem:[%s10226_s14 + $0x48] sm:$0xe]  ;;  %v6181_v0 = vrot.slane %v10769_v5, 5 }
 0x1ab   : > { %v6190_v40 = vsel %vm9230_vm5, %v7627_v35, %v6189_v44  ;;  %v7647_v33 = vcombine.low %v6174_v60, %v6178_v29  ;;  %v6201_v35 = vrot.slane %v10819_v7, 5  ;;  %v8967_v44 = vld [vmem:[%s11164_s3 + $0x680] sm:$0xff]  }
 0x1ac   : > { %8599 = vmatpush3.bf16.msra.mxu0 %v8954_v61  ;;  %v8961_v61 = vld [vmem:[%s10226_s14 + $0x40] ss:$8 sps:$4 sm:$0xff]   ;;  %v7649_v18 = vcombine.low %v6190_v40, %v6194_v30 }
 0x1ad   : > { %8623 = vmatpush3.bf16.msra.mxu1 %v8955_v55  ;;  %8632 = vmatprep.subr.bf16.mxu0 %v8958_v11 }
 0x1ae   : > { %8656 = vmatprep.subr.bf16.mxu1 %v8958_v11 }
 0x1af   : > { %v8314_v38 = vpop.f32.mrf.mxu0  ;;  %8601 = vmatmul.mubr.bf16.vlgmr.msra.gmra.mxu0 %v8957_v51 }
 0x1b0   : > { %v3208_v3 = vadd.f32 %v8314_v38, %v10733_v63  ;;  %8625 = vmatmul.mubr.bf16.vlgmr.msra.gmra.mxu1 %v7604_v54  ;;  %8633 = vmatpush3.bf16.msra.mxu0 %v8958_v11  ;;  %v8338_v47 = vpop.f32.mrf.mxu1  ;;  %v5992_v63 = vsel %vm9153_vm2, %v5987_v48, %v5991_v23  ;;  %v8966_v23 = vld [vmem:[%s11164_s3 + $0x688] sm:$0xff]  }
 0x1b1   : > { %8664 = vmatpush3.bf16.msra.mxu1 %v8958_v11  ;;  %v3175_v39 = vpop.f32.mrf.mxu0  ;;  %8634 = vmatprep.subr.bf16.mxu0 %v8959_v28  ;;  %v7606_v55 = vcombine.low %v5978_v27, %v5992_v63 }
 0x1b2   : > { %v3206_v45 = vadd.f32 %v3175_v39, %v10740_v13  ;;  %v10856_v58 = vadd.f32 %v8338_v47, %v3208_v3  ;;  %v3457_v21 = vpop.f32.mrf.mxu1  ;;  %8657 = vmatprep.subr.bf16.mxu1 %v8959_v28  ;;  %8604 = vmatprep.mubr.bf16.mxu0 %v8960_v46  ;;  %v7618_v46 = vld [vmem:[%s10226_s14 + $0x28] sm:$0xe]  ;;  %v7630_v47 = vrot.slane %v7622_v52, 9 }
 0x1b3   : > { %v8315_v9 = vpop.f32.mrf.mxu0  ;;  %8628 = vmatprep.mubr.bf16.mxu1 %v7605_v8  ;;  %v7621_v8 = vld [vmem:[%s10226_s14 + $0x40] sm:$0xe]  ;;  %v7626_v38 = vrot.slane %v7618_v46, 9  ;;  %s6648_s14 = sshll.u32 %s11225_s21, 3 }
 0x1b4   : > { %v3209_v62 = vadd.f32 %v8315_v9, %v10751_v4  ;;  %v10866_v13 = vadd.f32 %v3457_v21, %v3206_v45  ;;  %8635 = vmatpush3.bf16.msra.mxu0 %v8959_v28  ;;  %v8339_v22 = vpop.f32.mrf.mxu1  ;;  %v7629_v3 = vrot.slane %v7621_v8, 9  ;;  %v6202_v7 = vsel %vm9230_vm5, %v7630_v47, %v6201_v35  ;;  %s392_s18 = sadd.s32 %s6649_s17, %s6648_s14 }
 0x1b5   : > { %8665 = vmatpush3.bf16.msra.mxu1 %v8959_v28  ;;  %v3178_v53 = vpop.f32.mrf.mxu0  ;;  %8636 = vmatprep.subr.bf16.mxu0 %v8962_v15  ;;  %v6186_v25 = vsel %vm9230_vm5, %v7626_v38, %v6185_v49  ;;  %s6650_s9 = sshll.u32 %s392_s18, 2 }
 0x1b6   : > { %v3207_v6 = vadd.f32 %v3178_v53, %v10762_v24  ;;  %v10874_v2 = vadd.f32 %v8339_v22, %v3209_v62  ;;  %v3460_v4 = vpop.f32.mrf.mxu1  ;;  %8658 = vmatprep.subr.bf16.mxu1 %v8962_v15  ;;  %v8964_v24 = vld [vmem:[%s11164_s3 + $0x698] sm:$0xff]   ;;  %v6198_v17 = vsel %vm9230_vm5, %v7629_v3, %v6197_v56  ;;  %s394_s28 = scalar_lea.vmem %s11165_s4, %s6650_s9 }
 0x1b7   : > { %v8318_v11 = vpop.f32.mrf.mxu0  ;;  %8605 = vmatmul.mubr.bf16.gmra.mxu0 %v8961_v61  ;;  %v7650_v36 = vcombine.low %v6198_v17, %v6202_v7 }
 0x1b8   : > { %v3212_v14 = vadd.f32 %v8318_v11, %v10772_v32  ;;  %v10877_v19 = vadd.f32 %v3460_v4, %v3207_v6  ;;  %8637 = vmatpush3.bf16.msra.mxu0 %v8962_v15  ;;  %v8342_v20 = vpop.f32.mrf.mxu1  ;;  %8629 = vmatmul.mubr.bf16.gmra.mxu1 %v7606_v55 }
 0x1b9   : > { %8666 = vmatpush3.bf16.msra.mxu1 %v8962_v15  ;;  %v3191_v51 = vpop.f32.mrf.mxu0  ;;  %8638 = vmatprep.subr.bf16.mxu0 %v8963_v42 }
 0x1ba   : > { %v3210_v12 = vadd.f32 %v3191_v51, %v10778_v59  ;;  %v10883_v31 = vadd.f32 %v8342_v20, %v3212_v14  ;;  %v3473_v43 = vpop.f32.mrf.mxu1  ;;  %8659 = vmatprep.subr.bf16.mxu1 %v8963_v42  ;;  %8648 = vmatprep.mubr.bf16.mxu0 %v7647_v33  ;;  %v8965_v59 = vld [vmem:[%s11164_s3 + $0x690] sm:$0xff]  }
 0x1bb   : > { %v8319_v32 = vpop.f32.mrf.mxu0  ;;  %8652 = vmatprep.mubr.bf16.mxu1 %v7649_v18 }
 0x1bc   : > { %v3213_v54 = vadd.f32 %v8319_v32, %v10784_v41  ;;  %v10886_v28 = vadd.f32 %v3473_v43, %v3210_v12  ;;  %8639 = vmatpush3.bf16.msra.mxu0 %v8963_v42  ;;  %v8343_v57 = vpop.f32.mrf.mxu1 }
 0x1bd   : > { %8667 = vmatpush3.bf16.msra.mxu1 %v8963_v42  ;;  %v3194_v34 = vpop.f32.mrf.mxu0  ;;  %8640 = vmatprep.subr.bf16.mxu0 %v8964_v24 }
 0x1be   : > { %v3211_v10 = vadd.f32 %v3194_v34, %v10792_v16  ;;  %v10892_v37 = vadd.f32 %v8343_v57, %v3213_v54  ;;  %v3476_v41 = vpop.f32.mrf.mxu1  ;;  %8660 = vmatprep.subr.bf16.mxu1 %v8964_v24  ;;  %v7625_v16 = vrot.slane %v7617_v26, 9 }
 0x1c0   : > { %v10894_v48 = vadd.f32 %v3476_v41, %v3211_v10  ;;  %8641 = vmatpush3.bf16.msra.mxu0 %v8964_v24  ;;  %v6182_v5 = vsel %vm9230_vm5, %v7625_v16, %v6181_v0 }
 0x1c1   : > { %8668 = vmatpush3.bf16.msra.mxu1 %v8964_v24  ;;  %8642 = vmatprep.subr.bf16.mxu0 %v8965_v59  ;;  %v7648_v50 = vcombine.low %v6182_v5, %v6186_v25 }
 0x1c2   : > { %8661 = vmatprep.subr.bf16.mxu1 %v8965_v59 }
 0x1c4   : > { %8643 = vmatpush3.bf16.msra.mxu0 %v8965_v59 }
 0x1c5   : > { %8669 = vmatpush3.bf16.msra.mxu1 %v8965_v59  ;;  %8644 = vmatprep.subr.bf16.mxu0 %v8966_v23 }
 0x1c6   : > { %8662 = vmatprep.subr.bf16.mxu1 %v8966_v23 }
 0x1c8   : > { %8645 = vmatpush3.bf16.msra.mxu0 %v8966_v23 }
 0x1c9   : > { %8670 = vmatpush3.bf16.msra.mxu1 %v8966_v23  ;;  %8646 = vmatprep.subr.bf16.mxu0 %v8967_v44 }
 0x1ca   : > { %8663 = vmatprep.subr.bf16.mxu1 %v8967_v44 }
 0x1cc   : > { %8647 = vmatpush3.bf16.msra.mxu0 %v8967_v44 }
 0x1cd   : > { %8671 = vmatpush3.bf16.msra.mxu1 %v8967_v44 }
 0x1cf   : > { %v8362_v39 = vpop.f32.mrf.mxu0  ;;  %8649 = vmatmul.mubr.bf16.vlgmr.msra.gmra.mxu0 %v7648_v50 }
 0x1d0   : > { %v3700_v15 = vadd.f32 %v8362_v39, %v10856_v58  ;;  %8653 = vmatmul.mubr.bf16.vlgmr.msra.gmra.mxu1 %v7650_v36  ;;  %v8386_v27 = vpop.f32.mrf.mxu1 }
 0x1d1   : > { %v3667_v63 = vpop.f32.mrf.mxu0 }
 0x1d2   : > { %v3698_v45 = vadd.f32 %v3667_v63, %v10866_v13  ;;  %v3871_v21 = vadd.f32 %v8386_v27, %v3700_v15  ;;  %v3838_v9 = vpop.f32.mrf.mxu1 }
 0x1d3   : > { %v8363_v61 = vpop.f32.mrf.mxu0 }
 0x1d4   : > { %v3701_v1 = vadd.f32 %v8363_v61, %v10874_v2  ;;  %v3869_v60 = vadd.f32 %v3838_v9, %v3698_v45  ;;  %v8387_v29 = vpop.f32.mrf.mxu1 }
 0x1d5   : > { %v3670_v40 = vpop.f32.mrf.mxu0 }
 0x1d6   : > { %v3699_v62 = vadd.f32 %v3670_v40, %v10877_v19  ;;  %v10922_v22 = vadd.f32 %v8387_v29, %v3701_v1  ;;  %v3841_v55 = vpop.f32.mrf.mxu1 }
 0x1d7   : > { %v8366_v30 = vpop.f32.mrf.mxu0 }
 0x1d8   : > { %v3704_v58 = vadd.f32 %v8366_v30, %v10883_v31  ;;  %v10925_v53 = vadd.f32 %v3841_v55, %v3699_v62  ;;  %v8390_v42 = vpop.f32.mrf.mxu1 }
 0x1d9   : > { %v3683_v13 = vpop.f32.mrf.mxu0 }
 0x1da   : > { %v3702_v6 = vadd.f32 %v3683_v13, %v10886_v28  ;;  %v10928_v4 = vadd.f32 %v8390_v42, %v3704_v58  ;;  %v3854_v2 = vpop.f32.mrf.mxu1 }
 0x1db   : > { %v8367_v33 = vpop.f32.mrf.mxu0 }
 0x1dc   : > { %v3705_v11 = vadd.f32 %v8367_v33, %v10892_v37  ;;  %v10931_v18 = vadd.f32 %v3854_v2, %v3702_v6  ;;  %v8391_v14 = vpop.f32.mrf.mxu1 }
 0x1dd   : > { %v3686_v19 = vpop.f32.mrf.mxu0 }
 0x1de   : > { %v3703_v20 = vadd.f32 %v3686_v19, %v10894_v48  ;;  %v10934_v51 = vadd.f32 %v8391_v14, %v3705_v11  ;;  %v3857_v24 = vpop.f32.mrf.mxu1 }
 0x1e0   : > { %v10936_v12 = vadd.f32 %v3857_v24, %v3703_v20 }
 0x1ef   : > { %v8410_v31 = vpop.f32.mrf.mxu0 }
 0x1f0   : > { %v4153_v43 = vadd.f32 %v8410_v31, %v3871_v21  ;;  %v8434_v32 = vpop.f32.mrf.mxu1 }
 0x1f1   : > { %v4120_v54 = vpop.f32.mrf.mxu0 }
 0x1f2   : > { %v4151_v28 = vadd.f32 %v4120_v54, %v3869_v60  ;;  %v10938_v57 = vadd.f32 %v8434_v32, %v4153_v43  ;;  %v4330_v34 = vpop.f32.mrf.mxu1 }
 0x1f3   : > { %v10942_v10 = vpop.f32.mrf.mxu0 }
 0x1f4   : > { %v10940_v59 = vadd.f32 %v4330_v34, %v4151_v28  ;;  %v10944_v37 = vpop.f32.mrf.mxu1 }
 0x1f5   : > { %v10946_v41 = vpop.f32.mrf.mxu0 }
 0x1f6   : > { %v10948_v48 = vpop.f32.mrf.mxu1 }
 0x1f7   : > { %v8414_v23 = vpop.f32.mrf.mxu0 }
 0x1f8   : > { %v10950_v26 = vpop.f32.mrf.mxu1 }
 0x1f9   : > { %v4136_v46 = vpop.f32.mrf.mxu0 }
 0x1fa   : > { %v10952_v8 = vpop.f32.mrf.mxu1 }
 0x1fb   : > { %v8415_v52 = vpop.f32.mrf.mxu0 }
 0x1fc   : > { %v10954_v16 = vpop.f32.mrf.mxu1 }
 0x1fd   : > { %v4139_v0 = vpop.f32.mrf.mxu0 }
 0x1fe   : > { %v10956_v38 = vpop.f32.mrf.mxu1 }
 0x20f   : > { %v10958_v49 = vpop.f32.mrf.mxu0 }
 0x210   : > { %v10960_v56 = vpop.f32.mrf.mxu1 }
 0x211   : > { %v10962_v35 = vpop.f32.mrf.mxu0 }
 0x212   : > { %v10964_v44 = vpop.f32.mrf.mxu1 }
 0x213   : > { %v8459_v3 = vpop.f32.mrf.mxu0 }
 0x214   : > { %v10966_v47 = vpop.f32.mrf.mxu1 }
 0x215   : > { %v10968_v5 = vpop.f32.mrf.mxu0 }
 0x216   : > { %v10970_v25 = vpop.f32.mrf.mxu1 }
 0x217   : > { %v8462_v17 = vpop.f32.mrf.mxu0 }
 0x218   : > { %v10972_v7 = vpop.f32.mrf.mxu1 }
 0x219   : > { %v10974_v50 = vpop.f32.mrf.mxu0 }
 0x21a   : > { %v10976_v36 = vpop.f32.mrf.mxu1 }
 0x21b   : > { %v8463_v39 = vpop.f32.mrf.mxu0 }
 0x21c   : > { %v10978_v15 = vpop.f32.mrf.mxu1 }
 0x21d   : > { %v4519_v27 = vpop.f32.mrf.mxu0 }
 0x21e   : > { %v10980_v63 = vpop.f32.mrf.mxu1 }
 0x22f   : > { %v10982_v45 = vpop.f32.mrf.mxu0 }
 0x230   : > { %v10984_v21 = vpop.f32.mrf.mxu1 }
 0x231   : > { %v10986_v9 = vpop.f32.mrf.mxu0 }
 0x232   : > { %v10988_v61 = vpop.f32.mrf.mxu1 }
 0x233   : > { %v10990_v1 = vpop.f32.mrf.mxu0 }
 0x234   : > { %v10992_v60 = vpop.f32.mrf.mxu1 }
 0x235   : > { %v10994_v29 = vpop.f32.mrf.mxu0 }
 0x236   : > { %v10996_v40 = vpop.f32.mrf.mxu1 }
 0x237   : > { %v10998_v62 = vpop.f32.mrf.mxu0 }
 0x238   : > { %v11000_v55 = vpop.f32.mrf.mxu1 }
 0x239   : > { %v11002_v30 = vpop.f32.mrf.mxu0 }
 0x23a   : > { %v11004_v58 = vpop.f32.mrf.mxu1 }
 0x23b   : > { %11174 = vst [vmem:[#allocation2_spill] sm:$0xff] %v11004_v58  ;;  %v8511_v42 = vpop.f32.mrf.mxu0 }
 0x23c   : > { %v11006_v13 = vpop.f32.mrf.mxu1 }
 0x23d   : > { %v11008_v6 = vpop.f32.mrf.mxu0 }
 0x23e   : > { %v11010_v2 = vpop.f32.mrf.mxu1 }
 0x23f   : > { %11175 = vst [vmem:[#allocation3_spill] sm:$0xff] %v11010_v2 }
 0x24f   : > { %v11012_v33 = vpop.f32.mrf.mxu0 }
 0x250   : > { %v11014_v11 = vpop.f32.mrf.mxu1 }
 0x251   : > { %11176 = vst [vmem:[#allocation4_spill] sm:$0xff] %v11014_v11  ;;  %v11016_v14 = vpop.f32.mrf.mxu0 }
 0x252   : > { %v11018_v19 = vpop.f32.mrf.mxu1 }
 0x253   : > { %11177 = vst [vmem:[#allocation5_spill] sm:$0xff] %v11018_v19  ;;  %v11020_v20 = vpop.f32.mrf.mxu0 }
 0x254   : > { %v11022_v24 = vpop.f32.mrf.mxu1 }
 0x255   : > { %11178 = vst [vmem:[#allocation6_spill] sm:$0xff] %v11022_v24  ;;  %v11024_v31 = vpop.f32.mrf.mxu0 }
 0x256   : > { %11179 = vst [vmem:[#allocation7_spill] sm:$0xff] %v11024_v31  ;;  %v11026_v43 = vpop.f32.mrf.mxu1 }
 0x257   : > { %11180 = vst [vmem:[#allocation8_spill] sm:$0xff] %v11026_v43  ;;  %v11028_v32 = vpop.f32.mrf.mxu0 }
 0x258   : > { %v11030_v54 = vpop.f32.mrf.mxu1 }
 0x259   : > { %11181 = vst [vmem:[#allocation9_spill] sm:$0xff] %v11030_v54  ;;  %v11032_v28 = vpop.f32.mrf.mxu0  ;;  %v4154_v54 = vadd.f32 %v10942_v10, %v10922_v22 }
 0x25a   : > { %11182 = vst [vmem:[#allocation10_spill] sm:$0xff] %v11032_v28  ;;  %v11034_v34 = vpop.f32.mrf.mxu1 }
 0x25b   : > { %11183 = vst [vmem:[#allocation11_spill] sm:$0xff] %v11034_v34  ;;  %v11036_v11 = vpop.f32.mrf.mxu0  ;;  %v4157_v34 = vadd.f32 %v8414_v23, %v10928_v4 }
 0x25c   : > { %11184 = vst [vmem:[#allocation12_spill] sm:$0xff] %v11036_v11  ;;  %v11038_v2 = vpop.f32.mrf.mxu1  ;;  %v4158_v11 = vadd.f32 %v8415_v52, %v10934_v51  ;;  %v4533_v51 = vadd.f32 %v10958_v49, %v10938_v57 }
 0x25d   : > { %11185 = vst [vmem:[#allocation13_spill] sm:$0xff] %v11038_v2  ;;  %v11040_v19 = vpop.f32.mrf.mxu0  ;;  %v4152_v2 = vadd.f32 %v10946_v41, %v10925_v53  ;;  %v4367_v22 = vadd.f32 %v10950_v26, %v4157_v34  ;;  %v4531_v53 = vadd.f32 %v10962_v35, %v10940_v59  ;;  %v11197_v34 = vld [vmem:[#allocation4_spill] sm:$0xff] }
 0x25e   : > { %11186 = vst [vmem:[#allocation14_spill] sm:$0xff] %v11040_v19  ;;  %v11042_v58 = vpop.f32.mrf.mxu1  ;;  %v4368_v10 = vadd.f32 %v10954_v16, %v4158_v11  ;;  %v4815_v57 = vadd.f32 %v10960_v56, %v4533_v51  ;;  %v11194_v11 = vld [vmem:[#allocation7_spill] sm:$0xff]  ;;  %v11199_v51 = vld [vmem:[#allocation6_spill] sm:$0xff] }
 0x25f   : > { %11187 = vst [vmem:[#allocation15_spill] sm:$0xff] %v11042_v58  ;;  %v4155_v58 = vadd.f32 %v4136_v46, %v10931_v18  ;;  %v4362_v4 = vadd.f32 %v10948_v48, %v4152_v2  ;;  %v4813_v59 = vadd.f32 %v10964_v44, %v4531_v53 }
 0x260   : > { %v4538_v23 = vadd.f32 %v8463_v39, %v4368_v10  ;;  %v11198_v10 = vld [vmem:[#allocation5_spill] sm:$0xff] }
 0x261   : > { %v4532_v26 = vadd.f32 %v10968_v5, %v4362_v4  ;;  %v5023_v5 = vadd.f32 %v10986_v9, %v4813_v59 }
 0x263   : > { %v4814_v35 = vadd.f32 %v10970_v25, %v4532_v26  ;;  %v5194_v9 = vadd.f32 %v10988_v61, %v5023_v5 }
 0x26f   : > { %v11044_v24 = vpop.f32.mrf.mxu0 }
 0x270   : > { %11188 = vst [vmem:[#allocation16_spill] sm:$0xff] %v11044_v24  ;;  %v11046_v31 = vpop.f32.mrf.mxu1  ;;  %v4156_v24 = vadd.f32 %v4139_v0, %v10936_v12  ;;  %v4365_v12 = vadd.f32 %v10952_v8, %v4155_v58 }
 0x271   : > { %11189 = vst [vmem:[#allocation17_spill] sm:$0xff] %v11046_v31  ;;  %v11048_v43 = vpop.f32.mrf.mxu0  ;;  %v4364_v31 = vadd.f32 %v10944_v37, %v4154_v54  ;;  %v4537_v37 = vadd.f32 %v8462_v17, %v4367_v22  ;;  %v11196_v54 = vld [vmem:[#allocation14_spill] sm:$0xff] }
 0x272   : > { %11190 = vst [vmem:[#allocation18_spill] sm:$0xff] %v11048_v43  ;;  %v11052_v28 = vpop.f32.mrf.mxu1  ;;  %v4366_v41 = vadd.f32 %v10956_v38, %v4156_v24  ;;  %v4535_v48 = vadd.f32 %v10974_v50, %v4365_v12  ;;  %v4820_v38 = vadd.f32 %v10978_v15, %v4538_v23  ;;  %v11201_v12 = vld [vmem:[#allocation13_spill] sm:$0xff]  ;;  %v11202_v23 = vld [vmem:[#allocation8_spill] sm:$0xff] }
 0x273   : > { %v11060_v19 = vpop.f32.mrf.mxu0  ;;  %v4534_v18 = vadd.f32 %v8459_v3, %v4364_v31  ;;  %v4819_v0 = vadd.f32 %v10972_v7, %v4537_v37  ;;  %v5025_v3 = vadd.f32 %v10982_v45, %v4815_v57  ;;  %v5024_v7 = vadd.f32 %v10994_v29, %v4814_v35 }
 0x274   : > { %v11063_v43 = vpop.f32.mrf.mxu1  ;;  %v4536_v16 = vadd.f32 %v4519_v27, %v4366_v41  ;;  %v4817_v56 = vadd.f32 %v10976_v36, %v4535_v48  ;;  %v5030_v39 = vadd.f32 %v8511_v42, %v4820_v38  ;;  %v11205_v38 = vld [vmem:[#allocation11_spill] sm:$0xff] }
 0x275   : > { %v11074_v46 = vpop.f32.mrf.mxu0  ;;  %v4816_v8 = vadd.f32 %v10966_v47, %v4534_v18  ;;  %v5029_v47 = vadd.f32 %v10998_v62, %v4819_v0  ;;  %v5196_v45 = vadd.f32 %v10984_v21, %v5025_v3  ;;  %v5195_v58 = vadd.f32 %v10996_v40, %v5024_v7  ;;  %v11191_v21 = vld [vmem:[#allocation2_spill] sm:$0xff]  ;;  %v11200_v18 = vld [vmem:[#allocation9_spill] sm:$0xff]  ;;  %v11206_v3 = vld [vmem:[#allocation15_spill] sm:$0xff] }
 0x276   : > { %v11077_v52 = vpop.f32.mrf.mxu1  ;;  %v4818_v44 = vadd.f32 %v10980_v63, %v4536_v16  ;;  %v5027_v25 = vadd.f32 %v11002_v30, %v4817_v56  ;;  %v5201_v62 = vadd.f32 %v11006_v13, %v5030_v39  ;;  %v5476_v30 = vadd.f32 %v11016_v14, %v5194_v9  ;;  %v11193_v13 = vld [vmem:[#allocation12_spill] sm:$0xff]  ;;  %v11195_v14 = vld [vmem:[#allocation10_spill] sm:$0xff] }
 0x277   : > { %v8606_v49 = vpop.f32.mrf.mxu0  ;;  %v5026_v17 = vadd.f32 %v10990_v1, %v4816_v8  ;;  %v5200_v1 = vadd.f32 %v11000_v55, %v5029_v47  ;;  %v5478_v29 = vadd.f32 %v11012_v33, %v5196_v45  ;;  %v5477_v33 = vadd.f32 %v11194_v11, %v5195_v58  ;;  %v11203_v48 = vld [vmem:[#allocation16_spill] sm:$0xff] }
 0x278   : > { %v8630_v50 = vpop.f32.mrf.mxu1  ;;  %v5028_v15 = vadd.f32 %v11008_v6, %v4818_v44  ;;  %v5198_v61 = vadd.f32 %v11191_v21, %v5027_v25  ;;  %v5483_v2 = vadd.f32 %v11193_v13, %v5201_v62  ;;  %v5686_v4 = vadd.f32 %v11198_v10, %v5476_v30  ;;  %v11207_v45 = vld [vmem:[#allocation17_spill] sm:$0xff] }
 0x279   : > { %v5842_v27 = vpop.f32.mrf.mxu0  ;;  %v5197_v36 = vadd.f32 %v10992_v60, %v5026_v17  ;;  %v11192_v60 = vld [vmem:[#allocation3_spill] sm:$0xff]  ;;  %v5482_v55 = vadd.f32 %v11028_v32, %v5200_v1  ;;  %v5688_v22 = vadd.f32 %v11197_v34, %v5478_v29  ;;  %v5687_v26 = vadd.f32 %v11202_v23, %v5477_v33  ;;  %v11204_v57 = vld [vmem:[#allocation18_spill] sm:$0xff] }
 0x27a   : > { %v6124_v63 = vpop.f32.mrf.mxu1  ;;  %v5199_v6 = vadd.f32 %v11192_v60, %v5028_v15  ;;  %v5480_v31 = vadd.f32 %v11195_v14, %v5198_v61  ;;  %v5693_v41 = vadd.f32 %v11201_v12, %v5483_v2  ;;  %v5857_v59 = vadd.f32 %v11204_v57, %v5686_v4 }
 0x27b   : > { %v5479_v42 = vadd.f32 %v11020_v20, %v5197_v36  ;;  %v8607_v40 = vpop.f32.mrf.mxu0  ;;  %v5692_v32 = vadd.f32 %v11200_v18, %v5482_v55  ;;  %v5859_v16 = vadd.f32 %v11203_v48, %v5688_v22  ;;  %v5858_v47 = vadd.f32 %v11074_v46, %v5687_v26 }
 0x27c   : > { %v8631_v24 = vpop.f32.mrf.mxu1  ;;  %v5481_v20 = vadd.f32 %v11196_v54, %v5199_v6  ;;  %v5690_v35 = vadd.f32 %v11205_v38, %v5480_v31  ;;  %v5864_v56 = vadd.f32 %v8607_v40, %v5693_v41  ;;  %v6139_v36 = vadd.f32 %v11052_v28, %v5857_v59 }
 0x27d   : > { %v5689_v53 = vadd.f32 %v11199_v51, %v5479_v42  ;;  %v5845_v37 = vpop.f32.mrf.mxu0  ;;  %v5863_v17 = vadd.f32 %v8606_v49, %v5692_v32  ;;  %v6141_v9 = vadd.f32 %v11207_v45, %v5859_v16  ;;  %v6140_v29 = vadd.f32 %v11077_v52, %v5858_v47 }
 0x27e   : > { %v6127_v0 = vpop.f32.mrf.mxu1  ;;  %v5691_v5 = vadd.f32 %v11206_v3, %v5481_v20  ;;  %v5861_v7 = vadd.f32 %v5842_v27, %v5690_v35  ;;  %v6146_v58 = vadd.f32 %v8631_v24, %v5864_v56 }
 0x27f   : > { %v5860_v8 = vadd.f32 %v11060_v19, %v5689_v53  ;;  %v6145_v62 = vadd.f32 %v8630_v50, %v5863_v17 }
 0x280   : > { %v5862_v25 = vadd.f32 %v5845_v37, %v5691_v5  ;;  %v6143_v27 = vadd.f32 %v6124_v63, %v5861_v7 }
 0x281   : > { %v6142_v19 = vadd.f32 %v11063_v43, %v5860_v8 }
 0x282   : > { %v6144_v61 = vadd.f32 %v6127_v0, %v5862_v25 }
 0x28f   : > { %v8650_v44 = vpop.f32.mrf.mxu0 }
 0x290   : > { %v8654_v39 = vpop.f32.mrf.mxu1  ;;  %v6351_v30 = vadd.f32 %v8650_v44, %v6141_v9 }
 0x291   : > { %v6318_v15 = vpop.f32.mrf.mxu0  ;;  %v6355_v60 = vadd.f32 %v8654_v39, %v6145_v62 }
 0x292   : > { %v6334_v1 = vpop.f32.mrf.mxu1  ;;  %v6349_v42 = vadd.f32 %v6318_v15, %v6139_v36  ;;  %v6388_v14 = vmul.f32 %v6351_v30, %v6351_v30 }
 0x293   : > { %v8651_v49 = vpop.f32.mrf.mxu0  ;;  %v6353_v13 = vadd.f32 %v6334_v1, %v6143_v27  ;;  %v6392_v12 = vmul.f32 %v6355_v60, %v6355_v60 }
 0x294   : > { %v6352_v46 = vadd.f32 %v8651_v49, %v6142_v19  ;;  %v8655_v21 = vpop.f32.mrf.mxu1  ;;  %v6386_v52 = vmul.f32 %v6349_v42, %v6349_v42 }
 0x295   : > { %v6356_v28 = vadd.f32 %v8655_v21, %v6146_v58  ;;  %v6321_v43 = vpop.f32.mrf.mxu0  ;;  %v6390_v10 = vmul.f32 %v6353_v13, %v6353_v13 }
 0x296   : > { %v7669_v6 = vpack.c.bf16 %v6352_v46, %v6351_v30  ;;  %v6350_v55 = vadd.f32 %v6321_v43, %v6140_v29  ;;  %v6337_v50 = vpop.f32.mrf.mxu1  ;;  %v6389_v20 = vmul.f32 %v6352_v46, %v6352_v46 }
 0x297   : > { %v7679_v2 = vpack.c.bf16 %v6356_v28, %v6355_v60  ;;  %v6354_v40 = vadd.f32 %v6337_v50, %v6144_v61  ;;  %v6393_v23 = vmul.f32 %v6356_v28, %v6356_v28 }
 0x298   : > { %7681 = vst [vmem:[%s394_s28 + $0x8] sm:$0xff] %v7669_v6   ;;  %v7664_v11 = vpack.c.bf16 %v6350_v55, %v6349_v42  ;;  %v6373_v33 = vadd.f32 %v6350_v55, %v6349_v42  ;;  %v6387_v24 = vmul.f32 %v6350_v55, %v6350_v55 }
 0x299   : > { %7683 = vst [vmem:[%s394_s28 + $0x18] sm:$0xff] %v7679_v2   ;;  %v7674_v63 = vpack.c.bf16 %v6354_v40, %v6353_v13  ;;  %v6391_v18 = vmul.f32 %v6354_v40, %v6354_v40 }
 0x29a   : > { %7665 = vst [vmem:[%s394_s28] sm:$0xff] %v7664_v11   ;;  %v6374_v31 = vadd.f32 %v6373_v33, %v6351_v30  ;;  %v6394_v54 = vadd.f32 %v6387_v24, %v6386_v52 }
 0x29b   : > { %7682 = vst [vmem:[%s394_s28 + $0x10] sm:$0xff] %v7674_v63  }
 0x29c   : > { %v6395_v34 = vadd.f32 %v6394_v54, %v6388_v14  ;;  %v6375_v22 = vadd.f32 %v6374_v31, %v6352_v46 }
 0x29e   : > { %v6376_v4 = vadd.f32 %v6375_v22, %v6353_v13  ;;  %v6396_v51 = vadd.f32 %v6395_v34, %v6389_v20 }
 0x2a0   : > { %v6377_v53 = vadd.f32 %v6376_v4, %v6354_v40  ;;  %v6397_v32 = vadd.f32 %v6396_v51, %v6390_v10 }
 0x2a2   : > { %v6378_v41 = vadd.f32 %v6377_v53, %v6355_v60  ;;  %v6398_v37 = vadd.f32 %v6397_v32, %v6391_v18 }
 0x2a4   : > { %v6379_v26 = vadd.f32 %v6378_v41, %v6356_v28  ;;  %v6399_v48 = vadd.f32 %v6398_v37, %v6392_v12 }
 0x2a6   : > { %v6380_v16 = vrot.slane %v6379_v26, 4  ;;  %v6400_v57 = vadd.f32 %v6399_v48, %v6393_v23 }
 0x2a8   : > { %v6381_v59 = vadd.f32 %v6380_v16, %v6379_v26  ;;  %v6401_v8 = vrot.slane %v6400_v57, 4 }
 0x2aa   : > { %v6382_v0 = vrot.slane %v6381_v59, 2  ;;  %v6402_v38 = vadd.f32 %v6401_v8, %v6400_v57 }
 0x2ac   : > { %v6383_v35 = vadd.f32 %v6382_v0, %v6381_v59  ;;  %v6403_v3 = vrot.slane %v6402_v38, 2 }
 0x2ae   : > { %v6384_v5 = vrot.slane %v6383_v35, 1  ;;  %v6404_v17 = vadd.f32 %v6403_v3, %v6402_v38 }
 0x2b0   : > { %v6385_v56 = vadd.f32 %v6384_v5, %v6383_v35  ;;  %v6405_v44 = vrot.slane %v6404_v17, 1 }
 0x2b2   : > { %v6406_v47 = vadd.f32 %v6405_v44, %v6404_v17  ;;  %6407 = vst [vmem:[%s402_s16] sm:$0xff] %v6385_v56 }
 0x2b4   : > { %6408 = vst [vmem:[%s410_s13] sm:$0xff] %v6406_v47 }
 0x2b5 PF: > { %s17_s25 = sadd.s32 1, %s9006_s25   ;;  %s11208_s21 = smov %s8998_s23 }
 0x2b6   : > { %p14_p10 = scmp.ge.s32.totalorder %s17_s25, 18   ;;  %s11209_s22 = smov %s9002_s24 }
 0x2b7   : > { %s11210_s23 = smov %s11213_s26  ;;  %s11211_s24 = smov %s11217_s27 }
 0x2b8   :  { %16 = sbr.rel (!%p14_p10) target bundleno = 3 (0x3), region = 128 }

</bundles_post_ra>
